<compile_context>
chip_gen: v7x
topology: tpu7x:2x2x1
jax: 0.10.0
libtpu: 0.0.40
codegen_flags: <defaults>
</compile_context>

<pallas_src>
import functools

import jax
import jax.numpy as jnp
from jax.experimental import pallas as pl
from jax.experimental.pallas import tpu as pltpu

K = 5        # conv kernel size
PAD = 2      # conv padding ("same" for k=5)
C1 = 64      # conv1 out channels
C2 = 128     # conv2 out channels
FC1 = 256    # fc1 hidden size
LANE = 128   # TPU lane width


def _round_up(x, m):
    return (x + m - 1) // m * m


# ---------------------------------------------------------------- fused kernel

def cnn_fused_kernel(xp_ref, w1_ref, st1_ref, w2_ref, st2_ref, wc_ref,
                     fb_ref, wf2_ref, o_ref, *, ncp):
    # One grid step = BT samples.  Everything is a lane-dense 2-D matmul with
    # M = BT; per-channel BN scale/shift are per-column vectors broadcast over
    # the batch rows.
    x = xp_ref[...]                                              # (BT, LP) f32

    # conv1 (+ folded BN1, ReLU): im2col matmul against a dense (LP, L*C1) weight
    h1 = jnp.dot(x, w1_ref[...], preferred_element_type=jnp.float32)
    h1 = jnp.maximum(h1 * st1_ref[0:1, :] + st1_ref[1:2, :], 0.0)   # (BT, L*C1)

    # conv2 (+ folded BN2, ReLU): dense banded (Toeplitz) matmul, bf16 on MXU
    y2 = jnp.dot(h1.astype(jnp.bfloat16), w2_ref[...],
                 preferred_element_type=jnp.float32)                # (BT, L*C2)
    y2 = jnp.maximum(y2 * st2_ref[0:1, :] + st2_ref[1:2, :], 0.0)

    # AvgPool1d(2) + PyTorch flatten order + fc1 folded into one (L*C2, FC1)
    # weight; single K = L*C2 matmul + ReLU.
    # TODO(synk): Dropout(p=0.6) is identity in eval mode; training-mode RNG
    # dropout masking is not implemented.
    f1 = jnp.dot(y2.astype(jnp.bfloat16), wc_ref[...],
                 preferred_element_type=jnp.float32) + fb_ref[0:1, :FC1]
    f1 = jnp.maximum(f1, 0.0)                                       # (BT, FC1)

    # fc2 (output lane-padded to ncp; sliced to num_classes in the wrapper)
    out = jnp.dot(f1.astype(jnp.bfloat16), wf2_ref[...],
                  preferred_element_type=jnp.float32) + fb_ref[1:2, :ncp]
    o_ref[...] = out                                                # (BT, ncp)


# ---------------------------------------------------------------- wrapper

def fused_forward(xp, p, *, bt, ncp):
    Bp, LP = xp.shape
    lc1 = p["w1"].shape[1]
    lc2 = p["w2"].shape[1]
    fbw = p["fb"].shape[1]
    return pl.pallas_call(
        functools.partial(cnn_fused_kernel, ncp=ncp),
        out_shape=jax.ShapeDtypeStruct((Bp, ncp), jnp.float32),
        grid=(Bp // bt,),
        in_specs=[
            pl.BlockSpec((bt, LP), lambda b: (b, 0)),      # xp  (f32, lane-dense)
            pl.BlockSpec((LP, lc1), lambda b: (0, 0)),     # w1  (f32 im2col conv1)
            pl.BlockSpec((2, lc1), lambda b: (0, 0)),      # st1 (BN1 scale/shift)
            pl.BlockSpec((lc1, lc2), lambda b: (0, 0)),    # w2  (bf16 banded conv2)
            pl.BlockSpec((2, lc2), lambda b: (0, 0)),      # st2 (BN2 scale/shift)
            pl.BlockSpec((lc2, FC1), lambda b: (0, 0)),    # wc  (bf16 pool+fc1)
            pl.BlockSpec((2, fbw), lambda b: (0, 0)),      # fb  (fc1/fc2 biases)
            pl.BlockSpec((FC1, ncp), lambda b: (0, 0)),    # wf2 (bf16 fc2)
        ],
        out_specs=pl.BlockSpec((bt, ncp), lambda b: (b, 0)),
        compiler_params=pltpu.CompilerParams(
            dimension_semantics=("parallel",)),
    )(xp, p["w1"], p["st1"], p["w2"], p["st2"], p["wc"], p["fb"], p["wf2"])


def cnn_forward(x_ncl, params, num_classes):
    B, _, L = x_ncl.shape
    ncp = params["wf2"].shape[1]
    LP = params["w1"].shape[0]
    # Batch tile: multiple of 8 sublanes, capped at 256 rows (one full 256-wide
    # MXU pass on v6e/v7x; two 128-row passes on v5e).  Batch is zero-padded to
    # a multiple of the tile.
    bt = min(256, _round_up(B, 8))
    Bp = _round_up(B, bt)
    # Lane-dense input block: real samples in rows [:B], conv "same" padding and
    # lane padding to LP are the zero columns.
    xp = jnp.zeros((Bp, LP), x_ncl.dtype)
    xp = xp.at[:B, PAD:PAD + L].set(x_ncl[:, 0, :])
    out_padded = fused_forward(xp, params, bt=bt, ncp=ncp)          # (Bp, ncp)
    return out_padded[:B, :num_classes]


# ---------------------------------------------------------------- params

def fold_bn(conv_bias, gamma, beta, mean, var, eps=1e-5):
    scale = gamma / jnp.sqrt(var + eps)
    shift = (conv_bias - mean) * scale + beta
    return scale, shift


def init_params(key, input_length, num_classes):
    L = input_length
    assert L % 2 == 0, "AvgPool1d(2): input_length must be even"
    L2 = L // 2
    D = L2 * C2
    LP = _round_up(L + 2 * PAD, LANE)            # lane-dense padded input width
    ncp = _round_up(num_classes, LANE)           # lane-padded logits width
    fbw = max(FC1, ncp)

    ks = jax.random.split(key, 16)
    # PyTorch-shaped weights; deterministic synthetic init.
    conv1_w = 0.20 * jax.random.normal(ks[0], (C1, 1, K), jnp.float32)
    conv1_b = 0.10 * jax.random.normal(ks[1], (C1,), jnp.float32)
    conv2_w = 0.05 * jax.random.normal(ks[2], (C2, C1, K), jnp.float32)
    conv2_b = 0.10 * jax.random.normal(ks[3], (C2,), jnp.float32)
    g1 = 1.0 + 0.1 * jax.random.normal(ks[4], (C1,), jnp.float32)
    b1 = 0.1 * jax.random.normal(ks[5], (C1,), jnp.float32)
    m1 = 0.1 * jax.random.normal(ks[6], (C1,), jnp.float32)
    v1 = 1.0 + 0.5 * jax.random.uniform(ks[7], (C1,), jnp.float32)
    g2 = 1.0 + 0.1 * jax.random.normal(ks[8], (C2,), jnp.float32)
    b2 = 0.1 * jax.random.normal(ks[9], (C2,), jnp.float32)
    m2 = 0.1 * jax.random.normal(ks[10], (C2,), jnp.float32)
    v2 = 1.0 + 0.5 * jax.random.uniform(ks[11], (C2,), jnp.float32)
    fc1_w = 0.05 * jax.random.normal(ks[12], (FC1, D), jnp.float32)
    fc1_b = 0.10 * jax.random.normal(ks[13], (FC1,), jnp.float32)
    fc2_w = 0.05 * jax.random.normal(ks[14], (num_classes, FC1), jnp.float32)
    fc2_b = 0.10 * jax.random.normal(ks[15], (num_classes,), jnp.float32)

    s1, t1 = fold_bn(conv1_b, g1, b1, m1, v1)
    s2, t2 = fold_bn(conv2_b, g2, b2, m2, v2)

    # conv1 as an im2col matmul weight: W1[i, l*C1 + c] = conv1_w[c, 0, k] when
    # i == l + k (input already carries the "same" zero padding).
    w1_kc = jnp.transpose(conv1_w[:, 0, :], (1, 0))                 # (K, C1)
    li = jnp.arange(L)
    W1 = jnp.zeros((LP, L, C1), jnp.float32)
    for k in range(K):
        W1 = W1.at[li + k, li, :].set(jnp.broadcast_to(w1_kc[k], (L, C1)))
    W1 = W1.reshape(LP, L * C1)

    # conv2 as a dense banded (Toeplitz) matmul weight:
    #   W2[j*C1 + c1, l*C2 + c2] = conv2_w[c2, c1, k] where j = l + k - PAD.
    w2_kcc = jnp.transpose(conv2_w, (2, 1, 0))                      # (K, C1, C2)
    W2 = jnp.zeros((L, C1, L, C2), jnp.float32)
    for k in range(K):
        lo, hi = max(0, PAD - k), min(L, L + PAD - k)
        ls = jnp.arange(lo, hi)
        W2 = W2.at[ls + k - PAD, :, ls, :].set(
            jnp.broadcast_to(w2_kcc[k], (hi - lo, C1, C2)))
    W2 = W2.reshape(L * C1, L * C2).astype(jnp.bfloat16)

    # BN-folded per-column scale/shift, tiled over positions (columns are
    # l-major: index = l*C + c).
    st1 = jnp.stack([jnp.tile(s1, L), jnp.tile(t1, L)])             # (2, L*C1)
    st2 = jnp.stack([jnp.tile(s2, L), jnp.tile(t2, L)])             # (2, L*C2)

    # AvgPool1d(2) + PyTorch flatten order (index = c2*L2 + p) folded into fc1:
    #   Wc[l*C2 + c2, f] = 0.5 * fc1_w[f, c2*L2 + l//2]
    Wc = jnp.transpose(fc1_w.reshape(FC1, C2, L2), (2, 1, 0))       # (L2, C2, FC1)
    Wc = 0.5 * jnp.repeat(Wc, 2, axis=0)                            # (L,  C2, FC1)
    Wc = Wc.reshape(L * C2, FC1).astype(jnp.bfloat16)

    # fc2 weight lane-padded to ncp columns; both fc biases in a single array.
    Wf2 = jnp.pad(fc2_w.T, ((0, 0), (0, ncp - num_classes))).astype(jnp.bfloat16)
    fb = jnp.zeros((2, fbw), jnp.float32)
    fb = fb.at[0, :FC1].set(fc1_b)
    fb = fb.at[1, :num_classes].set(fc2_b)

    return dict(w1=W1, st1=st1, w2=W2, st2=st2, wc=Wc, fb=fb, wf2=Wf2)


if __name__ == "__main__":
    input_length = 16
    num_classes = 10
    batch = 2

    key = jax.random.PRNGKey(0)
    kx, kp = jax.random.split(key)
    x = jax.random.normal(kx, (batch, 1, input_length), jnp.float32)  # NCL input
    params = init_params(kp, input_length, num_classes)

    out = cnn_forward(x, params, num_classes)
    jax.block_until_ready(out)
    assert out.shape == (batch, num_classes)
    assert out.dtype == jnp.float32
    print("KERNEL_OK")
</pallas_src>

<mosaic_0001>
module attributes {stable_mosaic.version = 11 : i64} {
  func.func @cnn_fused_kernel(%arg0: i32, %arg1: memref<8x128xf32, #tpu.memory_space<vmem>>, %arg2: memref<128x1024xf32, #tpu.memory_space<vmem>>, %arg3: memref<2x1024xf32, #tpu.memory_space<vmem>>, %arg4: memref<1024x2048xbf16, #tpu.memory_space<vmem>>, %arg5: memref<2x2048xf32, #tpu.memory_space<vmem>>, %arg6: memref<2048x256xbf16, #tpu.memory_space<vmem>>, %arg7: memref<2x256xf32, #tpu.memory_space<vmem>>, %arg8: memref<256x128xbf16, #tpu.memory_space<vmem>>, %arg9: memref<8x128xf32, #tpu.memory_space<vmem>>) attributes {dimension_semantics = [#tpu.dimension_semantics<parallel>], iteration_bounds = array<i64: 1>, scalar_prefetch = 0 : i64, scratch_operands = 0 : i64, tpu.core_type = #tpu.core_type<tc>, window_params = [{transform_indices = @transform_0, window_bounds = array<i64: 8, 128>}, {pipeline_mode = #tpu.pipeline_mode<synchronous>, transform_indices = @transform_1, window_bounds = array<i64: 128, 1024>}, {pipeline_mode = #tpu.pipeline_mode<synchronous>, transform_indices = @transform_2, window_bounds = array<i64: 2, 1024>}, {pipeline_mode = #tpu.pipeline_mode<synchronous>, transform_indices = @transform_3, window_bounds = array<i64: 1024, 2048>}, {pipeline_mode = #tpu.pipeline_mode<synchronous>, transform_indices = @transform_4, window_bounds = array<i64: 2, 2048>}, {pipeline_mode = #tpu.pipeline_mode<synchronous>, transform_indices = @transform_5, window_bounds = array<i64: 2048, 256>}, {pipeline_mode = #tpu.pipeline_mode<synchronous>, transform_indices = @transform_6, window_bounds = array<i64: 2, 256>}, {pipeline_mode = #tpu.pipeline_mode<synchronous>, transform_indices = @transform_7, window_bounds = array<i64: 256, 128>}, {transform_indices = @transform_8, window_bounds = array<i64: 8, 128>}]} {
    %c0 = arith.constant 0 : index
    %c0_0 = arith.constant 0 : index
    %0 = vector.load %arg1[%c0, %c0_0] : memref<8x128xf32, #tpu.memory_space<vmem>>, vector<8x128xf32>
    %c0_1 = arith.constant 0 : index
    %c0_2 = arith.constant 0 : index
    %1 = vector.load %arg2[%c0_1, %c0_2] : memref<128x1024xf32, #tpu.memory_space<vmem>>, vector<128x1024xf32>
    %cst = arith.constant dense<0.000000e+00> : vector<8x1024xf32>
    %2 = tpu.matmul %0, %1, %cst {dimension_numbers = #tpu.dot_dimension_numbers<[1], [0], [0], [1], [0, 0, 1, 1], [], []>} : vector<8x128xf32>, vector<128x1024xf32>, vector<8x1024xf32> -> vector<8x1024xf32>
    %c0_3 = arith.constant 0 : index
    %c0_4 = arith.constant 0 : index
    %3 = vector.load %arg3[%c0_3, %c0_4] : memref<2x1024xf32, #tpu.memory_space<vmem>>, vector<1x1024xf32>
    %4 = vector.broadcast %3 : vector<1x1024xf32> to vector<8x1024xf32>
    %5 = arith.mulf %2, %4 : vector<8x1024xf32>
    %c1 = arith.constant 1 : index
    %c0_5 = arith.constant 0 : index
    %6 = vector.load %arg3[%c1, %c0_5] : memref<2x1024xf32, #tpu.memory_space<vmem>>, vector<1x1024xf32>
    %7 = vector.broadcast %6 : vector<1x1024xf32> to vector<8x1024xf32>
    %8 = arith.addf %5, %7 : vector<8x1024xf32>
    %cst_6 = arith.constant 0.000000e+00 : f32
    %9 = vector.broadcast %cst_6 : f32 to vector<8x1024xf32>
    %10 = arith.maximumf %8, %9 : vector<8x1024xf32>
    %11 = arith.truncf %10 : vector<8x1024xf32> to vector<8x1024xbf16>
    %c0_7 = arith.constant 0 : index
    %c0_8 = arith.constant 0 : index
    %12 = vector.load %arg4[%c0_7, %c0_8] : memref<1024x2048xbf16, #tpu.memory_space<vmem>>, vector<1024x2048xbf16>
    %cst_9 = arith.constant dense<0.000000e+00> : vector<8x2048xf32>
    %13 = tpu.matmul %11, %12, %cst_9 {dimension_numbers = #tpu.dot_dimension_numbers<[1], [0], [0], [1], [0, 0, 1, 1], [], []>} : vector<8x1024xbf16>, vector<1024x2048xbf16>, vector<8x2048xf32> -> vector<8x2048xf32>
    %c0_10 = arith.constant 0 : index
    %c0_11 = arith.constant 0 : index
    %14 = vector.load %arg5[%c0_10, %c0_11] : memref<2x2048xf32, #tpu.memory_space<vmem>>, vector<1x2048xf32>
    %15 = vector.broadcast %14 : vector<1x2048xf32> to vector<8x2048xf32>
    %16 = arith.mulf %13, %15 : vector<8x2048xf32>
    %c1_12 = arith.constant 1 : index
    %c0_13 = arith.constant 0 : index
    %17 = vector.load %arg5[%c1_12, %c0_13] : memref<2x2048xf32, #tpu.memory_space<vmem>>, vector<1x2048xf32>
    %18 = vector.broadcast %17 : vector<1x2048xf32> to vector<8x2048xf32>
    %19 = arith.addf %16, %18 : vector<8x2048xf32>
    %cst_14 = arith.constant 0.000000e+00 : f32
    %20 = vector.broadcast %cst_14 : f32 to vector<8x2048xf32>
    %21 = arith.maximumf %19, %20 : vector<8x2048xf32>
    %22 = arith.truncf %21 : vector<8x2048xf32> to vector<8x2048xbf16>
    %c0_15 = arith.constant 0 : index
    %c0_16 = arith.constant 0 : index
    %23 = vector.load %arg6[%c0_15, %c0_16] : memref<2048x256xbf16, #tpu.memory_space<vmem>>, vector<2048x256xbf16>
    %cst_17 = arith.constant dense<0.000000e+00> : vector<8x256xf32>
    %24 = tpu.matmul %22, %23, %cst_17 {dimension_numbers = #tpu.dot_dimension_numbers<[1], [0], [0], [1], [0, 0, 1, 1], [], []>} : vector<8x2048xbf16>, vector<2048x256xbf16>, vector<8x256xf32> -> vector<8x256xf32>
    %c0_18 = arith.constant 0 : index
    %c0_19 = arith.constant 0 : index
    %25 = vector.load %arg7[%c0_18, %c0_19] : memref<2x256xf32, #tpu.memory_space<vmem>>, vector<1x256xf32>
    %26 = vector.broadcast %25 : vector<1x256xf32> to vector<8x256xf32>
    %27 = arith.addf %24, %26 : vector<8x256xf32>
    %cst_20 = arith.constant 0.000000e+00 : f32
    %28 = vector.broadcast %cst_20 : f32 to vector<8x256xf32>
    %29 = arith.maximumf %27, %28 : vector<8x256xf32>
    %30 = arith.truncf %29 : vector<8x256xf32> to vector<8x256xbf16>
    %c0_21 = arith.constant 0 : index
    %c0_22 = arith.constant 0 : index
    %31 = vector.load %arg8[%c0_21, %c0_22] : memref<256x128xbf16, #tpu.memory_space<vmem>>, vector<256x128xbf16>
    %cst_23 = arith.constant dense<0.000000e+00> : vector<8x128xf32>
    %32 = tpu.matmul %30, %31, %cst_23 {dimension_numbers = #tpu.dot_dimension_numbers<[1], [0], [0], [1], [0, 0, 1, 1], [], []>} : vector<8x256xbf16>, vector<256x128xbf16>, vector<8x128xf32> -> vector<8x128xf32>
    %c1_24 = arith.constant 1 : index
    %c0_25 = arith.constant 0 : index
    %33 = vector.load %arg7[%c1_24, %c0_25] : memref<2x256xf32, #tpu.memory_space<vmem>>, vector<1x128xf32>
    %34 = vector.broadcast %33 : vector<1x128xf32> to vector<8x128xf32>
    %35 = arith.addf %32, %34 : vector<8x128xf32>
    %c0_26 = arith.constant 0 : index
    %c0_27 = arith.constant 0 : index
    %36 = vector.load %arg9[%c0_26, %c0_27] : memref<8x128xf32, #tpu.memory_space<vmem>>, vector<8x128xf32>
    tpu.vector_store %arg9[%c0_26, %c0_27], %35 {strides = array<i32>} : memref<8x128xf32, #tpu.memory_space<vmem>>, vector<8x128xf32>,
    return
  }
  func.func @transform_0(%arg0: i32) -> (i32, i32) {
    %c0_i32 = arith.constant 0 : i32
    %c0_i32_0 = arith.constant 0 : i32
    return %arg0, %c0_i32 : i32, i32
  }
  func.func @transform_1(%arg0: i32) -> (i32, i32) {
    %c0_i32 = arith.constant 0 : i32
    %c0_i32_0 = arith.constant 0 : i32
    %c0_i32_1 = arith.constant 0 : i32
    return %c0_i32, %c0_i32_0 : i32, i32
  }
  func.func @transform_2(%arg0: i32) -> (i32, i32) {
    %c0_i32 = arith.constant 0 : i32
    %c0_i32_0 = arith.constant 0 : i32
    %c0_i32_1 = arith.constant 0 : i32
    return %c0_i32, %c0_i32_0 : i32, i32
  }
  func.func @transform_3(%arg0: i32) -> (i32, i32) {
    %c0_i32 = arith.constant 0 : i32
    %c0_i32_0 = arith.constant 0 : i32
    %c0_i32_1 = arith.constant 0 : i32
    return %c0_i32, %c0_i32_0 : i32, i32
  }
  func.func @transform_4(%arg0: i32) -> (i32, i32) {
    %c0_i32 = arith.constant 0 : i32
    %c0_i32_0 = arith.constant 0 : i32
    %c0_i32_1 = arith.constant 0 : i32
    return %c0_i32, %c0_i32_0 : i32, i32
  }
  func.func @transform_5(%arg0: i32) -> (i32, i32) {
    %c0_i32 = arith.constant 0 : i32
    %c0_i32_0 = arith.constant 0 : i32
    %c0_i32_1 = arith.constant 0 : i32
    return %c0_i32, %c0_i32_0 : i32, i32
  }
  func.func @transform_6(%arg0: i32) -> (i32, i32) {
    %c0_i32 = arith.constant 0 : i32
    %c0_i32_0 = arith.constant 0 : i32
    %c0_i32_1 = arith.constant 0 : i32
    return %c0_i32, %c0_i32_0 : i32, i32
  }
  func.func @transform_7(%arg0: i32) -> (i32, i32) {
    %c0_i32 = arith.constant 0 : i32
    %c0_i32_0 = arith.constant 0 : i32
    %c0_i32_1 = arith.constant 0 : i32
    return %c0_i32, %c0_i32_0 : i32, i32
  }
  func.func @transform_8(%arg0: i32) -> (i32, i32) {
    %c0_i32 = arith.constant 0 : i32
    %c0_i32_0 = arith.constant 0 : i32
    return %arg0, %c0_i32 : i32, i32
  }
}

</mosaic_0001>

<bundles_post_ra>
// kernel: tpu_custom_call.1
= control target key start
LH: loop header
LB: loop body
LE: loop exit
PB: predicated region body
PF: predicated region fallthrough
CT: control target
= control target key end

     0   :  { %13 = vsyncpa [#allocation3], 0  ;;  %s13099_s0 = inlined_call_operand.hbm [shape: f32[8,128], index: 0, kind: input, shape index: {}]   ;;  %s13100_s1 = inlined_call_operand.hbm [shape: f32[128,1024], index: 1, kind: input, shape index: {}]   ;;  %s13101_s2 = inlined_call_operand.hbm [shape: f32[2,1024], index: 2, kind: input, shape index: {}]   ;;  %s13102_s3 = inlined_call_operand.hbm [shape: bf16[1024,2048], index: 3, kind: input, shape index: {}]   ;;  %s13103_s4 = inlined_call_operand.hbm [shape: f32[2,2048], index: 4, kind: input, shape index: {}]   ;;  %s13104_s5 = inlined_call_operand.hbm [shape: bf16[2048,256], index: 5, kind: input, shape index: {}]   ;;  %s13105_s6 = inlined_call_operand.hbm [shape: f32[2,256], index: 6, kind: input, shape index: {}]   ;;  %s13106_s7 = inlined_call_operand.hbm [shape: bf16[256,128], index: 7, kind: input, shape index: {}]   ;;  %s13107_s8 = inlined_call_operand.hbm [shape: f32[8,128], index: 8, kind: output, shape index: {}]  }
   0x1   :  { %14 = vsyncpa [#allocation6], 0 }
   0x2   :  { %15 = vsyncpa [#allocation9], 0 }
   0x3   :  { %16 = vsyncpa [#allocation12], 0 }
   0x4   :  { %17 = vsyncpa [#allocation15], 0 }
   0x5   :  { %18 = vsyncpa [#allocation4], 0  ;;  %s12624_s27 = smov [#allocation5]   ;;  %s12414_s9 = scalar_lea.hbm %s13100_s1, 16384 }
   0x6   :  { %s34_s28 = sshll.u32 %s12624_s27, 4  ;;  %p12415_p0 = scmp.ne.s32.totalorder %s13100_s1, %s12414_s9  ;;  %s35_s28 = int_to_ptr.vmem [resolvable:$true] %s34_s28 }
   0x7   :  { %p12418_p1 = scmp.lt.u32.totalorder %s12414_s9, %s13100_s1 }
   0x9   :  { %p12420_p2 = pnand %p12418_p1, %p12415_p0 }
   0xb   :  { %12423 = shalt.err (!%p12420_p2)
}
   0xc   :  { %s12424_s14 = scalar_lea.vmem %s35_s28, 16384  ;;  %p12429_p4 = scmp.lt.s32.totalorder %s35_s28, %s35_s28 }
   0xd   :  { %p12425_p3 = scmp.ne.s32.totalorder %s35_s28, %s12424_s14  ;;  %p12430_p5 = scmp.lt.s32.totalorder %s12424_s14, %s12424_s14 }
   0xf   :  { %p12431_p6 = por %p12430_p5, %p12429_p4 }
  0x11   :  { %p12432_p7 = pnand %p12431_p6, %p12425_p3 }
  0x13   :  { %12435 = shalt.err (!%p12432_p7)
}
  0x14   :  { %s12625_s15 = smov 1024   ;;  %s12626_s16 = smov 64  }
  0x15   :  { %40 = dma.hbm_to_vmem [thread:$0]  %s13100_s1, 16384, %s35_s28, [#allocation6], %s12625_s15, %s12625_s15, %s12626_s16  }
  0x16   :  { %s12627_s19 = smov [#allocation8]   ;;  %s12628_s21 = smov [#allocation11]  }
  0x17   :  { %s56_s20 = sshll.u32 %s12627_s19, 4  ;;  %s78_s22 = sshll.u32 %s12628_s21, 4  ;;  %s57_s20 = int_to_ptr.vmem [resolvable:$true] %s56_s20  ;;  %s79_s22 = int_to_ptr.vmem [resolvable:$true] %s78_s22 }
  0x18   :  { %s12436_s25 = scalar_lea.hbm %s13102_s3, 131072 }
  0x19   :  { %p12437_p8 = scmp.ne.s32.totalorder %s13102_s3, %s12436_s25  ;;  %p12440_p9 = scmp.lt.u32.totalorder %s12436_s25, %s13102_s3 }
  0x1b   :  { %p12442_p10 = pnand %p12440_p9, %p12437_p8 }
  0x1d   :  { %12445 = shalt.err (!%p12442_p10)
}
  0x1e   :  { %s12446_s1 = scalar_lea.vmem %s57_s20, 131072  ;;  %p12451_p12 = scmp.lt.s32.totalorder %s57_s20, %s57_s20 }
  0x1f   :  { %p12447_p11 = scmp.ne.s32.totalorder %s57_s20, %s12446_s1  ;;  %p12452_p13 = scmp.lt.s32.totalorder %s12446_s1, %s12446_s1 }
  0x21   :  { %p12453_p0 = por %p12452_p13, %p12451_p12 }
  0x23   :  { %p12454_p1 = pnand %p12453_p0, %p12447_p11 }
  0x25   :  { %12457 = shalt.err (!%p12454_p1)
}
  0x26   :  { %62 = dma.hbm_to_vmem [thread:$0]  %s13102_s3, 131072, %s57_s20, [#allocation9], %s12625_s15, %s12625_s15, %s12626_s16  }
  0x27   :  { %s12458_s12 = scalar_lea.hbm %s13104_s5, 32768 }
  0x28   :  { %p12459_p2 = scmp.ne.s32.totalorder %s13104_s5, %s12458_s12  ;;  %p12462_p3 = scmp.lt.u32.totalorder %s12458_s12, %s13104_s5 }
  0x2a   :  { %p12464_p4 = pnand %p12462_p3, %p12459_p2 }
  0x2c   :  { %12467 = shalt.err (!%p12464_p4)
}
  0x2d   :  { %s12468_s19 = scalar_lea.vmem %s79_s22, 32768  ;;  %p12473_p6 = scmp.lt.s32.totalorder %s79_s22, %s79_s22 }
  0x2e   :  { %p12469_p5 = scmp.ne.s32.totalorder %s79_s22, %s12468_s19  ;;  %p12474_p7 = scmp.lt.s32.totalorder %s12468_s19, %s12468_s19 }
  0x30   :  { %p12475_p8 = por %p12474_p7, %p12473_p6 }
  0x32   :  { %p12476_p9 = pnand %p12475_p8, %p12469_p5 }
  0x34   :  { %12479 = shalt.err (!%p12476_p9)
}
  0x35   :  { %s12629_s3 = smov 128   ;;  %s12630_s15 = smov 8  }
  0x36   :  { %84 = dma.hbm_to_vmem [thread:$0]  %s13104_s5, 32768, %s79_s22, [#allocation12], %s12629_s3, %s12629_s3, %s12630_s15  }
  0x37   :  { %s12631_s23 = smov [#allocation2]   ;;  %s12632_s25 = smov [#allocation7]  }
  0x38   :  { %s25_s24 = sshll.u32 %s12631_s23, 4  ;;  %s47_s26 = sshll.u32 %s12632_s25, 4  ;;  %s26_s24 = int_to_ptr.vmem [resolvable:$true] %s25_s24  ;;  %s48_s26 = int_to_ptr.vmem [resolvable:$true] %s47_s26 }
  0x39   :  { %s12480_s30 = scalar_lea.hbm %s13099_s0, 128 }
  0x3a   :  { %p12481_p10 = scmp.ne.s32.totalorder %s13099_s0, %s12480_s30  ;;  %p12484_p11 = scmp.lt.u32.totalorder %s12480_s30, %s13099_s0 }
  0x3c   :  { %p12486_p12 = pnand %p12484_p11, %p12481_p10 }
  0x3e   :  { %12489 = shalt.err (!%p12486_p12)
}
  0x3f   :  { %s12490_s5 = scalar_lea.vmem %s26_s24, 128  ;;  %p12495_p0 = scmp.lt.s32.totalorder %s26_s24, %s26_s24 }
  0x40   :  { %p12491_p13 = scmp.ne.s32.totalorder %s26_s24, %s12490_s5  ;;  %p12496_p1 = scmp.lt.s32.totalorder %s12490_s5, %s12490_s5 }
  0x42   :  { %p12497_p2 = por %p12496_p1, %p12495_p0 }
  0x44   :  { %p12498_p3 = pnand %p12497_p2, %p12491_p13 }
  0x46   :  { %12501 = shalt.err (!%p12498_p3)
}
  0x47   :  { %28 = dma.hbm_to_vmem [thread:$0]  %s13099_s0, 128, %s26_s24, [#allocation3]  }
  0x48   :  { %s12502_s14 = scalar_lea.hbm %s13101_s2, 256 }
  0x49   :  { %p12503_p4 = scmp.ne.s32.totalorder %s13101_s2, %s12502_s14  ;;  %p12506_p5 = scmp.lt.u32.totalorder %s12502_s14, %s13101_s2 }
  0x4b   :  { %p12508_p6 = pnand %p12506_p5, %p12503_p4 }
  0x4d   :  { %12511 = shalt.err (!%p12508_p6)
}
  0x4e   :  { %s12512_s15 = scalar_lea.vmem %s48_s26, 256  ;;  %p12517_p8 = scmp.lt.s32.totalorder %s48_s26, %s48_s26 }
  0x4f   :  { %p12513_p7 = scmp.ne.s32.totalorder %s48_s26, %s12512_s15  ;;  %p12518_p9 = scmp.lt.s32.totalorder %s12512_s15, %s12512_s15 }
  0x51   :  { %p12519_p10 = por %p12518_p9, %p12517_p8 }
  0x53   :  { %p12520_p11 = pnand %p12519_p10, %p12513_p7 }
  0x55   :  { %12523 = shalt.err (!%p12520_p11)
}
  0x56   :  { %50 = dma.hbm_to_vmem [thread:$0]  %s13101_s2, 256, %s48_s26, [#allocation6]  }
  0x57   :  { %s12633_s21 = smov [#allocation10]   ;;  %s12634_s24 = smov [#allocation13]  }
  0x58   :  { %s69_s23 = sshll.u32 %s12633_s21, 4  ;;  %s91_s25 = sshll.u32 %s12634_s24, 4  ;;  %s70_s23 = int_to_ptr.vmem [resolvable:$true] %s69_s23  ;;  %s92_s25 = int_to_ptr.vmem [resolvable:$true] %s91_s25 }
  0x59   :  { %s12524_s30 = scalar_lea.hbm %s13103_s4, 512 }
  0x5a   :  { %p12525_p12 = scmp.ne.s32.totalorder %s13103_s4, %s12524_s30  ;;  %p12528_p13 = scmp.lt.u32.totalorder %s12524_s30, %s13103_s4 }
  0x5c   :  { %p12530_p0 = pnand %p12528_p13, %p12525_p12 }
  0x5e   :  { %12533 = shalt.err (!%p12530_p0)
}
  0x5f   :  { %s12534_s2 = scalar_lea.vmem %s70_s23, 512  ;;  %p12539_p2 = scmp.lt.s32.totalorder %s70_s23, %s70_s23 }
  0x60   :  { %p12535_p1 = scmp.ne.s32.totalorder %s70_s23, %s12534_s2  ;;  %p12540_p3 = scmp.lt.s32.totalorder %s12534_s2, %s12534_s2 }
  0x62   :  { %p12541_p4 = por %p12540_p3, %p12539_p2 }
  0x64   :  { %p12542_p5 = pnand %p12541_p4, %p12535_p1 }
  0x66   :  { %12545 = shalt.err (!%p12542_p5)
}
  0x67   :  { %72 = dma.hbm_to_vmem [thread:$0]  %s13103_s4, 512, %s70_s23, [#allocation9]  }
  0x68   :  { %s12546_s12 = scalar_lea.hbm %s13105_s6, 64 }
  0x69   :  { %p12547_p6 = scmp.ne.s32.totalorder %s13105_s6, %s12546_s12  ;;  %p12550_p7 = scmp.lt.u32.totalorder %s12546_s12, %s13105_s6 }
  0x6b   :  { %p12552_p8 = pnand %p12550_p7, %p12547_p6 }
  0x6d   :  { %12555 = shalt.err (!%p12552_p8)
}
  0x6e   :  { %s12556_s19 = scalar_lea.vmem %s92_s25, 64  ;;  %p12561_p10 = scmp.lt.s32.totalorder %s92_s25, %s92_s25 }
  0x6f   :  { %p12557_p9 = scmp.ne.s32.totalorder %s92_s25, %s12556_s19  ;;  %p12562_p11 = scmp.lt.s32.totalorder %s12556_s19, %s12556_s19 }
  0x71   :  { %p12563_p12 = por %p12562_p11, %p12561_p10 }
  0x73   :  { %p12564_p13 = pnand %p12563_p12, %p12557_p9 }
  0x75   :  { %12567 = shalt.err (!%p12564_p13)
}
  0x76   :  { %94 = dma.hbm_to_vmem [thread:$0]  %s13105_s6, 64, %s92_s25, [#allocation12]  }
  0x77   :  { %s12635_s15 = smov [#allocation14]   ;;  %s12568_s23 = scalar_lea.hbm %s13106_s7, 2048 }
  0x78   :  { %s100_s0 = sshll.u32 %s12635_s15, 4  ;;  %p12569_p0 = scmp.ne.s32.totalorder %s13106_s7, %s12568_s23  ;;  %s101_s0 = int_to_ptr.vmem [resolvable:$true] %s100_s0 }
  0x79   :  { %p12572_p1 = scmp.lt.u32.totalorder %s12568_s23, %s13106_s7 }
  0x7b   :  { %p12574_p2 = pnand %p12572_p1, %p12569_p0 }
  0x7d   :  { %12577 = shalt.err (!%p12574_p2)
}
  0x7e   :  { %s12578_s1 = scalar_lea.vmem %s101_s0, 2048  ;;  %p12583_p4 = scmp.lt.s32.totalorder %s101_s0, %s101_s0 }
  0x7f   :  { %p12579_p3 = scmp.ne.s32.totalorder %s101_s0, %s12578_s1  ;;  %p12584_p5 = scmp.lt.s32.totalorder %s12578_s1, %s12578_s1 }
  0x81   :  { %p12585_p6 = por %p12584_p5, %p12583_p4 }
  0x83   :  { %p12586_p7 = pnand %p12585_p6, %p12579_p3 }
  0x85   :  { %12589 = shalt.err (!%p12586_p7)
}
  0x86   :  { %s12636_s6 = smov 4  }
  0x87   :  { %106 = dma.hbm_to_vmem [thread:$0]  %s13106_s7, 2048, %s101_s0, [#allocation15], %s12626_s16, %s12626_s16, %s12636_s6  }
  0x88   :  { %12612 = dma.done.wait [#allocation3], 128  }
  0x89   :  { %12613 = vsyncadd [#allocation3], 4294967168 }
  0x8a   :  { %12614 = dma.done.wait [#allocation6], 16640  }
  0x8b   :  { %12615 = vsyncadd [#allocation6], 4294950656 }
  0x8c   :  { %12616 = dma.done.wait [#allocation9], 131584  }
  0x8d   :  { %12617 = vsyncadd [#allocation9], 4294835712 }
  0x8e   :  { %12618 = dma.done.wait [#allocation12], 32832  }
  0x8f   :  { %12619 = vsyncadd [#allocation12], 4294934464 }
  0x90   :  { %12620 = dma.done.wait [#allocation15], 2048  }
  0x91   :  { %12621 = vsyncadd [#allocation15], 4294965248  ;;  %v12637_v0 = vmov 0.0   ;;  %v134_v1 = vld [vmem:[#allocation5 + $0x8] sm:$0xff]  ;;  %v133_v3 = vld [vmem:[#allocation5] sm:$0xff]  ;;  %s12638_s7 = smov [#allocation16]  }
  0x92   :  { %325 = vmatprep.mubr.f32.mxu1 %v12637_v0  ;;  %467 = vmatprep.mubr.f32.mxu0 %v12637_v0  ;;  %v142_v2 = vld [vmem:[#allocation5 + $0x48] sm:$0xff]  ;;  %v141_v5 = vld [vmem:[#allocation5 + $0x40] sm:$0xff]  ;;  %v136_v48 = vld [vmem:[#allocation5 + $0x18] sm:$0xff]  ;;  %s10413_s16 = sshll.u32 %s12638_s7, 4  ;;  %s10414_s16 = int_to_ptr.vmem [resolvable:$true] %s10413_s16 }
  0x93   :  { %v11745_v4 = vpack.c.bf16 %v142_v2, %v134_v1  ;;  %v150_v6 = vld [vmem:[#allocation5 + $0x88] sm:$0xff]  ;;  %v11747_v8 = vpack.c.bf16 %v141_v5, %v133_v3  ;;  %v149_v10 = vld [vmem:[#allocation5 + $0x80] sm:$0xff]  ;;  %v144_v49 = vld [vmem:[#allocation5 + $0x58] sm:$0xff]  ;;  %s12590_s9 = scalar_lea.vmem %s10414_s16, 128  ;;  %p12595_p9 = scmp.lt.s32.totalorder %s10414_s16, %s10414_s16 }
  0x94   :  { %v158_v7 = vld [vmem:[#allocation5 + $0xc8] sm:$0xff]  ;;  %v157_v11 = vld [vmem:[#allocation5 + $0xc0] sm:$0xff]  ;;  %v11777_v51 = vpack.c.bf16 %v144_v49, %v136_v48  ;;  %v135_v52 = vld [vmem:[#allocation5 + $0x10] sm:$0xff]  ;;  %p12591_p8 = scmp.ne.s32.totalorder %s10414_s16, %s12590_s9  ;;  %p12596_p10 = scmp.lt.s32.totalorder %s12590_s9, %s12590_s9 }
  0x95   :  { %v11749_v9 = vpack.c.bf16 %v158_v7, %v150_v6  ;;  %v166_v12 = vld [vmem:[#allocation5 + $0x108] sm:$0xff]  ;;  %11746 = vmatprep.subr.bf16.mxu1 %v11745_v4  ;;  %v11751_v14 = vpack.c.bf16 %v157_v11, %v149_v10  ;;  %v165_v16 = vld [vmem:[#allocation5 + $0x100] sm:$0xff]  ;;  %v143_v53 = vld [vmem:[#allocation5 + $0x50] sm:$0xff] }
  0x96   :  { %v174_v13 = vld [vmem:[#allocation5 + $0x148] sm:$0xff]  ;;  %11748 = vmatpush1.bf16.msra.mxu1 %v11747_v8  ;;  %v173_v17 = vld [vmem:[#allocation5 + $0x140] sm:$0xff]  ;;  %v152_v54 = vld [vmem:[#allocation5 + $0x98] sm:$0xff]  ;;  %v11779_v59 = vpack.c.bf16 %v143_v53, %v135_v52  ;;  %p12597_p11 = por %p12596_p10, %p12595_p9 }
  0x97   :  { %11750 = vmatprep.subr.bf16.mxu1 %v11749_v9  ;;  %v11753_v15 = vpack.c.bf16 %v174_v13, %v166_v12  ;;  %v182_v18 = vld [vmem:[#allocation5 + $0x188] sm:$0xff]  ;;  %v11755_v20 = vpack.c.bf16 %v173_v17, %v165_v16  ;;  %v181_v22 = vld [vmem:[#allocation5 + $0x180] sm:$0xff]  ;;  %v160_v55 = vld [vmem:[#allocation5 + $0xd8] sm:$0xff] }
  0x98   :  { %v190_v19 = vld [vmem:[#allocation5 + $0x1c8] sm:$0xff]  ;;  %v189_v23 = vld [vmem:[#allocation5 + $0x1c0] sm:$0xff]  ;;  %v12786_v56 = vld [vmem:[#allocation2] sm:$0xff]  ;;  %v11781_v1 = vpack.c.bf16 %v160_v55, %v152_v54  ;;  %p12598_p12 = pnand %p12597_p11, %p12591_p8 }
  0x99   :  { %v11757_v21 = vpack.c.bf16 %v190_v19, %v182_v18  ;;  %v198_v24 = vld [vmem:[#allocation5 + $0x208] sm:$0xff]  ;;  %v11759_v26 = vpack.c.bf16 %v189_v23, %v181_v22  ;;  %v197_v28 = vld [vmem:[#allocation5 + $0x200] sm:$0xff]  ;;  %v151_v57 = vld [vmem:[#allocation5 + $0x90] sm:$0xff] }
  0x9a   :  { %11752 = vmatpush1.bf16.msra.mxu1 %v11751_v14  ;;  %v206_v25 = vld [vmem:[#allocation5 + $0x248] sm:$0xff]  ;;  %v205_v29 = vld [vmem:[#allocation5 + $0x240] sm:$0xff]  ;;  %v159_v58 = vld [vmem:[#allocation5 + $0xd0] sm:$0xff] }
  0x9b   :  { %11754 = vmatprep.subr.bf16.mxu1 %v11753_v15  ;;  %v11761_v27 = vpack.c.bf16 %v206_v25, %v198_v24  ;;  %v214_v30 = vld [vmem:[#allocation5 + $0x288] sm:$0xff]  ;;  %v11763_v32 = vpack.c.bf16 %v205_v29, %v197_v28  ;;  %v213_v34 = vld [vmem:[#allocation5 + $0x280] sm:$0xff]  ;;  %v168_v60 = vld [vmem:[#allocation5 + $0x118] sm:$0xff]  ;;  %v11783_v13 = vpack.c.bf16 %v159_v58, %v151_v57 }
  0x9c   :  { %v222_v31 = vld [vmem:[#allocation5 + $0x2c8] sm:$0xff]  ;;  %v221_v35 = vld [vmem:[#allocation5 + $0x2c0] sm:$0xff]  ;;  %v176_v61 = vld [vmem:[#allocation5 + $0x158] sm:$0xff] }
  0x9d   :  { %v11765_v33 = vpack.c.bf16 %v222_v31, %v214_v30  ;;  %v230_v36 = vld [vmem:[#allocation5 + $0x308] sm:$0xff]  ;;  %v11767_v38 = vpack.c.bf16 %v221_v35, %v213_v34  ;;  %v229_v40 = vld [vmem:[#allocation5 + $0x300] sm:$0xff]  ;;  %v11785_v14 = vpack.c.bf16 %v176_v61, %v168_v60  ;;  %v167_v15 = vld [vmem:[#allocation5 + $0x110] sm:$0xff] }
  0x9e   :  { %11756 = vmatpush1.bf16.msra.mxu1 %v11755_v20  ;;  %v238_v37 = vld [vmem:[#allocation5 + $0x348] sm:$0xff]  ;;  %v237_v41 = vld [vmem:[#allocation5 + $0x340] sm:$0xff]  ;;  %v175_v16 = vld [vmem:[#allocation5 + $0x150] sm:$0xff] }
  0x9f   :  { %11758 = vmatprep.subr.bf16.mxu1 %v11757_v21  ;;  %v11769_v39 = vpack.c.bf16 %v238_v37, %v230_v36  ;;  %v246_v42 = vld [vmem:[#allocation5 + $0x388] sm:$0xff]  ;;  %v11771_v44 = vpack.c.bf16 %v237_v41, %v229_v40  ;;  %v245_v46 = vld [vmem:[#allocation5 + $0x380] sm:$0xff]  ;;  %v184_v17 = vld [vmem:[#allocation5 + $0x198] sm:$0xff]  ;;  %v11787_v25 = vpack.c.bf16 %v175_v16, %v167_v15 }
  0xa0   :  { %v254_v43 = vld [vmem:[#allocation5 + $0x3c8] sm:$0xff]  ;;  %v253_v47 = vld [vmem:[#allocation5 + $0x3c0] sm:$0xff]  ;;  %v192_v19 = vld [vmem:[#allocation5 + $0x1d8] sm:$0xff] }
  0xa1   :  { %v11773_v45 = vpack.c.bf16 %v254_v43, %v246_v42  ;;  %v11775_v50 = vpack.c.bf16 %v253_v47, %v245_v46  ;;  %v138_v62 = vld [vmem:[#allocation5 + $0x28] sm:$0xff]  ;;  %v137_v3 = vld [vmem:[#allocation5 + $0x20] sm:$0xff]  ;;  %v191_v28 = vld [vmem:[#allocation5 + $0x1d0] sm:$0xff] }
  0xa2   :  { %11760 = vmatpush1.bf16.msra.mxu1 %v11759_v26  ;;  %v146_v63 = vld [vmem:[#allocation5 + $0x68] sm:$0xff]  ;;  %v145_v4 = vld [vmem:[#allocation5 + $0x60] sm:$0xff]  ;;  %v11789_v26 = vpack.c.bf16 %v192_v19, %v184_v17  ;;  %v200_v29 = vld [vmem:[#allocation5 + $0x218] sm:$0xff] }
  0xa3   :  { %11762 = vmatprep.subr.bf16.mxu1 %v11761_v27  ;;  %v11809_v2 = vpack.c.bf16 %v146_v63, %v138_v62  ;;  %v154_v5 = vld [vmem:[#allocation5 + $0xa8] sm:$0xff]  ;;  %v11811_v6 = vpack.c.bf16 %v145_v4, %v137_v3  ;;  %v153_v8 = vld [vmem:[#allocation5 + $0xa0] sm:$0xff]  ;;  %v183_v27 = vld [vmem:[#allocation5 + $0x190] sm:$0xff] }
  0xa4   :  { %v162_v7 = vld [vmem:[#allocation5 + $0xe8] sm:$0xff]  ;;  %v161_v9 = vld [vmem:[#allocation5 + $0xe0] sm:$0xff]  ;;  %v208_v31 = vld [vmem:[#allocation5 + $0x258] sm:$0xff]  ;;  %v11791_v37 = vpack.c.bf16 %v191_v28, %v183_v27 }
  0xa5   :  { %11810 = vmatprep.subr.bf16.mxu0 %v11809_v2  ;;  %v11813_v10 = vpack.c.bf16 %v162_v7, %v154_v5  ;;  %v170_v11 = vld [vmem:[#allocation5 + $0x128] sm:$0xff]  ;;  %v11815_v18 = vpack.c.bf16 %v161_v9, %v153_v8  ;;  %v169_v21 = vld [vmem:[#allocation5 + $0x120] sm:$0xff]  ;;  %v207_v40 = vld [vmem:[#allocation5 + $0x250] sm:$0xff] }
  0xa6   :  { %11764 = vmatpush1.bf16.msra.mxu1 %v11763_v32  ;;  %v178_v12 = vld [vmem:[#allocation5 + $0x168] sm:$0xff]  ;;  %11812 = vmatpush1.bf16.msra.mxu0 %v11811_v6  ;;  %v177_v22 = vld [vmem:[#allocation5 + $0x160] sm:$0xff]  ;;  %v216_v41 = vld [vmem:[#allocation5 + $0x298] sm:$0xff] }
  0xa7   :  { %11766 = vmatprep.subr.bf16.mxu1 %v11765_v33  ;;  %11814 = vmatprep.subr.bf16.mxu0 %v11813_v10  ;;  %v11817_v20 = vpack.c.bf16 %v178_v12, %v170_v11  ;;  %v186_v23 = vld [vmem:[#allocation5 + $0x1a8] sm:$0xff]  ;;  %v11819_v30 = vpack.c.bf16 %v177_v22, %v169_v21  ;;  %v185_v33 = vld [vmem:[#allocation5 + $0x1a0] sm:$0xff]  ;;  %v224_v43 = vld [vmem:[#allocation5 + $0x2d8] sm:$0xff] }
  0xa8   :  { %v194_v24 = vld [vmem:[#allocation5 + $0x1e8] sm:$0xff]  ;;  %v193_v34 = vld [vmem:[#allocation5 + $0x1e0] sm:$0xff]  ;;  %v223_v52 = vld [vmem:[#allocation5 + $0x2d0] sm:$0xff] }
  0xa9   :  { %v11821_v32 = vpack.c.bf16 %v194_v24, %v186_v23  ;;  %v202_v35 = vld [vmem:[#allocation5 + $0x228] sm:$0xff]  ;;  %v11823_v42 = vpack.c.bf16 %v193_v34, %v185_v33  ;;  %v209_v46 = vld [vmem:[#allocation5 + $0x260] sm:$0xff]  ;;  %v232_v53 = vld [vmem:[#allocation5 + $0x318] sm:$0xff] }
  0xaa   :  { %11768 = vmatpush1.bf16.msra.mxu1 %v11767_v38  ;;  %11816 = vmatpush1.bf16.msra.mxu0 %v11815_v18  ;;  %v210_v36 = vld [vmem:[#allocation5 + $0x268] sm:$0xff]  ;;  %v11793_v38 = vpack.c.bf16 %v208_v31, %v200_v29  ;;  %v240_v55 = vld [vmem:[#allocation5 + $0x358] sm:$0xff]  ;;  %v217_v58 = vld [vmem:[#allocation5 + $0x2a0] sm:$0xff] }
  0xab   :  { %11770 = vmatprep.subr.bf16.mxu1 %v11769_v39  ;;  %11818 = vmatprep.subr.bf16.mxu0 %v11817_v20  ;;  %v199_v39 = vld [vmem:[#allocation5 + $0x210] sm:$0xff]  ;;  %v218_v47 = vld [vmem:[#allocation5 + $0x2a8] sm:$0xff]  ;;  %v248_v2 = vld [vmem:[#allocation5 + $0x398] sm:$0xff]  ;;  %v11801_v6 = vpack.c.bf16 %v240_v55, %v232_v53 }
  0xac   :  { %v226_v48 = vld [vmem:[#allocation5 + $0x2e8] sm:$0xff]  ;;  %v11795_v49 = vpack.c.bf16 %v207_v40, %v199_v39  ;;  %v231_v60 = vld [vmem:[#allocation5 + $0x310] sm:$0xff]  ;;  %v256_v3 = vld [vmem:[#allocation5 + $0x3d8] sm:$0xff] }
  0xad   :  { %v11829_v57 = vpack.c.bf16 %v226_v48, %v218_v47  ;;  %v239_v61 = vld [vmem:[#allocation5 + $0x350] sm:$0xff]  ;;  %v234_v62 = vld [vmem:[#allocation5 + $0x328] sm:$0xff]  ;;  %v233_v4 = vld [vmem:[#allocation5 + $0x320] sm:$0xff]  ;;  %v11805_v18 = vpack.c.bf16 %v256_v3, %v248_v2 }
  0xae   :  { %11772 = vmatpush1.bf16.msra.mxu1 %v11771_v44  ;;  %11820 = vmatpush1.bf16.msra.mxu0 %v11819_v30  ;;  %v11825_v44 = vpack.c.bf16 %v210_v36, %v202_v35  ;;  %v242_v63 = vld [vmem:[#allocation5 + $0x368] sm:$0xff]  ;;  %v241_v5 = vld [vmem:[#allocation5 + $0x360] sm:$0xff]  ;;  %v247_v11 = vld [vmem:[#allocation5 + $0x390] sm:$0xff] }
  0xaf   :  { %11774 = vmatprep.subr.bf16.mxu1 %v11773_v45  ;;  %11822 = vmatprep.subr.bf16.mxu0 %v11821_v32  ;;  %v201_v45 = vld [vmem:[#allocation5 + $0x220] sm:$0xff]  ;;  %v250_v8 = vld [vmem:[#allocation5 + $0x3a8] sm:$0xff]  ;;  %v11833_v10 = vpack.c.bf16 %v242_v63, %v234_v62  ;;  %v255_v12 = vld [vmem:[#allocation5 + $0x3d0] sm:$0xff]  ;;  %v11835_v19 = vpack.c.bf16 %v241_v5, %v233_v4 }
  0xb0   :  { %v11827_v54 = vpack.c.bf16 %v209_v46, %v201_v45  ;;  %v258_v9 = vld [vmem:[#allocation5 + $0x3e8] sm:$0xff]  ;;  %v148_v15 = vld [vmem:[#allocation5 + $0x78] sm:$0xff]  ;;  %v249_v16 = vld [vmem:[#allocation5 + $0x3a0] sm:$0xff]  ;;  %v11807_v23 = vpack.c.bf16 %v255_v12, %v247_v11 }
  0xb1   :  { %v257_v17 = vld [vmem:[#allocation5 + $0x3e0] sm:$0xff]  ;;  %v11837_v20 = vpack.c.bf16 %v258_v9, %v250_v8  ;;  %v139_v21 = vld [vmem:[#allocation5 + $0x30] sm:$0xff]  ;;  %v156_v24 = vld [vmem:[#allocation5 + $0xb8] sm:$0xff] }
  0xb2   :  { %11776 = vmatpush1.bf16.msra.mxu1 %v11775_v50  ;;  %v11797_v50 = vpack.c.bf16 %v224_v43, %v216_v41  ;;  %11824 = vmatpush1.bf16.msra.mxu0 %v11823_v42  ;;  %v147_v22 = vld [vmem:[#allocation5 + $0x70] sm:$0xff]  ;;  %v11839_v27 = vpack.c.bf16 %v257_v17, %v249_v16  ;;  %v172_v31 = vld [vmem:[#allocation5 + $0x138] sm:$0xff] }
  0xb3   :  { %11778 = vmatprep.subr.bf16.mxu1 %v11777_v51  ;;  %v215_v51 = vld [vmem:[#allocation5 + $0x290] sm:$0xff]  ;;  %11826 = vmatprep.subr.bf16.mxu0 %v11825_v44  ;;  %v11843_v30 = vpack.c.bf16 %v147_v22, %v139_v21  ;;  %v180_v32 = vld [vmem:[#allocation5 + $0x178] sm:$0xff] }
  0xb4   :  { %v155_v28 = vld [vmem:[#allocation5 + $0xb0] sm:$0xff]  ;;  %v11849_v39 = vpack.c.bf16 %v180_v32, %v172_v31  ;;  %v204_v43 = vld [vmem:[#allocation5 + $0x238] sm:$0xff] }
  0xb5   :  { %326 = vmatmul.mubr.f32.vlgmr.msra.gmra.mrb[0].mxu1 %v12786_v56  ;;  %v163_v29 = vld [vmem:[#allocation5 + $0xf0] sm:$0xff]  ;;  %v212_v44 = vld [vmem:[#allocation5 + $0x278] sm:$0xff] }
  0xb6   :  { %11780 = vmatpush1.bf16.msra.mxu1 %v11779_v59  ;;  %396 = vmatprep.mubr.f32.mxu1 %v12637_v0  ;;  %v225_v59 = vld [vmem:[#allocation5 + $0x2e0] sm:$0xff]  ;;  %v171_v34 = vld [vmem:[#allocation5 + $0x130] sm:$0xff]  ;;  %v11847_v36 = vpack.c.bf16 %v163_v29, %v155_v28  ;;  %v244_v55 = vld [vmem:[#allocation5 + $0x378] sm:$0xff] }
  0xb7   :  { %11782 = vmatprep.subr.bf16.mxu1 %v11781_v1  ;;  %v11799_v1 = vpack.c.bf16 %v223_v52, %v215_v51  ;;  %11828 = vmatpush1.bf16.msra.mxu0 %v11827_v54  ;;  %v11831_v7 = vpack.c.bf16 %v225_v59, %v217_v58  ;;  %v179_v35 = vld [vmem:[#allocation5 + $0x170] sm:$0xff]  ;;  %v236_v54 = vld [vmem:[#allocation5 + $0x338] sm:$0xff] }
  0xb8   :  { %11830 = vmatprep.subr.bf16.mxu0 %v11829_v57  ;;  %v187_v40 = vld [vmem:[#allocation5 + $0x1b0] sm:$0xff]  ;;  %v11851_v42 = vpack.c.bf16 %v179_v35, %v171_v34  ;;  %v260_v62 = vld [vmem:[#allocation5 + $0x3f8] sm:$0xff]  ;;  %v11865_v63 = vpack.c.bf16 %v244_v55, %v236_v54 }
  0xb9   :  { %v195_v41 = vld [vmem:[#allocation5 + $0x1f0] sm:$0xff] }
  0xba   :  { %11784 = vmatpush1.bf16.msra.mxu1 %v11783_v13  ;;  %v11803_v13 = vpack.c.bf16 %v239_v61, %v231_v60  ;;  %v203_v46 = vld [vmem:[#allocation5 + $0x230] sm:$0xff]  ;;  %v11855_v48 = vpack.c.bf16 %v195_v41, %v187_v40  ;;  %v252_v61 = vld [vmem:[#allocation5 + $0x3b8] sm:$0xff] }
  0xbb   :  { %11786 = vmatprep.subr.bf16.mxu1 %v11785_v14  ;;  %v140_v14 = vld [vmem:[#allocation5 + $0x38] sm:$0xff]  ;;  %11832 = vmatpush1.bf16.msra.mxu0 %v11831_v7  ;;  %v211_v47 = vld [vmem:[#allocation5 + $0x270] sm:$0xff] }
  0xbc   :  { %11834 = vmatprep.subr.bf16.mxu0 %v11833_v10  ;;  %v219_v51 = vld [vmem:[#allocation5 + $0x2b0] sm:$0xff]  ;;  %v11859_v53 = vpack.c.bf16 %v211_v47, %v203_v46 }
  0xbd   :  { %v227_v52 = vld [vmem:[#allocation5 + $0x2f0] sm:$0xff] }
  0xbe   :  { %11788 = vmatpush1.bf16.msra.mxu1 %v11787_v25  ;;  %v164_v25 = vld [vmem:[#allocation5 + $0xf8] sm:$0xff]  ;;  %v235_v58 = vld [vmem:[#allocation5 + $0x330] sm:$0xff]  ;;  %v11863_v60 = vpack.c.bf16 %v227_v52, %v219_v51 }
  0xbf   :  { %11790 = vmatprep.subr.bf16.mxu1 %v11789_v26  ;;  %v11841_v26 = vpack.c.bf16 %v148_v15, %v140_v14  ;;  %11836 = vmatpush1.bf16.msra.mxu0 %v11835_v19  ;;  %v11845_v33 = vpack.c.bf16 %v164_v25, %v156_v24  ;;  %v243_v59 = vld [vmem:[#allocation5 + $0x370] sm:$0xff] }
  0xc0   :  { %11838 = vmatprep.subr.bf16.mxu0 %v11837_v20  ;;  %v259_v2 = vld [vmem:[#allocation5 + $0x3f0] sm:$0xff]  ;;  %v11867_v3 = vpack.c.bf16 %v243_v59, %v235_v58 }
  0xc1   :  { %v662_v4 = vld [vmem:[#allocation8] sm:$0xff] }
  0xc2   :  { %11792 = vmatpush1.bf16.msra.mxu1 %v11791_v37  ;;  %v188_v37 = vld [vmem:[#allocation5 + $0x1b8] sm:$0xff]  ;;  %v670_v5 = vld [vmem:[#allocation8 + $0x40] sm:$0xff] }
  0xc3   :  { %11794 = vmatprep.subr.bf16.mxu1 %v11793_v38  ;;  %11840 = vmatpush1.bf16.msra.mxu0 %v11839_v27  ;;  %v196_v38 = vld [vmem:[#allocation5 + $0x1f8] sm:$0xff]  ;;  %v678_v8 = vld [vmem:[#allocation8 + $0x80] sm:$0xff]  ;;  %v10427_v10 = vcombine.high %v662_v4, %v670_v5  ;;  %v10426_v11 = vcombine.low %v662_v4, %v670_v5 }
  0xc4   :  { %v11853_v45 = vpack.c.bf16 %v196_v38, %v188_v37  ;;  %v686_v9 = vld [vmem:[#allocation8 + $0xc0] sm:$0xff] }
  0xc5   :  { %v694_v12 = vld [vmem:[#allocation8 + $0x100] sm:$0xff]  ;;  %v10443_v14 = vcombine.high %v678_v8, %v686_v9  ;;  %v10442_v15 = vcombine.low %v678_v8, %v686_v9 }
  0xc6   :  { %11796 = vmatpush1.bf16.msra.mxu1 %v11795_v49  ;;  %468 = vmatmul.mubr.f32.vlgmr.msra.gmra.mrb[0].mxu0 %v12786_v56  ;;  %v220_v49 = vld [vmem:[#allocation5 + $0x2b8] sm:$0xff]  ;;  %v710_v16 = vld [vmem:[#allocation8 + $0x180] sm:$0xff] }
  0xc7   :  { %11798 = vmatprep.subr.bf16.mxu1 %v11797_v50  ;;  %v228_v50 = vld [vmem:[#allocation5 + $0x2f8] sm:$0xff]  ;;  %v718_v17 = vld [vmem:[#allocation8 + $0x1c0] sm:$0xff] }
  0xc8   :  { %v11861_v57 = vpack.c.bf16 %v228_v50, %v220_v49  ;;  %v726_v20 = vld [vmem:[#allocation8 + $0x200] sm:$0xff]  ;;  %v10475_v22 = vcombine.high %v710_v16, %v718_v17 }
  0xc9   :  { %v734_v21 = vld [vmem:[#allocation8 + $0x240] sm:$0xff] }
  0xca   :  { %11800 = vmatpush1.bf16.msra.mxu1 %v11799_v1  ;;  %v251_v1 = vld [vmem:[#allocation5 + $0x3b0] sm:$0xff] }
  0xcb   :  { %11802 = vmatprep.subr.bf16.mxu1 %v11801_v6  ;;  %v11869_v6 = vpack.c.bf16 %v260_v62, %v252_v61  ;;  %v11871_v7 = vpack.c.bf16 %v259_v2, %v251_v1  ;;  %v742_v24 = vld [vmem:[#allocation8 + $0x280] sm:$0xff] }
  0xcc   :  { %v750_v25 = vld [vmem:[#allocation8 + $0x2c0] sm:$0xff] }
  0xcd   :  { %v758_v27 = vld [vmem:[#allocation8 + $0x300] sm:$0xff]  ;;  %v10507_v29 = vcombine.high %v742_v24, %v750_v25 }
  0xce   :  { %11804 = vmatpush1.bf16.msra.mxu1 %v11803_v13  ;;  %v702_v13 = vld [vmem:[#allocation8 + $0x140] sm:$0xff] }
  0xcf   :  { %11806 = vmatprep.subr.bf16.mxu1 %v11805_v18  ;;  %v10459_v18 = vcombine.high %v694_v12, %v702_v13  ;;  %v10458_v19 = vcombine.low %v694_v12, %v702_v13  ;;  %v766_v28 = vld [vmem:[#allocation8 + $0x340] sm:$0xff] }
  0xd0   :  { %v10523_v31 = vcombine.high %v758_v27, %v766_v28  ;;  %v774_v32 = vld [vmem:[#allocation8 + $0x380] sm:$0xff]  ;;  %v10522_v34 = vcombine.low %v758_v27, %v766_v28 }
  0xd1   :  { %v798_v37 = vld [vmem:[#allocation8 + $0x440] sm:$0xff] }
  0xd2   :  { %11808 = vmatpush1.bf16.msra.mxu1 %v11807_v23  ;;  %v10474_v23 = vcombine.low %v710_v16, %v718_v17  ;;  %v814_v40 = vld [vmem:[#allocation8 + $0x4c0] sm:$0xff] }
  0xd3   :  { %11842 = vmatprep.subr.bf16.mxu1 %v11841_v26  ;;  %v10491_v26 = vcombine.high %v726_v20, %v734_v21  ;;  %v830_v51 = vld [vmem:[#allocation8 + $0x540] sm:$0xff] }
  0xd4   :  { %v1446_v52 = vld [vmem:[#allocation8 + $0x1880] sm:$0xff] }
  0xd5   :  { %397 = vmatmul.mubr.f32.vlgmr.msra.gmra.mrb[2].mxu1 %v12786_v56  ;;  %v838_v59 = vld [vmem:[#allocation8 + $0x580] sm:$0xff] }
  0xd6   :  { %11844 = vmatpush1.bf16.msra.mxu1 %v11843_v30  ;;  %538 = vmatprep.mubr.f32.mxu1 %v12637_v0  ;;  %v11857_v0 = vpack.c.bf16 %v212_v44, %v204_v43  ;;  %v10506_v30 = vcombine.low %v742_v24, %v750_v25  ;;  %v12796_v43 = vld [vmem:[#allocation8 + $0x840] sm:$0xff] }
  0xd7   :  { %11846 = vmatprep.subr.bf16.mxu1 %v11845_v33  ;;  %v782_v33 = vld [vmem:[#allocation8 + $0x3c0] sm:$0xff] }
  0xd8   :  { %v10539_v35 = vcombine.high %v774_v32, %v782_v33  ;;  %v10538_v38 = vcombine.low %v774_v32, %v782_v33  ;;  %v1430_v44 = vld [vmem:[#allocation8 + $0x1800] sm:$0xff] }
  0xd9   :  { %v1462_v61 = vld [vmem:[#allocation8 + $0x1900] sm:$0xff] }
  0xda   :  { %11848 = vmatpush1.bf16.msra.mxu1 %v11847_v36  ;;  %v790_v36 = vld [vmem:[#allocation8 + $0x400] sm:$0xff] }
  0xdb   :  { %11850 = vmatprep.subr.bf16.mxu1 %v11849_v39  ;;  %v806_v39 = vld [vmem:[#allocation8 + $0x480] sm:$0xff]  ;;  %v10555_v41 = vcombine.high %v790_v36, %v798_v37  ;;  %v10554_v49 = vcombine.low %v790_v36, %v798_v37 }
  0xdc   :  { %v10571_v50 = vcombine.high %v806_v39, %v814_v40  ;;  %v10570_v54 = vcombine.low %v806_v39, %v814_v40  ;;  %v1470_v62 = vld [vmem:[#allocation8 + $0x1940] sm:$0xff] }
  0xdd   :  { %v11226_v1 = vcombine.low %v1462_v61, %v1470_v62  ;;  %v11227_v2 = vcombine.high %v1462_v61, %v1470_v62  ;;  %v854_v4 = vld [vmem:[#allocation8 + $0x600] sm:$0xff] }
  0xde   :  { %11852 = vmatpush1.bf16.msra.mxu1 %v11851_v42  ;;  %v12794_v42 = vld [vmem:[#allocation8 + $0x800] sm:$0xff] }
  0xdf   :  { %11854 = vmatprep.subr.bf16.mxu1 %v11853_v45  ;;  %v1438_v45 = vld [vmem:[#allocation8 + $0x1840] sm:$0xff]  ;;  %v10682_v46 = vcombine.low %v12794_v42, %v12796_v43  ;;  %v10683_v40 = vcombine.high %v12794_v42, %v12796_v43 }
  0xe0   :  { %v11194_v47 = vcombine.low %v1430_v44, %v1438_v45  ;;  %v862_v5 = vld [vmem:[#allocation8 + $0x640] sm:$0xff] }
  0xe1   :  { %v870_v12 = vld [vmem:[#allocation8 + $0x680] sm:$0xff]  ;;  %v10618_v16 = vcombine.low %v854_v4, %v862_v5 }
  0xe2   :  { %11856 = vmatpush1.bf16.msra.mxu1 %v11855_v48  ;;  %v11195_v48 = vcombine.high %v1430_v44, %v1438_v45  ;;  %v878_v13 = vld [vmem:[#allocation8 + $0x6c0] sm:$0xff] }
  0xe3   :  { %11858 = vmatprep.subr.bf16.mxu1 %v11857_v0  ;;  %v822_v0 = vld [vmem:[#allocation8 + $0x500] sm:$0xff]  ;;  %v10634_v24 = vcombine.low %v870_v12, %v878_v13 }
  0xe4   :  { %6929 = vmatprep.subr.bf16.mxu0 %v11195_v48  ;;  %v10587_v58 = vcombine.high %v822_v0, %v830_v51  ;;  %v902_v27 = vld [vmem:[#allocation8 + $0x780] sm:$0xff] }
  0xe5   :  { %6930 = vmatpush1.bf16.msra.mxu0 %v11194_v47  ;;  %v910_v28 = vld [vmem:[#allocation8 + $0x7c0] sm:$0xff] }
  0xe6   :  { %11860 = vmatpush1.bf16.msra.mxu1 %v11859_v53  ;;  %v1454_v53 = vld [vmem:[#allocation8 + $0x18c0] sm:$0xff]  ;;  %v10666_v37 = vcombine.low %v902_v27, %v910_v28 }
  0xe7   :  { %11862 = vmatprep.subr.bf16.mxu1 %v11861_v57  ;;  %v11210_v55 = vcombine.low %v1446_v52, %v1454_v53  ;;  %v11211_v57 = vcombine.high %v1446_v52, %v1454_v53  ;;  %v1550_v36 = vld [vmem:[#allocation8 + $0x1bc0] sm:$0xff] }
  0xe8   :  { %v1566_v44 = vld [vmem:[#allocation8 + $0x1c40] sm:$0xff] }
  0xe9   :  { %6931 = vmatprep.subr.bf16.mxu0 %v11211_v57  ;;  %v1574_v48 = vld [vmem:[#allocation8 + $0x1c80] sm:$0xff] }
  0xea   :  { %11864 = vmatpush1.bf16.msra.mxu1 %v11863_v60  ;;  %v846_v60 = vld [vmem:[#allocation8 + $0x5c0] sm:$0xff]  ;;  %6932 = vmatpush1.bf16.msra.mxu0 %v11210_v55 }
  0xeb   :  { %11866 = vmatprep.subr.bf16.mxu1 %v11865_v63  ;;  %v10586_v63 = vcombine.low %v822_v0, %v830_v51  ;;  %6933 = vmatprep.subr.bf16.mxu0 %v11227_v2  ;;  %v10602_v8 = vcombine.low %v838_v59, %v846_v60  ;;  %v1590_v51 = vld [vmem:[#allocation8 + $0x1d00] sm:$0xff] }
  0xec   :  { %v1598_v52 = vld [vmem:[#allocation8 + $0x1d40] sm:$0xff] }
  0xed   :  { %v11354_v53 = vcombine.low %v1590_v51, %v1598_v52  ;;  %v1606_v55 = vld [vmem:[#allocation8 + $0x1d80] sm:$0xff] }
  0xee   :  { %11868 = vmatpush1.bf16.msra.mxu1 %v11867_v3  ;;  %v10603_v3 = vcombine.high %v838_v59, %v846_v60  ;;  %6934 = vmatpush1.bf16.msra.mxu0 %v11226_v1  ;;  %v1614_v57 = vld [vmem:[#allocation8 + $0x1dc0] sm:$0xff] }
  0xef   :  { %11870 = vmatprep.subr.bf16.mxu1 %v11869_v6  ;;  %v1478_v6 = vld [vmem:[#allocation8 + $0x1980] sm:$0xff]  ;;  %v11371_v59 = vcombine.high %v1606_v55, %v1614_v57 }
  0xf0   :  { %v1622_v60 = vld [vmem:[#allocation8 + $0x1e00] sm:$0xff] }
  0xf1   :  { %v1630_v61 = vld [vmem:[#allocation8 + $0x1e40] sm:$0xff] }
  0xf2   :  { %11872 = vmatpush1.bf16.msra.mxu1 %v11871_v7  ;;  %v1486_v7 = vld [vmem:[#allocation8 + $0x19c0] sm:$0xff]  ;;  %v11386_v62 = vcombine.low %v1622_v60, %v1630_v61 }
  0xf3   :  { %6806 = vmatprep.subr.bf16.mxu1 %v10427_v10  ;;  %v11242_v9 = vcombine.low %v1478_v6, %v1486_v7  ;;  %v11243_v10 = vcombine.high %v1478_v6, %v1486_v7  ;;  %v1638_v1 = vld [vmem:[#allocation8 + $0x1e80] sm:$0xff] }
  0xf4   :  { %v1646_v2 = vld [vmem:[#allocation8 + $0x1ec0] sm:$0xff] }
  0xf5   :  { %539 = vmatmul.mubr.f32.vlgmr.msra.gmra.mrb[4].mxu1 %v12786_v56  ;;  %v10490_v56 = vcombine.low %v726_v20, %v734_v21  ;;  %6935 = vmatprep.subr.bf16.mxu0 %v11243_v10  ;;  %v886_v20 = vld [vmem:[#allocation8 + $0x700] sm:$0xff] }
  0xf6   :  { %6807 = vmatpush1.bf16.msra.mxu1 %v10426_v11  ;;  %v10619_v11 = vcombine.high %v854_v4, %v862_v5  ;;  %6936 = vmatpush1.bf16.msra.mxu0 %v11242_v9  ;;  %v894_v21 = vld [vmem:[#allocation8 + $0x740] sm:$0xff]  ;;  %v11403_v4 = vcombine.high %v1638_v1, %v1646_v2 }
  0xf7   :  { %6808 = vmatprep.subr.bf16.mxu1 %v10443_v14  ;;  %v1494_v14 = vld [vmem:[#allocation8 + $0x1a00] sm:$0xff] }
  0xf8   :  { %v1654_v5 = vld [vmem:[#allocation8 + $0x1f00] sm:$0xff] }
  0xf9   :  { %v1662_v6 = vld [vmem:[#allocation8 + $0x1f40] sm:$0xff] }
  0xfa   :  { %6809 = vmatpush1.bf16.msra.mxu1 %v10442_v15  ;;  %v1502_v15 = vld [vmem:[#allocation8 + $0x1a40] sm:$0xff]  ;;  %v11418_v7 = vcombine.low %v1654_v5, %v1662_v6 }
  0xfb   :  { %6810 = vmatprep.subr.bf16.mxu1 %v10459_v18  ;;  %v11258_v17 = vcombine.low %v1494_v14, %v1502_v15  ;;  %v11259_v18 = vcombine.high %v1494_v14, %v1502_v15  ;;  %v1670_v9 = vld [vmem:[#allocation8 + $0x1f80] sm:$0xff]  ;;  %v12804_v14 = vld [vmem:[#allocation8 + $0x50] sm:$0xff] }
  0xfc   :  { %v1678_v10 = vld [vmem:[#allocation8 + $0x1fc0] sm:$0xff] }
  0xfd   :  { %6937 = vmatprep.subr.bf16.mxu0 %v11259_v18 }
  0xfe   :  { %6811 = vmatpush1.bf16.msra.mxu1 %v10458_v19  ;;  %v10635_v19 = vcombine.high %v870_v12, %v878_v13  ;;  %6938 = vmatpush1.bf16.msra.mxu0 %v11258_v17  ;;  %v11435_v12 = vcombine.high %v1670_v9, %v1678_v10  ;;  %v12802_v13 = vld [vmem:[#allocation8 + $0x10] sm:$0xff]  ;;  %v547_v17 = vlaneseq }
  0xff   :  { %6812 = vmatprep.subr.bf16.mxu1 %v10475_v22  ;;  %v1510_v22 = vld [vmem:[#allocation8 + $0x1a80] sm:$0xff]  ;;  %v10430_v15 = vcombine.low %v12802_v13, %v12804_v14 }
 0x100   :  { %v12810_v18 = vshrl.u32 %v547_v17, 7  ;;  %v1070_v17 = vld [vmem:[#allocation8 + $0xcc0] sm:$0xff] }
 0x102   :  { %6813 = vmatpush1.bf16.msra.mxu1 %v10474_v23  ;;  %v1518_v23 = vld [vmem:[#allocation8 + $0x1ac0] sm:$0xff] }
 0x103   :  { %6814 = vmatprep.subr.bf16.mxu1 %v10491_v26  ;;  %v11274_v25 = vcombine.low %v1510_v22, %v1518_v23  ;;  %v11275_v26 = vcombine.high %v1510_v22, %v1518_v23  ;;  %v12820_v22 = vld [vmem:[#allocation7 + $0x1] ss:$2 sm:$0xff] }
 0x105   :  { %6939 = vmatprep.subr.bf16.mxu0 %v11275_v26 }
 0x106   :  { %6815 = vmatpush1.bf16.msra.mxu1 %v10490_v56  ;;  %v10651_v56 = vcombine.high %v886_v20, %v894_v21  ;;  %6940 = vmatpush1.bf16.msra.mxu0 %v11274_v25 }
 0x107   :  { %6816 = vmatprep.subr.bf16.mxu1 %v10507_v29  ;;  %v1526_v29 = vld [vmem:[#allocation8 + $0x1b00] sm:$0xff] }
 0x10a   :  { %6817 = vmatpush1.bf16.msra.mxu1 %v10506_v30  ;;  %v1534_v30 = vld [vmem:[#allocation8 + $0x1b40] sm:$0xff] }
 0x10b   :  { %6818 = vmatprep.subr.bf16.mxu1 %v10523_v31  ;;  %v10650_v31 = vcombine.low %v886_v20, %v894_v21  ;;  %v11290_v32 = vcombine.low %v1526_v29, %v1534_v30  ;;  %v11291_v33 = vcombine.high %v1526_v29, %v1534_v30  ;;  %v12815_v20 = vld [vmem:[#allocation7] ss:$2 sm:$0xff]  ;;  %v12818_v21 = vsub.s32 1, %v12810_v18 }
 0x10d   :  { %6941 = vmatprep.subr.bf16.mxu0 %v11291_v33 }
 0x10e   :  { %6819 = vmatpush1.bf16.msra.mxu1 %v10522_v34  ;;  %v10667_v34 = vcombine.high %v902_v27, %v910_v28  ;;  %6942 = vmatpush1.bf16.msra.mxu0 %v11290_v32 }
 0x10f   :  { %6820 = vmatprep.subr.bf16.mxu1 %v10539_v35  ;;  %v1542_v35 = vld [vmem:[#allocation8 + $0x1b80] sm:$0xff] }
 0x110   :  { %v11307_v39 = vcombine.high %v1542_v35, %v1550_v36 }
 0x112   :  { %6821 = vmatpush1.bf16.msra.mxu1 %v10538_v38  ;;  %v11306_v38 = vcombine.low %v1542_v35, %v1550_v36  ;;  %6943 = vmatprep.subr.bf16.mxu0 %v11307_v39  ;;  %v942_v35 = vld [vmem:[#allocation8 + $0x8c0] sm:$0xff] }
 0x113   :  { %6822 = vmatprep.subr.bf16.mxu1 %v10555_v41  ;;  %v1558_v41 = vld [vmem:[#allocation8 + $0x1c00] sm:$0xff] }
 0x114   :  { %6944 = vmatpush1.bf16.msra.mxu0 %v11306_v38  ;;  %v11322_v45 = vcombine.low %v1558_v41, %v1566_v44  ;;  %v11323_v47 = vcombine.high %v1558_v41, %v1566_v44  ;;  %v950_v39 = vld [vmem:[#allocation8 + $0x900] sm:$0xff] }
 0x116   :  { %6823 = vmatpush1.bf16.msra.mxu1 %v10554_v49  ;;  %6945 = vmatprep.subr.bf16.mxu0 %v11323_v47  ;;  %v1582_v49 = vld [vmem:[#allocation8 + $0x1cc0] sm:$0xff] }
 0x117   :  { %6824 = vmatprep.subr.bf16.mxu1 %v10571_v50  ;;  %v11338_v50 = vcombine.low %v1574_v48, %v1582_v49  ;;  %v11339_v0 = vcombine.high %v1574_v48, %v1582_v49  ;;  %v974_v47 = vld [vmem:[#allocation8 + $0x9c0] sm:$0xff] }
 0x118   :  { %6946 = vmatpush1.bf16.msra.mxu0 %v11322_v45  ;;  %v966_v45 = vld [vmem:[#allocation8 + $0x980] sm:$0xff] }
 0x119   :  { %6947 = vmatprep.subr.bf16.mxu0 %v11339_v0  ;;  %v10731_v49 = vcombine.high %v966_v45, %v974_v47  ;;  %v990_v0 = vld [vmem:[#allocation8 + $0xa40] sm:$0xff] }
 0x11a   :  { %6825 = vmatpush1.bf16.msra.mxu1 %v10570_v54  ;;  %v11355_v54 = vcombine.high %v1590_v51, %v1598_v52  ;;  %v10730_v51 = vcombine.low %v966_v45, %v974_v47  ;;  %v12855_v45 = vsub.s32 5, %v12810_v18 }
 0x11b   :  { %6826 = vmatprep.subr.bf16.mxu1 %v10587_v58  ;;  %v11370_v58 = vcombine.low %v1606_v55, %v1614_v57  ;;  %v1022_v55 = vld [vmem:[#allocation8 + $0xb40] sm:$0xff]  ;;  %v12840_v57 = vsub.s32 3, %v12810_v18 }
 0x11c   :  { %6948 = vmatpush1.bf16.msra.mxu0 %v11338_v50  ;;  %v982_v50 = vld [vmem:[#allocation8 + $0xa00] sm:$0xff] }
 0x11d   :  { %6949 = vmatprep.subr.bf16.mxu0 %v11355_v54  ;;  %v10747_v52 = vcombine.high %v982_v50, %v990_v0  ;;  %v1006_v54 = vld [vmem:[#allocation8 + $0xac0] sm:$0xff]  ;;  %v10746_v42 = vcombine.low %v982_v50, %v990_v0  ;;  %v12860_v50 = vsub.s32 6, %v12810_v18  ;;  %v12863_v0 = vsub.s32 7, %v12810_v18 }
 0x11e   :  { %6827 = vmatpush1.bf16.msra.mxu1 %v10586_v63  ;;  %v11387_v63 = vcombine.high %v1622_v60, %v1630_v61  ;;  %v1030_v60 = vld [vmem:[#allocation8 + $0xb80] sm:$0xff] }
 0x11f   :  { %6828 = vmatprep.subr.bf16.mxu1 %v10603_v3  ;;  %v11402_v3 = vcombine.low %v1638_v1, %v1646_v2  ;;  %v1038_v61 = vld [vmem:[#allocation8 + $0xbc0] sm:$0xff]  ;;  %v613_v2 = vrot.slane %v12820_v22, %v12840_v57 }
 0x120   :  { %6950 = vmatpush1.bf16.msra.mxu0 %v11354_v53  ;;  %v998_v53 = vld [vmem:[#allocation8 + $0xa80] sm:$0xff] }
 0x121   :  { %6951 = vmatprep.subr.bf16.mxu0 %v11371_v59  ;;  %v10763_v43 = vcombine.high %v998_v53, %v1006_v54 }
 0x122   :  { %6829 = vmatpush1.bf16.msra.mxu1 %v10602_v8  ;;  %v11419_v8 = vcombine.high %v1654_v5, %v1662_v6  ;;  %v1046_v5 = vld [vmem:[#allocation8 + $0xc00] sm:$0xff] }
 0x123   :  { %6830 = vmatprep.subr.bf16.mxu1 %v10619_v11  ;;  %v11434_v11 = vcombine.low %v1670_v9, %v1678_v10  ;;  %v1054_v6 = vld [vmem:[#allocation8 + $0xc40] sm:$0xff]  ;;  %v10794_v10 = vcombine.low %v1030_v60, %v1038_v61 }
 0x124   :  { %6952 = vmatpush1.bf16.msra.mxu0 %v11370_v58  ;;  %v10762_v58 = vcombine.low %v998_v53, %v1006_v54  ;;  %v570_v53 = vrot.slane %v12815_v20, %v12855_v45 }
 0x125   :  { %6953 = vmatprep.subr.bf16.mxu0 %v11387_v63 }
 0x126   :  { %6831 = vmatpush1.bf16.msra.mxu1 %v10618_v16  ;;  %v10431_v16 = vcombine.high %v12802_v13, %v12804_v14 }
 0x127   :  { %6832 = vmatprep.subr.bf16.mxu1 %v10635_v19  ;;  %v12813_v19 = vsub.s32 0, %v12810_v18 }
 0x128   :  { %6954 = vmatpush1.bf16.msra.mxu0 %v11386_v62  ;;  %v562_v62 = vrot.slane %v12815_v20, %v12840_v57 }
 0x129   :  { %6955 = vmatprep.subr.bf16.mxu0 %v11403_v4  ;;  %v550_v23 = vrot.slane %v12815_v20, %v12813_v19  ;;  %v601_v25 = vrot.slane %v12820_v22, %v12813_v19 }
 0x12a   :  { %6833 = vmatpush1.bf16.msra.mxu1 %v10634_v24  ;;  %v554_v24 = vrot.slane %v12815_v20, %v12818_v21 }
 0x12b   :  { %6834 = vmatprep.subr.bf16.mxu1 %v10651_v56  ;;  %v605_v56 = vrot.slane %v12820_v22, %v12818_v21 }
 0x12c   :  { %6956 = vmatpush1.bf16.msra.mxu0 %v11402_v3  ;;  %v10795_v3 = vcombine.high %v1030_v60, %v1038_v61  ;;  %v1166_v60 = vld [vmem:[#allocation8 + $0xfc0] sm:$0xff] }
 0x12d   :  { %6957 = vmatprep.subr.bf16.mxu0 %v11419_v8 }
 0x12e   :  { %6835 = vmatpush1.bf16.msra.mxu1 %v10650_v31 }
 0x12f   :  { %6836 = vmatprep.subr.bf16.mxu1 %v10667_v34  ;;  %v934_v34 = vld [vmem:[#allocation8 + $0x880] sm:$0xff] }
 0x130   :  { %6958 = vmatpush1.bf16.msra.mxu0 %v11418_v7  ;;  %v10699_v38 = vcombine.high %v934_v34, %v942_v35  ;;  %v10698_v41 = vcombine.low %v934_v34, %v942_v35  ;;  %v1110_v34 = vld [vmem:[#allocation8 + $0xe00] sm:$0xff] }
 0x131   :  { %6959 = vmatprep.subr.bf16.mxu0 %v11435_v12  ;;  %v10811_v12 = vcombine.high %v1046_v5, %v1054_v6  ;;  %v1118_v35 = vld [vmem:[#allocation8 + $0xe40] sm:$0xff] }
 0x132   :  { %6837 = vmatpush1.bf16.msra.mxu1 %v10666_v37  ;;  %v10874_v47 = vcombine.low %v1110_v34, %v1118_v35 }
 0x133   :  { %6847 = vmatprep.subr.bf16.mxu1 %v10683_v40  ;;  %v958_v40 = vld [vmem:[#allocation8 + $0x940] sm:$0xff] }
 0x134   :  { %6960 = vmatpush1.bf16.msra.mxu0 %v11434_v11  ;;  %v10715_v44 = vcombine.high %v950_v39, %v958_v40  ;;  %v10714_v48 = vcombine.low %v950_v39, %v958_v40  ;;  %v10875_v39 = vcombine.high %v1110_v34, %v1118_v35  ;;  %v12852_v40 = vsub.s32 2, %v12810_v18 }
 0x135   :  { %7134 = vmatprep.subr.bf16.mxu0 %v10431_v16  ;;  %v1062_v16 = vld [vmem:[#allocation8 + $0xc80] sm:$0xff] }
 0x188   :  { %v327_v26 = vpop.f32.mrb[0].mxu1 }
 0x189   :  { %v587_v27 = vmul.f32 %v550_v23, %v327_v26  ;;  %v329_v28 = vpop.f32.mrb[1].mxu1  ;;  %v10827_v26 = vcombine.high %v1062_v16, %v1070_v17 }
 0x18a   :  { %v588_v29 = vmul.f32 %v554_v24, %v329_v28  ;;  %v10810_v24 = vcombine.low %v1046_v5, %v1054_v6  ;;  %v10826_v28 = vcombine.low %v1062_v16, %v1070_v17 }
 0x18b   :  { %v638_v30 = vadd.f32 %v601_v25, %v587_v27  ;;  %v1086_v27 = vld [vmem:[#allocation8 + $0xd40] sm:$0xff] }
 0x18c   :  { %v639_v31 = vadd.f32 %v605_v56, %v588_v29  ;;  %v1078_v56 = vld [vmem:[#allocation8 + $0xd00] sm:$0xff] }
 0x18d   :  { %v646_v32 = vmax.f32 %v638_v30, 0.0  ;;  %v10843_v29 = vcombine.high %v1078_v56, %v1086_v27  ;;  %v1094_v30 = vld [vmem:[#allocation8 + $0xd80] sm:$0xff] }
 0x18e   :  { %v647_v33 = vmax.f32 %v639_v31, 0.0  ;;  %v1102_v31 = vld [vmem:[#allocation8 + $0xdc0] sm:$0xff] }
 0x18f   :  { %v12832_v37 = vpack.c.bf16 %v646_v32, %v646_v32  ;;  %v10842_v32 = vcombine.low %v1078_v56, %v1086_v27 }
 0x190   :  { %v12830_v36 = vpack.c.bf16 %v647_v33, %v647_v33  ;;  %v10859_v33 = vcombine.high %v1094_v30, %v1102_v31 }
 0x192   :  { %6838 = vmatprep.mubr.bf16.mxu1 %v12830_v36 }
 0x193   :  { %6839 = vmatmul.mubr.bf16.vlgmr.msra.gmra.mrb[8].mxu1 %v12832_v37 }
 0x194   :  { %6848 = vmatpush1.bf16.msra.mxu1 %v10682_v46  ;;  %v1014_v46 = vld [vmem:[#allocation8 + $0xb00] sm:$0xff] }
 0x195   :  { %6849 = vmatprep.subr.bf16.mxu1 %v10699_v38  ;;  %v10779_v59 = vcombine.high %v1014_v46, %v1022_v55  ;;  %v10778_v63 = vcombine.low %v1014_v46, %v1022_v55  ;;  %v10858_v38 = vcombine.low %v1094_v30, %v1102_v31  ;;  %v574_v46 = vrot.slane %v12815_v20, %v12860_v50 }
 0x198   :  { %6850 = vmatpush1.bf16.msra.mxu1 %v10698_v41  ;;  %v1126_v41 = vld [vmem:[#allocation8 + $0xe80] sm:$0xff] }
 0x199   :  { %6851 = vmatprep.subr.bf16.mxu1 %v10715_v44  ;;  %v12846_v8 = vpop.f32.mrb[0].mxu0  ;;  %v1134_v44 = vld [vmem:[#allocation8 + $0xec0] sm:$0xff] }
 0x19a   :  { %v471_v9 = vpop.f32.mrb[1].mxu0  ;;  %v10890_v54 = vcombine.low %v1126_v41, %v1134_v44 }
 0x19b   :  { %v592_v61 = vmul.f32 %v570_v53, %v471_v9  ;;  %v1182_v9 = vld [vmem:[#allocation8 + $0x1040] sm:$0xff] }
 0x19c   :  { %6852 = vmatpush1.bf16.msra.mxu1 %v10714_v48  ;;  %v558_v48 = vrot.slane %v12815_v20, %v12852_v40 }
 0x19d   :  { %6853 = vmatprep.subr.bf16.mxu1 %v10731_v49  ;;  %v10891_v49 = vcombine.high %v1126_v41, %v1134_v44  ;;  %v1206_v41 = vld [vmem:[#allocation8 + $0x1100] sm:$0xff] }
 0x1a0   :  { %6854 = vmatpush1.bf16.msra.mxu1 %v10730_v51  ;;  %v1142_v51 = vld [vmem:[#allocation8 + $0xf00] sm:$0xff] }
 0x1a1   :  { %6855 = vmatprep.subr.bf16.mxu1 %v10747_v52  ;;  %v1150_v52 = vld [vmem:[#allocation8 + $0xf40] sm:$0xff] }
 0x1a2   :  { %v10907_v55 = vcombine.high %v1142_v51, %v1150_v52 }
 0x1a4   :  { %6856 = vmatpush1.bf16.msra.mxu1 %v10746_v42 }
 0x1a5   :  { %6857 = vmatprep.subr.bf16.mxu1 %v10763_v43  ;;  %v609_v43 = vrot.slane %v12820_v22, %v12852_v40 }
 0x1a8   :  { %6858 = vmatpush1.bf16.msra.mxu1 %v10762_v58  ;;  %v398_v1 = vpop.f32.mrb[2].mxu1  ;;  %v578_v58 = vrot.slane %v12815_v20, %v12863_v0 }
 0x1a9   :  { %6859 = vmatprep.subr.bf16.mxu1 %v10779_v59  ;;  %v400_v4 = vpop.f32.mrb[3].mxu1  ;;  %v589_v42 = vmul.f32 %v558_v48, %v398_v1  ;;  %v1158_v59 = vld [vmem:[#allocation8 + $0xf80] sm:$0xff]  ;;  %v696_v48 = vld [vmem:[#allocation8 + $0x110] sm:$0xff] }
 0x1aa   :  { %v590_v7 = vmul.f32 %v562_v62, %v400_v4  ;;  %v621_v62 = vrot.slane %v12820_v22, %v12855_v45 }
 0x1ab   :  { %v640_v4 = vadd.f32 %v609_v43, %v589_v42  ;;  %v1222_v43 = vld [vmem:[#allocation8 + $0x1180] sm:$0xff] }
 0x1ac   :  { %6860 = vmatpush1.bf16.msra.mxu1 %v10778_v63  ;;  %v641_v11 = vadd.f32 %v613_v2, %v590_v7  ;;  %v625_v63 = vrot.slane %v12820_v22, %v12860_v50  ;;  %v629_v2 = vrot.slane %v12820_v22, %v12863_v0  ;;  %v10923_v7 = vcombine.high %v1158_v59, %v1166_v60 }
 0x1ad   :  { %6861 = vmatprep.subr.bf16.mxu1 %v10795_v3  ;;  %v10906_v3 = vcombine.low %v1142_v51, %v1150_v52 }
 0x1ae   :  { %v649_v23 = vmax.f32 %v641_v11, 0.0  ;;  %v1174_v11 = vld [vmem:[#allocation8 + $0x1000] sm:$0xff] }
 0x1af   :  { %v10939_v56 = vcombine.high %v1174_v11, %v1182_v9  ;;  %v10938_v35 = vcombine.low %v1174_v11, %v1182_v9 }
 0x1b0   :  { %6862 = vmatpush1.bf16.msra.mxu1 %v10794_v10  ;;  %v12848_v25 = vpack.c.bf16 %v649_v23, %v649_v23  ;;  %v10922_v23 = vcombine.low %v1158_v59, %v1166_v60 }
 0x1b1   :  { %6863 = vmatprep.subr.bf16.mxu1 %v10811_v12  ;;  %v643_v12 = vadd.f32 %v621_v62, %v592_v61  ;;  %v1246_v61 = vld [vmem:[#allocation8 + $0x1240] sm:$0xff]  ;;  %v728_v62 = vld [vmem:[#allocation8 + $0x210] sm:$0xff] }
 0x1b2   :  { %6879 = vmatprep.mubr.bf16.mxu1 %v12848_v25 }
 0x1b3   :  { %v651_v30 = vmax.f32 %v643_v12, 0.0 }
 0x1b4   :  { %6864 = vmatpush1.bf16.msra.mxu1 %v10810_v24  ;;  %v648_v24 = vmax.f32 %v640_v4, 0.0 }
 0x1b5   :  { %6865 = vmatprep.subr.bf16.mxu1 %v10827_v26  ;;  %v12886_v51 = vpack.c.bf16 %v651_v30, %v651_v30  ;;  %v1286_v30 = vld [vmem:[#allocation8 + $0x1380] sm:$0xff] }
 0x1b8   :  { %6866 = vmatpush1.bf16.msra.mxu1 %v10826_v28  ;;  %v1190_v28 = vld [vmem:[#allocation8 + $0x1080] sm:$0xff] }
 0x1b9   :  { %6867 = vmatprep.subr.bf16.mxu1 %v10843_v29  ;;  %v1198_v29 = vld [vmem:[#allocation8 + $0x10c0] sm:$0xff] }
 0x1ba   :  { %v10954_v52 = vcombine.low %v1190_v28, %v1198_v29 }
 0x1bc   :  { %6868 = vmatpush1.bf16.msra.mxu1 %v10842_v32  ;;  %v680_v32 = vld [vmem:[#allocation8 + $0x90] sm:$0xff] }
 0x1bd   :  { %6869 = vmatprep.subr.bf16.mxu1 %v10859_v33  ;;  %v688_v33 = vld [vmem:[#allocation8 + $0xd0] sm:$0xff] }
 0x1be   :  { %v10447_v44 = vcombine.high %v680_v32, %v688_v33  ;;  %v10446_v53 = vcombine.low %v680_v32, %v688_v33  ;;  %v1294_v32 = vld [vmem:[#allocation8 + $0x13c0] sm:$0xff]  ;;  %v776_v33 = vld [vmem:[#allocation8 + $0x390] sm:$0xff] }
 0x1c0   :  { %6870 = vmatpush1.bf16.msra.mxu1 %v10858_v38  ;;  %v12883_v38 = vpack.c.bf16 %v648_v24, %v648_v24  ;;  %v760_v24 = vld [vmem:[#allocation8 + $0x310] sm:$0xff] }
 0x1c1   :  { %6871 = vmatprep.subr.bf16.mxu1 %v10875_v39  ;;  %v10955_v39 = vcombine.high %v1190_v28, %v1198_v29 }
 0x1c4   :  { %6872 = vmatpush1.bf16.msra.mxu1 %v10874_v47  ;;  %v1214_v47 = vld [vmem:[#allocation8 + $0x1140] sm:$0xff] }
 0x1c5   :  { %6873 = vmatprep.subr.bf16.mxu1 %v10891_v49  ;;  %v704_v49 = vld [vmem:[#allocation8 + $0x150] sm:$0xff]  ;;  %v10970_v59 = vcombine.low %v1206_v41, %v1214_v47 }
 0x1c6   :  { %v10463_v42 = vcombine.high %v696_v48, %v704_v49  ;;  %v10462_v60 = vcombine.low %v696_v48, %v704_v49  ;;  %v1302_v48 = vld [vmem:[#allocation8 + $0x1400] sm:$0xff] }
 0x1c7   :  { %v1310_v49 = vld [vmem:[#allocation8 + $0x1440] sm:$0xff] }
 0x1c8   :  { %6874 = vmatpush1.bf16.msra.mxu1 %v10890_v54  ;;  %v540_v1 = vpop.f32.mrb[4].mxu1  ;;  %v10971_v54 = vcombine.high %v1206_v41, %v1214_v47 }
 0x1c9   :  { %v593_v5 = vmul.f32 %v574_v46, %v540_v1  ;;  %v542_v6 = vpop.f32.mrb[5].mxu1  ;;  %6875 = vmatprep.subr.bf16.mxu1 %v10907_v55  ;;  %v1230_v46 = vld [vmem:[#allocation8 + $0x11c0] sm:$0xff]  ;;  %v712_v55 = vld [vmem:[#allocation8 + $0x190] sm:$0xff] }
 0x1ca   :  { %v594_v10 = vmul.f32 %v578_v58, %v542_v6  ;;  %v720_v58 = vld [vmem:[#allocation8 + $0x1d0] sm:$0xff]  ;;  %v10987_v13 = vcombine.high %v1222_v43, %v1230_v46  ;;  %v10986_v1 = vcombine.low %v1222_v43, %v1230_v46  ;;  %v1262_v6 = vld [vmem:[#allocation8 + $0x12c0] sm:$0xff]  ;;  %v11067_v43 = vcombine.high %v1302_v48, %v1310_v49 }
 0x1cb   :  { %v644_v16 = vadd.f32 %v625_v63, %v593_v5  ;;  %v10479_v14 = vcombine.high %v712_v55, %v720_v58  ;;  %v736_v63 = vld [vmem:[#allocation8 + $0x250] sm:$0xff]  ;;  %v1254_v5 = vld [vmem:[#allocation8 + $0x1280] sm:$0xff] }
 0x1cc   :  { %v645_v17 = vadd.f32 %v629_v2, %v594_v10  ;;  %6876 = vmatpush1.bf16.msra.mxu1 %v10906_v3  ;;  %v10478_v2 = vcombine.low %v712_v55, %v720_v58  ;;  %v10495_v4 = vcombine.high %v728_v62, %v736_v63  ;;  %v752_v10 = vld [vmem:[#allocation8 + $0x2d0] sm:$0xff]  ;;  %v10494_v9 = vcombine.low %v728_v62, %v736_v63  ;;  %v1318_v55 = vld [vmem:[#allocation8 + $0x1480] sm:$0xff] }
 0x1cd   :  { %v652_v26 = vmax.f32 %v644_v16, 0.0  ;;  %6877 = vmatprep.subr.bf16.mxu1 %v10923_v7  ;;  %v744_v7 = vld [vmem:[#allocation8 + $0x290] sm:$0xff]  ;;  %v11019_v12 = vcombine.high %v1254_v5, %v1262_v6  ;;  %v1326_v58 = vld [vmem:[#allocation8 + $0x14c0] sm:$0xff] }
 0x1ce   :  { %v653_v27 = vmax.f32 %v645_v17, 0.0  ;;  %v10511_v16 = vcombine.high %v744_v7, %v752_v10  ;;  %v1270_v17 = vld [vmem:[#allocation8 + $0x1300] sm:$0xff] }
 0x1cf   :  { %v12879_v31 = vpack.c.bf16 %v652_v26, %v652_v26  ;;  %v768_v26 = vld [vmem:[#allocation8 + $0x350] sm:$0xff]  ;;  %v1334_v62 = vld [vmem:[#allocation8 + $0x1500] sm:$0xff] }
 0x1d0   :  { %v12881_v34 = vpack.c.bf16 %v653_v27, %v653_v27  ;;  %6878 = vmatpush1.bf16.msra.mxu1 %v10922_v23  ;;  %v1278_v23 = vld [vmem:[#allocation8 + $0x1340] sm:$0xff]  ;;  %v10510_v27 = vcombine.low %v744_v7, %v752_v10  ;;  %v10527_v29 = vcombine.high %v760_v24, %v768_v26  ;;  %v10526_v41 = vcombine.low %v760_v24, %v768_v26 }
 0x1d1   :  { %6888 = vmatprep.subr.bf16.mxu1 %v10939_v56  ;;  %v11018_v56 = vcombine.low %v1254_v5, %v1262_v6  ;;  %v11035_v28 = vcombine.high %v1270_v17, %v1278_v23  ;;  %v1342_v63 = vld [vmem:[#allocation8 + $0x1540] sm:$0xff] }
 0x1d2   :  { %6961 = vmatprep.mubr.bf16.mxu0 %v12881_v34  ;;  %v11099_v5 = vcombine.high %v1334_v62, %v1342_v63  ;;  %v1350_v7 = vld [vmem:[#allocation8 + $0x1580] sm:$0xff] }
 0x1d3   :  { %6880 = vmatmul.mubr.bf16.vlgmr.msra.gmra.mrb[8].mxu1 %v12883_v38  ;;  %6962 = vmatmul.mubr.bf16.vlgmr.msra.gmra.mrb[4].mxu0 %v12879_v31  ;;  %v1358_v10 = vld [vmem:[#allocation8 + $0x15c0] sm:$0xff] }
 0x1d4   :  { %6889 = vmatpush1.bf16.msra.mxu1 %v10938_v35  ;;  %7135 = vmatpush1.bf16.msra.mxu0 %v10430_v15  ;;  %v1238_v15 = vld [vmem:[#allocation8 + $0x1200] sm:$0xff]  ;;  %v784_v35 = vld [vmem:[#allocation8 + $0x3d0] sm:$0xff] }
 0x1d5   :  { %7166 = vmatprep.mubr.bf16.mxu0 %v12830_v36  ;;  %6890 = vmatprep.subr.bf16.mxu1 %v10955_v39  ;;  %v11003_v3 = vcombine.high %v1238_v15, %v1246_v61  ;;  %v11002_v11 = vcombine.low %v1238_v15, %v1246_v61  ;;  %v11034_v39 = vcombine.low %v1270_v17, %v1278_v23  ;;  %v1366_v24 = vld [vmem:[#allocation8 + $0x1600] sm:$0xff] }
 0x1d6   :  { %7136 = vmatprep.subr.bf16.mxu0 %v10447_v44  ;;  %6920 = vmatprep.mubr.bf16.mxu1 %v12886_v51  ;;  %v11051_v44 = vcombine.high %v1286_v30, %v1294_v32  ;;  %v10543_v47 = vcombine.high %v776_v33, %v784_v35  ;;  %v11083_v15 = vcombine.high %v1318_v55, %v1326_v58  ;;  %v1374_v26 = vld [vmem:[#allocation8 + $0x1640] sm:$0xff] }
 0x1d7   :  { %v11115_v17 = vcombine.high %v1350_v7, %v1358_v10 }
 0x1d8   :  { %6891 = vmatpush1.bf16.msra.mxu1 %v10954_v52  ;;  %7137 = vmatpush1.bf16.msra.mxu0 %v10446_v53  ;;  %v792_v52 = vld [vmem:[#allocation8 + $0x410] sm:$0xff] }
 0x1d9   :  { %6892 = vmatprep.subr.bf16.mxu1 %v10971_v54  ;;  %7138 = vmatprep.subr.bf16.mxu0 %v10463_v42  ;;  %v800_v53 = vld [vmem:[#allocation8 + $0x450] sm:$0xff]  ;;  %v11050_v54 = vcombine.low %v1286_v30, %v1294_v32  ;;  %v10542_v42 = vcombine.low %v776_v33, %v784_v35  ;;  %v11131_v32 = vcombine.high %v1366_v24, %v1374_v26  ;;  %v1382_v35 = vld [vmem:[#allocation8 + $0x1680] sm:$0xff] }
 0x1da   :  { %v10559_v46 = vcombine.high %v792_v52, %v800_v53 }
 0x1dc   :  { %6893 = vmatpush1.bf16.msra.mxu1 %v10970_v59  ;;  %7139 = vmatpush1.bf16.msra.mxu0 %v10462_v60  ;;  %v808_v59 = vld [vmem:[#allocation8 + $0x490] sm:$0xff] }
 0x1dd   :  { %6894 = vmatprep.subr.bf16.mxu1 %v10987_v13  ;;  %7140 = vmatprep.subr.bf16.mxu0 %v10479_v14  ;;  %v816_v60 = vld [vmem:[#allocation8 + $0x4d0] sm:$0xff]  ;;  %v11066_v13 = vcombine.low %v1302_v48, %v1310_v49  ;;  %v10558_v14 = vcombine.low %v792_v52, %v800_v53  ;;  %v11130_v48 = vcombine.low %v1366_v24, %v1374_v26  ;;  %v1398_v53 = vld [vmem:[#allocation8 + $0x1700] sm:$0xff] }
 0x1de   :  { %v10575_v61 = vcombine.high %v808_v59, %v816_v60  ;;  %v944_v24 = vld [vmem:[#allocation8 + $0x8d0] sm:$0xff] }
 0x1e0   :  { %6895 = vmatpush1.bf16.msra.mxu1 %v10986_v1  ;;  %7141 = vmatpush1.bf16.msra.mxu0 %v10478_v2  ;;  %v824_v1 = vld [vmem:[#allocation8 + $0x510] sm:$0xff] }
 0x1e1   :  { %6896 = vmatprep.subr.bf16.mxu1 %v11003_v3  ;;  %7142 = vmatprep.subr.bf16.mxu0 %v10495_v4  ;;  %v832_v2 = vld [vmem:[#allocation8 + $0x550] sm:$0xff]  ;;  %v11082_v3 = vcombine.low %v1318_v55, %v1326_v58  ;;  %v10574_v4 = vcombine.low %v808_v59, %v816_v60 }
 0x1e2   :  { %v10591_v6 = vcombine.high %v824_v1, %v832_v2 }
 0x1e4   :  { %6897 = vmatpush1.bf16.msra.mxu1 %v11002_v11  ;;  %7143 = vmatpush1.bf16.msra.mxu0 %v10494_v9  ;;  %v840_v11 = vld [vmem:[#allocation8 + $0x590] sm:$0xff] }
 0x1e5   :  { %6898 = vmatprep.subr.bf16.mxu1 %v11019_v12  ;;  %7144 = vmatprep.subr.bf16.mxu0 %v10511_v16  ;;  %v848_v9 = vld [vmem:[#allocation8 + $0x5d0] sm:$0xff]  ;;  %v11098_v12 = vcombine.low %v1334_v62, %v1342_v63  ;;  %v10590_v16 = vcombine.low %v824_v1, %v832_v2  ;;  %v663_v2 = vld [vmem:[#allocation8 + $0x8] sm:$0xff] }
 0x1e6   :  { %v10607_v23 = vcombine.high %v840_v11, %v848_v9  ;;  %v10606_v30 = vcombine.low %v840_v11, %v848_v9 }
 0x1e8   :  { %6899 = vmatpush1.bf16.msra.mxu1 %v11018_v56  ;;  %7145 = vmatpush1.bf16.msra.mxu0 %v10510_v27  ;;  %v856_v56 = vld [vmem:[#allocation8 + $0x610] sm:$0xff] }
 0x1e9   :  { %6900 = vmatprep.subr.bf16.mxu1 %v11035_v28  ;;  %7146 = vmatprep.subr.bf16.mxu0 %v10527_v29  ;;  %v864_v27 = vld [vmem:[#allocation8 + $0x650] sm:$0xff]  ;;  %v12896_v28 = vsub.s32 4, %v12810_v18  ;;  %v11114_v29 = vcombine.low %v1350_v7, %v1358_v10 }
 0x1ea   :  { %v10623_v33 = vcombine.high %v856_v56, %v864_v27  ;;  %v10622_v18 = vcombine.low %v856_v56, %v864_v27 }
 0x1eb   :  { %v617_v55 = vrot.slane %v12820_v22, %v12896_v28 }
 0x1ec   :  { %6901 = vmatpush1.bf16.msra.mxu1 %v11034_v39  ;;  %7147 = vmatpush1.bf16.msra.mxu0 %v10526_v41  ;;  %v1390_v39 = vld [vmem:[#allocation8 + $0x16c0] sm:$0xff]  ;;  %v872_v41 = vld [vmem:[#allocation8 + $0x690] sm:$0xff] }
 0x1ed   :  { %6902 = vmatprep.subr.bf16.mxu1 %v11051_v44  ;;  %7148 = vmatprep.subr.bf16.mxu0 %v10543_v47  ;;  %v880_v44 = vld [vmem:[#allocation8 + $0x6d0] sm:$0xff]  ;;  %v566_v47 = vrot.slane %v12815_v20, %v12896_v28  ;;  %v11147_v49 = vcombine.high %v1382_v35, %v1390_v39  ;;  %v11146_v20 = vcombine.low %v1382_v35, %v1390_v39 }
 0x1ee   :  { %v10639_v52 = vcombine.high %v872_v41, %v880_v44  ;;  %v10638_v58 = vcombine.low %v872_v41, %v880_v44  ;;  %v960_v35 = vld [vmem:[#allocation8 + $0x950] sm:$0xff] }
 0x1f0   :  { %6903 = vmatpush1.bf16.msra.mxu1 %v11050_v54  ;;  %7149 = vmatpush1.bf16.msra.mxu0 %v10542_v42  ;;  %v1406_v54 = vld [vmem:[#allocation8 + $0x1740] sm:$0xff]  ;;  %v888_v42 = vld [vmem:[#allocation8 + $0x710] sm:$0xff] }
 0x1f1   :  { %6904 = vmatprep.subr.bf16.mxu1 %v11067_v43  ;;  %7150 = vmatprep.subr.bf16.mxu0 %v10559_v46  ;;  %v896_v43 = vld [vmem:[#allocation8 + $0x750] sm:$0xff]  ;;  %v591_v46 = vmul.f32 %v566_v47, %v12846_v8  ;;  %v11163_v59 = vcombine.high %v1398_v53, %v1406_v54  ;;  %v11162_v63 = vcombine.low %v1398_v53, %v1406_v54 }
 0x1f2   :  { %v10655_v60 = vcombine.high %v888_v42, %v896_v43  ;;  %v10654_v8 = vcombine.low %v888_v42, %v896_v43 }
 0x1f3   :  { %v642_v62 = vadd.f32 %v617_v55, %v591_v46  ;;  %v727_v46 = vld [vmem:[#allocation8 + $0x208] sm:$0xff] }
 0x1f4   :  { %6905 = vmatpush1.bf16.msra.mxu1 %v11066_v13  ;;  %7151 = vmatpush1.bf16.msra.mxu0 %v10558_v14  ;;  %v1414_v13 = vld [vmem:[#allocation8 + $0x1780] sm:$0xff]  ;;  %v735_v55 = vld [vmem:[#allocation8 + $0x248] sm:$0xff] }
 0x1f5   :  { %6906 = vmatprep.subr.bf16.mxu1 %v11083_v15  ;;  %7152 = vmatprep.subr.bf16.mxu0 %v10575_v61  ;;  %v1422_v14 = vld [vmem:[#allocation8 + $0x17c0] sm:$0xff]  ;;  %v904_v15 = vld [vmem:[#allocation8 + $0x790] sm:$0xff] }
 0x1f6   :  { %v912_v61 = vld [vmem:[#allocation8 + $0x7d0] sm:$0xff]  ;;  %v11179_v22 = vcombine.high %v1414_v13, %v1422_v14  ;;  %v11178_v7 = vcombine.low %v1414_v13, %v1422_v14  ;;  %v10493_v13 = vcombine.high %v727_v46, %v735_v55 }
 0x1f7   :  { %v10671_v1 = vcombine.high %v904_v15, %v912_v61  ;;  %v10670_v10 = vcombine.low %v904_v15, %v912_v61  ;;  %v743_v15 = vld [vmem:[#allocation8 + $0x288] sm:$0xff] }
 0x1f8   :  { %6907 = vmatpush1.bf16.msra.mxu1 %v11082_v3  ;;  %7153 = vmatpush1.bf16.msra.mxu0 %v10574_v4  ;;  %v671_v3 = vld [vmem:[#allocation8 + $0x48] sm:$0xff]  ;;  %v920_v4 = vld [vmem:[#allocation8 + $0x810] sm:$0xff] }
 0x1f9   :  { %6908 = vmatprep.subr.bf16.mxu1 %v11099_v5  ;;  %7154 = vmatprep.subr.bf16.mxu0 %v10591_v6  ;;  %v928_v5 = vld [vmem:[#allocation8 + $0x850] sm:$0xff]  ;;  %v650_v6 = vmax.f32 %v642_v62, 0.0  ;;  %v10429_v11 = vcombine.high %v663_v2, %v671_v3  ;;  %v10428_v26 = vcombine.low %v663_v2, %v671_v3  ;;  %v751_v61 = vld [vmem:[#allocation8 + $0x2c8] sm:$0xff] }
 0x1fa   :  { %v10687_v9 = vcombine.high %v920_v4, %v928_v5  ;;  %v10686_v56 = vcombine.low %v920_v4, %v928_v5  ;;  %v1000_v62 = vld [vmem:[#allocation8 + $0xa90] sm:$0xff]  ;;  %v759_v3 = vld [vmem:[#allocation8 + $0x308] sm:$0xff] }
 0x1fb   :  { %v767_v4 = vld [vmem:[#allocation8 + $0x348] sm:$0xff]  ;;  %v1016_v5 = vld [vmem:[#allocation8 + $0xb10] sm:$0xff] }
 0x1fc   :  { %6909 = vmatpush1.bf16.msra.mxu1 %v11098_v12  ;;  %7155 = vmatpush1.bf16.msra.mxu0 %v10590_v16  ;;  %v679_v12 = vld [vmem:[#allocation8 + $0x88] sm:$0xff]  ;;  %v12903_v16 = vpack.c.bf16 %v650_v6, %v650_v6  ;;  %v1024_v6 = vld [vmem:[#allocation8 + $0xb50] sm:$0xff] }
 0x1fd   :  { %6910 = vmatprep.subr.bf16.mxu1 %v11115_v17  ;;  %7156 = vmatprep.subr.bf16.mxu0 %v10607_v23  ;;  %v687_v17 = vld [vmem:[#allocation8 + $0xc8] sm:$0xff]  ;;  %v936_v23 = vld [vmem:[#allocation8 + $0x890] sm:$0xff] }
 0x1fe   :  { %v10445_v27 = vcombine.high %v679_v12, %v687_v17  ;;  %v10444_v39 = vcombine.low %v679_v12, %v687_v17  ;;  %v10702_v41 = vcombine.low %v936_v23, %v944_v24  ;;  %v775_v12 = vld [vmem:[#allocation8 + $0x388] sm:$0xff] }
 0x1ff   :  { %v783_v17 = vld [vmem:[#allocation8 + $0x3c8] sm:$0xff] }
 0x200   :  { %6911 = vmatpush1.bf16.msra.mxu1 %v11114_v29  ;;  %7157 = vmatpush1.bf16.msra.mxu0 %v10606_v30  ;;  %v10703_v29 = vcombine.high %v936_v23, %v944_v24  ;;  %v695_v30 = vld [vmem:[#allocation8 + $0x108] sm:$0xff]  ;;  %v1032_v23 = vld [vmem:[#allocation8 + $0xb90] sm:$0xff] }
 0x201   :  { %6912 = vmatprep.subr.bf16.mxu1 %v11131_v32  ;;  %7158 = vmatprep.subr.bf16.mxu0 %v10623_v33  ;;  %v703_v32 = vld [vmem:[#allocation8 + $0x148] sm:$0xff]  ;;  %v952_v33 = vld [vmem:[#allocation8 + $0x910] sm:$0xff] }
 0x202   :  { %v10461_v44 = vcombine.high %v695_v30, %v703_v32  ;;  %v10719_v47 = vcombine.high %v952_v33, %v960_v35  ;;  %v10460_v53 = vcombine.low %v695_v30, %v703_v32  ;;  %v10718_v54 = vcombine.low %v952_v33, %v960_v35  ;;  %v1040_v24 = vld [vmem:[#allocation8 + $0xbd0] sm:$0xff]  ;;  %v791_v30 = vld [vmem:[#allocation8 + $0x408] sm:$0xff] }
 0x203   :  { %v799_v32 = vld [vmem:[#allocation8 + $0x448] sm:$0xff]  ;;  %v1048_v33 = vld [vmem:[#allocation8 + $0xc10] sm:$0xff] }
 0x204   :  { %6913 = vmatpush1.bf16.msra.mxu1 %v11130_v48  ;;  %7159 = vmatpush1.bf16.msra.mxu0 %v10622_v18  ;;  %v711_v48 = vld [vmem:[#allocation8 + $0x188] sm:$0xff]  ;;  %v1056_v35 = vld [vmem:[#allocation8 + $0xc50] sm:$0xff] }
 0x205   :  { %6914 = vmatprep.subr.bf16.mxu1 %v11147_v49  ;;  %7160 = vmatprep.subr.bf16.mxu0 %v10639_v52  ;;  %v719_v18 = vld [vmem:[#allocation8 + $0x1c8] sm:$0xff]  ;;  %v968_v49 = vld [vmem:[#allocation8 + $0x990] sm:$0xff] }
 0x206   :  { %v976_v52 = vld [vmem:[#allocation8 + $0x9d0] sm:$0xff]  ;;  %v10477_v42 = vcombine.high %v711_v48, %v719_v18 }
 0x207   :  { %v10735_v43 = vcombine.high %v968_v49, %v976_v52 }
 0x208   :  { %6915 = vmatpush1.bf16.msra.mxu1 %v11146_v20  ;;  %7161 = vmatpush1.bf16.msra.mxu0 %v10638_v58  ;;  %v984_v20 = vld [vmem:[#allocation8 + $0xa10] sm:$0xff] }
 0x209   :  { %6916 = vmatprep.subr.bf16.mxu1 %v11163_v59  ;;  %7162 = vmatprep.subr.bf16.mxu0 %v10655_v60  ;;  %v992_v58 = vld [vmem:[#allocation8 + $0xa50] sm:$0xff]  ;;  %v10476_v59 = vcombine.low %v711_v48, %v719_v18  ;;  %v10734_v60 = vcombine.low %v968_v49, %v976_v52  ;;  %v807_v48 = vld [vmem:[#allocation8 + $0x488] sm:$0xff] }
 0x20a   :  { %v10751_v14 = vcombine.high %v984_v20, %v992_v58  ;;  %v815_v18 = vld [vmem:[#allocation8 + $0x4c8] sm:$0xff]  ;;  %v1064_v49 = vld [vmem:[#allocation8 + $0xc90] sm:$0xff] }
 0x20b   :  { %v1072_v52 = vld [vmem:[#allocation8 + $0xcd0] sm:$0xff] }
 0x20c   :  { %6917 = vmatpush1.bf16.msra.mxu1 %v11162_v63  ;;  %7163 = vmatpush1.bf16.msra.mxu0 %v10654_v8  ;;  %v1008_v63 = vld [vmem:[#allocation8 + $0xad0] sm:$0xff]  ;;  %v10492_v8 = vcombine.low %v727_v46, %v735_v55  ;;  %v823_v46 = vld [vmem:[#allocation8 + $0x508] sm:$0xff] }
 0x20d   :  { %6918 = vmatprep.subr.bf16.mxu1 %v11179_v22  ;;  %7164 = vmatprep.subr.bf16.mxu0 %v10671_v1  ;;  %v10750_v22 = vcombine.low %v984_v20, %v992_v58  ;;  %v10509_v1 = vcombine.high %v743_v15, %v751_v61  ;;  %v10767_v2 = vcombine.high %v1000_v62, %v1008_v63  ;;  %v831_v55 = vld [vmem:[#allocation8 + $0x548] sm:$0xff]  ;;  %v1080_v20 = vld [vmem:[#allocation8 + $0xd10] sm:$0xff] }
 0x20e   :  { %v1088_v58 = vld [vmem:[#allocation8 + $0xd50] sm:$0xff] }
 0x210   :  { %6919 = vmatpush1.bf16.msra.mxu1 %v11178_v7  ;;  %7165 = vmatpush1.bf16.msra.mxu0 %v10670_v10  ;;  %v10508_v7 = vcombine.low %v743_v15, %v751_v61  ;;  %v10766_v10 = vcombine.low %v1000_v62, %v1008_v63  ;;  %v839_v15 = vld [vmem:[#allocation8 + $0x588] sm:$0xff]  ;;  %v1096_v62 = vld [vmem:[#allocation8 + $0xd90] sm:$0xff] }
 0x211   :  { %6970 = vmatprep.subr.bf16.mxu1 %v10429_v11  ;;  %7175 = vmatprep.subr.bf16.mxu0 %v10687_v9  ;;  %v10525_v11 = vcombine.high %v759_v3, %v767_v4  ;;  %v10783_v9 = vcombine.high %v1016_v5, %v1024_v6  ;;  %v847_v61 = vld [vmem:[#allocation8 + $0x5c8] sm:$0xff]  ;;  %v1104_v63 = vld [vmem:[#allocation8 + $0xdd0] sm:$0xff] }
 0x213   :  { %6921 = vmatmul.mubr.bf16.vlgmr.msra.gmra.mrb[8].mxu1 %v12903_v16  ;;  %7167 = vmatmul.mubr.bf16.vlgmr.msra.gmra.mrb[8].mxu0 %v12832_v37 }
 0x214   :  { %6971 = vmatpush1.bf16.msra.mxu1 %v10428_v26  ;;  %7002 = vmatprep.mubr.bf16.mxu1 %v12830_v36  ;;  %v10524_v26 = vcombine.low %v759_v3, %v767_v4  ;;  %v855_v3 = vld [vmem:[#allocation8 + $0x608] sm:$0xff] }
 0x215   :  { %7176 = vmatpush1.bf16.msra.mxu0 %v10686_v56  ;;  %7207 = vmatprep.mubr.bf16.mxu0 %v12848_v25  ;;  %v10782_v56 = vcombine.low %v1016_v5, %v1024_v6  ;;  %v863_v4 = vld [vmem:[#allocation8 + $0x648] sm:$0xff]  ;;  %v1112_v5 = vld [vmem:[#allocation8 + $0xe10] sm:$0xff] }
 0x216   :  { %6972 = vmatprep.subr.bf16.mxu1 %v10445_v27  ;;  %7177 = vmatprep.subr.bf16.mxu0 %v10703_v29  ;;  %v10541_v27 = vcombine.high %v775_v12, %v783_v17  ;;  %v10799_v29 = vcombine.high %v1032_v23, %v1040_v24  ;;  %v1120_v6 = vld [vmem:[#allocation8 + $0xe50] sm:$0xff] }
 0x218   :  { %6973 = vmatpush1.bf16.msra.mxu1 %v10444_v39  ;;  %v10540_v39 = vcombine.low %v775_v12, %v783_v17  ;;  %v871_v12 = vld [vmem:[#allocation8 + $0x688] sm:$0xff] }
 0x219   :  { %7178 = vmatpush1.bf16.msra.mxu0 %v10702_v41  ;;  %6974 = vmatprep.subr.bf16.mxu1 %v10461_v44  ;;  %v10798_v41 = vcombine.low %v1032_v23, %v1040_v24  ;;  %v10557_v44 = vcombine.high %v791_v30, %v799_v32  ;;  %v879_v17 = vld [vmem:[#allocation8 + $0x6c8] sm:$0xff]  ;;  %v1128_v23 = vld [vmem:[#allocation8 + $0xe90] sm:$0xff] }
 0x21a   :  { %7179 = vmatprep.subr.bf16.mxu0 %v10719_v47  ;;  %v10815_v47 = vcombine.high %v1048_v33, %v1056_v35  ;;  %v1136_v24 = vld [vmem:[#allocation8 + $0xed0] sm:$0xff] }
 0x21c   :  { %6975 = vmatpush1.bf16.msra.mxu1 %v10460_v53  ;;  %v10556_v53 = vcombine.low %v791_v30, %v799_v32  ;;  %v887_v30 = vld [vmem:[#allocation8 + $0x708] sm:$0xff] }
 0x21d   :  { %7180 = vmatpush1.bf16.msra.mxu0 %v10718_v54  ;;  %6976 = vmatprep.subr.bf16.mxu1 %v10477_v42  ;;  %v10814_v54 = vcombine.low %v1048_v33, %v1056_v35  ;;  %v10573_v42 = vcombine.high %v807_v48, %v815_v18  ;;  %v895_v32 = vld [vmem:[#allocation8 + $0x748] sm:$0xff]  ;;  %v1144_v33 = vld [vmem:[#allocation8 + $0xf10] sm:$0xff] }
 0x21e   :  { %7181 = vmatprep.subr.bf16.mxu0 %v10735_v43  ;;  %v10831_v43 = vcombine.high %v1064_v49, %v1072_v52  ;;  %v1152_v35 = vld [vmem:[#allocation8 + $0xf50] sm:$0xff] }
 0x220   :  { %6977 = vmatpush1.bf16.msra.mxu1 %v10476_v59  ;;  %v10572_v59 = vcombine.low %v807_v48, %v815_v18  ;;  %v903_v48 = vld [vmem:[#allocation8 + $0x788] sm:$0xff] }
 0x221   :  { %7182 = vmatpush1.bf16.msra.mxu0 %v10734_v60  ;;  %6978 = vmatprep.subr.bf16.mxu1 %v10493_v13  ;;  %v10830_v60 = vcombine.low %v1064_v49, %v1072_v52  ;;  %v10589_v13 = vcombine.high %v823_v46, %v831_v55  ;;  %v911_v18 = vld [vmem:[#allocation8 + $0x7c8] sm:$0xff]  ;;  %v1160_v49 = vld [vmem:[#allocation8 + $0xf90] sm:$0xff] }
 0x222   :  { %7183 = vmatprep.subr.bf16.mxu0 %v10751_v14  ;;  %v10847_v14 = vcombine.high %v1080_v20, %v1088_v58  ;;  %v1168_v52 = vld [vmem:[#allocation8 + $0xfd0] sm:$0xff] }
 0x224   :  { %6979 = vmatpush1.bf16.msra.mxu1 %v10492_v8  ;;  %v10588_v8 = vcombine.low %v823_v46, %v831_v55  ;;  %v919_v46 = vld [vmem:[#allocation8 + $0x808] sm:$0xff] }
 0x225   :  { %7184 = vmatpush1.bf16.msra.mxu0 %v10750_v22  ;;  %6980 = vmatprep.subr.bf16.mxu1 %v10509_v1  ;;  %v10846_v22 = vcombine.low %v1080_v20, %v1088_v58  ;;  %v10605_v1 = vcombine.high %v839_v15, %v847_v61  ;;  %v927_v55 = vld [vmem:[#allocation8 + $0x848] sm:$0xff]  ;;  %v1176_v20 = vld [vmem:[#allocation8 + $0x1010] sm:$0xff] }
 0x226   :  { %7185 = vmatprep.subr.bf16.mxu0 %v10767_v2  ;;  %v10863_v2 = vcombine.high %v1096_v62, %v1104_v63  ;;  %v1184_v58 = vld [vmem:[#allocation8 + $0x1050] sm:$0xff] }
 0x228   :  { %6981 = vmatpush1.bf16.msra.mxu1 %v10508_v7  ;;  %v10604_v7 = vcombine.low %v839_v15, %v847_v61  ;;  %v935_v15 = vld [vmem:[#allocation8 + $0x888] sm:$0xff] }
 0x229   :  { %7186 = vmatpush1.bf16.msra.mxu0 %v10766_v10  ;;  %6982 = vmatprep.subr.bf16.mxu1 %v10525_v11  ;;  %v10862_v10 = vcombine.low %v1096_v62, %v1104_v63  ;;  %v10621_v11 = vcombine.high %v855_v3, %v863_v4  ;;  %v943_v61 = vld [vmem:[#allocation8 + $0x8c8] sm:$0xff]  ;;  %v10684_v62 = vcombine.low %v919_v46, %v927_v55  ;;  %v1192_v63 = vld [vmem:[#allocation8 + $0x1090] sm:$0xff] }
 0x22a   :  { %7187 = vmatprep.subr.bf16.mxu0 %v10783_v9  ;;  %v10879_v9 = vcombine.high %v1112_v5, %v1120_v6 }
 0x22c   :  { %6983 = vmatpush1.bf16.msra.mxu1 %v10524_v26  ;;  %v10620_v26 = vcombine.low %v855_v3, %v863_v4  ;;  %v959_v3 = vld [vmem:[#allocation8 + $0x948] sm:$0xff] }
 0x22d   :  { %7188 = vmatpush1.bf16.msra.mxu0 %v10782_v56  ;;  %6984 = vmatprep.subr.bf16.mxu1 %v10541_v27  ;;  %v10878_v56 = vcombine.low %v1112_v5, %v1120_v6  ;;  %v10637_v27 = vcombine.high %v871_v12, %v879_v17  ;;  %v1208_v5 = vld [vmem:[#allocation8 + $0x1110] sm:$0xff] }
 0x22e   :  { %7189 = vmatprep.subr.bf16.mxu0 %v10799_v29  ;;  %v10895_v29 = vcombine.high %v1128_v23, %v1136_v24  ;;  %v1216_v6 = vld [vmem:[#allocation8 + $0x1150] sm:$0xff] }
 0x230   :  { %6985 = vmatpush1.bf16.msra.mxu1 %v10540_v39  ;;  %v10636_v39 = vcombine.low %v871_v12, %v879_v17  ;;  %v967_v12 = vld [vmem:[#allocation8 + $0x988] sm:$0xff] }
 0x231   :  { %7190 = vmatpush1.bf16.msra.mxu0 %v10798_v41  ;;  %6986 = vmatprep.subr.bf16.mxu1 %v10557_v44  ;;  %v10894_v41 = vcombine.low %v1128_v23, %v1136_v24  ;;  %v10653_v44 = vcombine.high %v887_v30, %v895_v32  ;;  %v975_v17 = vld [vmem:[#allocation8 + $0x9c8] sm:$0xff]  ;;  %v1224_v23 = vld [vmem:[#allocation8 + $0x1190] sm:$0xff] }
 0x232   :  { %7191 = vmatprep.subr.bf16.mxu0 %v10815_v47  ;;  %v10911_v47 = vcombine.high %v1144_v33, %v1152_v35  ;;  %v1232_v24 = vld [vmem:[#allocation8 + $0x11d0] sm:$0xff] }
 0x234   :  { %6987 = vmatpush1.bf16.msra.mxu1 %v10556_v53  ;;  %v10652_v53 = vcombine.low %v887_v30, %v895_v32  ;;  %v983_v30 = vld [vmem:[#allocation8 + $0xa08] sm:$0xff] }
 0x235   :  { %7192 = vmatpush1.bf16.msra.mxu0 %v10814_v54  ;;  %6988 = vmatprep.subr.bf16.mxu1 %v10573_v42  ;;  %v10910_v54 = vcombine.low %v1144_v33, %v1152_v35  ;;  %v10669_v42 = vcombine.high %v903_v48, %v911_v18  ;;  %v991_v32 = vld [vmem:[#allocation8 + $0xa48] sm:$0xff]  ;;  %v1240_v33 = vld [vmem:[#allocation8 + $0x1210] sm:$0xff] }
 0x236   :  { %7193 = vmatprep.subr.bf16.mxu0 %v10831_v43  ;;  %v10927_v43 = vcombine.high %v1160_v49, %v1168_v52  ;;  %v1248_v35 = vld [vmem:[#allocation8 + $0x1250] sm:$0xff] }
 0x238   :  { %6989 = vmatpush1.bf16.msra.mxu1 %v10572_v59  ;;  %v10668_v59 = vcombine.low %v903_v48, %v911_v18  ;;  %v999_v48 = vld [vmem:[#allocation8 + $0xa88] sm:$0xff] }
 0x239   :  { %7194 = vmatpush1.bf16.msra.mxu0 %v10830_v60  ;;  %6990 = vmatprep.subr.bf16.mxu1 %v10589_v13  ;;  %v10926_v60 = vcombine.low %v1160_v49, %v1168_v52  ;;  %v10685_v13 = vcombine.high %v919_v46, %v927_v55  ;;  %v1007_v18 = vld [vmem:[#allocation8 + $0xac8] sm:$0xff]  ;;  %v1256_v49 = vld [vmem:[#allocation8 + $0x1290] sm:$0xff] }
 0x23a   :  { %7195 = vmatprep.subr.bf16.mxu0 %v10847_v14  ;;  %v10943_v14 = vcombine.high %v1176_v20, %v1184_v58  ;;  %v1264_v52 = vld [vmem:[#allocation8 + $0x12d0] sm:$0xff]  ;;  %v1015_v46 = vld [vmem:[#allocation8 + $0xb08] sm:$0xff] }
 0x23b   :  { %v1023_v55 = vld [vmem:[#allocation8 + $0xb48] sm:$0xff] }
 0x23c   :  { %6991 = vmatpush1.bf16.msra.mxu1 %v10588_v8  ;;  %v1200_v8 = vld [vmem:[#allocation8 + $0x10d0] sm:$0xff] }
 0x23d   :  { %7196 = vmatpush1.bf16.msra.mxu0 %v10846_v22  ;;  %6992 = vmatprep.subr.bf16.mxu1 %v10605_v1  ;;  %v10942_v22 = vcombine.low %v1176_v20, %v1184_v58  ;;  %v10701_v1 = vcombine.high %v935_v15, %v943_v61  ;;  %v10959_v4 = vcombine.high %v1192_v63, %v1200_v8  ;;  %v1272_v20 = vld [vmem:[#allocation8 + $0x1310] sm:$0xff] }
 0x23e   :  { %7197 = vmatprep.subr.bf16.mxu0 %v10863_v2  ;;  %v951_v2 = vld [vmem:[#allocation8 + $0x908] sm:$0xff]  ;;  %v1280_v58 = vld [vmem:[#allocation8 + $0x1350] sm:$0xff] }
 0x240   :  { %6993 = vmatpush1.bf16.msra.mxu1 %v10604_v7  ;;  %v10700_v7 = vcombine.low %v935_v15, %v943_v61  ;;  %v1031_v15 = vld [vmem:[#allocation8 + $0xb88] sm:$0xff] }
 0x241   :  { %7198 = vmatpush1.bf16.msra.mxu0 %v10862_v10  ;;  %6994 = vmatprep.subr.bf16.mxu1 %v10621_v11  ;;  %v10958_v10 = vcombine.low %v1192_v63, %v1200_v8  ;;  %v10717_v11 = vcombine.high %v951_v2, %v959_v3  ;;  %v1039_v61 = vld [vmem:[#allocation8 + $0xbc8] sm:$0xff]  ;;  %v1296_v63 = vld [vmem:[#allocation8 + $0x13d0] sm:$0xff]  ;;  %v10780_v8 = vcombine.low %v1015_v46, %v1023_v55 }
 0x242   :  { %7199 = vmatprep.subr.bf16.mxu0 %v10879_v9  ;;  %v10975_v9 = vcombine.high %v1208_v5, %v1216_v6 }
 0x244   :  { %6995 = vmatpush1.bf16.msra.mxu1 %v10620_v26  ;;  %v10716_v26 = vcombine.low %v951_v2, %v959_v3  ;;  %v1047_v3 = vld [vmem:[#allocation8 + $0xc08] sm:$0xff] }
 0x245   :  { %7200 = vmatpush1.bf16.msra.mxu0 %v10878_v56  ;;  %6996 = vmatprep.subr.bf16.mxu1 %v10637_v27  ;;  %v10974_v56 = vcombine.low %v1208_v5, %v1216_v6  ;;  %v10733_v27 = vcombine.high %v967_v12, %v975_v17  ;;  %v1304_v5 = vld [vmem:[#allocation8 + $0x1410] sm:$0xff] }
 0x246   :  { %7201 = vmatprep.subr.bf16.mxu0 %v10895_v29  ;;  %v10991_v29 = vcombine.high %v1224_v23, %v1232_v24  ;;  %v1312_v6 = vld [vmem:[#allocation8 + $0x1450] sm:$0xff] }
 0x248   :  { %6997 = vmatpush1.bf16.msra.mxu1 %v10636_v39  ;;  %v10732_v39 = vcombine.low %v967_v12, %v975_v17  ;;  %v1063_v12 = vld [vmem:[#allocation8 + $0xc88] sm:$0xff] }
 0x249   :  { %7202 = vmatpush1.bf16.msra.mxu0 %v10894_v41  ;;  %6998 = vmatprep.subr.bf16.mxu1 %v10653_v44  ;;  %v10990_v41 = vcombine.low %v1224_v23, %v1232_v24  ;;  %v10749_v44 = vcombine.high %v983_v30, %v991_v32  ;;  %v1071_v17 = vld [vmem:[#allocation8 + $0xcc8] sm:$0xff]  ;;  %v1320_v23 = vld [vmem:[#allocation8 + $0x1490] sm:$0xff] }
 0x24a   :  { %7203 = vmatprep.subr.bf16.mxu0 %v10911_v47  ;;  %v11007_v47 = vcombine.high %v1240_v33, %v1248_v35  ;;  %v1328_v24 = vld [vmem:[#allocation8 + $0x14d0] sm:$0xff] }
 0x24c   :  { %6999 = vmatpush1.bf16.msra.mxu1 %v10652_v53  ;;  %v10748_v53 = vcombine.low %v983_v30, %v991_v32  ;;  %v1079_v30 = vld [vmem:[#allocation8 + $0xd08] sm:$0xff] }
 0x24d   :  { %7204 = vmatpush1.bf16.msra.mxu0 %v10910_v54  ;;  %7000 = vmatprep.subr.bf16.mxu1 %v10669_v42  ;;  %v11006_v54 = vcombine.low %v1240_v33, %v1248_v35  ;;  %v10765_v42 = vcombine.high %v999_v48, %v1007_v18  ;;  %v1087_v32 = vld [vmem:[#allocation8 + $0xd48] sm:$0xff]  ;;  %v1336_v33 = vld [vmem:[#allocation8 + $0x1510] sm:$0xff] }
 0x24e   :  { %7205 = vmatprep.subr.bf16.mxu0 %v10927_v43  ;;  %v11023_v43 = vcombine.high %v1256_v49, %v1264_v52  ;;  %v1344_v35 = vld [vmem:[#allocation8 + $0x1550] sm:$0xff] }
 0x250   :  { %7001 = vmatpush1.bf16.msra.mxu1 %v10668_v59  ;;  %v10764_v59 = vcombine.low %v999_v48, %v1007_v18  ;;  %v1095_v48 = vld [vmem:[#allocation8 + $0xd88] sm:$0xff] }
 0x251   :  { %7206 = vmatpush1.bf16.msra.mxu0 %v10926_v60  ;;  %7011 = vmatprep.subr.bf16.mxu1 %v10685_v13  ;;  %v11022_v60 = vcombine.low %v1256_v49, %v1264_v52  ;;  %v10781_v13 = vcombine.high %v1015_v46, %v1023_v55  ;;  %v1103_v18 = vld [vmem:[#allocation8 + $0xdc8] sm:$0xff]  ;;  %v1352_v49 = vld [vmem:[#allocation8 + $0x1590] sm:$0xff] }
 0x252   :  { %7216 = vmatprep.subr.bf16.mxu0 %v10943_v14  ;;  %v11039_v14 = vcombine.high %v1272_v20, %v1280_v58  ;;  %v1360_v52 = vld [vmem:[#allocation8 + $0x15d0] sm:$0xff]  ;;  %v1111_v46 = vld [vmem:[#allocation8 + $0xe08] sm:$0xff] }
 0x253   :  { %7003 = vmatmul.mubr.bf16.vlgmr.msra.gmra.mrb[12].mxu1 %v12832_v37  ;;  %v1119_v55 = vld [vmem:[#allocation8 + $0xe48] sm:$0xff] }
 0x254   :  { %7208 = vmatmul.mubr.bf16.vlgmr.msra.gmra.mrb[8].mxu0 %v12883_v38  ;;  %7012 = vmatpush1.bf16.msra.mxu1 %v10684_v62  ;;  %v1288_v62 = vld [vmem:[#allocation8 + $0x1390] sm:$0xff] }
 0x255   :  { %7043 = vmatprep.mubr.bf16.mxu1 %v12848_v25  ;;  %7217 = vmatpush1.bf16.msra.mxu0 %v10942_v22  ;;  %v11038_v22 = vcombine.low %v1272_v20, %v1280_v58  ;;  %v11055_v2 = vcombine.high %v1288_v62, %v1296_v63  ;;  %v1368_v20 = vld [vmem:[#allocation8 + $0x1610] sm:$0xff] }
 0x256   :  { %7248 = vmatprep.mubr.bf16.mxu0 %v12886_v51  ;;  %7013 = vmatprep.subr.bf16.mxu1 %v10701_v1  ;;  %v10797_v1 = vcombine.high %v1031_v15, %v1039_v61  ;;  %v1376_v58 = vld [vmem:[#allocation8 + $0x1650] sm:$0xff] }
 0x257   :  { %7218 = vmatprep.subr.bf16.mxu0 %v10959_v4  ;;  %v1055_v4 = vld [vmem:[#allocation8 + $0xc48] sm:$0xff] }
 0x258   :  { %7014 = vmatpush1.bf16.msra.mxu1 %v10700_v7  ;;  %v10796_v7 = vcombine.low %v1031_v15, %v1039_v61  ;;  %v1127_v15 = vld [vmem:[#allocation8 + $0xe88] sm:$0xff] }
 0x259   :  { %7219 = vmatpush1.bf16.msra.mxu0 %v10958_v10  ;;  %7015 = vmatprep.subr.bf16.mxu1 %v10717_v11  ;;  %v11054_v10 = vcombine.low %v1288_v62, %v1296_v63  ;;  %v10813_v11 = vcombine.high %v1047_v3, %v1055_v4  ;;  %v1135_v61 = vld [vmem:[#allocation8 + $0xec8] sm:$0xff]  ;;  %v1384_v62 = vld [vmem:[#allocation8 + $0x1690] sm:$0xff] }
 0x25a   :  { %7220 = vmatprep.subr.bf16.mxu0 %v10975_v9  ;;  %v11071_v9 = vcombine.high %v1304_v5, %v1312_v6  ;;  %v1392_v63 = vld [vmem:[#allocation8 + $0x16d0] sm:$0xff] }
 0x25c   :  { %7016 = vmatpush1.bf16.msra.mxu1 %v10716_v26  ;;  %v10812_v26 = vcombine.low %v1047_v3, %v1055_v4  ;;  %v1143_v3 = vld [vmem:[#allocation8 + $0xf08] sm:$0xff] }
 0x25d   :  { %7221 = vmatpush1.bf16.msra.mxu0 %v10974_v56  ;;  %7017 = vmatprep.subr.bf16.mxu1 %v10733_v27  ;;  %v11070_v56 = vcombine.low %v1304_v5, %v1312_v6  ;;  %v10829_v27 = vcombine.high %v1063_v12, %v1071_v17  ;;  %v1151_v4 = vld [vmem:[#allocation8 + $0xf48] sm:$0xff]  ;;  %v1400_v5 = vld [vmem:[#allocation8 + $0x1710] sm:$0xff] }
 0x25e   :  { %7222 = vmatprep.subr.bf16.mxu0 %v10991_v29  ;;  %v11087_v29 = vcombine.high %v1320_v23, %v1328_v24  ;;  %v1408_v6 = vld [vmem:[#allocation8 + $0x1750] sm:$0xff] }
 0x260   :  { %7018 = vmatpush1.bf16.msra.mxu1 %v10732_v39  ;;  %v10828_v39 = vcombine.low %v1063_v12, %v1071_v17  ;;  %v1159_v12 = vld [vmem:[#allocation8 + $0xf88] sm:$0xff] }
 0x261   :  { %7223 = vmatpush1.bf16.msra.mxu0 %v10990_v41  ;;  %7019 = vmatprep.subr.bf16.mxu1 %v10749_v44  ;;  %v11086_v41 = vcombine.low %v1320_v23, %v1328_v24  ;;  %v10845_v44 = vcombine.high %v1079_v30, %v1087_v32  ;;  %v1167_v17 = vld [vmem:[#allocation8 + $0xfc8] sm:$0xff]  ;;  %v1416_v23 = vld [vmem:[#allocation8 + $0x1790] sm:$0xff] }
 0x262   :  { %7224 = vmatprep.subr.bf16.mxu0 %v11007_v47  ;;  %v11103_v47 = vcombine.high %v1336_v33, %v1344_v35  ;;  %v1424_v24 = vld [vmem:[#allocation8 + $0x17d0] sm:$0xff] }
 0x264   :  { %7020 = vmatpush1.bf16.msra.mxu1 %v10748_v53  ;;  %v10844_v53 = vcombine.low %v1079_v30, %v1087_v32  ;;  %v1175_v30 = vld [vmem:[#allocation8 + $0x1008] sm:$0xff] }
 0x265   :  { %7225 = vmatpush1.bf16.msra.mxu0 %v11006_v54  ;;  %7021 = vmatprep.subr.bf16.mxu1 %v10765_v42  ;;  %v11102_v54 = vcombine.low %v1336_v33, %v1344_v35  ;;  %v10861_v42 = vcombine.high %v1095_v48, %v1103_v18  ;;  %v1183_v32 = vld [vmem:[#allocation8 + $0x1048] sm:$0xff]  ;;  %v1432_v33 = vld [vmem:[#allocation8 + $0x1810] sm:$0xff] }
 0x266   :  { %7226 = vmatprep.subr.bf16.mxu0 %v11023_v43  ;;  %v11119_v43 = vcombine.high %v1352_v49, %v1360_v52  ;;  %v1440_v35 = vld [vmem:[#allocation8 + $0x1850] sm:$0xff] }
 0x268   :  { %7022 = vmatpush1.bf16.msra.mxu1 %v10764_v59  ;;  %v10860_v59 = vcombine.low %v1095_v48, %v1103_v18  ;;  %v1191_v48 = vld [vmem:[#allocation8 + $0x1088] sm:$0xff] }
 0x269   :  { %7227 = vmatpush1.bf16.msra.mxu0 %v11022_v60  ;;  %7023 = vmatprep.subr.bf16.mxu1 %v10781_v13  ;;  %v11118_v60 = vcombine.low %v1352_v49, %v1360_v52  ;;  %v10877_v13 = vcombine.high %v1111_v46, %v1119_v55  ;;  %v1199_v18 = vld [vmem:[#allocation8 + $0x10c8] sm:$0xff]  ;;  %v10940_v49 = vcombine.low %v1175_v30, %v1183_v32  ;;  %v1448_v52 = vld [vmem:[#allocation8 + $0x1890] sm:$0xff] }
 0x26a   :  { %7228 = vmatprep.subr.bf16.mxu0 %v11039_v14  ;;  %v11135_v14 = vcombine.high %v1368_v20, %v1376_v58 }
 0x26c   :  { %7024 = vmatpush1.bf16.msra.mxu1 %v10780_v8  ;;  %v10876_v8 = vcombine.low %v1111_v46, %v1119_v55  ;;  %v1215_v46 = vld [vmem:[#allocation8 + $0x1148] sm:$0xff] }
 0x26d   :  { %7229 = vmatpush1.bf16.msra.mxu0 %v11038_v22  ;;  %7025 = vmatprep.subr.bf16.mxu1 %v10797_v1  ;;  %v11134_v22 = vcombine.low %v1368_v20, %v1376_v58  ;;  %v10893_v1 = vcombine.high %v1127_v15, %v1135_v61  ;;  %v1464_v20 = vld [vmem:[#allocation8 + $0x1910] sm:$0xff] }
 0x26e   :  { %7230 = vmatprep.subr.bf16.mxu0 %v11055_v2  ;;  %v11151_v2 = vcombine.high %v1384_v62, %v1392_v63  ;;  %v1472_v58 = vld [vmem:[#allocation8 + $0x1950] sm:$0xff] }
 0x270   :  { %7026 = vmatpush1.bf16.msra.mxu1 %v10796_v7  ;;  %v10892_v7 = vcombine.low %v1127_v15, %v1135_v61  ;;  %v1223_v15 = vld [vmem:[#allocation8 + $0x1188] sm:$0xff] }
 0x271   :  { %7231 = vmatpush1.bf16.msra.mxu0 %v11054_v10  ;;  %7027 = vmatprep.subr.bf16.mxu1 %v10813_v11  ;;  %v11150_v10 = vcombine.low %v1384_v62, %v1392_v63  ;;  %v10909_v11 = vcombine.high %v1143_v3, %v1151_v4  ;;  %v1231_v61 = vld [vmem:[#allocation8 + $0x11c8] sm:$0xff]  ;;  %v1480_v62 = vld [vmem:[#allocation8 + $0x1990] sm:$0xff] }
 0x272   :  { %7232 = vmatprep.subr.bf16.mxu0 %v11071_v9  ;;  %v11167_v9 = vcombine.high %v1400_v5, %v1408_v6  ;;  %v1488_v63 = vld [vmem:[#allocation8 + $0x19d0] sm:$0xff] }
 0x274   :  { %7028 = vmatpush1.bf16.msra.mxu1 %v10812_v26  ;;  %v10908_v26 = vcombine.low %v1143_v3, %v1151_v4  ;;  %v1239_v3 = vld [vmem:[#allocation8 + $0x1208] sm:$0xff] }
 0x275   :  { %7233 = vmatpush1.bf16.msra.mxu0 %v11070_v56  ;;  %7029 = vmatprep.subr.bf16.mxu1 %v10829_v27  ;;  %v11166_v56 = vcombine.low %v1400_v5, %v1408_v6  ;;  %v10925_v27 = vcombine.high %v1159_v12, %v1167_v17  ;;  %v1247_v4 = vld [vmem:[#allocation8 + $0x1248] sm:$0xff]  ;;  %v1496_v5 = vld [vmem:[#allocation8 + $0x1a10] sm:$0xff] }
 0x276   :  { %7234 = vmatprep.subr.bf16.mxu0 %v11087_v29  ;;  %v11183_v29 = vcombine.high %v1416_v23, %v1424_v24  ;;  %v1504_v6 = vld [vmem:[#allocation8 + $0x1a50] sm:$0xff] }
 0x278   :  { %7030 = vmatpush1.bf16.msra.mxu1 %v10828_v39  ;;  %v10924_v39 = vcombine.low %v1159_v12, %v1167_v17  ;;  %v1255_v12 = vld [vmem:[#allocation8 + $0x1288] sm:$0xff] }
 0x279   :  { %7235 = vmatpush1.bf16.msra.mxu0 %v11086_v41  ;;  %7031 = vmatprep.subr.bf16.mxu1 %v10845_v44  ;;  %v11182_v41 = vcombine.low %v1416_v23, %v1424_v24  ;;  %v10941_v44 = vcombine.high %v1175_v30, %v1183_v32  ;;  %v1263_v17 = vld [vmem:[#allocation8 + $0x12c8] sm:$0xff]  ;;  %v1512_v23 = vld [vmem:[#allocation8 + $0x1a90] sm:$0xff] }
 0x27a   :  { %7236 = vmatprep.subr.bf16.mxu0 %v11103_v47  ;;  %v11199_v47 = vcombine.high %v1432_v33, %v1440_v35  ;;  %v1520_v24 = vld [vmem:[#allocation8 + $0x1ad0] sm:$0xff]  ;;  %v1271_v30 = vld [vmem:[#allocation8 + $0x1308] sm:$0xff] }
 0x27b   :  { %v1279_v32 = vld [vmem:[#allocation8 + $0x1348] sm:$0xff] }
 0x27c   :  { %7032 = vmatpush1.bf16.msra.mxu1 %v10844_v53  ;;  %v1456_v53 = vld [vmem:[#allocation8 + $0x18d0] sm:$0xff] }
 0x27d   :  { %7237 = vmatpush1.bf16.msra.mxu0 %v11102_v54  ;;  %7033 = vmatprep.subr.bf16.mxu1 %v10861_v42  ;;  %v11198_v54 = vcombine.low %v1432_v33, %v1440_v35  ;;  %v10957_v42 = vcombine.high %v1191_v48, %v1199_v18  ;;  %v11215_v55 = vcombine.high %v1448_v52, %v1456_v53  ;;  %v1528_v33 = vld [vmem:[#allocation8 + $0x1b10] sm:$0xff] }
 0x27e   :  { %7238 = vmatprep.subr.bf16.mxu0 %v11119_v43  ;;  %v1207_v43 = vld [vmem:[#allocation8 + $0x1108] sm:$0xff]  ;;  %v1536_v35 = vld [vmem:[#allocation8 + $0x1b50] sm:$0xff] }
 0x280   :  { %7034 = vmatpush1.bf16.msra.mxu1 %v10860_v59  ;;  %v10956_v59 = vcombine.low %v1191_v48, %v1199_v18  ;;  %v1287_v48 = vld [vmem:[#allocation8 + $0x1388] sm:$0xff] }
 0x281   :  { %7239 = vmatpush1.bf16.msra.mxu0 %v11118_v60  ;;  %7035 = vmatprep.subr.bf16.mxu1 %v10877_v13  ;;  %v11214_v60 = vcombine.low %v1448_v52, %v1456_v53  ;;  %v10973_v13 = vcombine.high %v1207_v43, %v1215_v46  ;;  %v1295_v18 = vld [vmem:[#allocation8 + $0x13c8] sm:$0xff]  ;;  %v1544_v52 = vld [vmem:[#allocation8 + $0x1b90] sm:$0xff] }
 0x282   :  { %7240 = vmatprep.subr.bf16.mxu0 %v11135_v14  ;;  %v11231_v14 = vcombine.high %v1464_v20, %v1472_v58  ;;  %v1552_v53 = vld [vmem:[#allocation8 + $0x1bd0] sm:$0xff] }
 0x284   :  { %7036 = vmatpush1.bf16.msra.mxu1 %v10876_v8  ;;  %v10972_v8 = vcombine.low %v1207_v43, %v1215_v46  ;;  %v11294_v46 = vcombine.low %v1528_v33, %v1536_v35 }
 0x285   :  { %7241 = vmatpush1.bf16.msra.mxu0 %v11134_v22  ;;  %7037 = vmatprep.subr.bf16.mxu1 %v10893_v1  ;;  %v11230_v22 = vcombine.low %v1464_v20, %v1472_v58  ;;  %v10989_v1 = vcombine.high %v1223_v15, %v1231_v61  ;;  %v11311_v58 = vcombine.high %v1544_v52, %v1552_v53 }
 0x286   :  { %7242 = vmatprep.subr.bf16.mxu0 %v11151_v2  ;;  %v11247_v2 = vcombine.high %v1480_v62, %v1488_v63 }
 0x288   :  { %7038 = vmatpush1.bf16.msra.mxu1 %v10892_v7  ;;  %v10988_v7 = vcombine.low %v1223_v15, %v1231_v61  ;;  %v11052_v15 = vcombine.low %v1287_v48, %v1295_v18  ;;  %v11310_v61 = vcombine.low %v1544_v52, %v1552_v53 }
 0x289   :  { %7243 = vmatpush1.bf16.msra.mxu0 %v11150_v10  ;;  %7039 = vmatprep.subr.bf16.mxu1 %v10909_v11  ;;  %v11246_v10 = vcombine.low %v1480_v62, %v1488_v63  ;;  %v11005_v11 = vcombine.high %v1239_v3, %v1247_v4 }
 0x28a   :  { %7244 = vmatprep.subr.bf16.mxu0 %v11167_v9  ;;  %v11263_v9 = vcombine.high %v1496_v5, %v1504_v6 }
 0x28c   :  { %7040 = vmatpush1.bf16.msra.mxu1 %v10908_v26  ;;  %v11004_v26 = vcombine.low %v1239_v3, %v1247_v4 }
 0x28d   :  { %7245 = vmatpush1.bf16.msra.mxu0 %v11166_v56  ;;  %7041 = vmatprep.subr.bf16.mxu1 %v10925_v27  ;;  %v11262_v56 = vcombine.low %v1496_v5, %v1504_v6  ;;  %v11021_v27 = vcombine.high %v1255_v12, %v1263_v17 }
 0x28e   :  { %7246 = vmatprep.subr.bf16.mxu0 %v11183_v29  ;;  %v11279_v29 = vcombine.high %v1512_v23, %v1520_v24 }
 0x290   :  { %7042 = vmatpush1.bf16.msra.mxu1 %v10924_v39  ;;  %v11020_v39 = vcombine.low %v1255_v12, %v1263_v17 }
 0x291   :  { %7247 = vmatpush1.bf16.msra.mxu0 %v11182_v41  ;;  %7052 = vmatprep.subr.bf16.mxu1 %v10941_v44  ;;  %v11278_v41 = vcombine.low %v1512_v23, %v1520_v24  ;;  %v11037_v44 = vcombine.high %v1271_v30, %v1279_v32 }
 0x292   :  { %7257 = vmatprep.subr.bf16.mxu0 %v11199_v47  ;;  %v11295_v47 = vcombine.high %v1528_v33, %v1536_v35 }
 0x293   :  { %7044 = vmatmul.mubr.bf16.vlgmr.msra.gmra.mrb[12].mxu1 %v12883_v38 }
 0x294   :  { %7249 = vmatmul.mubr.bf16.vlgmr.msra.gmra.mrb[8].mxu0 %v12903_v16  ;;  %7053 = vmatpush1.bf16.msra.mxu1 %v10940_v49 }
 0x295   :  { %7084 = vmatprep.mubr.bf16.mxu1 %v12886_v51  ;;  %7258 = vmatpush1.bf16.msra.mxu0 %v11198_v54 }
 0x296   :  { %7289 = vmatprep.mubr.bf16.mxu0 %v12881_v34  ;;  %7054 = vmatprep.subr.bf16.mxu1 %v10957_v42  ;;  %v11036_v42 = vcombine.low %v1271_v30, %v1279_v32 }
 0x297   :  { %7259 = vmatprep.subr.bf16.mxu0 %v11215_v55  ;;  %v11053_v55 = vcombine.high %v1287_v48, %v1295_v18 }
 0x298   :  { %7055 = vmatpush1.bf16.msra.mxu1 %v10956_v59  ;;  %v1303_v59 = vld [vmem:[#allocation8 + $0x1408] sm:$0xff] }
 0x299   :  { %7260 = vmatpush1.bf16.msra.mxu0 %v11214_v60  ;;  %7056 = vmatprep.subr.bf16.mxu1 %v10973_v13  ;;  %v1311_v60 = vld [vmem:[#allocation8 + $0x1448] sm:$0xff]  ;;  %v1560_v13 = vld [vmem:[#allocation8 + $0x1c10] sm:$0xff] }
 0x29a   :  { %7261 = vmatprep.subr.bf16.mxu0 %v11231_v14  ;;  %v1568_v14 = vld [vmem:[#allocation8 + $0x1c50] sm:$0xff]  ;;  %v11069_v62 = vcombine.high %v1303_v59, %v1311_v60  ;;  %v11068_v3 = vcombine.low %v1303_v59, %v1311_v60 }
 0x29b   :  { %v11327_v63 = vcombine.high %v1560_v13, %v1568_v14  ;;  %v11326_v4 = vcombine.low %v1560_v13, %v1568_v14  ;;  %v1399_v13 = vld [vmem:[#allocation8 + $0x1708] sm:$0xff] }
 0x29c   :  { %7057 = vmatpush1.bf16.msra.mxu1 %v10972_v8  ;;  %v1319_v8 = vld [vmem:[#allocation8 + $0x1488] sm:$0xff] }
 0x29d   :  { %7262 = vmatpush1.bf16.msra.mxu0 %v11230_v22  ;;  %7058 = vmatprep.subr.bf16.mxu1 %v10989_v1  ;;  %v1327_v22 = vld [vmem:[#allocation8 + $0x14c8] sm:$0xff]  ;;  %v1576_v1 = vld [vmem:[#allocation8 + $0x1c90] sm:$0xff] }
 0x29e   :  { %7263 = vmatprep.subr.bf16.mxu0 %v11247_v2  ;;  %v1584_v2 = vld [vmem:[#allocation8 + $0x1cd0] sm:$0xff]  ;;  %v11085_v5 = vcombine.high %v1319_v8, %v1327_v22  ;;  %v11084_v12 = vcombine.low %v1319_v8, %v1327_v22  ;;  %v1407_v14 = vld [vmem:[#allocation8 + $0x1748] sm:$0xff] }
 0x29f   :  { %v11343_v6 = vcombine.high %v1576_v1, %v1584_v2  ;;  %v11342_v17 = vcombine.low %v1576_v1, %v1584_v2  ;;  %v11165_v8 = vcombine.high %v1399_v13, %v1407_v14  ;;  %v1415_v1 = vld [vmem:[#allocation8 + $0x1788] sm:$0xff] }
 0x2a0   :  { %7059 = vmatpush1.bf16.msra.mxu1 %v10988_v7  ;;  %v1335_v7 = vld [vmem:[#allocation8 + $0x1508] sm:$0xff] }
 0x2a1   :  { %7264 = vmatpush1.bf16.msra.mxu0 %v11246_v10  ;;  %7060 = vmatprep.subr.bf16.mxu1 %v11005_v11  ;;  %v1343_v10 = vld [vmem:[#allocation8 + $0x1548] sm:$0xff]  ;;  %v1592_v11 = vld [vmem:[#allocation8 + $0x1d10] sm:$0xff] }
 0x2a2   :  { %7265 = vmatprep.subr.bf16.mxu0 %v11263_v9  ;;  %v1600_v9 = vld [vmem:[#allocation8 + $0x1d50] sm:$0xff]  ;;  %v11101_v23 = vcombine.high %v1335_v7, %v1343_v10  ;;  %v11100_v30 = vcombine.low %v1335_v7, %v1343_v10  ;;  %v1423_v2 = vld [vmem:[#allocation8 + $0x17c8] sm:$0xff] }
 0x2a3   :  { %v11359_v24 = vcombine.high %v1592_v11, %v1600_v9  ;;  %v11358_v32 = vcombine.low %v1592_v11, %v1600_v9  ;;  %v11181_v7 = vcombine.high %v1415_v1, %v1423_v2  ;;  %v1431_v11 = vld [vmem:[#allocation8 + $0x1808] sm:$0xff] }
 0x2a4   :  { %7061 = vmatpush1.bf16.msra.mxu1 %v11004_v26  ;;  %v1351_v26 = vld [vmem:[#allocation8 + $0x1588] sm:$0xff] }
 0x2a5   :  { %7266 = vmatpush1.bf16.msra.mxu0 %v11262_v56  ;;  %7062 = vmatprep.subr.bf16.mxu1 %v11021_v27  ;;  %v1359_v56 = vld [vmem:[#allocation8 + $0x15c8] sm:$0xff]  ;;  %v1608_v27 = vld [vmem:[#allocation8 + $0x1d90] sm:$0xff] }
 0x2a6   :  { %7267 = vmatprep.subr.bf16.mxu0 %v11279_v29  ;;  %v12917_v49 = vpop.f32.mrb[4].mxu0  ;;  %v1616_v29 = vld [vmem:[#allocation8 + $0x1dd0] sm:$0xff]  ;;  %v11117_v33 = vcombine.high %v1351_v26, %v1359_v56  ;;  %v11116_v48 = vcombine.low %v1351_v26, %v1359_v56  ;;  %v1439_v9 = vld [vmem:[#allocation8 + $0x1848] sm:$0xff] }
 0x2a7   :  { %v12919_v54 = vpop.f32.mrb[5].mxu0  ;;  %v11375_v35 = vcombine.high %v1608_v27, %v1616_v29  ;;  %v11374_v18 = vcombine.low %v1608_v27, %v1616_v29  ;;  %v11197_v26 = vcombine.high %v1431_v11, %v1439_v9  ;;  %v1447_v27 = vld [vmem:[#allocation8 + $0x1888] sm:$0xff] }
 0x2a8   :  { %7063 = vmatpush1.bf16.msra.mxu1 %v11020_v39  ;;  %v6967_v43 = vpop.f32.mrb[6].mxu0  ;;  %v1367_v39 = vld [vmem:[#allocation8 + $0x1608] sm:$0xff] }
 0x2a9   :  { %7268 = vmatpush1.bf16.msra.mxu0 %v11278_v41  ;;  %7064 = vmatprep.subr.bf16.mxu1 %v11037_v44  ;;  %v6968_v20 = vpop.f32.mrb[7].mxu0  ;;  %v1375_v41 = vld [vmem:[#allocation8 + $0x1648] sm:$0xff]  ;;  %v1624_v44 = vld [vmem:[#allocation8 + $0x1e10] sm:$0xff] }
 0x2aa   :  { %7269 = vmatprep.subr.bf16.mxu0 %v11295_v47  ;;  %v1632_v47 = vld [vmem:[#allocation8 + $0x1e50] sm:$0xff]  ;;  %v11133_v52 = vcombine.high %v1367_v39, %v1375_v41  ;;  %v1391_v43 = vld [vmem:[#allocation8 + $0x16c8] sm:$0xff]  ;;  %v11132_v20 = vcombine.low %v1367_v39, %v1375_v41 }
 0x2ab   :  { %v11391_v53 = vcombine.high %v1624_v44, %v1632_v47  ;;  %v1455_v29 = vld [vmem:[#allocation8 + $0x18c8] sm:$0xff] }
 0x2ac   :  { %7065 = vmatpush1.bf16.msra.mxu1 %v11036_v42  ;;  %v1383_v42 = vld [vmem:[#allocation8 + $0x1688] sm:$0xff]  ;;  %v11213_v39 = vcombine.high %v1447_v27, %v1455_v29 }
 0x2ad   :  { %7270 = vmatpush1.bf16.msra.mxu0 %v11294_v46  ;;  %7066 = vmatprep.subr.bf16.mxu1 %v11053_v55  ;;  %v1640_v46 = vld [vmem:[#allocation8 + $0x1e90] sm:$0xff]  ;;  %v11149_v59 = vcombine.high %v1383_v42, %v1391_v43  ;;  %v1463_v41 = vld [vmem:[#allocation8 + $0x1908] sm:$0xff] }
 0x2ae   :  { %7271 = vmatprep.subr.bf16.mxu0 %v11311_v58  ;;  %v1648_v55 = vld [vmem:[#allocation8 + $0x1ed0] sm:$0xff]  ;;  %v11390_v58 = vcombine.low %v1624_v44, %v1632_v47  ;;  %v1471_v44 = vld [vmem:[#allocation8 + $0x1948] sm:$0xff] }
 0x2af   :  { %v11407_v60 = vcombine.high %v1640_v46, %v1648_v55 }
 0x2b0   :  { %7067 = vmatpush1.bf16.msra.mxu1 %v11052_v15  ;;  %v1656_v15 = vld [vmem:[#allocation8 + $0x1f10] sm:$0xff] }
 0x2b1   :  { %7272 = vmatpush1.bf16.msra.mxu0 %v11310_v61  ;;  %7068 = vmatprep.subr.bf16.mxu1 %v11069_v62  ;;  %v1664_v61 = vld [vmem:[#allocation8 + $0x1f50] sm:$0xff]  ;;  %v11148_v62 = vcombine.low %v1383_v42, %v1391_v43  ;;  %v11229_v42 = vcombine.high %v1463_v41, %v1471_v44 }
 0x2b2   :  { %7273 = vmatprep.subr.bf16.mxu0 %v11327_v63  ;;  %v11406_v63 = vcombine.low %v1640_v46, %v1648_v55  ;;  %v11423_v22 = vcombine.high %v1656_v15, %v1664_v61  ;;  %v1479_v46 = vld [vmem:[#allocation8 + $0x1988] sm:$0xff] }
 0x2b3   :  { %v1487_v55 = vld [vmem:[#allocation8 + $0x19c8] sm:$0xff] }
 0x2b4   :  { %7069 = vmatpush1.bf16.msra.mxu1 %v11068_v3  ;;  %v1672_v3 = vld [vmem:[#allocation8 + $0x1f90] sm:$0xff] }
 0x2b5   :  { %7274 = vmatpush1.bf16.msra.mxu0 %v11326_v4  ;;  %7070 = vmatprep.subr.bf16.mxu1 %v11085_v5  ;;  %v1680_v4 = vld [vmem:[#allocation8 + $0x1fd0] sm:$0xff]  ;;  %v11164_v5 = vcombine.low %v1399_v13, %v1407_v14  ;;  %v11245_v13 = vcombine.high %v1479_v46, %v1487_v55 }
 0x2b6   :  { %7275 = vmatprep.subr.bf16.mxu0 %v11343_v6  ;;  %v11422_v6 = vcombine.low %v1656_v15, %v1664_v61  ;;  %v11439_v10 = vcombine.high %v1672_v3, %v1680_v4  ;;  %v1495_v15 = vld [vmem:[#allocation8 + $0x1a08] sm:$0xff] }
 0x2b7   :  { %v1503_v61 = vld [vmem:[#allocation8 + $0x1a48] sm:$0xff] }
 0x2b8   :  { %7071 = vmatpush1.bf16.msra.mxu1 %v11084_v12  ;;  %v666_v12 = vld [vmem:[#allocation8 + $0x20] sm:$0xff] }
 0x2b9   :  { %7276 = vmatpush1.bf16.msra.mxu0 %v11342_v17  ;;  %7072 = vmatprep.subr.bf16.mxu1 %v11101_v23  ;;  %v674_v17 = vld [vmem:[#allocation8 + $0x60] sm:$0xff]  ;;  %v11180_v23 = vcombine.low %v1415_v1, %v1423_v2  ;;  %v11261_v1 = vcombine.high %v1495_v15, %v1503_v61 }
 0x2ba   :  { %7277 = vmatprep.subr.bf16.mxu0 %v11359_v24  ;;  %v11438_v24 = vcombine.low %v1672_v3, %v1680_v4  ;;  %v10435_v56 = vcombine.high %v666_v12, %v674_v17  ;;  %v1511_v3 = vld [vmem:[#allocation8 + $0x1a88] sm:$0xff] }
 0x2bb   :  { %v1519_v4 = vld [vmem:[#allocation8 + $0x1ac8] sm:$0xff] }
 0x2bc   :  { %7073 = vmatpush1.bf16.msra.mxu1 %v11100_v30  ;;  %v11196_v30 = vcombine.low %v1431_v11, %v1439_v9  ;;  %v11277_v11 = vcombine.high %v1511_v3, %v1519_v4 }
 0x2bd   :  { %7278 = vmatpush1.bf16.msra.mxu0 %v11358_v32  ;;  %7074 = vmatprep.subr.bf16.mxu1 %v11117_v33  ;;  %v682_v32 = vld [vmem:[#allocation8 + $0xa0] sm:$0xff] }
 0x2be   :  { %7279 = vmatprep.subr.bf16.mxu0 %v11375_v35  ;;  %v690_v33 = vld [vmem:[#allocation8 + $0xe0] sm:$0xff]  ;;  %v10434_v35 = vcombine.low %v666_v12, %v674_v17  ;;  %v1527_v12 = vld [vmem:[#allocation8 + $0x1b08] sm:$0xff] }
 0x2bf   :  { %v10451_v47 = vcombine.high %v682_v32, %v690_v33  ;;  %v1535_v17 = vld [vmem:[#allocation8 + $0x1b48] sm:$0xff] }
 0x2c0   :  { %7075 = vmatpush1.bf16.msra.mxu1 %v11116_v48  ;;  %v698_v48 = vld [vmem:[#allocation8 + $0x120] sm:$0xff] }
 0x2c1   :  { %7280 = vmatpush1.bf16.msra.mxu0 %v11374_v18  ;;  %7076 = vmatprep.subr.bf16.mxu1 %v11133_v52  ;;  %v706_v18 = vld [vmem:[#allocation8 + $0x160] sm:$0xff]  ;;  %v11212_v52 = vcombine.low %v1447_v27, %v1455_v29  ;;  %v11293_v27 = vcombine.high %v1527_v12, %v1535_v17 }
 0x2c2   :  { %7281 = vmatprep.subr.bf16.mxu0 %v11391_v53  ;;  %v10450_v53 = vcombine.low %v682_v32, %v690_v33  ;;  %v10467_v43 = vcombine.high %v698_v48, %v706_v18  ;;  %v1543_v32 = vld [vmem:[#allocation8 + $0x1b88] sm:$0xff] }
 0x2c3   :  { %v1551_v33 = vld [vmem:[#allocation8 + $0x1bc8] sm:$0xff] }
 0x2c4   :  { %7077 = vmatpush1.bf16.msra.mxu1 %v11132_v20  ;;  %v714_v20 = vld [vmem:[#allocation8 + $0x1a0] sm:$0xff] }
 0x2c5   :  { %7282 = vmatpush1.bf16.msra.mxu0 %v11390_v58  ;;  %7078 = vmatprep.subr.bf16.mxu1 %v11149_v59  ;;  %v722_v58 = vld [vmem:[#allocation8 + $0x1e0] sm:$0xff]  ;;  %v11228_v59 = vcombine.low %v1463_v41, %v1471_v44 }
 0x2c6   :  { %7283 = vmatprep.subr.bf16.mxu0 %v11407_v60  ;;  %v10466_v60 = vcombine.low %v698_v48, %v706_v18  ;;  %v10483_v14 = vcombine.high %v714_v20, %v722_v58  ;;  %v778_v41 = vld [vmem:[#allocation8 + $0x3a0] sm:$0xff]  ;;  %v11292_v18 = vcombine.low %v1527_v12, %v1535_v17 }
 0x2c7   :  { %v786_v44 = vld [vmem:[#allocation8 + $0x3e0] sm:$0xff] }
 0x2c8   :  { %7079 = vmatpush1.bf16.msra.mxu1 %v11148_v62  ;;  %v730_v62 = vld [vmem:[#allocation8 + $0x220] sm:$0xff] }
 0x2c9   :  { %7284 = vmatpush1.bf16.msra.mxu0 %v11406_v63  ;;  %7080 = vmatprep.subr.bf16.mxu1 %v11165_v8  ;;  %v738_v63 = vld [vmem:[#allocation8 + $0x260] sm:$0xff]  ;;  %v11244_v8 = vcombine.low %v1479_v46, %v1487_v55  ;;  %v1559_v46 = vld [vmem:[#allocation8 + $0x1c08] sm:$0xff] }
 0x2ca   :  { %7285 = vmatprep.subr.bf16.mxu0 %v11423_v22  ;;  %v10482_v22 = vcombine.low %v714_v20, %v722_v58  ;;  %v10499_v2 = vcombine.high %v730_v62, %v738_v63  ;;  %v1567_v55 = vld [vmem:[#allocation8 + $0x1c48] sm:$0xff]  ;;  %v802_v20 = vld [vmem:[#allocation8 + $0x460] sm:$0xff]  ;;  %v11308_v58 = vcombine.low %v1543_v32, %v1551_v33 }
 0x2cb   :  { %v842_v12 = vld [vmem:[#allocation8 + $0x5a0] sm:$0xff] }
 0x2cc   :  { %7081 = vmatpush1.bf16.msra.mxu1 %v11164_v5  ;;  %v746_v5 = vld [vmem:[#allocation8 + $0x2a0] sm:$0xff] }
 0x2cd   :  { %7286 = vmatpush1.bf16.msra.mxu0 %v11422_v6  ;;  %7082 = vmatprep.subr.bf16.mxu1 %v11181_v7  ;;  %v754_v6 = vld [vmem:[#allocation8 + $0x2e0] sm:$0xff]  ;;  %v11260_v7 = vcombine.low %v1495_v15, %v1503_v61 }
 0x2ce   :  { %7287 = vmatprep.subr.bf16.mxu0 %v11439_v10  ;;  %v10498_v10 = vcombine.low %v730_v62, %v738_v63  ;;  %v10515_v9 = vcombine.high %v746_v5, %v754_v6  ;;  %v810_v15 = vld [vmem:[#allocation8 + $0x4a0] sm:$0xff]  ;;  %v11324_v62 = vcombine.low %v1559_v46, %v1567_v55 }
 0x2cf   :  { %v818_v61 = vld [vmem:[#allocation8 + $0x4e0] sm:$0xff] }
 0x2d0   :  { %7083 = vmatpush1.bf16.msra.mxu1 %v11180_v23  ;;  %v762_v23 = vld [vmem:[#allocation8 + $0x320] sm:$0xff] }
 0x2d1   :  { %7288 = vmatpush1.bf16.msra.mxu0 %v11438_v24  ;;  %7093 = vmatprep.subr.bf16.mxu1 %v11197_v26  ;;  %v770_v24 = vld [vmem:[#allocation8 + $0x360] sm:$0xff]  ;;  %v11276_v26 = vcombine.low %v1511_v3, %v1519_v4 }
 0x2d2   :  { %7462 = vmatprep.subr.bf16.mxu0 %v10435_v56  ;;  %v10514_v56 = vcombine.low %v746_v5, %v754_v6  ;;  %v826_v3 = vld [vmem:[#allocation8 + $0x520] sm:$0xff]  ;;  %v10578_v6 = vcombine.low %v810_v15, %v818_v61 }
 0x2d3   :  { %7085 = vmatmul.mubr.bf16.vlgmr.msra.gmra.mrb[12].mxu1 %v12903_v16  ;;  %v834_v4 = vld [vmem:[#allocation8 + $0x560] sm:$0xff] }
 0x2d4   :  { %7290 = vmatmul.mubr.bf16.vlgmr.msra.gmra.mrb[8].mxu0 %v12879_v31  ;;  %7094 = vmatpush1.bf16.msra.mxu1 %v11196_v30  ;;  %v10531_v30 = vcombine.high %v762_v23, %v770_v24  ;;  %v850_v17 = vld [vmem:[#allocation8 + $0x5e0] sm:$0xff] }
 0x2d5   :  { %7125 = vmatprep.mubr.bf16.mxu1 %v12881_v34  ;;  %7463 = vmatpush1.bf16.msra.mxu0 %v10434_v35 }
 0x2d6   :  { %7494 = vmatprep.mubr.bf16.mxu0 %v12830_v36  ;;  %7095 = vmatprep.subr.bf16.mxu1 %v11213_v39 }
 0x2d7   :  { %7464 = vmatprep.subr.bf16.mxu0 %v10451_v47 }
 0x2d8   :  { %7096 = vmatpush1.bf16.msra.mxu1 %v11212_v52 }
 0x2d9   :  { %7465 = vmatpush1.bf16.msra.mxu0 %v10450_v53  ;;  %7097 = vmatprep.subr.bf16.mxu1 %v11229_v42  ;;  %v10530_v53 = vcombine.low %v762_v23, %v770_v24  ;;  %v11309_v42 = vcombine.high %v1543_v32, %v1551_v33  ;;  %v10594_v24 = vcombine.low %v826_v3, %v834_v4  ;;  %v866_v32 = vld [vmem:[#allocation8 + $0x660] sm:$0xff] }
 0x2da   :  { %7466 = vmatprep.subr.bf16.mxu0 %v10467_v43  ;;  %v10547_v43 = vcombine.high %v778_v41, %v786_v44 }
 0x2dc   :  { %7098 = vmatpush1.bf16.msra.mxu1 %v11228_v59  ;;  %v11325_v59 = vcombine.high %v1559_v46, %v1567_v55 }
 0x2dd   :  { %7467 = vmatpush1.bf16.msra.mxu0 %v10466_v60  ;;  %7099 = vmatprep.subr.bf16.mxu1 %v11245_v13  ;;  %v1575_v13 = vld [vmem:[#allocation8 + $0x1c88] sm:$0xff] }
 0x2de   :  { %7468 = vmatprep.subr.bf16.mxu0 %v10483_v14  ;;  %v1583_v14 = vld [vmem:[#allocation8 + $0x1cc8] sm:$0xff] }
 0x2df   :  { %v11340_v5 = vcombine.low %v1575_v13, %v1583_v14 }
 0x2e0   :  { %7100 = vmatpush1.bf16.msra.mxu1 %v11244_v8  ;;  %v11341_v8 = vcombine.high %v1575_v13, %v1583_v14 }
 0x2e1   :  { %7469 = vmatpush1.bf16.msra.mxu0 %v10482_v22  ;;  %7101 = vmatprep.subr.bf16.mxu1 %v11261_v1  ;;  %v10579_v22 = vcombine.high %v810_v15, %v818_v61  ;;  %v1591_v1 = vld [vmem:[#allocation8 + $0x1d08] sm:$0xff] }
 0x2e2   :  { %7470 = vmatprep.subr.bf16.mxu0 %v10499_v2  ;;  %v1599_v2 = vld [vmem:[#allocation8 + $0x1d48] sm:$0xff] }
 0x2e3   :  { %v11356_v23 = vcombine.low %v1591_v1, %v1599_v2  ;;  %v1671_v15 = vld [vmem:[#allocation8 + $0x1f88] sm:$0xff] }
 0x2e4   :  { %7102 = vmatpush1.bf16.msra.mxu1 %v11260_v7  ;;  %v11357_v7 = vcombine.high %v1591_v1, %v1599_v2  ;;  %v1679_v61 = vld [vmem:[#allocation8 + $0x1fc8] sm:$0xff] }
 0x2e5   :  { %7471 = vmatpush1.bf16.msra.mxu0 %v10498_v10  ;;  %7103 = vmatprep.subr.bf16.mxu1 %v11277_v11  ;;  %v10595_v10 = vcombine.high %v826_v3, %v834_v4  ;;  %v1607_v11 = vld [vmem:[#allocation8 + $0x1d88] sm:$0xff]  ;;  %v11437_v1 = vcombine.high %v1671_v15, %v1679_v61  ;;  %v665_v3 = vld [vmem:[#allocation8 + $0x18] sm:$0xff] }
 0x2e6   :  { %v6922_v29 = vpop.f32.mrb[8].mxu1  ;;  %7472 = vmatprep.subr.bf16.mxu0 %v10515_v9  ;;  %v1615_v9 = vld [vmem:[#allocation8 + $0x1dc8] sm:$0xff]  ;;  %v673_v4 = vld [vmem:[#allocation8 + $0x58] sm:$0xff] }
 0x2e7   :  { %v12926_v35 = vadd.f32 %v12917_v49, %v6922_v29  ;;  %v6924_v39 = vpop.f32.mrb[9].mxu1  ;;  %v794_v49 = vld [vmem:[#allocation8 + $0x420] sm:$0xff]  ;;  %v1631_v29 = vld [vmem:[#allocation8 + $0x1e48] sm:$0xff]  ;;  %v11372_v33 = vcombine.low %v1607_v11, %v1615_v9 }
 0x2e8   :  { %v12929_v47 = vadd.f32 %v12919_v54, %v6924_v39  ;;  %v6926_v48 = vpop.f32.mrb[10].mxu1  ;;  %7104 = vmatpush1.bf16.msra.mxu1 %v11276_v26  ;;  %v10546_v54 = vcombine.low %v778_v41, %v786_v44  ;;  %v10563_v60 = vcombine.high %v794_v49, %v802_v20  ;;  %v10562_v63 = vcombine.low %v794_v49, %v802_v20  ;;  %v1655_v49 = vld [vmem:[#allocation8 + $0x1f08] sm:$0xff] }
 0x2e9   :  { %7473 = vmatpush1.bf16.msra.mxu0 %v10514_v56  ;;  %v6927_v52 = vpop.f32.mrb[11].mxu1  ;;  %7105 = vmatprep.subr.bf16.mxu1 %v11293_v27  ;;  %v11373_v26 = vcombine.high %v1607_v11, %v1615_v9  ;;  %v10611_v56 = vcombine.high %v842_v12, %v850_v17  ;;  %v1623_v27 = vld [vmem:[#allocation8 + $0x1e08] sm:$0xff]  ;;  %v10610_v39 = vcombine.low %v842_v12, %v850_v17  ;;  %v681_v12 = vld [vmem:[#allocation8 + $0x98] sm:$0xff] }
 0x2ea   :  { %7474 = vmatprep.subr.bf16.mxu0 %v10531_v30  ;;  %v858_v30 = vld [vmem:[#allocation8 + $0x620] sm:$0xff]  ;;  %v11389_v41 = vcombine.high %v1623_v27, %v1631_v29  ;;  %v1639_v48 = vld [vmem:[#allocation8 + $0x1e88] sm:$0xff]  ;;  %v10433_v11 = vcombine.high %v665_v3, %v673_v4  ;;  %v689_v17 = vld [vmem:[#allocation8 + $0xd8] sm:$0xff] }
 0x2eb   :  { %v10627_v44 = vcombine.high %v858_v30, %v866_v32  ;;  %v874_v52 = vld [vmem:[#allocation8 + $0x6a0] sm:$0xff]  ;;  %v1663_v20 = vld [vmem:[#allocation8 + $0x1f48] sm:$0xff] }
 0x2ec   :  { %7106 = vmatpush1.bf16.msra.mxu1 %v11292_v18  ;;  %v1647_v18 = vld [vmem:[#allocation8 + $0x1ec8] sm:$0xff]  ;;  %v11421_v13 = vcombine.high %v1655_v49, %v1663_v20 }
 0x2ed   :  { %7475 = vmatpush1.bf16.msra.mxu0 %v10530_v53  ;;  %7107 = vmatprep.subr.bf16.mxu1 %v11309_v42  ;;  %v882_v53 = vld [vmem:[#allocation8 + $0x6e0] sm:$0xff]  ;;  %v11388_v42 = vcombine.low %v1623_v27, %v1631_v29  ;;  %v11405_v46 = vcombine.high %v1639_v48, %v1647_v18  ;;  %v10449_v27 = vcombine.high %v681_v12, %v689_v17  ;;  %v697_v29 = vld [vmem:[#allocation8 + $0x118] sm:$0xff] }
 0x2ee   :  { %7476 = vmatprep.subr.bf16.mxu0 %v10547_v43  ;;  %v10626_v43 = vcombine.low %v858_v30, %v866_v32  ;;  %v10643_v55 = vcombine.high %v874_v52, %v882_v53  ;;  %v705_v30 = vld [vmem:[#allocation8 + $0x158] sm:$0xff] }
 0x2f0   :  { %7108 = vmatpush1.bf16.msra.mxu1 %v11308_v58  ;;  %v890_v58 = vld [vmem:[#allocation8 + $0x720] sm:$0xff] }
 0x2f1   :  { %7477 = vmatpush1.bf16.msra.mxu0 %v10546_v54  ;;  %7109 = vmatprep.subr.bf16.mxu1 %v11325_v59  ;;  %v898_v54 = vld [vmem:[#allocation8 + $0x760] sm:$0xff]  ;;  %v11404_v59 = vcombine.low %v1639_v48, %v1647_v18  ;;  %v10465_v48 = vcombine.high %v697_v29, %v705_v30 }
 0x2f2   :  { %7478 = vmatprep.subr.bf16.mxu0 %v10563_v60  ;;  %v10642_v60 = vcombine.low %v874_v52, %v882_v53  ;;  %v10659_v14 = vcombine.high %v890_v58, %v898_v54  ;;  %v713_v52 = vld [vmem:[#allocation8 + $0x198] sm:$0xff] }
 0x2f3   :  { %v721_v53 = vld [vmem:[#allocation8 + $0x1d8] sm:$0xff] }
 0x2f4   :  { %7110 = vmatpush1.bf16.msra.mxu1 %v11324_v62  ;;  %v906_v62 = vld [vmem:[#allocation8 + $0x7a0] sm:$0xff] }
 0x2f5   :  { %7479 = vmatpush1.bf16.msra.mxu0 %v10562_v63  ;;  %7111 = vmatprep.subr.bf16.mxu1 %v11341_v8  ;;  %v914_v63 = vld [vmem:[#allocation8 + $0x7e0] sm:$0xff]  ;;  %v11420_v8 = vcombine.low %v1655_v49, %v1663_v20  ;;  %v10481_v49 = vcombine.high %v713_v52, %v721_v53 }
 0x2f6   :  { %7480 = vmatprep.subr.bf16.mxu0 %v10579_v22  ;;  %v10658_v22 = vcombine.low %v890_v58, %v898_v54  ;;  %v10675_v2 = vcombine.high %v906_v62, %v914_v63  ;;  %v729_v58 = vld [vmem:[#allocation8 + $0x218] sm:$0xff] }
 0x2f7   :  { %v737_v54 = vld [vmem:[#allocation8 + $0x258] sm:$0xff] }
 0x2f8   :  { %7112 = vmatpush1.bf16.msra.mxu1 %v11340_v5  ;;  %v922_v5 = vld [vmem:[#allocation8 + $0x820] sm:$0xff] }
 0x2f9   :  { %7481 = vmatpush1.bf16.msra.mxu0 %v10578_v6  ;;  %7113 = vmatprep.subr.bf16.mxu1 %v11357_v7  ;;  %v930_v6 = vld [vmem:[#allocation8 + $0x860] sm:$0xff]  ;;  %v11436_v7 = vcombine.low %v1671_v15, %v1679_v61  ;;  %v10497_v15 = vcombine.high %v729_v58, %v737_v54 }
 0x2fa   :  { %7482 = vmatprep.subr.bf16.mxu0 %v10595_v10  ;;  %v10674_v10 = vcombine.low %v906_v62, %v914_v63  ;;  %v10691_v9 = vcombine.high %v922_v5, %v930_v6  ;;  %v745_v62 = vld [vmem:[#allocation8 + $0x298] sm:$0xff] }
 0x2fb   :  { %v753_v63 = vld [vmem:[#allocation8 + $0x2d8] sm:$0xff] }
 0x2fc   :  { %7114 = vmatpush1.bf16.msra.mxu1 %v11356_v23  ;;  %v10432_v23 = vcombine.low %v665_v3, %v673_v4  ;;  %v10513_v3 = vcombine.high %v745_v62, %v753_v63 }
 0x2fd   :  { %7483 = vmatpush1.bf16.msra.mxu0 %v10594_v24  ;;  %7115 = vmatprep.subr.bf16.mxu1 %v11373_v26  ;;  %v938_v24 = vld [vmem:[#allocation8 + $0x8a0] sm:$0xff] }
 0x2fe   :  { %7484 = vmatprep.subr.bf16.mxu0 %v10611_v56  ;;  %v946_v26 = vld [vmem:[#allocation8 + $0x8e0] sm:$0xff]  ;;  %v10690_v56 = vcombine.low %v922_v5, %v930_v6  ;;  %v761_v5 = vld [vmem:[#allocation8 + $0x318] sm:$0xff] }
 0x2ff   :  { %v10707_v32 = vcombine.high %v938_v24, %v946_v26  ;;  %v769_v6 = vld [vmem:[#allocation8 + $0x358] sm:$0xff] }
 0x300   :  { %7116 = vmatpush1.bf16.msra.mxu1 %v11372_v33  ;;  %v954_v33 = vld [vmem:[#allocation8 + $0x920] sm:$0xff] }
 0x301   :  { %7485 = vmatpush1.bf16.msra.mxu0 %v10610_v39  ;;  %7117 = vmatprep.subr.bf16.mxu1 %v11389_v41  ;;  %v962_v39 = vld [vmem:[#allocation8 + $0x960] sm:$0xff]  ;;  %v10448_v41 = vcombine.low %v681_v12, %v689_v17  ;;  %v10529_v12 = vcombine.high %v761_v5, %v769_v6 }
 0x302   :  { %7486 = vmatprep.subr.bf16.mxu0 %v10627_v44  ;;  %v10706_v44 = vcombine.low %v938_v24, %v946_v26  ;;  %v10723_v18 = vcombine.high %v954_v33, %v962_v39  ;;  %v785_v24 = vld [vmem:[#allocation8 + $0x3d8] sm:$0xff]  ;;  %v1034_v26 = vld [vmem:[#allocation8 + $0xba0] sm:$0xff] }
 0x304   :  { %7118 = vmatpush1.bf16.msra.mxu1 %v11388_v42  ;;  %v970_v42 = vld [vmem:[#allocation8 + $0x9a0] sm:$0xff] }
 0x305   :  { %7487 = vmatpush1.bf16.msra.mxu0 %v10626_v43  ;;  %7119 = vmatprep.subr.bf16.mxu1 %v11405_v46  ;;  %v978_v43 = vld [vmem:[#allocation8 + $0x9e0] sm:$0xff]  ;;  %v10464_v46 = vcombine.low %v697_v29, %v705_v30 }
 0x306   :  { %7488 = vmatprep.subr.bf16.mxu0 %v10643_v55  ;;  %v10722_v55 = vcombine.low %v954_v33, %v962_v39  ;;  %v10739_v20 = vcombine.high %v970_v42, %v978_v43  ;;  %v793_v33 = vld [vmem:[#allocation8 + $0x418] sm:$0xff] }
 0x307   :  { %v801_v39 = vld [vmem:[#allocation8 + $0x458] sm:$0xff] }
 0x308   :  { %7120 = vmatpush1.bf16.msra.mxu1 %v11404_v59  ;;  %v986_v59 = vld [vmem:[#allocation8 + $0xa20] sm:$0xff] }
 0x309   :  { %7489 = vmatpush1.bf16.msra.mxu0 %v10642_v60  ;;  %7121 = vmatprep.subr.bf16.mxu1 %v11421_v13  ;;  %v994_v60 = vld [vmem:[#allocation8 + $0xa60] sm:$0xff]  ;;  %v10480_v13 = vcombine.low %v713_v52, %v721_v53  ;;  %v10561_v52 = vcombine.high %v793_v33, %v801_v39 }
 0x30a   :  { %7490 = vmatprep.subr.bf16.mxu0 %v10659_v14  ;;  %v10738_v14 = vcombine.low %v970_v42, %v978_v43  ;;  %v10755_v61 = vcombine.high %v986_v59, %v994_v60  ;;  %v809_v42 = vld [vmem:[#allocation8 + $0x498] sm:$0xff] }
 0x30b   :  { %v817_v43 = vld [vmem:[#allocation8 + $0x4d8] sm:$0xff] }
 0x30c   :  { %7122 = vmatpush1.bf16.msra.mxu1 %v11420_v8  ;;  %v1002_v8 = vld [vmem:[#allocation8 + $0xaa0] sm:$0xff] }
 0x30d   :  { %7491 = vmatpush1.bf16.msra.mxu0 %v10658_v22  ;;  %7123 = vmatprep.subr.bf16.mxu1 %v11437_v1  ;;  %v1010_v22 = vld [vmem:[#allocation8 + $0xae0] sm:$0xff]  ;;  %v10496_v1 = vcombine.low %v729_v58, %v737_v54  ;;  %v10577_v58 = vcombine.high %v809_v42, %v817_v43 }
 0x30e   :  { %7492 = vmatprep.subr.bf16.mxu0 %v10675_v2  ;;  %v10754_v2 = vcombine.low %v986_v59, %v994_v60  ;;  %v10771_v4 = vcombine.high %v1002_v8, %v1010_v22  ;;  %v825_v59 = vld [vmem:[#allocation8 + $0x518] sm:$0xff] }
 0x30f   :  { %v833_v60 = vld [vmem:[#allocation8 + $0x558] sm:$0xff] }
 0x310   :  { %7124 = vmatpush1.bf16.msra.mxu1 %v11436_v7  ;;  %v1018_v7 = vld [vmem:[#allocation8 + $0xb20] sm:$0xff] }
 0x311   :  { %7493 = vmatpush1.bf16.msra.mxu0 %v10674_v10  ;;  %7298 = vmatprep.subr.bf16.mxu1 %v10433_v11  ;;  %v1026_v10 = vld [vmem:[#allocation8 + $0xb60] sm:$0xff]  ;;  %v10512_v11 = vcombine.low %v745_v62, %v753_v63  ;;  %v10593_v62 = vcombine.high %v825_v59, %v833_v60 }
 0x312   :  { %7503 = vmatprep.subr.bf16.mxu0 %v10691_v9  ;;  %v10770_v9 = vcombine.low %v1002_v8, %v1010_v22  ;;  %v10787_v17 = vcombine.high %v1018_v7, %v1026_v10  ;;  %v10786_v29 = vcombine.low %v1018_v7, %v1026_v10  ;;  %v841_v8 = vld [vmem:[#allocation8 + $0x598] sm:$0xff] }
 0x313   :  { %7126 = vmatmul.mubr.bf16.vlgmr.msra.gmra.mrb[12].mxu1 %v12879_v31  ;;  %v849_v22 = vld [vmem:[#allocation8 + $0x5d8] sm:$0xff] }
 0x314   :  { %7495 = vmatmul.mubr.bf16.vlgmr.msra.gmra.mrb[12].mxu0 %v12832_v37  ;;  %7299 = vmatpush1.bf16.msra.mxu1 %v10432_v23  ;;  %v777_v23 = vld [vmem:[#allocation8 + $0x398] sm:$0xff] }
 0x315   :  { %7330 = vmatprep.mubr.bf16.mxu1 %v12830_v36  ;;  %7504 = vmatpush1.bf16.msra.mxu0 %v10690_v56  ;;  %v1042_v56 = vld [vmem:[#allocation8 + $0xbe0] sm:$0xff]  ;;  %v10545_v30 = vcombine.high %v777_v23, %v785_v24  ;;  %v857_v7 = vld [vmem:[#allocation8 + $0x618] sm:$0xff] }
 0x316   :  { %7535 = vmatprep.mubr.bf16.mxu0 %v12848_v25  ;;  %7300 = vmatprep.subr.bf16.mxu1 %v10449_v27  ;;  %v10528_v27 = vcombine.low %v761_v5, %v769_v6  ;;  %v10609_v5 = vcombine.high %v841_v8, %v849_v22  ;;  %v865_v10 = vld [vmem:[#allocation8 + $0x658] sm:$0xff] }
 0x317   :  { %7505 = vmatprep.subr.bf16.mxu0 %v10707_v32  ;;  %v10803_v32 = vcombine.high %v1034_v26, %v1042_v56 }
 0x318   :  { %7301 = vmatpush1.bf16.msra.mxu1 %v10448_v41  ;;  %v1050_v41 = vld [vmem:[#allocation8 + $0xc20] sm:$0xff] }
 0x319   :  { %7506 = vmatpush1.bf16.msra.mxu0 %v10706_v44  ;;  %7302 = vmatprep.subr.bf16.mxu1 %v10465_v48  ;;  %v1058_v44 = vld [vmem:[#allocation8 + $0xc60] sm:$0xff]  ;;  %v10544_v48 = vcombine.low %v777_v23, %v785_v24  ;;  %v10625_v23 = vcombine.high %v857_v7, %v865_v10 }
 0x31a   :  { %7507 = vmatprep.subr.bf16.mxu0 %v10723_v18  ;;  %v10802_v18 = vcombine.low %v1034_v26, %v1042_v56  ;;  %v10819_v53 = vcombine.high %v1050_v41, %v1058_v44  ;;  %v873_v26 = vld [vmem:[#allocation8 + $0x698] sm:$0xff] }
 0x31b   :  { %v881_v56 = vld [vmem:[#allocation8 + $0x6d8] sm:$0xff] }
 0x31c   :  { %7303 = vmatpush1.bf16.msra.mxu1 %v10464_v46  ;;  %v1066_v46 = vld [vmem:[#allocation8 + $0xca0] sm:$0xff] }
 0x31d   :  { %7508 = vmatpush1.bf16.msra.mxu0 %v10722_v55  ;;  %7304 = vmatprep.subr.bf16.mxu1 %v10481_v49  ;;  %v1074_v55 = vld [vmem:[#allocation8 + $0xce0] sm:$0xff]  ;;  %v10560_v49 = vcombine.low %v793_v33, %v801_v39  ;;  %v10641_v33 = vcombine.high %v873_v26, %v881_v56 }
 0x31e   :  { %7509 = vmatprep.subr.bf16.mxu0 %v10739_v20  ;;  %v10818_v20 = vcombine.low %v1050_v41, %v1058_v44  ;;  %v10835_v54 = vcombine.high %v1066_v46, %v1074_v55  ;;  %v889_v41 = vld [vmem:[#allocation8 + $0x718] sm:$0xff] }
 0x31f   :  { %v897_v44 = vld [vmem:[#allocation8 + $0x758] sm:$0xff] }
 0x320   :  { %7305 = vmatpush1.bf16.msra.mxu1 %v10480_v13  ;;  %v1082_v13 = vld [vmem:[#allocation8 + $0xd20] sm:$0xff] }
 0x321   :  { %7510 = vmatpush1.bf16.msra.mxu0 %v10738_v14  ;;  %7306 = vmatprep.subr.bf16.mxu1 %v10497_v15  ;;  %v1090_v14 = vld [vmem:[#allocation8 + $0xd60] sm:$0xff]  ;;  %v10576_v15 = vcombine.low %v809_v42, %v817_v43  ;;  %v10657_v42 = vcombine.high %v889_v41, %v897_v44 }
 0x322   :  { %7511 = vmatprep.subr.bf16.mxu0 %v10755_v61  ;;  %v10834_v61 = vcombine.low %v1066_v46, %v1074_v55  ;;  %v10851_v63 = vcombine.high %v1082_v13, %v1090_v14  ;;  %v905_v46 = vld [vmem:[#allocation8 + $0x798] sm:$0xff] }
 0x323   :  { %v913_v55 = vld [vmem:[#allocation8 + $0x7d8] sm:$0xff] }
 0x324   :  { %7307 = vmatpush1.bf16.msra.mxu1 %v10496_v1  ;;  %v1098_v1 = vld [vmem:[#allocation8 + $0xda0] sm:$0xff] }
 0x325   :  { %7512 = vmatpush1.bf16.msra.mxu0 %v10754_v2  ;;  %7308 = vmatprep.subr.bf16.mxu1 %v10513_v3  ;;  %v1106_v2 = vld [vmem:[#allocation8 + $0xde0] sm:$0xff]  ;;  %v10592_v3 = vcombine.low %v825_v59, %v833_v60  ;;  %v10673_v59 = vcombine.high %v905_v46, %v913_v55 }
 0x326   :  { %7513 = vmatprep.subr.bf16.mxu0 %v10771_v4  ;;  %v10850_v4 = vcombine.low %v1082_v13, %v1090_v14  ;;  %v10867_v6 = vcombine.high %v1098_v1, %v1106_v2  ;;  %v921_v13 = vld [vmem:[#allocation8 + $0x818] sm:$0xff] }
 0x327   :  { %v929_v14 = vld [vmem:[#allocation8 + $0x858] sm:$0xff] }
 0x328   :  { %7309 = vmatpush1.bf16.msra.mxu1 %v10512_v11  ;;  %v1114_v11 = vld [vmem:[#allocation8 + $0xe20] sm:$0xff] }
 0x329   :  { %7514 = vmatpush1.bf16.msra.mxu0 %v10770_v9  ;;  %7310 = vmatprep.subr.bf16.mxu1 %v10529_v12  ;;  %v1122_v9 = vld [vmem:[#allocation8 + $0xe60] sm:$0xff]  ;;  %v10608_v12 = vcombine.low %v841_v8, %v849_v22  ;;  %v10689_v8 = vcombine.high %v921_v13, %v929_v14 }
 0x32a   :  { %7515 = vmatprep.subr.bf16.mxu0 %v10787_v17  ;;  %v10866_v17 = vcombine.low %v1098_v1, %v1106_v2  ;;  %v10883_v24 = vcombine.high %v1114_v11, %v1122_v9  ;;  %v937_v1 = vld [vmem:[#allocation8 + $0x898] sm:$0xff] }
 0x32b   :  { %v945_v2 = vld [vmem:[#allocation8 + $0x8d8] sm:$0xff] }
 0x32c   :  { %7311 = vmatpush1.bf16.msra.mxu1 %v10528_v27  ;;  %v1130_v27 = vld [vmem:[#allocation8 + $0xea0] sm:$0xff] }
 0x32d   :  { %7516 = vmatpush1.bf16.msra.mxu0 %v10786_v29  ;;  %7312 = vmatprep.subr.bf16.mxu1 %v10545_v30  ;;  %v1138_v29 = vld [vmem:[#allocation8 + $0xee0] sm:$0xff]  ;;  %v10624_v30 = vcombine.low %v857_v7, %v865_v10  ;;  %v10705_v7 = vcombine.high %v937_v1, %v945_v2  ;;  %v953_v10 = vld [vmem:[#allocation8 + $0x918] sm:$0xff] }
 0x32e   :  { %7517 = vmatprep.subr.bf16.mxu0 %v10803_v32  ;;  %v10882_v32 = vcombine.low %v1114_v11, %v1122_v9  ;;  %v10899_v39 = vcombine.high %v1130_v27, %v1138_v29  ;;  %v961_v11 = vld [vmem:[#allocation8 + $0x958] sm:$0xff] }
 0x330   :  { %7313 = vmatpush1.bf16.msra.mxu1 %v10544_v48  ;;  %v1146_v48 = vld [vmem:[#allocation8 + $0xf20] sm:$0xff] }
 0x331   :  { %7518 = vmatpush1.bf16.msra.mxu0 %v10802_v18  ;;  %7314 = vmatprep.subr.bf16.mxu1 %v10561_v52  ;;  %v1154_v18 = vld [vmem:[#allocation8 + $0xf60] sm:$0xff]  ;;  %v10640_v52 = vcombine.low %v873_v26, %v881_v56  ;;  %v10721_v26 = vcombine.high %v953_v10, %v961_v11 }
 0x332   :  { %7519 = vmatprep.subr.bf16.mxu0 %v10819_v53  ;;  %v10898_v53 = vcombine.low %v1130_v27, %v1138_v29  ;;  %v10915_v43 = vcombine.high %v1146_v48, %v1154_v18  ;;  %v969_v27 = vld [vmem:[#allocation8 + $0x998] sm:$0xff] }
 0x333   :  { %v977_v29 = vld [vmem:[#allocation8 + $0x9d8] sm:$0xff] }
 0x334   :  { %7315 = vmatpush1.bf16.msra.mxu1 %v10560_v49  ;;  %v1162_v49 = vld [vmem:[#allocation8 + $0xfa0] sm:$0xff] }
 0x335   :  { %7520 = vmatpush1.bf16.msra.mxu0 %v10818_v20  ;;  %7316 = vmatprep.subr.bf16.mxu1 %v10577_v58  ;;  %v1170_v20 = vld [vmem:[#allocation8 + $0xfe0] sm:$0xff]  ;;  %v10656_v58 = vcombine.low %v889_v41, %v897_v44  ;;  %v10737_v41 = vcombine.high %v969_v27, %v977_v29 }
 0x336   :  { %7521 = vmatprep.subr.bf16.mxu0 %v10835_v54  ;;  %v10914_v54 = vcombine.low %v1146_v48, %v1154_v18  ;;  %v10931_v60 = vcombine.high %v1162_v49, %v1170_v20  ;;  %v985_v48 = vld [vmem:[#allocation8 + $0xa18] sm:$0xff] }
 0x337   :  { %v993_v18 = vld [vmem:[#allocation8 + $0xa58] sm:$0xff] }
 0x338   :  { %7317 = vmatpush1.bf16.msra.mxu1 %v10576_v15  ;;  %v1178_v15 = vld [vmem:[#allocation8 + $0x1020] sm:$0xff] }
 0x339   :  { %7522 = vmatpush1.bf16.msra.mxu0 %v10834_v61  ;;  %7318 = vmatprep.subr.bf16.mxu1 %v10593_v62  ;;  %v1186_v61 = vld [vmem:[#allocation8 + $0x1060] sm:$0xff]  ;;  %v10672_v62 = vcombine.low %v905_v46, %v913_v55  ;;  %v10753_v46 = vcombine.high %v985_v48, %v993_v18 }
 0x33a   :  { %7523 = vmatprep.subr.bf16.mxu0 %v10851_v63  ;;  %v10930_v63 = vcombine.low %v1162_v49, %v1170_v20  ;;  %v10947_v22 = vcombine.high %v1178_v15, %v1186_v61  ;;  %v1001_v49 = vld [vmem:[#allocation8 + $0xa98] sm:$0xff] }
 0x33b   :  { %v1009_v20 = vld [vmem:[#allocation8 + $0xad8] sm:$0xff] }
 0x33c   :  { %7319 = vmatpush1.bf16.msra.mxu1 %v10592_v3  ;;  %v10688_v3 = vcombine.low %v921_v13, %v929_v14  ;;  %v10769_v13 = vcombine.high %v1001_v49, %v1009_v20 }
 0x33d   :  { %7524 = vmatpush1.bf16.msra.mxu0 %v10850_v4  ;;  %7320 = vmatprep.subr.bf16.mxu1 %v10609_v5  ;;  %v1194_v4 = vld [vmem:[#allocation8 + $0x10a0] sm:$0xff] }
 0x33e   :  { %7525 = vmatprep.subr.bf16.mxu0 %v10867_v6  ;;  %v1202_v5 = vld [vmem:[#allocation8 + $0x10e0] sm:$0xff]  ;;  %v10946_v6 = vcombine.low %v1178_v15, %v1186_v61  ;;  %v1017_v15 = vld [vmem:[#allocation8 + $0xb18] sm:$0xff] }
 0x33f   :  { %v10963_v9 = vcombine.high %v1194_v4, %v1202_v5  ;;  %v1025_v61 = vld [vmem:[#allocation8 + $0xb58] sm:$0xff] }
 0x340   :  { %7321 = vmatpush1.bf16.msra.mxu1 %v10608_v12  ;;  %v1210_v12 = vld [vmem:[#allocation8 + $0x1120] sm:$0xff] }
 0x341   :  { %7526 = vmatpush1.bf16.msra.mxu0 %v10866_v17  ;;  %7322 = vmatprep.subr.bf16.mxu1 %v10625_v23  ;;  %v1218_v17 = vld [vmem:[#allocation8 + $0x1160] sm:$0xff]  ;;  %v10704_v23 = vcombine.low %v937_v1, %v945_v2  ;;  %v10785_v1 = vcombine.high %v1017_v15, %v1025_v61 }
 0x342   :  { %7527 = vmatprep.subr.bf16.mxu0 %v10883_v24  ;;  %v10962_v24 = vcombine.low %v1194_v4, %v1202_v5  ;;  %v10979_v56 = vcombine.high %v1210_v12, %v1218_v17  ;;  %v1041_v4 = vld [vmem:[#allocation8 + $0xbd8] sm:$0xff]  ;;  %v1290_v5 = vld [vmem:[#allocation8 + $0x13a0] sm:$0xff] }
 0x344   :  { %7323 = vmatpush1.bf16.msra.mxu1 %v10624_v30  ;;  %v1226_v30 = vld [vmem:[#allocation8 + $0x11a0] sm:$0xff] }
 0x345   :  { %7528 = vmatpush1.bf16.msra.mxu0 %v10882_v32  ;;  %7324 = vmatprep.subr.bf16.mxu1 %v10641_v33  ;;  %v1234_v32 = vld [vmem:[#allocation8 + $0x11e0] sm:$0xff]  ;;  %v10720_v33 = vcombine.low %v953_v10, %v961_v11 }
 0x346   :  { %7529 = vmatprep.subr.bf16.mxu0 %v10899_v39  ;;  %v10978_v39 = vcombine.low %v1210_v12, %v1218_v17  ;;  %v10995_v44 = vcombine.high %v1226_v30, %v1234_v32  ;;  %v1049_v12 = vld [vmem:[#allocation8 + $0xc18] sm:$0xff] }
 0x347   :  { %v1057_v17 = vld [vmem:[#allocation8 + $0xc58] sm:$0xff] }
 0x348   :  { %7325 = vmatpush1.bf16.msra.mxu1 %v10640_v52  ;;  %v1242_v52 = vld [vmem:[#allocation8 + $0x1220] sm:$0xff] }
 0x349   :  { %7530 = vmatpush1.bf16.msra.mxu0 %v10898_v53  ;;  %7326 = vmatprep.subr.bf16.mxu1 %v10657_v42  ;;  %v1250_v53 = vld [vmem:[#allocation8 + $0x1260] sm:$0xff]  ;;  %v10736_v42 = vcombine.low %v969_v27, %v977_v29  ;;  %v10817_v27 = vcombine.high %v1049_v12, %v1057_v17 }
 0x34a   :  { %7531 = vmatprep.subr.bf16.mxu0 %v10915_v43  ;;  %v10994_v43 = vcombine.low %v1226_v30, %v1234_v32  ;;  %v11011_v55 = vcombine.high %v1242_v52, %v1250_v53  ;;  %v1065_v30 = vld [vmem:[#allocation8 + $0xc98] sm:$0xff] }
 0x34b   :  { %v1073_v32 = vld [vmem:[#allocation8 + $0xcd8] sm:$0xff] }
 0x34c   :  { %7327 = vmatpush1.bf16.msra.mxu1 %v10656_v58  ;;  %v1258_v58 = vld [vmem:[#allocation8 + $0x12a0] sm:$0xff] }
 0x34d   :  { %7532 = vmatpush1.bf16.msra.mxu0 %v10914_v54  ;;  %7328 = vmatprep.subr.bf16.mxu1 %v10673_v59  ;;  %v1266_v54 = vld [vmem:[#allocation8 + $0x12e0] sm:$0xff]  ;;  %v10752_v59 = vcombine.low %v985_v48, %v993_v18  ;;  %v10833_v48 = vcombine.high %v1065_v30, %v1073_v32 }
 0x34e   :  { %7533 = vmatprep.subr.bf16.mxu0 %v10931_v60  ;;  %v11010_v60 = vcombine.low %v1242_v52, %v1250_v53  ;;  %v11027_v14 = vcombine.high %v1258_v58, %v1266_v54  ;;  %v1081_v52 = vld [vmem:[#allocation8 + $0xd18] sm:$0xff] }
 0x34f   :  { %v1089_v53 = vld [vmem:[#allocation8 + $0xd58] sm:$0xff] }
 0x350   :  { %7329 = vmatpush1.bf16.msra.mxu1 %v10672_v62  ;;  %v1274_v62 = vld [vmem:[#allocation8 + $0x1320] sm:$0xff] }
 0x351   :  { %7534 = vmatpush1.bf16.msra.mxu0 %v10930_v63  ;;  %7339 = vmatprep.subr.bf16.mxu1 %v10689_v8  ;;  %v1282_v63 = vld [vmem:[#allocation8 + $0x1360] sm:$0xff]  ;;  %v10768_v8 = vcombine.low %v1001_v49, %v1009_v20  ;;  %v10849_v49 = vcombine.high %v1081_v52, %v1089_v53 }
 0x352   :  { %7544 = vmatprep.subr.bf16.mxu0 %v10947_v22  ;;  %v11026_v22 = vcombine.low %v1258_v58, %v1266_v54  ;;  %v11043_v2 = vcombine.high %v1274_v62, %v1282_v63  ;;  %v11042_v10 = vcombine.low %v1274_v62, %v1282_v63  ;;  %v1097_v58 = vld [vmem:[#allocation8 + $0xd98] sm:$0xff] }
 0x353   :  { %7331 = vmatmul.mubr.bf16.vlgmr.msra.gmra.mrb[16].mxu1 %v12832_v37  ;;  %v1105_v54 = vld [vmem:[#allocation8 + $0xdd8] sm:$0xff] }
 0x354   :  { %7536 = vmatmul.mubr.bf16.vlgmr.msra.gmra.mrb[12].mxu0 %v12883_v38  ;;  %7340 = vmatpush1.bf16.msra.mxu1 %v10688_v3  ;;  %v1033_v3 = vld [vmem:[#allocation8 + $0xb98] sm:$0xff] }
 0x355   :  { %7371 = vmatprep.mubr.bf16.mxu1 %v12848_v25  ;;  %7545 = vmatpush1.bf16.msra.mxu0 %v10946_v6  ;;  %v1298_v6 = vld [vmem:[#allocation8 + $0x13e0] sm:$0xff]  ;;  %v10801_v11 = vcombine.high %v1033_v3, %v1041_v4  ;;  %v1113_v62 = vld [vmem:[#allocation8 + $0xe18] sm:$0xff] }
 0x356   :  { %7576 = vmatprep.mubr.bf16.mxu0 %v12886_v51  ;;  %7341 = vmatprep.subr.bf16.mxu1 %v10705_v7  ;;  %v10784_v7 = vcombine.low %v1017_v15, %v1025_v61  ;;  %v10865_v15 = vcombine.high %v1097_v58, %v1105_v54  ;;  %v1121_v63 = vld [vmem:[#allocation8 + $0xe58] sm:$0xff] }
 0x357   :  { %7546 = vmatprep.subr.bf16.mxu0 %v10963_v9  ;;  %v11059_v9 = vcombine.high %v1290_v5, %v1298_v6 }
 0x358   :  { %7342 = vmatpush1.bf16.msra.mxu1 %v10704_v23  ;;  %v1306_v23 = vld [vmem:[#allocation8 + $0x1420] sm:$0xff] }
 0x359   :  { %7547 = vmatpush1.bf16.msra.mxu0 %v10962_v24  ;;  %7343 = vmatprep.subr.bf16.mxu1 %v10721_v26  ;;  %v1314_v24 = vld [vmem:[#allocation8 + $0x1460] sm:$0xff]  ;;  %v10800_v26 = vcombine.low %v1033_v3, %v1041_v4  ;;  %v10881_v3 = vcombine.high %v1113_v62, %v1121_v63 }
 0x35a   :  { %7548 = vmatprep.subr.bf16.mxu0 %v10979_v56  ;;  %v11058_v56 = vcombine.low %v1290_v5, %v1298_v6  ;;  %v11075_v29 = vcombine.high %v1306_v23, %v1314_v24  ;;  %v1129_v5 = vld [vmem:[#allocation8 + $0xe98] sm:$0xff] }
 0x35b   :  { %v1137_v6 = vld [vmem:[#allocation8 + $0xed8] sm:$0xff] }
 0x35c   :  { %7344 = vmatpush1.bf16.msra.mxu1 %v10720_v33  ;;  %v1322_v33 = vld [vmem:[#allocation8 + $0x14a0] sm:$0xff] }
 0x35d   :  { %7549 = vmatpush1.bf16.msra.mxu0 %v10978_v39  ;;  %7345 = vmatprep.subr.bf16.mxu1 %v10737_v41  ;;  %v1330_v39 = vld [vmem:[#allocation8 + $0x14e0] sm:$0xff]  ;;  %v10816_v41 = vcombine.low %v1049_v12, %v1057_v17  ;;  %v10897_v12 = vcombine.high %v1129_v5, %v1137_v6 }
 0x35e   :  { %7550 = vmatprep.subr.bf16.mxu0 %v10995_v44  ;;  %v11074_v44 = vcombine.low %v1306_v23, %v1314_v24  ;;  %v11091_v18 = vcombine.high %v1322_v33, %v1330_v39  ;;  %v1145_v23 = vld [vmem:[#allocation8 + $0xf18] sm:$0xff] }
 0x35f   :  { %v1153_v24 = vld [vmem:[#allocation8 + $0xf58] sm:$0xff] }
 0x360   :  { %7346 = vmatpush1.bf16.msra.mxu1 %v10736_v42  ;;  %v1338_v42 = vld [vmem:[#allocation8 + $0x1520] sm:$0xff] }
 0x361   :  { %7551 = vmatpush1.bf16.msra.mxu0 %v10994_v43  ;;  %7347 = vmatprep.subr.bf16.mxu1 %v10753_v46  ;;  %v1346_v43 = vld [vmem:[#allocation8 + $0x1560] sm:$0xff]  ;;  %v10832_v46 = vcombine.low %v1065_v30, %v1073_v32  ;;  %v10913_v30 = vcombine.high %v1145_v23, %v1153_v24 }
 0x362   :  { %7552 = vmatprep.subr.bf16.mxu0 %v11011_v55  ;;  %v11090_v55 = vcombine.low %v1322_v33, %v1330_v39  ;;  %v11107_v20 = vcombine.high %v1338_v42, %v1346_v43  ;;  %v1161_v33 = vld [vmem:[#allocation8 + $0xf98] sm:$0xff] }
 0x363   :  { %v1169_v39 = vld [vmem:[#allocation8 + $0xfd8] sm:$0xff] }
 0x364   :  { %7348 = vmatpush1.bf16.msra.mxu1 %v10752_v59  ;;  %v1354_v59 = vld [vmem:[#allocation8 + $0x15a0] sm:$0xff] }
 0x365   :  { %7553 = vmatpush1.bf16.msra.mxu0 %v11010_v60  ;;  %7349 = vmatprep.subr.bf16.mxu1 %v10769_v13  ;;  %v1362_v60 = vld [vmem:[#allocation8 + $0x15e0] sm:$0xff]  ;;  %v10848_v13 = vcombine.low %v1081_v52, %v1089_v53  ;;  %v10929_v52 = vcombine.high %v1161_v33, %v1169_v39 }
 0x366   :  { %7554 = vmatprep.subr.bf16.mxu0 %v11027_v14  ;;  %v11106_v14 = vcombine.low %v1338_v42, %v1346_v43  ;;  %v11123_v61 = vcombine.high %v1354_v59, %v1362_v60  ;;  %v1177_v42 = vld [vmem:[#allocation8 + $0x1018] sm:$0xff] }
 0x367   :  { %v1185_v43 = vld [vmem:[#allocation8 + $0x1058] sm:$0xff] }
 0x368   :  { %7350 = vmatpush1.bf16.msra.mxu1 %v10768_v8  ;;  %v1370_v8 = vld [vmem:[#allocation8 + $0x1620] sm:$0xff] }
 0x369   :  { %7555 = vmatpush1.bf16.msra.mxu0 %v11026_v22  ;;  %7351 = vmatprep.subr.bf16.mxu1 %v10785_v1  ;;  %v1378_v22 = vld [vmem:[#allocation8 + $0x1660] sm:$0xff]  ;;  %v10864_v1 = vcombine.low %v1097_v58, %v1105_v54  ;;  %v10945_v58 = vcombine.high %v1177_v42, %v1185_v43 }
 0x36a   :  { %7556 = vmatprep.subr.bf16.mxu0 %v11043_v2  ;;  %v11122_v2 = vcombine.low %v1354_v59, %v1362_v60  ;;  %v11139_v4 = vcombine.high %v1370_v8, %v1378_v22  ;;  %v1193_v59 = vld [vmem:[#allocation8 + $0x1098] sm:$0xff] }
 0x36b   :  { %v1201_v60 = vld [vmem:[#allocation8 + $0x10d8] sm:$0xff] }
 0x36c   :  { %7352 = vmatpush1.bf16.msra.mxu1 %v10784_v7  ;;  %v1386_v7 = vld [vmem:[#allocation8 + $0x16a0] sm:$0xff] }
 0x36d   :  { %7557 = vmatpush1.bf16.msra.mxu0 %v11042_v10  ;;  %7353 = vmatprep.subr.bf16.mxu1 %v10801_v11  ;;  %v1394_v10 = vld [vmem:[#allocation8 + $0x16e0] sm:$0xff]  ;;  %v10880_v11 = vcombine.low %v1113_v62, %v1121_v63  ;;  %v10961_v62 = vcombine.high %v1193_v59, %v1201_v60  ;;  %v1209_v63 = vld [vmem:[#allocation8 + $0x1118] sm:$0xff] }
 0x36e   :  { %7558 = vmatprep.subr.bf16.mxu0 %v11059_v9  ;;  %v11138_v9 = vcombine.low %v1370_v8, %v1378_v22  ;;  %v11155_v17 = vcombine.high %v1386_v7, %v1394_v10  ;;  %v1217_v8 = vld [vmem:[#allocation8 + $0x1158] sm:$0xff] }
 0x370   :  { %7354 = vmatpush1.bf16.msra.mxu1 %v10800_v26  ;;  %v1402_v26 = vld [vmem:[#allocation8 + $0x1720] sm:$0xff] }
 0x371   :  { %7559 = vmatpush1.bf16.msra.mxu0 %v11058_v56  ;;  %7355 = vmatprep.subr.bf16.mxu1 %v10817_v27  ;;  %v1410_v56 = vld [vmem:[#allocation8 + $0x1760] sm:$0xff]  ;;  %v10896_v27 = vcombine.low %v1129_v5, %v1137_v6  ;;  %v10977_v5 = vcombine.high %v1209_v63, %v1217_v8 }
 0x372   :  { %7560 = vmatprep.subr.bf16.mxu0 %v11075_v29  ;;  %v11154_v29 = vcombine.low %v1386_v7, %v1394_v10  ;;  %v11171_v32 = vcombine.high %v1402_v26, %v1410_v56  ;;  %v1225_v7 = vld [vmem:[#allocation8 + $0x1198] sm:$0xff] }
 0x373   :  { %v1233_v10 = vld [vmem:[#allocation8 + $0x11d8] sm:$0xff] }
 0x374   :  { %7356 = vmatpush1.bf16.msra.mxu1 %v10816_v41  ;;  %v1418_v41 = vld [vmem:[#allocation8 + $0x17a0] sm:$0xff] }
 0x375   :  { %7561 = vmatpush1.bf16.msra.mxu0 %v11074_v44  ;;  %7357 = vmatprep.subr.bf16.mxu1 %v10833_v48  ;;  %v1426_v44 = vld [vmem:[#allocation8 + $0x17e0] sm:$0xff]  ;;  %v10912_v48 = vcombine.low %v1145_v23, %v1153_v24  ;;  %v10993_v23 = vcombine.high %v1225_v7, %v1233_v10 }
 0x376   :  { %7562 = vmatprep.subr.bf16.mxu0 %v11091_v18  ;;  %v11170_v18 = vcombine.low %v1402_v26, %v1410_v56  ;;  %v11187_v53 = vcombine.high %v1418_v41, %v1426_v44  ;;  %v1241_v26 = vld [vmem:[#allocation8 + $0x1218] sm:$0xff] }
 0x377   :  { %v1249_v56 = vld [vmem:[#allocation8 + $0x1258] sm:$0xff] }
 0x378   :  { %7358 = vmatpush1.bf16.msra.mxu1 %v10832_v46  ;;  %v1434_v46 = vld [vmem:[#allocation8 + $0x1820] sm:$0xff] }
 0x379   :  { %7563 = vmatpush1.bf16.msra.mxu0 %v11090_v55  ;;  %7359 = vmatprep.subr.bf16.mxu1 %v10849_v49  ;;  %v1442_v55 = vld [vmem:[#allocation8 + $0x1860] sm:$0xff]  ;;  %v10928_v49 = vcombine.low %v1161_v33, %v1169_v39  ;;  %v11009_v33 = vcombine.high %v1241_v26, %v1249_v56 }
 0x37a   :  { %7564 = vmatprep.subr.bf16.mxu0 %v11107_v20  ;;  %v11186_v20 = vcombine.low %v1418_v41, %v1426_v44  ;;  %v11203_v54 = vcombine.high %v1434_v46, %v1442_v55  ;;  %v1257_v41 = vld [vmem:[#allocation8 + $0x1298] sm:$0xff] }
 0x37b   :  { %v1265_v44 = vld [vmem:[#allocation8 + $0x12d8] sm:$0xff] }
 0x37c   :  { %7360 = vmatpush1.bf16.msra.mxu1 %v10848_v13  ;;  %v10944_v13 = vcombine.low %v1177_v42, %v1185_v43  ;;  %v11025_v42 = vcombine.high %v1257_v41, %v1265_v44 }
 0x37d   :  { %7565 = vmatpush1.bf16.msra.mxu0 %v11106_v14  ;;  %7361 = vmatprep.subr.bf16.mxu1 %v10865_v15  ;;  %v1450_v14 = vld [vmem:[#allocation8 + $0x18a0] sm:$0xff] }
 0x37e   :  { %7566 = vmatprep.subr.bf16.mxu0 %v11123_v61  ;;  %v1458_v15 = vld [vmem:[#allocation8 + $0x18e0] sm:$0xff]  ;;  %v11202_v61 = vcombine.low %v1434_v46, %v1442_v55  ;;  %v1273_v46 = vld [vmem:[#allocation8 + $0x1318] sm:$0xff] }
 0x37f   :  { %v11219_v22 = vcombine.high %v1450_v14, %v1458_v15  ;;  %v1281_v55 = vld [vmem:[#allocation8 + $0x1358] sm:$0xff] }
 0x380   :  { %7362 = vmatpush1.bf16.msra.mxu1 %v10864_v1  ;;  %v1466_v1 = vld [vmem:[#allocation8 + $0x1920] sm:$0xff] }
 0x381   :  { %7567 = vmatpush1.bf16.msra.mxu0 %v11122_v2  ;;  %7363 = vmatprep.subr.bf16.mxu1 %v10881_v3  ;;  %v1474_v2 = vld [vmem:[#allocation8 + $0x1960] sm:$0xff]  ;;  %v10960_v3 = vcombine.low %v1193_v59, %v1201_v60  ;;  %v11041_v59 = vcombine.high %v1273_v46, %v1281_v55 }
 0x382   :  { %7568 = vmatprep.subr.bf16.mxu0 %v11139_v4  ;;  %v11218_v4 = vcombine.low %v1450_v14, %v1458_v15  ;;  %v11235_v6 = vcombine.high %v1466_v1, %v1474_v2  ;;  %v1297_v14 = vld [vmem:[#allocation8 + $0x13d8] sm:$0xff] }
 0x384   :  { %7364 = vmatpush1.bf16.msra.mxu1 %v10880_v11  ;;  %v1482_v11 = vld [vmem:[#allocation8 + $0x19a0] sm:$0xff] }
 0x385   :  { %7569 = vmatpush1.bf16.msra.mxu0 %v11138_v9  ;;  %7365 = vmatprep.subr.bf16.mxu1 %v10897_v12  ;;  %v1490_v9 = vld [vmem:[#allocation8 + $0x19e0] sm:$0xff]  ;;  %v10976_v12 = vcombine.low %v1209_v63, %v1217_v8  ;;  %v11040_v8 = vcombine.low %v1273_v46, %v1281_v55 }
 0x386   :  { %7570 = vmatprep.subr.bf16.mxu0 %v11155_v17  ;;  %v11234_v17 = vcombine.low %v1466_v1, %v1474_v2  ;;  %v11251_v24 = vcombine.high %v1482_v11, %v1490_v9  ;;  %v1610_v46 = vld [vmem:[#allocation8 + $0x1da0] sm:$0xff] }
 0x387   :  { %v1618_v55 = vld [vmem:[#allocation8 + $0x1de0] sm:$0xff] }
 0x388   :  { %7366 = vmatpush1.bf16.msra.mxu1 %v10896_v27  ;;  %v1498_v27 = vld [vmem:[#allocation8 + $0x1a20] sm:$0xff] }
 0x389   :  { %7571 = vmatpush1.bf16.msra.mxu0 %v11154_v29  ;;  %7367 = vmatprep.subr.bf16.mxu1 %v10913_v30  ;;  %v1506_v29 = vld [vmem:[#allocation8 + $0x1a60] sm:$0xff]  ;;  %v10992_v30 = vcombine.low %v1225_v7, %v1233_v10 }
 0x38a   :  { %7572 = vmatprep.subr.bf16.mxu0 %v11171_v32  ;;  %v11250_v32 = vcombine.low %v1482_v11, %v1490_v9  ;;  %v11267_v39 = vcombine.high %v1498_v27, %v1506_v29  ;;  %v1562_v7 = vld [vmem:[#allocation8 + $0x1c20] sm:$0xff] }
 0x38b   :  { %v1570_v10 = vld [vmem:[#allocation8 + $0x1c60] sm:$0xff] }
 0x38c   :  { %7368 = vmatpush1.bf16.msra.mxu1 %v10912_v48  ;;  %v1514_v48 = vld [vmem:[#allocation8 + $0x1aa0] sm:$0xff] }
 0x38d   :  { %7573 = vmatpush1.bf16.msra.mxu0 %v11170_v18  ;;  %7369 = vmatprep.subr.bf16.mxu1 %v10929_v52  ;;  %v1522_v18 = vld [vmem:[#allocation8 + $0x1ae0] sm:$0xff]  ;;  %v11008_v52 = vcombine.low %v1241_v26, %v1249_v56 }
 0x38e   :  { %7574 = vmatprep.subr.bf16.mxu0 %v11187_v53  ;;  %v11266_v53 = vcombine.low %v1498_v27, %v1506_v29  ;;  %v11283_v43 = vcombine.high %v1514_v48, %v1522_v18  ;;  %v1578_v26 = vld [vmem:[#allocation8 + $0x1ca0] sm:$0xff]  ;;  %v11330_v29 = vcombine.low %v1562_v7, %v1570_v10 }
 0x38f   :  { %v1586_v56 = vld [vmem:[#allocation8 + $0x1ce0] sm:$0xff] }
 0x390   :  { %7370 = vmatpush1.bf16.msra.mxu1 %v10928_v49  ;;  %v1530_v49 = vld [vmem:[#allocation8 + $0x1b20] sm:$0xff] }
 0x391   :  { %7575 = vmatpush1.bf16.msra.mxu0 %v11186_v20  ;;  %7380 = vmatprep.subr.bf16.mxu1 %v10945_v58  ;;  %v1538_v20 = vld [vmem:[#allocation8 + $0x1b60] sm:$0xff]  ;;  %v11024_v58 = vcombine.low %v1257_v41, %v1265_v44 }
 0x392   :  { %7585 = vmatprep.subr.bf16.mxu0 %v11203_v54  ;;  %v11282_v54 = vcombine.low %v1514_v48, %v1522_v18  ;;  %v11299_v60 = vcombine.high %v1530_v49, %v1538_v20  ;;  %v11298_v1 = vcombine.low %v1530_v49, %v1538_v20  ;;  %v1594_v41 = vld [vmem:[#allocation8 + $0x1d20] sm:$0xff]  ;;  %v11346_v18 = vcombine.low %v1578_v26, %v1586_v56 }
 0x393   :  { %7372 = vmatmul.mubr.bf16.vlgmr.msra.gmra.mrb[16].mxu1 %v12883_v38  ;;  %v1602_v44 = vld [vmem:[#allocation8 + $0x1d60] sm:$0xff] }
 0x394   :  { %7577 = vmatmul.mubr.bf16.vlgmr.msra.gmra.mrb[12].mxu0 %v12903_v16  ;;  %7381 = vmatpush1.bf16.msra.mxu1 %v10944_v13  ;;  %v1289_v13 = vld [vmem:[#allocation8 + $0x1398] sm:$0xff]  ;;  %v11362_v20 = vcombine.low %v1594_v41, %v1602_v44 }
 0x395   :  { %7412 = vmatprep.mubr.bf16.mxu1 %v12886_v51  ;;  %7586 = vmatpush1.bf16.msra.mxu0 %v11202_v61  ;;  %v1546_v61 = vld [vmem:[#allocation8 + $0x1ba0] sm:$0xff]  ;;  %v11057_v2 = vcombine.high %v1289_v13, %v1297_v14  ;;  %v11056_v11 = vcombine.low %v1289_v13, %v1297_v14 }
 0x396   :  { %7617 = vmatprep.mubr.bf16.mxu0 %v12881_v34  ;;  %7382 = vmatprep.subr.bf16.mxu1 %v10961_v62  ;;  %v1554_v62 = vld [vmem:[#allocation8 + $0x1be0] sm:$0xff] }
 0x397   :  { %7587 = vmatprep.subr.bf16.mxu0 %v11219_v22  ;;  %v11314_v9 = vcombine.low %v1546_v61, %v1554_v62  ;;  %v1626_v13 = vld [vmem:[#allocation8 + $0x1e20] sm:$0xff] }
 0x398   :  { %7383 = vmatpush1.bf16.msra.mxu1 %v10960_v3  ;;  %v1634_v14 = vld [vmem:[#allocation8 + $0x1e60] sm:$0xff] }
 0x399   :  { %7588 = vmatpush1.bf16.msra.mxu0 %v11218_v4  ;;  %7384 = vmatprep.subr.bf16.mxu1 %v10977_v5  ;;  %v11315_v4 = vcombine.high %v1546_v61, %v1554_v62  ;;  %v1305_v5 = vld [vmem:[#allocation8 + $0x1418] sm:$0xff]  ;;  %v11378_v62 = vcombine.low %v1610_v46, %v1618_v55 }
 0x39a   :  { %7589 = vmatprep.subr.bf16.mxu0 %v11235_v6  ;;  %v1313_v6 = vld [vmem:[#allocation8 + $0x1458] sm:$0xff] }
 0x39b   :  { %v11072_v27 = vcombine.low %v1305_v5, %v1313_v6 }
 0x39c   :  { %7385 = vmatpush1.bf16.msra.mxu1 %v10976_v12  ;;  %v11073_v12 = vcombine.high %v1305_v5, %v1313_v6  ;;  %v11394_v6 = vcombine.low %v1626_v13, %v1634_v14 }
 0x39d   :  { %7590 = vmatpush1.bf16.msra.mxu0 %v11234_v17  ;;  %7386 = vmatprep.subr.bf16.mxu1 %v10993_v23  ;;  %v11331_v17 = vcombine.high %v1562_v7, %v1570_v10  ;;  %v1321_v23 = vld [vmem:[#allocation8 + $0x1498] sm:$0xff] }
 0x39e   :  { %7591 = vmatprep.subr.bf16.mxu0 %v11251_v24  ;;  %v1329_v24 = vld [vmem:[#allocation8 + $0x14d8] sm:$0xff] }
 0x39f   :  { %v11088_v48 = vcombine.low %v1321_v23, %v1329_v24 }
 0x3a0   :  { %7387 = vmatpush1.bf16.msra.mxu1 %v10992_v30  ;;  %v11089_v30 = vcombine.high %v1321_v23, %v1329_v24 }
 0x3a1   :  { %7592 = vmatpush1.bf16.msra.mxu0 %v11250_v32  ;;  %7388 = vmatprep.subr.bf16.mxu1 %v11009_v33  ;;  %v11347_v32 = vcombine.high %v1578_v26, %v1586_v56  ;;  %v1337_v33 = vld [vmem:[#allocation8 + $0x1518] sm:$0xff] }
 0x3a2   :  { %7593 = vmatprep.subr.bf16.mxu0 %v11267_v39  ;;  %v1345_v39 = vld [vmem:[#allocation8 + $0x1558] sm:$0xff] }
 0x3a3   :  { %v11104_v49 = vcombine.low %v1337_v33, %v1345_v39 }
 0x3a4   :  { %7389 = vmatpush1.bf16.msra.mxu1 %v11008_v52  ;;  %v11105_v52 = vcombine.high %v1337_v33, %v1345_v39 }
 0x3a5   :  { %7594 = vmatpush1.bf16.msra.mxu0 %v11266_v53  ;;  %7390 = vmatprep.subr.bf16.mxu1 %v11025_v42  ;;  %v11363_v53 = vcombine.high %v1594_v41, %v1602_v44  ;;  %v1353_v42 = vld [vmem:[#allocation8 + $0x1598] sm:$0xff] }
 0x3a6   :  { %7595 = vmatprep.subr.bf16.mxu0 %v11283_v43  ;;  %v1361_v43 = vld [vmem:[#allocation8 + $0x15d8] sm:$0xff] }
 0x3a7   :  { %v12943_v15 = vpop.f32.mrb[8].mxu0  ;;  %v11120_v61 = vcombine.low %v1353_v42, %v1361_v43 }
 0x3a8   :  { %v12945_v63 = vpop.f32.mrb[9].mxu0  ;;  %7391 = vmatpush1.bf16.msra.mxu1 %v11024_v58  ;;  %v11121_v58 = vcombine.high %v1353_v42, %v1361_v43 }
 0x3a9   :  { %v7295_v22 = vpop.f32.mrb[10].mxu0  ;;  %7596 = vmatpush1.bf16.msra.mxu0 %v11282_v54  ;;  %7392 = vmatprep.subr.bf16.mxu1 %v11041_v59  ;;  %v11379_v54 = vcombine.high %v1610_v46, %v1618_v55  ;;  %v1369_v59 = vld [vmem:[#allocation8 + $0x1618] sm:$0xff] }
 0x3aa   :  { %v7296_v3 = vpop.f32.mrb[11].mxu0  ;;  %7597 = vmatprep.subr.bf16.mxu0 %v11299_v60  ;;  %v1377_v60 = vld [vmem:[#allocation8 + $0x1658] sm:$0xff]  ;;  %v11395_v22 = vcombine.high %v1626_v13, %v1634_v14 }
 0x3ab   :  { %v1642_v3 = vld [vmem:[#allocation8 + $0x1ea0] sm:$0xff]  ;;  %v11136_v5 = vcombine.low %v1369_v59, %v1377_v60  ;;  %v1465_v14 = vld [vmem:[#allocation8 + $0x1918] sm:$0xff] }
 0x3ac   :  { %7393 = vmatpush1.bf16.msra.mxu1 %v11040_v8  ;;  %v11137_v8 = vcombine.high %v1369_v59, %v1377_v60  ;;  %v692_v59 = vld [vmem:[#allocation8 + $0xf0] sm:$0xff] }
 0x3ad   :  { %7598 = vmatpush1.bf16.msra.mxu0 %v11298_v1  ;;  %7394 = vmatprep.subr.bf16.mxu1 %v11057_v2  ;;  %v1385_v1 = vld [vmem:[#allocation8 + $0x1698] sm:$0xff] }
 0x3ae   :  { %7599 = vmatprep.subr.bf16.mxu0 %v11315_v4  ;;  %v1393_v2 = vld [vmem:[#allocation8 + $0x16d8] sm:$0xff]  ;;  %v1650_v4 = vld [vmem:[#allocation8 + $0x1ee0] sm:$0xff] }
 0x3af   :  { %v11153_v7 = vcombine.high %v1385_v1, %v1393_v2  ;;  %v11411_v10 = vcombine.high %v1642_v3, %v1650_v4  ;;  %v11152_v23 = vcombine.low %v1385_v1, %v1393_v2  ;;  %v11410_v24 = vcombine.low %v1642_v3, %v1650_v4 }
 0x3b0   :  { %7395 = vmatpush1.bf16.msra.mxu1 %v11056_v11  ;;  %v1401_v11 = vld [vmem:[#allocation8 + $0x1718] sm:$0xff] }
 0x3b1   :  { %7600 = vmatpush1.bf16.msra.mxu0 %v11314_v9  ;;  %7396 = vmatprep.subr.bf16.mxu1 %v11073_v12  ;;  %v1409_v9 = vld [vmem:[#allocation8 + $0x1758] sm:$0xff]  ;;  %v1658_v12 = vld [vmem:[#allocation8 + $0x1f20] sm:$0xff] }
 0x3b2   :  { %7601 = vmatprep.subr.bf16.mxu0 %v11331_v17  ;;  %v1666_v17 = vld [vmem:[#allocation8 + $0x1f60] sm:$0xff]  ;;  %v11169_v26 = vcombine.high %v1401_v11, %v1409_v9  ;;  %v11168_v33 = vcombine.low %v1401_v11, %v1409_v9 }
 0x3b3   :  { %v11427_v56 = vcombine.high %v1658_v12, %v1666_v17  ;;  %v11426_v39 = vcombine.low %v1658_v12, %v1666_v17 }
 0x3b4   :  { %7397 = vmatpush1.bf16.msra.mxu1 %v11072_v27  ;;  %v1417_v27 = vld [vmem:[#allocation8 + $0x1798] sm:$0xff] }
 0x3b5   :  { %7602 = vmatpush1.bf16.msra.mxu0 %v11330_v29  ;;  %7398 = vmatprep.subr.bf16.mxu1 %v11089_v30  ;;  %v1425_v29 = vld [vmem:[#allocation8 + $0x17d8] sm:$0xff]  ;;  %v1674_v30 = vld [vmem:[#allocation8 + $0x1fa0] sm:$0xff] }
 0x3b6   :  { %7603 = vmatprep.subr.bf16.mxu0 %v11347_v32  ;;  %v1682_v32 = vld [vmem:[#allocation8 + $0x1fe0] sm:$0xff]  ;;  %v11185_v41 = vcombine.high %v1417_v27, %v1425_v29  ;;  %v11184_v42 = vcombine.low %v1417_v27, %v1425_v29 }
 0x3b7   :  { %v11443_v44 = vcombine.high %v1674_v30, %v1682_v32  ;;  %v11442_v43 = vcombine.low %v1674_v30, %v1682_v32 }
 0x3b8   :  { %7399 = vmatpush1.bf16.msra.mxu1 %v11088_v48  ;;  %v1433_v48 = vld [vmem:[#allocation8 + $0x1818] sm:$0xff] }
 0x3b9   :  { %7604 = vmatpush1.bf16.msra.mxu0 %v11346_v18  ;;  %7400 = vmatprep.subr.bf16.mxu1 %v11105_v52  ;;  %v1441_v18 = vld [vmem:[#allocation8 + $0x1858] sm:$0xff]  ;;  %v668_v52 = vld [vmem:[#allocation8 + $0x30] sm:$0xff] }
 0x3ba   :  { %7605 = vmatprep.subr.bf16.mxu0 %v11363_v53  ;;  %v676_v53 = vld [vmem:[#allocation8 + $0x70] sm:$0xff]  ;;  %v11201_v46 = vcombine.high %v1433_v48, %v1441_v18 }
 0x3bb   :  { %v10439_v55 = vcombine.high %v668_v52, %v676_v53  ;;  %v10438_v60 = vcombine.low %v668_v52, %v676_v53 }
 0x3bc   :  { %7401 = vmatpush1.bf16.msra.mxu1 %v11104_v49  ;;  %v1449_v49 = vld [vmem:[#allocation8 + $0x1898] sm:$0xff] }
 0x3bd   :  { %7606 = vmatpush1.bf16.msra.mxu0 %v11362_v20  ;;  %7402 = vmatprep.subr.bf16.mxu1 %v11121_v58  ;;  %v1457_v20 = vld [vmem:[#allocation8 + $0x18d8] sm:$0xff]  ;;  %v11200_v58 = vcombine.low %v1433_v48, %v1441_v18 }
 0x3be   :  { %7607 = vmatprep.subr.bf16.mxu0 %v11379_v54  ;;  %v684_v54 = vld [vmem:[#allocation8 + $0xb0] sm:$0xff]  ;;  %v11217_v13 = vcombine.high %v1449_v49, %v1457_v20  ;;  %v11216_v1 = vcombine.low %v1449_v49, %v1457_v20 }
 0x3bf   :  { %v10454_v2 = vcombine.low %v684_v54, %v692_v59 }
 0x3c0   :  { %7403 = vmatpush1.bf16.msra.mxu1 %v11120_v61  ;;  %v1473_v61 = vld [vmem:[#allocation8 + $0x1958] sm:$0xff] }
 0x3c1   :  { %7608 = vmatpush1.bf16.msra.mxu0 %v11378_v62  ;;  %7404 = vmatprep.subr.bf16.mxu1 %v11137_v8  ;;  %v10455_v62 = vcombine.high %v684_v54, %v692_v59  ;;  %v700_v8 = vld [vmem:[#allocation8 + $0x130] sm:$0xff]  ;;  %v11233_v3 = vcombine.high %v1465_v14, %v1473_v61  ;;  %v11232_v11 = vcombine.low %v1465_v14, %v1473_v61 }
 0x3c2   :  { %7609 = vmatprep.subr.bf16.mxu0 %v11395_v22  ;;  %v708_v22 = vld [vmem:[#allocation8 + $0x170] sm:$0xff] }
 0x3c3   :  { %v10471_v4 = vcombine.high %v700_v8, %v708_v22  ;;  %v10470_v9 = vcombine.low %v700_v8, %v708_v22  ;;  %v780_v61 = vld [vmem:[#allocation8 + $0x3b0] sm:$0xff] }
 0x3c4   :  { %7405 = vmatpush1.bf16.msra.mxu1 %v11136_v5  ;;  %v1481_v5 = vld [vmem:[#allocation8 + $0x1998] sm:$0xff] }
 0x3c5   :  { %7610 = vmatpush1.bf16.msra.mxu0 %v11394_v6  ;;  %7406 = vmatprep.subr.bf16.mxu1 %v11153_v7  ;;  %v1489_v6 = vld [vmem:[#allocation8 + $0x19d8] sm:$0xff]  ;;  %v716_v7 = vld [vmem:[#allocation8 + $0x1b0] sm:$0xff] }
 0x3c6   :  { %7611 = vmatprep.subr.bf16.mxu0 %v11411_v10  ;;  %v724_v10 = vld [vmem:[#allocation8 + $0x1f0] sm:$0xff]  ;;  %v11249_v12 = vcombine.high %v1481_v5, %v1489_v6  ;;  %v11248_v27 = vcombine.low %v1481_v5, %v1489_v6  ;;  %v1561_v5 = vld [vmem:[#allocation8 + $0x1c18] sm:$0xff] }
 0x3c7   :  { %v10487_v17 = vcombine.high %v716_v7, %v724_v10  ;;  %v10486_v29 = vcombine.low %v716_v7, %v724_v10  ;;  %v1569_v6 = vld [vmem:[#allocation8 + $0x1c58] sm:$0xff]  ;;  %v796_v7 = vld [vmem:[#allocation8 + $0x430] sm:$0xff] }
 0x3c8   :  { %7407 = vmatpush1.bf16.msra.mxu1 %v11152_v23  ;;  %v1497_v23 = vld [vmem:[#allocation8 + $0x1a18] sm:$0xff]  ;;  %v804_v10 = vld [vmem:[#allocation8 + $0x470] sm:$0xff] }
 0x3c9   :  { %7612 = vmatpush1.bf16.msra.mxu0 %v11410_v24  ;;  %7408 = vmatprep.subr.bf16.mxu1 %v11169_v26  ;;  %v1505_v24 = vld [vmem:[#allocation8 + $0x1a58] sm:$0xff]  ;;  %v732_v26 = vld [vmem:[#allocation8 + $0x230] sm:$0xff] }
 0x3ca   :  { %7613 = vmatprep.subr.bf16.mxu0 %v11427_v56  ;;  %v740_v56 = vld [vmem:[#allocation8 + $0x270] sm:$0xff]  ;;  %v11265_v30 = vcombine.high %v1497_v23, %v1505_v24  ;;  %v11264_v48 = vcombine.low %v1497_v23, %v1505_v24  ;;  %v1577_v23 = vld [vmem:[#allocation8 + $0x1c98] sm:$0xff] }
 0x3cb   :  { %v10503_v32 = vcombine.high %v732_v26, %v740_v56  ;;  %v10502_v18 = vcombine.low %v732_v26, %v740_v56  ;;  %v1585_v24 = vld [vmem:[#allocation8 + $0x1cd8] sm:$0xff]  ;;  %v812_v26 = vld [vmem:[#allocation8 + $0x4b0] sm:$0xff] }
 0x3cc   :  { %7409 = vmatpush1.bf16.msra.mxu1 %v11168_v33  ;;  %v1513_v33 = vld [vmem:[#allocation8 + $0x1a98] sm:$0xff]  ;;  %v820_v56 = vld [vmem:[#allocation8 + $0x4f0] sm:$0xff] }
 0x3cd   :  { %7614 = vmatpush1.bf16.msra.mxu0 %v11426_v39  ;;  %7410 = vmatprep.subr.bf16.mxu1 %v11185_v41  ;;  %v1521_v39 = vld [vmem:[#allocation8 + $0x1ad8] sm:$0xff]  ;;  %v748_v41 = vld [vmem:[#allocation8 + $0x2b0] sm:$0xff] }
 0x3ce   :  { %7615 = vmatprep.subr.bf16.mxu0 %v11443_v44  ;;  %v756_v44 = vld [vmem:[#allocation8 + $0x2f0] sm:$0xff]  ;;  %v11281_v52 = vcombine.high %v1513_v33, %v1521_v39  ;;  %v11280_v49 = vcombine.low %v1513_v33, %v1521_v39  ;;  %v1593_v33 = vld [vmem:[#allocation8 + $0x1d18] sm:$0xff] }
 0x3cf   :  { %v10519_v53 = vcombine.high %v748_v41, %v756_v44  ;;  %v10518_v20 = vcombine.low %v748_v41, %v756_v44  ;;  %v1601_v39 = vld [vmem:[#allocation8 + $0x1d58] sm:$0xff]  ;;  %v828_v41 = vld [vmem:[#allocation8 + $0x530] sm:$0xff] }
 0x3d0   :  { %7411 = vmatpush1.bf16.msra.mxu1 %v11184_v42  ;;  %v1529_v42 = vld [vmem:[#allocation8 + $0x1b18] sm:$0xff]  ;;  %v836_v44 = vld [vmem:[#allocation8 + $0x570] sm:$0xff] }
 0x3d1   :  { %7616 = vmatpush1.bf16.msra.mxu0 %v11442_v43  ;;  %7421 = vmatprep.subr.bf16.mxu1 %v11201_v46  ;;  %v1537_v43 = vld [vmem:[#allocation8 + $0x1b58] sm:$0xff]  ;;  %v764_v46 = vld [vmem:[#allocation8 + $0x330] sm:$0xff] }
 0x3d2   :  { %7790 = vmatprep.subr.bf16.mxu0 %v10439_v55  ;;  %v772_v55 = vld [vmem:[#allocation8 + $0x370] sm:$0xff]  ;;  %v11296_v22 = vcombine.low %v1529_v42, %v1537_v43 }
 0x3d3   :  { %7413 = vmatmul.mubr.bf16.vlgmr.msra.gmra.mrb[16].mxu1 %v12903_v16  ;;  %v10535_v59 = vcombine.high %v764_v46, %v772_v55 }
 0x3d4   :  { %7618 = vmatmul.mubr.bf16.vlgmr.msra.gmra.mrb[12].mxu0 %v12879_v31  ;;  %7422 = vmatpush1.bf16.msra.mxu1 %v11200_v58  ;;  %v11297_v58 = vcombine.high %v1529_v42, %v1537_v43  ;;  %v1609_v42 = vld [vmem:[#allocation8 + $0x1d98] sm:$0xff] }
 0x3d5   :  { %7453 = vmatprep.mubr.bf16.mxu1 %v12881_v34  ;;  %7791 = vmatpush1.bf16.msra.mxu0 %v10438_v60  ;;  %v1545_v60 = vld [vmem:[#allocation8 + $0x1b98] sm:$0xff] }
 0x3d6   :  { %7822 = vmatprep.mubr.bf16.mxu0 %v12830_v36  ;;  %7423 = vmatprep.subr.bf16.mxu1 %v11217_v13  ;;  %v1553_v13 = vld [vmem:[#allocation8 + $0x1bd8] sm:$0xff] }
 0x3d7   :  { %7792 = vmatprep.subr.bf16.mxu0 %v10455_v62  ;;  %v788_v62 = vld [vmem:[#allocation8 + $0x3f0] sm:$0xff]  ;;  %v1617_v43 = vld [vmem:[#allocation8 + $0x1dd8] sm:$0xff] }
 0x3d8   :  { %7424 = vmatpush1.bf16.msra.mxu1 %v11216_v1 }
 0x3d9   :  { %7793 = vmatpush1.bf16.msra.mxu0 %v10454_v2  ;;  %7425 = vmatprep.subr.bf16.mxu1 %v11233_v3  ;;  %v10534_v2 = vcombine.low %v764_v46, %v772_v55  ;;  %v11313_v3 = vcombine.high %v1545_v60, %v1553_v13  ;;  %v844_v46 = vld [vmem:[#allocation8 + $0x5b0] sm:$0xff] }
 0x3da   :  { %7794 = vmatprep.subr.bf16.mxu0 %v10471_v4  ;;  %v10551_v4 = vcombine.high %v780_v61, %v788_v62  ;;  %v852_v55 = vld [vmem:[#allocation8 + $0x5f0] sm:$0xff] }
 0x3dc   :  { %7426 = vmatpush1.bf16.msra.mxu1 %v11232_v11  ;;  %v11312_v11 = vcombine.low %v1545_v60, %v1553_v13  ;;  %v1625_v60 = vld [vmem:[#allocation8 + $0x1e18] sm:$0xff] }
 0x3dd   :  { %7795 = vmatpush1.bf16.msra.mxu0 %v10470_v9  ;;  %7427 = vmatprep.subr.bf16.mxu1 %v11249_v12  ;;  %v10550_v9 = vcombine.low %v780_v61, %v788_v62  ;;  %v11329_v12 = vcombine.high %v1561_v5, %v1569_v6  ;;  %v1633_v13 = vld [vmem:[#allocation8 + $0x1e58] sm:$0xff]  ;;  %v860_v61 = vld [vmem:[#allocation8 + $0x630] sm:$0xff] }
 0x3de   :  { %7796 = vmatprep.subr.bf16.mxu0 %v10487_v17  ;;  %v10567_v17 = vcombine.high %v796_v7, %v804_v10  ;;  %v868_v62 = vld [vmem:[#allocation8 + $0x670] sm:$0xff] }
 0x3e0   :  { %7428 = vmatpush1.bf16.msra.mxu1 %v11248_v27  ;;  %v11328_v27 = vcombine.low %v1561_v5, %v1569_v6  ;;  %v876_v5 = vld [vmem:[#allocation8 + $0x6b0] sm:$0xff] }
 0x3e1   :  { %7797 = vmatpush1.bf16.msra.mxu0 %v10486_v29  ;;  %7429 = vmatprep.subr.bf16.mxu1 %v11265_v30  ;;  %v10566_v29 = vcombine.low %v796_v7, %v804_v10  ;;  %v11345_v30 = vcombine.high %v1577_v23, %v1585_v24  ;;  %v884_v6 = vld [vmem:[#allocation8 + $0x6f0] sm:$0xff]  ;;  %v11392_v7 = vcombine.low %v1625_v60, %v1633_v13 }
 0x3e2   :  { %7798 = vmatprep.subr.bf16.mxu0 %v10503_v32  ;;  %v10583_v32 = vcombine.high %v812_v26, %v820_v56  ;;  %v10630_v10 = vcombine.low %v860_v61, %v868_v62 }
 0x3e4   :  { %7430 = vmatpush1.bf16.msra.mxu1 %v11264_v48  ;;  %v11344_v48 = vcombine.low %v1577_v23, %v1585_v24  ;;  %v892_v23 = vld [vmem:[#allocation8 + $0x730] sm:$0xff] }
 0x3e5   :  { %7799 = vmatpush1.bf16.msra.mxu0 %v10502_v18  ;;  %7431 = vmatprep.subr.bf16.mxu1 %v11281_v52  ;;  %v10582_v18 = vcombine.low %v812_v26, %v820_v56  ;;  %v11361_v52 = vcombine.high %v1593_v33, %v1601_v39  ;;  %v900_v24 = vld [vmem:[#allocation8 + $0x770] sm:$0xff]  ;;  %v10646_v56 = vcombine.low %v876_v5, %v884_v6 }
 0x3e6   :  { %v12951_v54 = vpop.f32.mrb[12].mxu1  ;;  %7800 = vmatprep.subr.bf16.mxu0 %v10519_v53  ;;  %v10599_v53 = vcombine.high %v828_v41, %v836_v44 }
 0x3e7   :  { %v12953_v14 = vpop.f32.mrb[13].mxu1 }
 0x3e8   :  { %v7131_v8 = vpop.f32.mrb[14].mxu1  ;;  %7432 = vmatpush1.bf16.msra.mxu1 %v11280_v49  ;;  %v11360_v49 = vcombine.low %v1593_v33, %v1601_v39  ;;  %v908_v33 = vld [vmem:[#allocation8 + $0x7b0] sm:$0xff] }
 0x3e9   :  { %7801 = vmatpush1.bf16.msra.mxu0 %v10518_v20  ;;  %v7132_v1 = vpop.f32.mrb[15].mxu1  ;;  %7433 = vmatprep.subr.bf16.mxu1 %v11297_v58  ;;  %v10598_v20 = vcombine.low %v828_v41, %v836_v44  ;;  %v11377_v58 = vcombine.high %v1609_v42, %v1617_v43  ;;  %v11376_v8 = vcombine.low %v1609_v42, %v1617_v43  ;;  %v916_v39 = vld [vmem:[#allocation8 + $0x7f0] sm:$0xff] }
 0x3ea   :  { %7802 = vmatprep.subr.bf16.mxu0 %v10535_v59  ;;  %v10615_v59 = vcombine.high %v844_v46, %v852_v55  ;;  %v11393_v1 = vcombine.high %v1625_v60, %v1633_v13  ;;  %v10662_v44 = vcombine.low %v892_v23, %v900_v24  ;;  %v924_v42 = vld [vmem:[#allocation8 + $0x830] sm:$0xff] }
 0x3eb   :  { %v932_v43 = vld [vmem:[#allocation8 + $0x870] sm:$0xff] }
 0x3ec   :  { %7434 = vmatpush1.bf16.msra.mxu1 %v11296_v22  ;;  %v10614_v22 = vcombine.low %v844_v46, %v852_v55  ;;  %v10678_v55 = vcombine.low %v908_v33, %v916_v39  ;;  %v940_v13 = vld [vmem:[#allocation8 + $0x8b0] sm:$0xff] }
 0x3ed   :  { %7803 = vmatpush1.bf16.msra.mxu0 %v10534_v2  ;;  %7435 = vmatprep.subr.bf16.mxu1 %v11313_v3  ;;  %v10631_v2 = vcombine.high %v860_v61, %v868_v62  ;;  %v1641_v3 = vld [vmem:[#allocation8 + $0x1e98] sm:$0xff]  ;;  %v948_v61 = vld [vmem:[#allocation8 + $0x8f0] sm:$0xff]  ;;  %v10694_v62 = vcombine.low %v924_v42, %v932_v43 }
 0x3ee   :  { %7804 = vmatprep.subr.bf16.mxu0 %v10551_v4  ;;  %v1649_v4 = vld [vmem:[#allocation8 + $0x1ed8] sm:$0xff] }
 0x3ef   :  { %v11408_v26 = vcombine.low %v1641_v3, %v1649_v4 }
 0x3f0   :  { %7436 = vmatpush1.bf16.msra.mxu1 %v11312_v11  ;;  %v11409_v11 = vcombine.high %v1641_v3, %v1649_v4  ;;  %v956_v3 = vld [vmem:[#allocation8 + $0x930] sm:$0xff] }
 0x3f1   :  { %7805 = vmatpush1.bf16.msra.mxu0 %v10550_v9  ;;  %7437 = vmatprep.subr.bf16.mxu1 %v11329_v12  ;;  %v10647_v9 = vcombine.high %v876_v5, %v884_v6  ;;  %v1657_v12 = vld [vmem:[#allocation8 + $0x1f18] sm:$0xff]  ;;  %v964_v4 = vld [vmem:[#allocation8 + $0x970] sm:$0xff]  ;;  %v10710_v6 = vcombine.low %v940_v13, %v948_v61 }
 0x3f2   :  { %7806 = vmatprep.subr.bf16.mxu0 %v10567_v17  ;;  %v1665_v17 = vld [vmem:[#allocation8 + $0x1f58] sm:$0xff] }
 0x3f3   :  { %v11424_v41 = vcombine.low %v1657_v12, %v1665_v17 }
 0x3f4   :  { %7438 = vmatpush1.bf16.msra.mxu1 %v11328_v27  ;;  %v11425_v27 = vcombine.high %v1657_v12, %v1665_v17  ;;  %v972_v12 = vld [vmem:[#allocation8 + $0x9b0] sm:$0xff] }
 0x3f5   :  { %7807 = vmatpush1.bf16.msra.mxu0 %v10566_v29  ;;  %7439 = vmatprep.subr.bf16.mxu1 %v11345_v30  ;;  %v10663_v29 = vcombine.high %v892_v23, %v900_v24  ;;  %v1673_v30 = vld [vmem:[#allocation8 + $0x1f98] sm:$0xff]  ;;  %v980_v17 = vld [vmem:[#allocation8 + $0x9f0] sm:$0xff]  ;;  %v10726_v24 = vcombine.low %v956_v3, %v964_v4 }
 0x3f6   :  { %7808 = vmatprep.subr.bf16.mxu0 %v10583_v32  ;;  %v1681_v32 = vld [vmem:[#allocation8 + $0x1fd8] sm:$0xff] }
 0x3f7   :  { %v11440_v46 = vcombine.low %v1673_v30, %v1681_v32 }
 0x3f8   :  { %7440 = vmatpush1.bf16.msra.mxu1 %v11344_v48  ;;  %v11441_v48 = vcombine.high %v1673_v30, %v1681_v32  ;;  %v988_v30 = vld [vmem:[#allocation8 + $0xa30] sm:$0xff] }
 0x3f9   :  { %7809 = vmatpush1.bf16.msra.mxu0 %v10582_v18  ;;  %7441 = vmatprep.subr.bf16.mxu1 %v11361_v52  ;;  %v10679_v18 = vcombine.high %v908_v33, %v916_v39  ;;  %v667_v52 = vld [vmem:[#allocation8 + $0x28] sm:$0xff]  ;;  %v996_v32 = vld [vmem:[#allocation8 + $0xa70] sm:$0xff]  ;;  %v10742_v39 = vcombine.low %v972_v12, %v980_v17 }
 0x3fa   :  { %7810 = vmatprep.subr.bf16.mxu0 %v10599_v53  ;;  %v675_v53 = vld [vmem:[#allocation8 + $0x68] sm:$0xff] }
 0x3fb   :  { %v10436_v60 = vcombine.low %v667_v52, %v675_v53 }
 0x3fc   :  { %7442 = vmatpush1.bf16.msra.mxu1 %v11360_v49  ;;  %v10437_v49 = vcombine.high %v667_v52, %v675_v53  ;;  %v1004_v52 = vld [vmem:[#allocation8 + $0xab0] sm:$0xff] }
 0x3fd   :  { %7811 = vmatpush1.bf16.msra.mxu0 %v10598_v20  ;;  %7443 = vmatprep.subr.bf16.mxu1 %v11377_v58  ;;  %v10695_v20 = vcombine.high %v924_v42, %v932_v43  ;;  %v683_v58 = vld [vmem:[#allocation8 + $0xa8] sm:$0xff]  ;;  %v1012_v53 = vld [vmem:[#allocation8 + $0xaf0] sm:$0xff]  ;;  %v10758_v43 = vcombine.low %v988_v30, %v996_v32 }
 0x3fe   :  { %7812 = vmatprep.subr.bf16.mxu0 %v10615_v59  ;;  %v691_v59 = vld [vmem:[#allocation8 + $0xe8] sm:$0xff] }
 0x3ff   :  { %v10452_v5 = vcombine.low %v683_v58, %v691_v59 }
 0x400   :  { %7444 = vmatpush1.bf16.msra.mxu1 %v11376_v8  ;;  %v10453_v8 = vcombine.high %v683_v58, %v691_v59  ;;  %v1020_v58 = vld [vmem:[#allocation8 + $0xb30] sm:$0xff] }
 0x401   :  { %7813 = vmatpush1.bf16.msra.mxu0 %v10614_v22  ;;  %7445 = vmatprep.subr.bf16.mxu1 %v11393_v1  ;;  %v699_v22 = vld [vmem:[#allocation8 + $0x128] sm:$0xff]  ;;  %v1028_v59 = vld [vmem:[#allocation8 + $0xb70] sm:$0xff] }
 0x402   :  { %7814 = vmatprep.subr.bf16.mxu0 %v10631_v2  ;;  %v707_v1 = vld [vmem:[#allocation8 + $0x168] sm:$0xff]  ;;  %v10711_v2 = vcombine.high %v940_v13, %v948_v61  ;;  %v10774_v13 = vcombine.low %v1004_v52, %v1012_v53 }
 0x403   :  { %v10468_v23 = vcombine.low %v699_v22, %v707_v1 }
 0x404   :  { %7446 = vmatpush1.bf16.msra.mxu1 %v11392_v7  ;;  %v10469_v7 = vcombine.high %v699_v22, %v707_v1  ;;  %v787_v22 = vld [vmem:[#allocation8 + $0x3e8] sm:$0xff]  ;;  %v1036_v1 = vld [vmem:[#allocation8 + $0xbb0] sm:$0xff] }
 0x405   :  { %7815 = vmatpush1.bf16.msra.mxu0 %v10630_v10  ;;  %7447 = vmatprep.subr.bf16.mxu1 %v11409_v11  ;;  %v10727_v10 = vcombine.high %v956_v3, %v964_v4  ;;  %v715_v11 = vld [vmem:[#allocation8 + $0x1a8] sm:$0xff]  ;;  %v10790_v4 = vcombine.low %v1020_v58, %v1028_v59 }
 0x406   :  { %7816 = vmatprep.subr.bf16.mxu0 %v10647_v9  ;;  %v723_v9 = vld [vmem:[#allocation8 + $0x1e8] sm:$0xff] }
 0x407   :  { %v10484_v33 = vcombine.low %v715_v11, %v723_v9 }
 0x408   :  { %7448 = vmatpush1.bf16.msra.mxu1 %v11408_v26  ;;  %v10485_v26 = vcombine.high %v715_v11, %v723_v9  ;;  %v1052_v11 = vld [vmem:[#allocation8 + $0xc30] sm:$0xff] }
 0x409   :  { %7817 = vmatpush1.bf16.msra.mxu0 %v10646_v56  ;;  %7449 = vmatprep.subr.bf16.mxu1 %v11425_v27  ;;  %v10743_v56 = vcombine.high %v972_v12, %v980_v17  ;;  %v731_v27 = vld [vmem:[#allocation8 + $0x228] sm:$0xff]  ;;  %v1060_v9 = vld [vmem:[#allocation8 + $0xc70] sm:$0xff] }
 0x40a   :  { %7818 = vmatprep.subr.bf16.mxu0 %v10663_v29  ;;  %v739_v29 = vld [vmem:[#allocation8 + $0x268] sm:$0xff] }
 0x40b   :  { %v10500_v42 = vcombine.low %v731_v27, %v739_v29 }
 0x40c   :  { %7450 = vmatpush1.bf16.msra.mxu1 %v11424_v41  ;;  %v10501_v41 = vcombine.high %v731_v27, %v739_v29  ;;  %v1068_v27 = vld [vmem:[#allocation8 + $0xcb0] sm:$0xff] }
 0x40d   :  { %7819 = vmatpush1.bf16.msra.mxu0 %v10662_v44  ;;  %7451 = vmatprep.subr.bf16.mxu1 %v11441_v48  ;;  %v10759_v44 = vcombine.high %v988_v30, %v996_v32  ;;  %v747_v48 = vld [vmem:[#allocation8 + $0x2a8] sm:$0xff]  ;;  %v1076_v29 = vld [vmem:[#allocation8 + $0xcf0] sm:$0xff]  ;;  %v10822_v32 = vcombine.low %v1052_v11, %v1060_v9 }
 0x40e   :  { %7820 = vmatprep.subr.bf16.mxu0 %v10679_v18  ;;  %v755_v18 = vld [vmem:[#allocation8 + $0x2e8] sm:$0xff] }
 0x410   :  { %7452 = vmatpush1.bf16.msra.mxu1 %v11440_v46  ;;  %v10517_v46 = vcombine.high %v747_v48, %v755_v18 }
 0x411   :  { %7821 = vmatpush1.bf16.msra.mxu0 %v10678_v55  ;;  %7626 = vmatprep.subr.bf16.mxu1 %v10437_v49  ;;  %v10775_v55 = vcombine.high %v1004_v52, %v1012_v53  ;;  %v763_v49 = vld [vmem:[#allocation8 + $0x328] sm:$0xff]  ;;  %v10838_v53 = vcombine.low %v1068_v27, %v1076_v29 }
 0x412   :  { %7831 = vmatprep.subr.bf16.mxu0 %v10695_v20  ;;  %v771_v20 = vld [vmem:[#allocation8 + $0x368] sm:$0xff] }
 0x413   :  { %7454 = vmatmul.mubr.bf16.vlgmr.msra.gmra.mrb[16].mxu1 %v12879_v31  ;;  %v10533_v61 = vcombine.high %v763_v49, %v771_v20  ;;  %v10532_v3 = vcombine.low %v763_v49, %v771_v20  ;;  %v1100_v49 = vld [vmem:[#allocation8 + $0xdb0] sm:$0xff] }
 0x414   :  { %7823 = vmatmul.mubr.bf16.vlgmr.msra.gmra.mrb[16].mxu0 %v12832_v37  ;;  %7627 = vmatpush1.bf16.msra.mxu1 %v10436_v60  ;;  %v10516_v60 = vcombine.low %v747_v48, %v755_v18  ;;  %v1084_v48 = vld [vmem:[#allocation8 + $0xd30] sm:$0xff] }
 0x415   :  { %7658 = vmatprep.mubr.bf16.mxu1 %v12830_v36  ;;  %7832 = vmatpush1.bf16.msra.mxu0 %v10694_v62  ;;  %v10791_v62 = vcombine.high %v1020_v58, %v1028_v59  ;;  %v1092_v18 = vld [vmem:[#allocation8 + $0xd70] sm:$0xff] }
 0x416   :  { %7863 = vmatprep.mubr.bf16.mxu0 %v12848_v25  ;;  %7628 = vmatprep.subr.bf16.mxu1 %v10453_v8  ;;  %v779_v8 = vld [vmem:[#allocation8 + $0x3a8] sm:$0xff]  ;;  %v1108_v20 = vld [vmem:[#allocation8 + $0xdf0] sm:$0xff]  ;;  %v10854_v59 = vcombine.low %v1084_v48, %v1092_v18 }
 0x417   :  { %7833 = vmatprep.subr.bf16.mxu0 %v10711_v2  ;;  %v1044_v2 = vld [vmem:[#allocation8 + $0xbf0] sm:$0xff]  ;;  %v10548_v12 = vcombine.low %v779_v8, %v787_v22 }
 0x418   :  { %7629 = vmatpush1.bf16.msra.mxu1 %v10452_v5  ;;  %v10549_v5 = vcombine.high %v779_v8, %v787_v22  ;;  %v10806_v17 = vcombine.low %v1036_v1, %v1044_v2  ;;  %v1116_v8 = vld [vmem:[#allocation8 + $0xe30] sm:$0xff] }
 0x419   :  { %7834 = vmatpush1.bf16.msra.mxu0 %v10710_v6  ;;  %7630 = vmatprep.subr.bf16.mxu1 %v10469_v7  ;;  %v10807_v6 = vcombine.high %v1036_v1, %v1044_v2  ;;  %v795_v7 = vld [vmem:[#allocation8 + $0x428] sm:$0xff]  ;;  %v1124_v22 = vld [vmem:[#allocation8 + $0xe70] sm:$0xff]  ;;  %v10870_v2 = vcombine.low %v1100_v49, %v1108_v20 }
 0x41a   :  { %7835 = vmatprep.subr.bf16.mxu0 %v10727_v10  ;;  %v803_v10 = vld [vmem:[#allocation8 + $0x468] sm:$0xff] }
 0x41b   :  { %v10564_v30 = vcombine.low %v795_v7, %v803_v10 }
 0x41c   :  { %7631 = vmatpush1.bf16.msra.mxu1 %v10468_v23  ;;  %v10565_v23 = vcombine.high %v795_v7, %v803_v10  ;;  %v1132_v7 = vld [vmem:[#allocation8 + $0xeb0] sm:$0xff] }
 0x41d   :  { %7836 = vmatpush1.bf16.msra.mxu0 %v10726_v24  ;;  %7632 = vmatprep.subr.bf16.mxu1 %v10485_v26  ;;  %v10823_v24 = vcombine.high %v1052_v11, %v1060_v9  ;;  %v811_v26 = vld [vmem:[#allocation8 + $0x4a8] sm:$0xff]  ;;  %v1140_v10 = vld [vmem:[#allocation8 + $0xef0] sm:$0xff]  ;;  %v10886_v9 = vcombine.low %v1116_v8, %v1124_v22 }
 0x41e   :  { %7837 = vmatprep.subr.bf16.mxu0 %v10743_v56  ;;  %v819_v56 = vld [vmem:[#allocation8 + $0x4e8] sm:$0xff] }
 0x41f   :  { %v10580_v52 = vcombine.low %v811_v26, %v819_v56 }
 0x420   :  { %7633 = vmatpush1.bf16.msra.mxu1 %v10484_v33  ;;  %v10581_v33 = vcombine.high %v811_v26, %v819_v56  ;;  %v1148_v26 = vld [vmem:[#allocation8 + $0xf30] sm:$0xff] }
 0x421   :  { %7838 = vmatpush1.bf16.msra.mxu0 %v10742_v39  ;;  %7634 = vmatprep.subr.bf16.mxu1 %v10501_v41  ;;  %v10839_v39 = vcombine.high %v1068_v27, %v1076_v29  ;;  %v827_v41 = vld [vmem:[#allocation8 + $0x528] sm:$0xff]  ;;  %v1156_v56 = vld [vmem:[#allocation8 + $0xf70] sm:$0xff]  ;;  %v10902_v29 = vcombine.low %v1132_v7, %v1140_v10 }
 0x422   :  { %7839 = vmatprep.subr.bf16.mxu0 %v10759_v44  ;;  %v835_v44 = vld [vmem:[#allocation8 + $0x568] sm:$0xff] }
 0x423   :  { %v10596_v58 = vcombine.low %v827_v41, %v835_v44 }
 0x424   :  { %7635 = vmatpush1.bf16.msra.mxu1 %v10500_v42  ;;  %v10597_v42 = vcombine.high %v827_v41, %v835_v44  ;;  %v1164_v41 = vld [vmem:[#allocation8 + $0xfb0] sm:$0xff] }
 0x425   :  { %7840 = vmatpush1.bf16.msra.mxu0 %v10758_v43  ;;  %7636 = vmatprep.subr.bf16.mxu1 %v10517_v46  ;;  %v10855_v43 = vcombine.high %v1084_v48, %v1092_v18  ;;  %v843_v46 = vld [vmem:[#allocation8 + $0x5a8] sm:$0xff]  ;;  %v1172_v44 = vld [vmem:[#allocation8 + $0xff0] sm:$0xff]  ;;  %v10918_v18 = vcombine.low %v1148_v26, %v1156_v56 }
 0x426   :  { %7841 = vmatprep.subr.bf16.mxu0 %v10775_v55  ;;  %v851_v55 = vld [vmem:[#allocation8 + $0x5e8] sm:$0xff] }
 0x427   :  { %v10612_v1 = vcombine.low %v843_v46, %v851_v55 }
 0x428   :  { %7637 = vmatpush1.bf16.msra.mxu1 %v10516_v60  ;;  %v10613_v60 = vcombine.high %v843_v46, %v851_v55  ;;  %v1180_v46 = vld [vmem:[#allocation8 + $0x1030] sm:$0xff] }
 0x429   :  { %7842 = vmatpush1.bf16.msra.mxu0 %v10774_v13  ;;  %7638 = vmatprep.subr.bf16.mxu1 %v10533_v61  ;;  %v10871_v13 = vcombine.high %v1100_v49, %v1108_v20  ;;  %v859_v61 = vld [vmem:[#allocation8 + $0x628] sm:$0xff]  ;;  %v1188_v55 = vld [vmem:[#allocation8 + $0x1070] sm:$0xff]  ;;  %v10934_v20 = vcombine.low %v1164_v41, %v1172_v44 }
 0x42a   :  { %7843 = vmatprep.subr.bf16.mxu0 %v10791_v62  ;;  %v867_v62 = vld [vmem:[#allocation8 + $0x668] sm:$0xff] }
 0x42b   :  { %v10628_v11 = vcombine.low %v859_v61, %v867_v62 }
 0x42c   :  { %7639 = vmatpush1.bf16.msra.mxu1 %v10532_v3  ;;  %v10629_v3 = vcombine.high %v859_v61, %v867_v62  ;;  %v1196_v62 = vld [vmem:[#allocation8 + $0x10b0] sm:$0xff] }
 0x42d   :  { %7844 = vmatpush1.bf16.msra.mxu0 %v10790_v4  ;;  %7640 = vmatprep.subr.bf16.mxu1 %v10549_v5  ;;  %v10887_v4 = vcombine.high %v1116_v8, %v1124_v22  ;;  %v875_v5 = vld [vmem:[#allocation8 + $0x6a8] sm:$0xff]  ;;  %v1204_v8 = vld [vmem:[#allocation8 + $0x10f0] sm:$0xff]  ;;  %v10950_v22 = vcombine.low %v1180_v46, %v1188_v55 }
 0x42e   :  { %7845 = vmatprep.subr.bf16.mxu0 %v10807_v6  ;;  %v883_v6 = vld [vmem:[#allocation8 + $0x6e8] sm:$0xff] }
 0x42f   :  { %v10644_v27 = vcombine.low %v875_v5, %v883_v6 }
 0x430   :  { %7641 = vmatpush1.bf16.msra.mxu1 %v10548_v12  ;;  %v10645_v12 = vcombine.high %v875_v5, %v883_v6  ;;  %v1212_v5 = vld [vmem:[#allocation8 + $0x1130] sm:$0xff] }
 0x431   :  { %7846 = vmatpush1.bf16.msra.mxu0 %v10806_v17  ;;  %7642 = vmatprep.subr.bf16.mxu1 %v10565_v23  ;;  %v10903_v17 = vcombine.high %v1132_v7, %v1140_v10  ;;  %v891_v23 = vld [vmem:[#allocation8 + $0x728] sm:$0xff]  ;;  %v1220_v6 = vld [vmem:[#allocation8 + $0x1170] sm:$0xff]  ;;  %v10966_v10 = vcombine.low %v1196_v62, %v1204_v8 }
 0x432   :  { %7847 = vmatprep.subr.bf16.mxu0 %v10823_v24  ;;  %v899_v24 = vld [vmem:[#allocation8 + $0x768] sm:$0xff] }
 0x433   :  { %v10660_v48 = vcombine.low %v891_v23, %v899_v24 }
 0x434   :  { %7643 = vmatpush1.bf16.msra.mxu1 %v10564_v30  ;;  %v10661_v30 = vcombine.high %v891_v23, %v899_v24  ;;  %v1228_v23 = vld [vmem:[#allocation8 + $0x11b0] sm:$0xff] }
 0x435   :  { %7848 = vmatpush1.bf16.msra.mxu0 %v10822_v32  ;;  %7644 = vmatprep.subr.bf16.mxu1 %v10581_v33  ;;  %v10919_v32 = vcombine.high %v1148_v26, %v1156_v56  ;;  %v907_v33 = vld [vmem:[#allocation8 + $0x7a8] sm:$0xff]  ;;  %v1236_v24 = vld [vmem:[#allocation8 + $0x11f0] sm:$0xff]  ;;  %v10982_v56 = vcombine.low %v1212_v5, %v1220_v6 }
 0x436   :  { %7849 = vmatprep.subr.bf16.mxu0 %v10839_v39  ;;  %v915_v39 = vld [vmem:[#allocation8 + $0x7e8] sm:$0xff] }
 0x437   :  { %v10676_v49 = vcombine.low %v907_v33, %v915_v39 }
 0x438   :  { %7645 = vmatpush1.bf16.msra.mxu1 %v10580_v52  ;;  %v10677_v52 = vcombine.high %v907_v33, %v915_v39  ;;  %v1244_v33 = vld [vmem:[#allocation8 + $0x1230] sm:$0xff] }
 0x439   :  { %7850 = vmatpush1.bf16.msra.mxu0 %v10838_v53  ;;  %7646 = vmatprep.subr.bf16.mxu1 %v10597_v42  ;;  %v10935_v53 = vcombine.high %v1164_v41, %v1172_v44  ;;  %v923_v42 = vld [vmem:[#allocation8 + $0x828] sm:$0xff]  ;;  %v1252_v39 = vld [vmem:[#allocation8 + $0x1270] sm:$0xff]  ;;  %v10998_v44 = vcombine.low %v1228_v23, %v1236_v24 }
 0x43a   :  { %7851 = vmatprep.subr.bf16.mxu0 %v10855_v43  ;;  %v931_v43 = vld [vmem:[#allocation8 + $0x868] sm:$0xff] }
 0x43b   :  { %v10692_v61 = vcombine.low %v923_v42, %v931_v43 }
 0x43c   :  { %7647 = vmatpush1.bf16.msra.mxu1 %v10596_v58  ;;  %v10693_v58 = vcombine.high %v923_v42, %v931_v43  ;;  %v1260_v42 = vld [vmem:[#allocation8 + $0x12b0] sm:$0xff] }
 0x43d   :  { %7852 = vmatpush1.bf16.msra.mxu0 %v10854_v59  ;;  %7648 = vmatprep.subr.bf16.mxu1 %v10613_v60  ;;  %v10951_v59 = vcombine.high %v1180_v46, %v1188_v55  ;;  %v939_v60 = vld [vmem:[#allocation8 + $0x8a8] sm:$0xff]  ;;  %v1268_v43 = vld [vmem:[#allocation8 + $0x12f0] sm:$0xff]  ;;  %v11014_v55 = vcombine.low %v1244_v33, %v1252_v39 }
 0x43e   :  { %7853 = vmatprep.subr.bf16.mxu0 %v10871_v13  ;;  %v947_v13 = vld [vmem:[#allocation8 + $0x8e8] sm:$0xff] }
 0x43f   :  { %v10708_v7 = vcombine.low %v939_v60, %v947_v13 }
 0x440   :  { %7649 = vmatpush1.bf16.msra.mxu1 %v10612_v1  ;;  %v10709_v1 = vcombine.high %v939_v60, %v947_v13  ;;  %v1276_v60 = vld [vmem:[#allocation8 + $0x1330] sm:$0xff] }
 0x441   :  { %7854 = vmatpush1.bf16.msra.mxu0 %v10870_v2  ;;  %7650 = vmatprep.subr.bf16.mxu1 %v10629_v3  ;;  %v955_v2 = vld [vmem:[#allocation8 + $0x928] sm:$0xff]  ;;  %v1284_v13 = vld [vmem:[#allocation8 + $0x1370] sm:$0xff] }
 0x442   :  { %7855 = vmatprep.subr.bf16.mxu0 %v10887_v4  ;;  %v963_v3 = vld [vmem:[#allocation8 + $0x968] sm:$0xff]  ;;  %v10967_v4 = vcombine.high %v1196_v62, %v1204_v8  ;;  %v11030_v62 = vcombine.low %v1260_v42, %v1268_v43 }
 0x443   :  { %v10724_v26 = vcombine.low %v955_v2, %v963_v3 }
 0x444   :  { %7651 = vmatpush1.bf16.msra.mxu1 %v10628_v11  ;;  %v10725_v11 = vcombine.high %v955_v2, %v963_v3  ;;  %v1043_v2 = vld [vmem:[#allocation8 + $0xbe8] sm:$0xff]  ;;  %v1292_v3 = vld [vmem:[#allocation8 + $0x13b0] sm:$0xff] }
 0x445   :  { %7856 = vmatpush1.bf16.msra.mxu0 %v10886_v9  ;;  %7652 = vmatprep.subr.bf16.mxu1 %v10645_v12  ;;  %v10983_v9 = vcombine.high %v1212_v5, %v1220_v6  ;;  %v971_v12 = vld [vmem:[#allocation8 + $0x9a8] sm:$0xff]  ;;  %v11046_v6 = vcombine.low %v1276_v60, %v1284_v13 }
 0x446   :  { %7857 = vmatprep.subr.bf16.mxu0 %v10903_v17  ;;  %v979_v17 = vld [vmem:[#allocation8 + $0x9e8] sm:$0xff] }
 0x447   :  { %v10740_v41 = vcombine.low %v971_v12, %v979_v17 }
 0x448   :  { %7653 = vmatpush1.bf16.msra.mxu1 %v10644_v27  ;;  %v10741_v27 = vcombine.high %v971_v12, %v979_v17  ;;  %v1308_v12 = vld [vmem:[#allocation8 + $0x1430] sm:$0xff] }
 0x449   :  { %7858 = vmatpush1.bf16.msra.mxu0 %v10902_v29  ;;  %7654 = vmatprep.subr.bf16.mxu1 %v10661_v30  ;;  %v10999_v29 = vcombine.high %v1228_v23, %v1236_v24  ;;  %v987_v30 = vld [vmem:[#allocation8 + $0xa28] sm:$0xff]  ;;  %v1316_v17 = vld [vmem:[#allocation8 + $0x1470] sm:$0xff] }
 0x44a   :  { %7859 = vmatprep.subr.bf16.mxu0 %v10919_v32  ;;  %v995_v32 = vld [vmem:[#allocation8 + $0xa68] sm:$0xff] }
 0x44b   :  { %v10756_v46 = vcombine.low %v987_v30, %v995_v32 }
 0x44c   :  { %7655 = vmatpush1.bf16.msra.mxu1 %v10660_v48  ;;  %v10757_v48 = vcombine.high %v987_v30, %v995_v32  ;;  %v1324_v30 = vld [vmem:[#allocation8 + $0x14b0] sm:$0xff] }
 0x44d   :  { %7860 = vmatpush1.bf16.msra.mxu0 %v10918_v18  ;;  %7656 = vmatprep.subr.bf16.mxu1 %v10677_v52  ;;  %v11015_v18 = vcombine.high %v1244_v33, %v1252_v39  ;;  %v1003_v52 = vld [vmem:[#allocation8 + $0xaa8] sm:$0xff]  ;;  %v1332_v32 = vld [vmem:[#allocation8 + $0x14f0] sm:$0xff]  ;;  %v11078_v39 = vcombine.low %v1308_v12, %v1316_v17 }
 0x44e   :  { %7861 = vmatprep.subr.bf16.mxu0 %v10935_v53  ;;  %v1011_v53 = vld [vmem:[#allocation8 + $0xae8] sm:$0xff] }
 0x450   :  { %7657 = vmatpush1.bf16.msra.mxu1 %v10676_v49  ;;  %v10773_v49 = vcombine.high %v1003_v52, %v1011_v53 }
 0x451   :  { %7862 = vmatpush1.bf16.msra.mxu0 %v10934_v20  ;;  %7667 = vmatprep.subr.bf16.mxu1 %v10693_v58  ;;  %v11031_v20 = vcombine.high %v1260_v42, %v1268_v43  ;;  %v1019_v58 = vld [vmem:[#allocation8 + $0xb28] sm:$0xff]  ;;  %v11094_v43 = vcombine.low %v1324_v30, %v1332_v32 }
 0x452   :  { %7872 = vmatprep.subr.bf16.mxu0 %v10951_v59  ;;  %v1027_v59 = vld [vmem:[#allocation8 + $0xb68] sm:$0xff] }
 0x453   :  { %7659 = vmatmul.mubr.bf16.vlgmr.msra.gmra.mrb[20].mxu1 %v12832_v37  ;;  %v10789_v8 = vcombine.high %v1019_v58, %v1027_v59  ;;  %v10788_v5 = vcombine.low %v1019_v58, %v1027_v59  ;;  %v1356_v58 = vld [vmem:[#allocation8 + $0x15b0] sm:$0xff] }
 0x454   :  { %7864 = vmatmul.mubr.bf16.vlgmr.msra.gmra.mrb[16].mxu0 %v12883_v38  ;;  %7668 = vmatpush1.bf16.msra.mxu1 %v10692_v61  ;;  %v10772_v61 = vcombine.low %v1003_v52, %v1011_v53  ;;  %v1340_v52 = vld [vmem:[#allocation8 + $0x1530] sm:$0xff] }
 0x455   :  { %7699 = vmatprep.mubr.bf16.mxu1 %v12848_v25  ;;  %7873 = vmatpush1.bf16.msra.mxu0 %v10950_v22  ;;  %v11047_v22 = vcombine.high %v1276_v60, %v1284_v13  ;;  %v1348_v53 = vld [vmem:[#allocation8 + $0x1570] sm:$0xff] }
 0x456   :  { %7904 = vmatprep.mubr.bf16.mxu0 %v12886_v51  ;;  %7669 = vmatprep.subr.bf16.mxu1 %v10709_v1  ;;  %v1035_v1 = vld [vmem:[#allocation8 + $0xba8] sm:$0xff]  ;;  %v1364_v59 = vld [vmem:[#allocation8 + $0x15f0] sm:$0xff]  ;;  %v11110_v13 = vcombine.low %v1340_v52, %v1348_v53 }
 0x457   :  { %7874 = vmatprep.subr.bf16.mxu0 %v10967_v4  ;;  %v1300_v4 = vld [vmem:[#allocation8 + $0x13f0] sm:$0xff]  ;;  %v10804_v23 = vcombine.low %v1035_v1, %v1043_v2 }
 0x458   :  { %7670 = vmatpush1.bf16.msra.mxu1 %v10708_v7  ;;  %v10805_v7 = vcombine.high %v1035_v1, %v1043_v2  ;;  %v11062_v24 = vcombine.low %v1292_v3, %v1300_v4  ;;  %v1372_v1 = vld [vmem:[#allocation8 + $0x1630] sm:$0xff] }
 0x459   :  { %7875 = vmatpush1.bf16.msra.mxu0 %v10966_v10  ;;  %7671 = vmatprep.subr.bf16.mxu1 %v10725_v11  ;;  %v11063_v10 = vcombine.high %v1292_v3, %v1300_v4  ;;  %v1051_v11 = vld [vmem:[#allocation8 + $0xc28] sm:$0xff]  ;;  %v1380_v2 = vld [vmem:[#allocation8 + $0x1670] sm:$0xff]  ;;  %v11126_v4 = vcombine.low %v1356_v58, %v1364_v59 }
 0x45a   :  { %7876 = vmatprep.subr.bf16.mxu0 %v10983_v9  ;;  %v1059_v9 = vld [vmem:[#allocation8 + $0xc68] sm:$0xff] }
 0x45b   :  { %v10820_v33 = vcombine.low %v1051_v11, %v1059_v9 }
 0x45c   :  { %7672 = vmatpush1.bf16.msra.mxu1 %v10724_v26  ;;  %v10821_v26 = vcombine.high %v1051_v11, %v1059_v9  ;;  %v1388_v11 = vld [vmem:[#allocation8 + $0x16b0] sm:$0xff] }
 0x45d   :  { %7877 = vmatpush1.bf16.msra.mxu0 %v10982_v56  ;;  %7673 = vmatprep.subr.bf16.mxu1 %v10741_v27  ;;  %v11079_v56 = vcombine.high %v1308_v12, %v1316_v17  ;;  %v1067_v27 = vld [vmem:[#allocation8 + $0xca8] sm:$0xff]  ;;  %v1396_v9 = vld [vmem:[#allocation8 + $0x16f0] sm:$0xff]  ;;  %v11142_v17 = vcombine.low %v1372_v1, %v1380_v2 }
 0x45e   :  { %7878 = vmatprep.subr.bf16.mxu0 %v10999_v29  ;;  %v1075_v29 = vld [vmem:[#allocation8 + $0xce8] sm:$0xff] }
 0x45f   :  { %v10836_v42 = vcombine.low %v1067_v27, %v1075_v29 }
 0x460   :  { %7674 = vmatpush1.bf16.msra.mxu1 %v10740_v41  ;;  %v10837_v41 = vcombine.high %v1067_v27, %v1075_v29  ;;  %v1404_v27 = vld [vmem:[#allocation8 + $0x1730] sm:$0xff] }
 0x461   :  { %7879 = vmatpush1.bf16.msra.mxu0 %v10998_v44  ;;  %7675 = vmatprep.subr.bf16.mxu1 %v10757_v48  ;;  %v11095_v44 = vcombine.high %v1324_v30, %v1332_v32  ;;  %v1083_v48 = vld [vmem:[#allocation8 + $0xd28] sm:$0xff]  ;;  %v1412_v29 = vld [vmem:[#allocation8 + $0x1770] sm:$0xff]  ;;  %v11158_v32 = vcombine.low %v1388_v11, %v1396_v9 }
 0x462   :  { %7880 = vmatprep.subr.bf16.mxu0 %v11015_v18  ;;  %v1091_v18 = vld [vmem:[#allocation8 + $0xd68] sm:$0xff] }
 0x463   :  { %v10852_v60 = vcombine.low %v1083_v48, %v1091_v18 }
 0x464   :  { %7676 = vmatpush1.bf16.msra.mxu1 %v10756_v46  ;;  %v10853_v46 = vcombine.high %v1083_v48, %v1091_v18  ;;  %v1420_v48 = vld [vmem:[#allocation8 + $0x17b0] sm:$0xff] }
 0x465   :  { %7881 = vmatpush1.bf16.msra.mxu0 %v11014_v55  ;;  %7677 = vmatprep.subr.bf16.mxu1 %v10773_v49  ;;  %v11111_v55 = vcombine.high %v1340_v52, %v1348_v53  ;;  %v1099_v49 = vld [vmem:[#allocation8 + $0xda8] sm:$0xff]  ;;  %v1428_v18 = vld [vmem:[#allocation8 + $0x17f0] sm:$0xff]  ;;  %v11174_v53 = vcombine.low %v1404_v27, %v1412_v29 }
 0x466   :  { %7882 = vmatprep.subr.bf16.mxu0 %v11031_v20  ;;  %v1107_v20 = vld [vmem:[#allocation8 + $0xde8] sm:$0xff] }
 0x467   :  { %v10868_v3 = vcombine.low %v1099_v49, %v1107_v20 }
 0x468   :  { %7678 = vmatpush1.bf16.msra.mxu1 %v10772_v61  ;;  %v10869_v61 = vcombine.high %v1099_v49, %v1107_v20  ;;  %v1436_v49 = vld [vmem:[#allocation8 + $0x1830] sm:$0xff] }
 0x469   :  { %7883 = vmatpush1.bf16.msra.mxu0 %v11030_v62  ;;  %7679 = vmatprep.subr.bf16.mxu1 %v10789_v8  ;;  %v11127_v62 = vcombine.high %v1356_v58, %v1364_v59  ;;  %v1115_v8 = vld [vmem:[#allocation8 + $0xe28] sm:$0xff]  ;;  %v1444_v20 = vld [vmem:[#allocation8 + $0x1870] sm:$0xff]  ;;  %v11190_v59 = vcombine.low %v1420_v48, %v1428_v18 }
 0x46a   :  { %7884 = vmatprep.subr.bf16.mxu0 %v11047_v22  ;;  %v1123_v22 = vld [vmem:[#allocation8 + $0xe68] sm:$0xff] }
 0x46b   :  { %v10884_v12 = vcombine.low %v1115_v8, %v1123_v22 }
 0x46c   :  { %7680 = vmatpush1.bf16.msra.mxu1 %v10788_v5  ;;  %v10885_v5 = vcombine.high %v1115_v8, %v1123_v22  ;;  %v1452_v22 = vld [vmem:[#allocation8 + $0x18b0] sm:$0xff] }
 0x46d   :  { %7885 = vmatpush1.bf16.msra.mxu0 %v11046_v6  ;;  %7681 = vmatprep.subr.bf16.mxu1 %v10805_v7  ;;  %v11143_v6 = vcombine.high %v1372_v1, %v1380_v2  ;;  %v1131_v7 = vld [vmem:[#allocation8 + $0xea8] sm:$0xff]  ;;  %v1460_v1 = vld [vmem:[#allocation8 + $0x18f0] sm:$0xff]  ;;  %v11206_v2 = vcombine.low %v1436_v49, %v1444_v20 }
 0x46e   :  { %7886 = vmatprep.subr.bf16.mxu0 %v11063_v10  ;;  %v1139_v10 = vld [vmem:[#allocation8 + $0xee8] sm:$0xff] }
 0x46f   :  { %v10900_v30 = vcombine.low %v1131_v7, %v1139_v10 }
 0x470   :  { %7682 = vmatpush1.bf16.msra.mxu1 %v10804_v23  ;;  %v10901_v23 = vcombine.high %v1131_v7, %v1139_v10  ;;  %v1468_v7 = vld [vmem:[#allocation8 + $0x1930] sm:$0xff] }
 0x471   :  { %7887 = vmatpush1.bf16.msra.mxu0 %v11062_v24  ;;  %7683 = vmatprep.subr.bf16.mxu1 %v10821_v26  ;;  %v11159_v24 = vcombine.high %v1388_v11, %v1396_v9  ;;  %v1147_v26 = vld [vmem:[#allocation8 + $0xf28] sm:$0xff]  ;;  %v1476_v10 = vld [vmem:[#allocation8 + $0x1970] sm:$0xff]  ;;  %v11222_v9 = vcombine.low %v1452_v22, %v1460_v1 }
 0x472   :  { %7888 = vmatprep.subr.bf16.mxu0 %v11079_v56  ;;  %v1155_v56 = vld [vmem:[#allocation8 + $0xf68] sm:$0xff] }
 0x473   :  { %v10916_v52 = vcombine.low %v1147_v26, %v1155_v56 }
 0x474   :  { %7684 = vmatpush1.bf16.msra.mxu1 %v10820_v33  ;;  %v10917_v33 = vcombine.high %v1147_v26, %v1155_v56  ;;  %v1484_v26 = vld [vmem:[#allocation8 + $0x19b0] sm:$0xff] }
 0x475   :  { %7889 = vmatpush1.bf16.msra.mxu0 %v11078_v39  ;;  %7685 = vmatprep.subr.bf16.mxu1 %v10837_v41  ;;  %v11175_v39 = vcombine.high %v1404_v27, %v1412_v29  ;;  %v1163_v41 = vld [vmem:[#allocation8 + $0xfa8] sm:$0xff]  ;;  %v1492_v56 = vld [vmem:[#allocation8 + $0x19f0] sm:$0xff]  ;;  %v11238_v29 = vcombine.low %v1468_v7, %v1476_v10 }
 0x476   :  { %7890 = vmatprep.subr.bf16.mxu0 %v11095_v44  ;;  %v1171_v44 = vld [vmem:[#allocation8 + $0xfe8] sm:$0xff] }
 0x477   :  { %v10932_v58 = vcombine.low %v1163_v41, %v1171_v44 }
 0x478   :  { %7686 = vmatpush1.bf16.msra.mxu1 %v10836_v42  ;;  %v10933_v42 = vcombine.high %v1163_v41, %v1171_v44  ;;  %v1500_v41 = vld [vmem:[#allocation8 + $0x1a30] sm:$0xff] }
 0x479   :  { %7891 = vmatpush1.bf16.msra.mxu0 %v11094_v43  ;;  %7687 = vmatprep.subr.bf16.mxu1 %v10853_v46  ;;  %v11191_v43 = vcombine.high %v1420_v48, %v1428_v18  ;;  %v1179_v46 = vld [vmem:[#allocation8 + $0x1028] sm:$0xff]  ;;  %v1508_v44 = vld [vmem:[#allocation8 + $0x1a70] sm:$0xff]  ;;  %v11254_v18 = vcombine.low %v1484_v26, %v1492_v56 }
 0x47a   :  { %7892 = vmatprep.subr.bf16.mxu0 %v11111_v55  ;;  %v1187_v55 = vld [vmem:[#allocation8 + $0x1068] sm:$0xff] }
 0x47b   :  { %v10948_v8 = vcombine.low %v1179_v46, %v1187_v55 }
 0x47c   :  { %7688 = vmatpush1.bf16.msra.mxu1 %v10852_v60  ;;  %v10949_v60 = vcombine.high %v1179_v46, %v1187_v55  ;;  %v1516_v46 = vld [vmem:[#allocation8 + $0x1ab0] sm:$0xff] }
 0x47d   :  { %7893 = vmatpush1.bf16.msra.mxu0 %v11110_v13  ;;  %7689 = vmatprep.subr.bf16.mxu1 %v10869_v61  ;;  %v11207_v13 = vcombine.high %v1436_v49, %v1444_v20  ;;  %v1195_v61 = vld [vmem:[#allocation8 + $0x10a8] sm:$0xff]  ;;  %v1524_v55 = vld [vmem:[#allocation8 + $0x1af0] sm:$0xff]  ;;  %v11270_v20 = vcombine.low %v1500_v41, %v1508_v44 }
 0x47e   :  { %7894 = vmatprep.subr.bf16.mxu0 %v11127_v62  ;;  %v1203_v62 = vld [vmem:[#allocation8 + $0x10e8] sm:$0xff] }
 0x47f   :  { %v10964_v11 = vcombine.low %v1195_v61, %v1203_v62 }
 0x480   :  { %7690 = vmatpush1.bf16.msra.mxu1 %v10868_v3  ;;  %v10965_v3 = vcombine.high %v1195_v61, %v1203_v62  ;;  %v1532_v61 = vld [vmem:[#allocation8 + $0x1b30] sm:$0xff] }
 0x481   :  { %7895 = vmatpush1.bf16.msra.mxu0 %v11126_v4  ;;  %7691 = vmatprep.subr.bf16.mxu1 %v10885_v5  ;;  %v1211_v4 = vld [vmem:[#allocation8 + $0x1128] sm:$0xff]  ;;  %v1540_v62 = vld [vmem:[#allocation8 + $0x1b70] sm:$0xff] }
 0x482   :  { %7896 = vmatprep.subr.bf16.mxu0 %v11143_v6  ;;  %v1219_v5 = vld [vmem:[#allocation8 + $0x1168] sm:$0xff]  ;;  %v11223_v6 = vcombine.high %v1452_v22, %v1460_v1  ;;  %v11286_v22 = vcombine.low %v1516_v46, %v1524_v55 }
 0x483   :  { %v10980_v27 = vcombine.low %v1211_v4, %v1219_v5 }
 0x484   :  { %7692 = vmatpush1.bf16.msra.mxu1 %v10884_v12  ;;  %v10981_v12 = vcombine.high %v1211_v4, %v1219_v5  ;;  %v1299_v4 = vld [vmem:[#allocation8 + $0x13e8] sm:$0xff] }
 0x485   :  { %7897 = vmatpush1.bf16.msra.mxu0 %v11142_v17  ;;  %7693 = vmatprep.subr.bf16.mxu1 %v10901_v23  ;;  %v11239_v17 = vcombine.high %v1468_v7, %v1476_v10  ;;  %v1227_v23 = vld [vmem:[#allocation8 + $0x11a8] sm:$0xff]  ;;  %v1556_v7 = vld [vmem:[#allocation8 + $0x1bf0] sm:$0xff] }
 0x486   :  { %7898 = vmatprep.subr.bf16.mxu0 %v11159_v24  ;;  %v1235_v24 = vld [vmem:[#allocation8 + $0x11e8] sm:$0xff] }
 0x487   :  { %v10996_v48 = vcombine.low %v1227_v23, %v1235_v24 }
 0x488   :  { %7694 = vmatpush1.bf16.msra.mxu1 %v10900_v30  ;;  %v10997_v30 = vcombine.high %v1227_v23, %v1235_v24 }
 0x489   :  { %7899 = vmatpush1.bf16.msra.mxu0 %v11158_v32  ;;  %7695 = vmatprep.subr.bf16.mxu1 %v10917_v33  ;;  %v11255_v32 = vcombine.high %v1484_v26, %v1492_v56  ;;  %v1243_v33 = vld [vmem:[#allocation8 + $0x1228] sm:$0xff] }
 0x48a   :  { %7900 = vmatprep.subr.bf16.mxu0 %v11175_v39  ;;  %v1251_v39 = vld [vmem:[#allocation8 + $0x1268] sm:$0xff] }
 0x48b   :  { %v11012_v49 = vcombine.low %v1243_v33, %v1251_v39  ;;  %v1307_v26 = vld [vmem:[#allocation8 + $0x1428] sm:$0xff] }
 0x48c   :  { %7696 = vmatpush1.bf16.msra.mxu1 %v10916_v52  ;;  %v11013_v52 = vcombine.high %v1243_v33, %v1251_v39  ;;  %v1315_v56 = vld [vmem:[#allocation8 + $0x1468] sm:$0xff] }
 0x48d   :  { %7901 = vmatpush1.bf16.msra.mxu0 %v11174_v53  ;;  %7697 = vmatprep.subr.bf16.mxu1 %v10933_v42  ;;  %v11271_v53 = vcombine.high %v1500_v41, %v1508_v44  ;;  %v1259_v42 = vld [vmem:[#allocation8 + $0x12a8] sm:$0xff]  ;;  %v11077_v33 = vcombine.high %v1307_v26, %v1315_v56 }
 0x48e   :  { %7902 = vmatprep.subr.bf16.mxu0 %v11191_v43  ;;  %v1267_v43 = vld [vmem:[#allocation8 + $0x12e8] sm:$0xff] }
 0x48f   :  { %v1323_v41 = vld [vmem:[#allocation8 + $0x14a8] sm:$0xff] }
 0x490   :  { %7698 = vmatpush1.bf16.msra.mxu1 %v10932_v58  ;;  %v11029_v58 = vcombine.high %v1259_v42, %v1267_v43  ;;  %v1331_v44 = vld [vmem:[#allocation8 + $0x14e8] sm:$0xff] }
 0x491   :  { %7903 = vmatpush1.bf16.msra.mxu0 %v11190_v59  ;;  %7708 = vmatprep.subr.bf16.mxu1 %v10949_v60  ;;  %v11287_v59 = vcombine.high %v1516_v46, %v1524_v55  ;;  %v1275_v60 = vld [vmem:[#allocation8 + $0x1328] sm:$0xff] }
 0x492   :  { %7913 = vmatprep.subr.bf16.mxu0 %v11207_v13  ;;  %v1283_v13 = vld [vmem:[#allocation8 + $0x1368] sm:$0xff] }
 0x493   :  { %7700 = vmatmul.mubr.bf16.vlgmr.msra.gmra.mrb[20].mxu1 %v12883_v38  ;;  %v11045_v1 = vcombine.high %v1275_v60, %v1283_v13  ;;  %v1339_v46 = vld [vmem:[#allocation8 + $0x1528] sm:$0xff] }
 0x494   :  { %7905 = vmatmul.mubr.bf16.vlgmr.msra.gmra.mrb[16].mxu0 %v12903_v16  ;;  %7709 = vmatpush1.bf16.msra.mxu1 %v10948_v8  ;;  %v11028_v8 = vcombine.low %v1259_v42, %v1267_v43  ;;  %v11093_v42 = vcombine.high %v1323_v41, %v1331_v44  ;;  %v1347_v55 = vld [vmem:[#allocation8 + $0x1568] sm:$0xff] }
 0x495   :  { %7740 = vmatprep.mubr.bf16.mxu1 %v12886_v51  ;;  %7914 = vmatpush1.bf16.msra.mxu0 %v11206_v2  ;;  %v11303_v2 = vcombine.high %v1532_v61, %v1540_v62 }
 0x496   :  { %7945 = vmatprep.mubr.bf16.mxu0 %v12881_v34  ;;  %7710 = vmatprep.subr.bf16.mxu1 %v10965_v3  ;;  %v1291_v3 = vld [vmem:[#allocation8 + $0x13a8] sm:$0xff] }
 0x497   :  { %7915 = vmatprep.subr.bf16.mxu0 %v11223_v6  ;;  %v1548_v6 = vld [vmem:[#allocation8 + $0x1bb0] sm:$0xff] }
 0x498   :  { %7711 = vmatpush1.bf16.msra.mxu1 %v10964_v11  ;;  %v11044_v11 = vcombine.low %v1275_v60, %v1283_v13  ;;  %v11319_v24 = vcombine.high %v1548_v6, %v1556_v7  ;;  %v11109_v60 = vcombine.high %v1339_v46, %v1347_v55 }
 0x499   :  { %7916 = vmatpush1.bf16.msra.mxu0 %v11222_v9  ;;  %7712 = vmatprep.subr.bf16.mxu1 %v10981_v12  ;;  %v11302_v12 = vcombine.low %v1532_v61, %v1540_v62  ;;  %v1355_v61 = vld [vmem:[#allocation8 + $0x15a8] sm:$0xff] }
 0x49a   :  { %7917 = vmatprep.subr.bf16.mxu0 %v11239_v17  ;;  %v11061_v17 = vcombine.high %v1291_v3, %v1299_v4  ;;  %v1363_v62 = vld [vmem:[#allocation8 + $0x15e8] sm:$0xff] }
 0x49c   :  { %7713 = vmatpush1.bf16.msra.mxu1 %v10980_v27  ;;  %v1564_v27 = vld [vmem:[#allocation8 + $0x1c30] sm:$0xff] }
 0x49d   :  { %7918 = vmatpush1.bf16.msra.mxu0 %v11238_v29  ;;  %7714 = vmatprep.subr.bf16.mxu1 %v10997_v30  ;;  %v1572_v29 = vld [vmem:[#allocation8 + $0x1c70] sm:$0xff]  ;;  %v11060_v30 = vcombine.low %v1291_v3, %v1299_v4  ;;  %v11125_v3 = vcombine.high %v1355_v61, %v1363_v62 }
 0x49e   :  { %7919 = vmatprep.subr.bf16.mxu0 %v11255_v32  ;;  %v11318_v32 = vcombine.low %v1548_v6, %v1556_v7  ;;  %v11335_v39 = vcombine.high %v1564_v27, %v1572_v29  ;;  %v1371_v6 = vld [vmem:[#allocation8 + $0x1628] sm:$0xff] }
 0x49f   :  { %v1379_v7 = vld [vmem:[#allocation8 + $0x1668] sm:$0xff] }
 0x4a0   :  { %7715 = vmatpush1.bf16.msra.mxu1 %v10996_v48  ;;  %v1580_v48 = vld [vmem:[#allocation8 + $0x1cb0] sm:$0xff] }
 0x4a1   :  { %7920 = vmatpush1.bf16.msra.mxu0 %v11254_v18  ;;  %7716 = vmatprep.subr.bf16.mxu1 %v11013_v52  ;;  %v1588_v18 = vld [vmem:[#allocation8 + $0x1cf0] sm:$0xff]  ;;  %v11076_v52 = vcombine.low %v1307_v26, %v1315_v56  ;;  %v1387_v26 = vld [vmem:[#allocation8 + $0x16a8] sm:$0xff] }
 0x4a2   :  { %7921 = vmatprep.subr.bf16.mxu0 %v11271_v53  ;;  %v11334_v53 = vcombine.low %v1564_v27, %v1572_v29  ;;  %v11351_v43 = vcombine.high %v1580_v48, %v1588_v18  ;;  %v1395_v56 = vld [vmem:[#allocation8 + $0x16e8] sm:$0xff]  ;;  %v1644_v27 = vld [vmem:[#allocation8 + $0x1eb0] sm:$0xff] }
 0x4a3   :  { %v1652_v29 = vld [vmem:[#allocation8 + $0x1ef0] sm:$0xff] }
 0x4a4   :  { %7717 = vmatpush1.bf16.msra.mxu1 %v11012_v49  ;;  %v1596_v49 = vld [vmem:[#allocation8 + $0x1d30] sm:$0xff] }
 0x4a5   :  { %7922 = vmatpush1.bf16.msra.mxu0 %v11270_v20  ;;  %7718 = vmatprep.subr.bf16.mxu1 %v11029_v58  ;;  %v1604_v20 = vld [vmem:[#allocation8 + $0x1d70] sm:$0xff]  ;;  %v11092_v58 = vcombine.low %v1323_v41, %v1331_v44  ;;  %v11415_v41 = vcombine.high %v1644_v27, %v1652_v29  ;;  %v1403_v44 = vld [vmem:[#allocation8 + $0x1728] sm:$0xff] }
 0x4a6   :  { %7923 = vmatprep.subr.bf16.mxu0 %v11287_v59  ;;  %v11350_v59 = vcombine.low %v1580_v48, %v1588_v18  ;;  %v11367_v13 = vcombine.high %v1596_v49, %v1604_v20  ;;  %v1411_v48 = vld [vmem:[#allocation8 + $0x1768] sm:$0xff]  ;;  %v1660_v18 = vld [vmem:[#allocation8 + $0x1f30] sm:$0xff] }
 0x4a7   :  { %v12967_v5 = vpop.f32.mrb[12].mxu0 }
 0x4a8   :  { %v12969_v10 = vpop.f32.mrb[13].mxu0  ;;  %7719 = vmatpush1.bf16.msra.mxu1 %v11028_v8  ;;  %v1612_v8 = vld [vmem:[#allocation8 + $0x1db0] sm:$0xff] }
 0x4a9   :  { %v7623_v9 = vpop.f32.mrb[14].mxu0  ;;  %7924 = vmatpush1.bf16.msra.mxu0 %v11286_v22  ;;  %7720 = vmatprep.subr.bf16.mxu1 %v11045_v1  ;;  %v1620_v22 = vld [vmem:[#allocation8 + $0x1df0] sm:$0xff]  ;;  %v11108_v1 = vcombine.low %v1339_v46, %v1347_v55  ;;  %v11414_v46 = vcombine.low %v1644_v27, %v1652_v29  ;;  %v11173_v55 = vcombine.high %v1403_v44, %v1411_v48  ;;  %v1475_v27 = vld [vmem:[#allocation8 + $0x1968] sm:$0xff] }
 0x4aa   :  { %v7624_v23 = vpop.f32.mrb[15].mxu0  ;;  %7925 = vmatprep.subr.bf16.mxu0 %v11303_v2  ;;  %v11366_v2 = vcombine.low %v1596_v49, %v1604_v20  ;;  %v11383_v4 = vcombine.high %v1612_v8, %v1620_v22  ;;  %v1636_v9 = vld [vmem:[#allocation8 + $0x1e70] sm:$0xff]  ;;  %v1419_v20 = vld [vmem:[#allocation8 + $0x17a8] sm:$0xff] }
 0x4ab   :  { %v11141_v23 = vcombine.high %v1371_v6, %v1379_v7  ;;  %v12017_v29 = vld [vmem:[#allocation11 + $0x14] ss:$8 sps:$4 sm:$0xff]  }
 0x4ac   :  { %7721 = vmatpush1.bf16.msra.mxu1 %v11044_v11  ;;  %v1628_v11 = vld [vmem:[#allocation8 + $0x1e30] sm:$0xff] }
 0x4ad   :  { %7926 = vmatpush1.bf16.msra.mxu0 %v11302_v12  ;;  %7722 = vmatprep.subr.bf16.mxu1 %v11061_v17  ;;  %v11124_v12 = vcombine.low %v1355_v61, %v1363_v62  ;;  %v11382_v17 = vcombine.low %v1612_v8, %v1620_v22  ;;  %v11172_v62 = vcombine.low %v1403_v44, %v1411_v48  ;;  %v12020_v44 = vld [vmem:[#allocation11 + $0x24] ss:$8 sps:$4 sm:$0xff]  }
 0x4ae   :  { %7927 = vmatprep.subr.bf16.mxu0 %v11319_v24  ;;  %v11399_v24 = vcombine.high %v1628_v11, %v1636_v9  ;;  %v1483_v48 = vld [vmem:[#allocation8 + $0x19a8] sm:$0xff] }
 0x4b0   :  { %7723 = vmatpush1.bf16.msra.mxu1 %v11060_v30  ;;  %v11140_v30 = vcombine.low %v1371_v6, %v1379_v7 }
 0x4b1   :  { %7928 = vmatpush1.bf16.msra.mxu0 %v11318_v32  ;;  %7724 = vmatprep.subr.bf16.mxu1 %v11077_v33  ;;  %v12971_v32 = vld [vmem:[#allocation10] ss:$2 sm:$0xff]  ;;  %v11398_v33 = vcombine.low %v1628_v11, %v1636_v9 }
 0x4b2   :  { %7929 = vmatprep.subr.bf16.mxu0 %v11335_v39  ;;  %v11157_v39 = vcombine.high %v1387_v26, %v1395_v56  ;;  %v12014_v11 = vld [vmem:[#allocation11 + $0x4] ss:$8 sps:$4 sm:$0xff]  }
 0x4b3   :  { %v1451_v9 = vld [vmem:[#allocation8 + $0x18a8] sm:$0xff] }
 0x4b4   :  { %7725 = vmatpush1.bf16.msra.mxu1 %v11076_v52  ;;  %v1668_v52 = vld [vmem:[#allocation8 + $0x1f70] sm:$0xff] }
 0x4b5   :  { %7930 = vmatpush1.bf16.msra.mxu0 %v11334_v53  ;;  %7726 = vmatprep.subr.bf16.mxu1 %v11093_v42  ;;  %v8130_v53 = vrot.slane %v12971_v32, %v12818_v21  ;;  %v11156_v42 = vcombine.low %v1387_v26, %v1395_v56  ;;  %v11431_v49 = vcombine.high %v1660_v18, %v1668_v52  ;;  %v1467_v56 = vld [vmem:[#allocation8 + $0x1928] sm:$0xff] }
 0x4b6   :  { %7931 = vmatprep.subr.bf16.mxu0 %v11351_v43  ;;  %v12975_v43 = vld [vmem:[#allocation10 + $0x1] ss:$2 sm:$0xff]  ;;  %v11430_v8 = vcombine.low %v1660_v18, %v1668_v52  ;;  %v11236_v52 = vcombine.low %v1467_v56, %v1475_v27 }
 0x4b7   :  { %v8232_v61 = vrot.slane %v12975_v43, %v12818_v21  ;;  %v1491_v18 = vld [vmem:[#allocation8 + $0x19e8] sm:$0xff] }
 0x4b8   :  { %7727 = vmatpush1.bf16.msra.mxu1 %v11092_v58  ;;  %v1427_v58 = vld [vmem:[#allocation8 + $0x17e8] sm:$0xff] }
 0x4b9   :  { %7932 = vmatpush1.bf16.msra.mxu0 %v11350_v59  ;;  %7728 = vmatprep.subr.bf16.mxu1 %v11109_v60  ;;  %v1676_v59 = vld [vmem:[#allocation8 + $0x1fb0] sm:$0xff]  ;;  %v11189_v22 = vcombine.high %v1419_v20, %v1427_v58  ;;  %v11188_v6 = vcombine.low %v1419_v20, %v1427_v58  ;;  %v11252_v20 = vcombine.low %v1483_v48, %v1491_v18 }
 0x4ba   :  { %7933 = vmatprep.subr.bf16.mxu0 %v11367_v13  ;;  %v1684_v60 = vld [vmem:[#allocation8 + $0x1ff0] sm:$0xff]  ;;  %v8204_v13 = vmul.f32 %v12929_v47, %v8130_v53  ;;  %v12018_v53 = vld [vmem:[#allocation11 + $0x20] ss:$8 sps:$4 sm:$0xff]  }
 0x4bb   :  { %v11446_v7 = vcombine.low %v1676_v59, %v1684_v60  ;;  %v12021_v58 = vld [vmem:[#allocation11 + $0x30] ss:$8 sps:$4 sm:$0xff]  }
 0x4bc   :  { %7729 = vmatpush1.bf16.msra.mxu1 %v11108_v1  ;;  %v11447_v1 = vcombine.high %v1676_v59, %v1684_v60  ;;  %v12026_v60 = vld [vmem:[#allocation11 + $0x44] ss:$8 sps:$4 sm:$0xff]  }
 0x4bd   :  { %7934 = vmatpush1.bf16.msra.mxu0 %v11366_v2  ;;  %7730 = vmatprep.subr.bf16.mxu1 %v11125_v3  ;;  %v1435_v2 = vld [vmem:[#allocation8 + $0x1828] sm:$0xff] }
 0x4be   :  { %7935 = vmatprep.subr.bf16.mxu0 %v11383_v4  ;;  %v1443_v3 = vld [vmem:[#allocation8 + $0x1868] sm:$0xff]  ;;  %v8306_v4 = vadd.f32 %v8232_v61, %v8204_v13 }
 0x4bf   :  { %v11205_v47 = vcombine.high %v1435_v2, %v1443_v3  ;;  %v1515_v13 = vld [vmem:[#allocation8 + $0x1aa8] sm:$0xff] }
 0x4c0   :  { %7731 = vmatpush1.bf16.msra.mxu1 %v11124_v12  ;;  %v1459_v12 = vld [vmem:[#allocation8 + $0x18e8] sm:$0xff] }
 0x4c1   :  { %7936 = vmatpush1.bf16.msra.mxu0 %v11382_v17  ;;  %7732 = vmatprep.subr.bf16.mxu1 %v11141_v23  ;;  %v11204_v17 = vcombine.low %v1435_v2, %v1443_v3  ;;  %v8322_v23 = vmax.f32 %v8306_v4, 0.0  ;;  %v11221_v26 = vcombine.high %v1451_v9, %v1459_v12  ;;  %v1523_v61 = vld [vmem:[#allocation8 + $0x1ae8] sm:$0xff] }
 0x4c2   :  { %7937 = vmatprep.subr.bf16.mxu0 %v11399_v24  ;;  %v12012_v24 = vld [vmem:[#allocation11] ss:$8 sps:$4 sm:$0xff]   ;;  %v11284_v4 = vcombine.low %v1515_v13, %v1523_v61 }
 0x4c3   :  { %v1531_v2 = vld [vmem:[#allocation8 + $0x1b28] sm:$0xff] }
 0x4c4   :  { %7733 = vmatpush1.bf16.msra.mxu1 %v11140_v30  ;;  %v8338_v30 = vpack.c.bf16 %v8322_v23, %v8322_v23  ;;  %v1539_v3 = vld [vmem:[#allocation8 + $0x1b68] sm:$0xff] }
 0x4c5   :  { %7938 = vmatpush1.bf16.msra.mxu0 %v11398_v33  ;;  %7734 = vmatprep.subr.bf16.mxu1 %v11157_v39  ;;  %v11220_v33 = vcombine.low %v1451_v9, %v1459_v12  ;;  %v12015_v39 = vld [vmem:[#allocation11 + $0x10] ss:$8 sps:$4 sm:$0xff]   ;;  %v1547_v9 = vld [vmem:[#allocation8 + $0x1ba8] sm:$0xff] }
 0x4c6   :  { %7939 = vmatprep.subr.bf16.mxu0 %v11415_v41  ;;  %v11237_v41 = vcombine.high %v1467_v56, %v1475_v27  ;;  %v1555_v12 = vld [vmem:[#allocation8 + $0x1be8] sm:$0xff] }
 0x4c7   :  { %v12030_v56 = vld [vmem:[#allocation11 + $0x60] ss:$8 sps:$4 sm:$0xff]   ;;  %v11317_v27 = vcombine.high %v1547_v9, %v1555_v12 }
 0x4c8   :  { %7735 = vmatpush1.bf16.msra.mxu1 %v11156_v42  ;;  %v11253_v42 = vcombine.high %v1483_v48, %v1491_v18  ;;  %v12038_v48 = vld [vmem:[#allocation11 + $0x84] ss:$8 sps:$4 sm:$0xff]  }
 0x4c9   :  { %7940 = vmatpush1.bf16.msra.mxu0 %v11414_v46  ;;  %7736 = vmatprep.subr.bf16.mxu1 %v11173_v55  ;;  %v12023_v46 = vld [vmem:[#allocation11 + $0x34] ss:$8 sps:$4 sm:$0xff]   ;;  %v1499_v55 = vld [vmem:[#allocation8 + $0x1a28] sm:$0xff] }
 0x4ca   :  { %7941 = vmatprep.subr.bf16.mxu0 %v11431_v49  ;;  %v1507_v49 = vld [vmem:[#allocation8 + $0x1a68] sm:$0xff] }
 0x4cb   :  { %v11269_v59 = vcombine.high %v1499_v55, %v1507_v49  ;;  %v1579_v18 = vld [vmem:[#allocation8 + $0x1ca8] sm:$0xff] }
 0x4cc   :  { %7737 = vmatpush1.bf16.msra.mxu1 %v11172_v62  ;;  %v11268_v62 = vcombine.low %v1499_v55, %v1507_v49  ;;  %v12041_v55 = vld [vmem:[#allocation11 + $0x94] ss:$8 sps:$4 sm:$0xff]   ;;  %v1595_v49 = vld [vmem:[#allocation8 + $0x1d28] sm:$0xff] }
 0x4cd   :  { %7942 = vmatpush1.bf16.msra.mxu0 %v11430_v8  ;;  %7738 = vmatprep.subr.bf16.mxu1 %v11189_v22  ;;  %v12024_v8 = vld [vmem:[#allocation11 + $0x40] ss:$8 sps:$4 sm:$0xff]   ;;  %v11285_v22 = vcombine.high %v1515_v13, %v1523_v61  ;;  %v12044_v13 = vld [vmem:[#allocation11 + $0xa4] ss:$8 sps:$4 sm:$0xff]  }
 0x4ce   :  { %7943 = vmatprep.subr.bf16.mxu0 %v11447_v1  ;;  %v12029_v1 = vld [vmem:[#allocation11 + $0x54] ss:$8 sps:$4 sm:$0xff]   ;;  %v1611_v61 = vld [vmem:[#allocation8 + $0x1da8] sm:$0xff] }
 0x4d0   :  { %7739 = vmatpush1.bf16.msra.mxu1 %v11188_v6  ;;  %v12027_v6 = vld [vmem:[#allocation11 + $0x50] ss:$8 sps:$4 sm:$0xff]  }
 0x4d1   :  { %7944 = vmatpush1.bf16.msra.mxu0 %v11446_v7  ;;  %7749 = vmatprep.subr.bf16.mxu1 %v11205_v47  ;;  %v11301_v7 = vcombine.high %v1531_v2, %v1539_v3 }
 0x4d2   :  { %9901 = vmatprep.subr.bf16.mxu0 %v12014_v11  ;;  %v12032_v11 = vld [vmem:[#allocation11 + $0x64] ss:$8 sps:$4 sm:$0xff]  }
 0x4d3   :  { %7741 = vmatmul.mubr.bf16.vlgmr.msra.gmra.mrb[20].mxu1 %v12903_v16 }
 0x4d4   :  { %7946 = vmatmul.mubr.bf16.vlgmr.msra.gmra.mrb[16].mxu0 %v12879_v31  ;;  %7750 = vmatpush1.bf16.msra.mxu1 %v11204_v17 }
 0x4d5   :  { %7781 = vmatprep.mubr.bf16.mxu1 %v12881_v34  ;;  %9902 = vmatpush1.bf16.msra.mxu0 %v12012_v24  ;;  %v11300_v24 = vcombine.low %v1531_v2, %v1539_v3  ;;  %v12047_v2 = vld [vmem:[#allocation11 + $0xb4] ss:$8 sps:$4 sm:$0xff]   ;;  %v1627_v3 = vld [vmem:[#allocation8 + $0x1e28] sm:$0xff] }
 0x4d6   :  { %9933 = vmatprep.mubr.bf16.mxu0 %v8338_v30  ;;  %7751 = vmatprep.subr.bf16.mxu1 %v11221_v26  ;;  %v1563_v30 = vld [vmem:[#allocation8 + $0x1c28] sm:$0xff] }
 0x4d7   :  { %9903 = vmatprep.subr.bf16.mxu0 %v12017_v29  ;;  %v12035_v29 = vld [vmem:[#allocation11 + $0x74] ss:$8 sps:$4 sm:$0xff]  }
 0x4d8   :  { %7752 = vmatpush1.bf16.msra.mxu1 %v11220_v33  ;;  %v1571_v33 = vld [vmem:[#allocation8 + $0x1c68] sm:$0xff] }
 0x4d9   :  { %9904 = vmatpush1.bf16.msra.mxu0 %v12015_v39  ;;  %7753 = vmatprep.subr.bf16.mxu1 %v11237_v41  ;;  %v11316_v39 = vcombine.low %v1547_v9, %v1555_v12  ;;  %v12033_v41 = vld [vmem:[#allocation11 + $0x70] ss:$8 sps:$4 sm:$0xff]   ;;  %v12050_v9 = vld [vmem:[#allocation11 + $0xc4] ss:$8 sps:$4 sm:$0xff]  }
 0x4da   :  { %9905 = vmatprep.subr.bf16.mxu0 %v12020_v44  ;;  %v11333_v44 = vcombine.high %v1563_v30, %v1571_v33  ;;  %v1643_v12 = vld [vmem:[#allocation8 + $0x1ea8] sm:$0xff] }
 0x4dc   :  { %7754 = vmatpush1.bf16.msra.mxu1 %v11236_v52  ;;  %v1587_v52 = vld [vmem:[#allocation8 + $0x1ce8] sm:$0xff] }
 0x4dd   :  { %9906 = vmatpush1.bf16.msra.mxu0 %v12018_v53  ;;  %7755 = vmatprep.subr.bf16.mxu1 %v11253_v42  ;;  %v11332_v53 = vcombine.low %v1563_v30, %v1571_v33  ;;  %v12036_v42 = vld [vmem:[#allocation11 + $0x80] ss:$8 sps:$4 sm:$0xff]  }
 0x4de   :  { %9907 = vmatprep.subr.bf16.mxu0 %v12023_v46  ;;  %v11349_v46 = vcombine.high %v1579_v18, %v1587_v52  ;;  %v1659_v30 = vld [vmem:[#allocation8 + $0x1f28] sm:$0xff] }
 0x4df   :  { %v1667_v33 = vld [vmem:[#allocation8 + $0x1f68] sm:$0xff] }
 0x4e0   :  { %7756 = vmatpush1.bf16.msra.mxu1 %v11252_v20  ;;  %v1603_v20 = vld [vmem:[#allocation8 + $0x1d68] sm:$0xff] }
 0x4e1   :  { %9908 = vmatpush1.bf16.msra.mxu0 %v12021_v58  ;;  %7757 = vmatprep.subr.bf16.mxu1 %v11269_v59  ;;  %v11348_v58 = vcombine.low %v1579_v18, %v1587_v52  ;;  %v12039_v59 = vld [vmem:[#allocation11 + $0x90] ss:$8 sps:$4 sm:$0xff]   ;;  %v8228_v52 = vrot.slane %v12975_v43, %v12813_v19 }
 0x4e2   :  { %9909 = vmatprep.subr.bf16.mxu0 %v12026_v60  ;;  %v11365_v60 = vcombine.high %v1595_v49, %v1603_v20 }
 0x4e4   :  { %7758 = vmatpush1.bf16.msra.mxu1 %v11268_v62  ;;  %v1619_v62 = vld [vmem:[#allocation8 + $0x1de8] sm:$0xff] }
 0x4e5   :  { %9910 = vmatpush1.bf16.msra.mxu0 %v12024_v8  ;;  %7759 = vmatprep.subr.bf16.mxu1 %v11285_v22  ;;  %v11364_v8 = vcombine.low %v1595_v49, %v1603_v20  ;;  %v12042_v22 = vld [vmem:[#allocation11 + $0xa0] ss:$8 sps:$4 sm:$0xff]   ;;  %v8240_v49 = vrot.slane %v12975_v43, %v12840_v57  ;;  %v11428_v20 = vcombine.low %v1659_v30, %v1667_v33 }
 0x4e6   :  { %v12983_v47 = vpop.f32.mrb[16].mxu1  ;;  %9911 = vmatprep.subr.bf16.mxu0 %v12029_v1  ;;  %v11381_v1 = vcombine.high %v1611_v61, %v1619_v62 }
 0x4e7   :  { %v12985_v17 = vpop.f32.mrb[17].mxu1 }
 0x4e8   :  { %v7459_v23 = vpop.f32.mrb[18].mxu1  ;;  %7760 = vmatpush1.bf16.msra.mxu1 %v11284_v4  ;;  %v1635_v4 = vld [vmem:[#allocation8 + $0x1e68] sm:$0xff] }
 0x4e9   :  { %9912 = vmatpush1.bf16.msra.mxu0 %v12027_v6  ;;  %v7460_v26 = vpop.f32.mrb[19].mxu1  ;;  %7761 = vmatprep.subr.bf16.mxu1 %v11301_v7  ;;  %v11380_v6 = vcombine.low %v1611_v61, %v1619_v62  ;;  %v12045_v7 = vld [vmem:[#allocation11 + $0xb0] ss:$8 sps:$4 sm:$0xff]   ;;  %v1651_v23 = vld [vmem:[#allocation8 + $0x1ee8] sm:$0xff] }
 0x4ea   :  { %9913 = vmatprep.subr.bf16.mxu0 %v12032_v11  ;;  %v11397_v11 = vcombine.high %v1627_v3, %v1635_v4  ;;  %v12048_v26 = vld [vmem:[#allocation11 + $0xc0] ss:$8 sps:$4 sm:$0xff]   ;;  %v677_v61 = vld [vmem:[#allocation8 + $0x78] sm:$0xff] }
 0x4ec   :  { %7762 = vmatpush1.bf16.msra.mxu1 %v11300_v24  ;;  %v11396_v24 = vcombine.low %v1627_v3, %v1635_v4  ;;  %v685_v3 = vld [vmem:[#allocation8 + $0xb8] sm:$0xff] }
 0x4ed   :  { %9914 = vmatpush1.bf16.msra.mxu0 %v12030_v56  ;;  %7763 = vmatprep.subr.bf16.mxu1 %v11317_v27  ;;  %v11413_v56 = vcombine.high %v1643_v12, %v1651_v23  ;;  %v8126_v27 = vrot.slane %v12971_v32, %v12813_v19  ;;  %v693_v4 = vld [vmem:[#allocation8 + $0xf8] sm:$0xff] }
 0x4ee   :  { %9915 = vmatprep.subr.bf16.mxu0 %v12035_v29  ;;  %v12053_v29 = vld [vmem:[#allocation11 + $0xd4] ss:$8 sps:$4 sm:$0xff]  }
 0x4ef   :  { %v8203_v18 = vmul.f32 %v12926_v35, %v8126_v27  ;;  %v12059_v35 = vld [vmem:[#allocation11 + $0xf4] ss:$8 sps:$4 sm:$0xff]   ;;  %v10456_v27 = vcombine.low %v685_v3, %v693_v4 }
 0x4f0   :  { %7764 = vmatpush1.bf16.msra.mxu1 %v11316_v39  ;;  %v8138_v39 = vrot.slane %v12971_v32, %v12840_v57 }
 0x4f1   :  { %9916 = vmatpush1.bf16.msra.mxu0 %v12033_v41  ;;  %7765 = vmatprep.subr.bf16.mxu1 %v11333_v44  ;;  %v11412_v41 = vcombine.low %v1643_v12, %v1651_v23  ;;  %v12051_v44 = vld [vmem:[#allocation11 + $0xd0] ss:$8 sps:$4 sm:$0xff]   ;;  %v10457_v12 = vcombine.high %v685_v3, %v693_v4 }
 0x4f2   :  { %9917 = vmatprep.subr.bf16.mxu0 %v12038_v48  ;;  %v11429_v48 = vcombine.high %v1659_v30, %v1667_v33  ;;  %v701_v23 = vld [vmem:[#allocation8 + $0x138] sm:$0xff]  ;;  %v12068_v33 = vld [vmem:[#allocation11 + $0x124] ss:$8 sps:$4 sm:$0xff]  }
 0x4f3   :  { %v789_v3 = vld [vmem:[#allocation8 + $0x3f8] sm:$0xff] }
 0x4f4   :  { %7766 = vmatpush1.bf16.msra.mxu1 %v11332_v53  ;;  %v12056_v53 = vld [vmem:[#allocation11 + $0xe4] ss:$8 sps:$4 sm:$0xff]  }
 0x4f5   :  { %9918 = vmatpush1.bf16.msra.mxu0 %v12036_v42  ;;  %7767 = vmatprep.subr.bf16.mxu1 %v11349_v46  ;;  %v1675_v42 = vld [vmem:[#allocation8 + $0x1fa8] sm:$0xff] }
 0x4f6   :  { %9919 = vmatprep.subr.bf16.mxu0 %v12041_v55  ;;  %v1683_v46 = vld [vmem:[#allocation8 + $0x1fe8] sm:$0xff]  ;;  %v8206_v55 = vmul.f32 %v8138_v39, %v12953_v14  ;;  %v12057_v14 = vld [vmem:[#allocation11 + $0xf0] ss:$8 sps:$4 sm:$0xff]  }
 0x4f7   :  { %v717_v39 = vld [vmem:[#allocation8 + $0x1b8] sm:$0xff] }
 0x4f8   :  { %7768 = vmatpush1.bf16.msra.mxu1 %v11348_v58  ;;  %v12054_v58 = vld [vmem:[#allocation11 + $0xe0] ss:$8 sps:$4 sm:$0xff]   ;;  %v8308_v62 = vadd.f32 %v8240_v49, %v8206_v55  ;;  %v12074_v49 = vld [vmem:[#allocation11 + $0x144] ss:$8 sps:$4 sm:$0xff]  }
 0x4f9   :  { %9920 = vmatpush1.bf16.msra.mxu0 %v12039_v59  ;;  %7769 = vmatprep.subr.bf16.mxu1 %v11365_v60  ;;  %v11445_v59 = vcombine.high %v1675_v42, %v1683_v46  ;;  %v8305_v60 = vadd.f32 %v8228_v52, %v8203_v18  ;;  %v12071_v52 = vld [vmem:[#allocation11 + $0x134] ss:$8 sps:$4 sm:$0xff]  }
 0x4fa   :  { %9921 = vmatprep.subr.bf16.mxu0 %v12044_v13  ;;  %v669_v13 = vld [vmem:[#allocation8 + $0x38] sm:$0xff] }
 0x4fc   :  { %7770 = vmatpush1.bf16.msra.mxu1 %v11364_v8  ;;  %v11444_v8 = vcombine.low %v1675_v42, %v1683_v46  ;;  %v741_v42 = vld [vmem:[#allocation8 + $0x278] sm:$0xff] }
 0x4fd   :  { %9922 = vmatpush1.bf16.msra.mxu0 %v12042_v22  ;;  %7771 = vmatprep.subr.bf16.mxu1 %v11381_v1  ;;  %v10441_v22 = vcombine.high %v669_v13, %v677_v61  ;;  %v8321_v1 = vmax.f32 %v8305_v60, 0.0  ;;  %v12069_v46 = vld [vmem:[#allocation11 + $0x130] ss:$8 sps:$4 sm:$0xff]   ;;  %v12072_v60 = vld [vmem:[#allocation11 + $0x140] ss:$8 sps:$4 sm:$0xff]  }
 0x4fe   :  { %9923 = vmatprep.subr.bf16.mxu0 %v12047_v2  ;;  %v12062_v2 = vld [vmem:[#allocation11 + $0x104] ss:$8 sps:$4 sm:$0xff]  }
 0x500   :  { %7772 = vmatpush1.bf16.msra.mxu1 %v11380_v6  ;;  %v8324_v6 = vmax.f32 %v8308_v62, 0.0  ;;  %v773_v62 = vld [vmem:[#allocation8 + $0x378] sm:$0xff] }
 0x501   :  { %9924 = vmatpush1.bf16.msra.mxu0 %v12045_v7  ;;  %7773 = vmatprep.subr.bf16.mxu1 %v11397_v11  ;;  %v10440_v7 = vcombine.low %v669_v13, %v677_v61  ;;  %v12060_v11 = vld [vmem:[#allocation11 + $0x100] ss:$8 sps:$4 sm:$0xff]   ;;  %v12077_v13 = vld [vmem:[#allocation11 + $0x154] ss:$8 sps:$4 sm:$0xff]  }
 0x502   :  { %9925 = vmatprep.subr.bf16.mxu0 %v12050_v9  ;;  %v8337_v9 = vpack.c.bf16 %v8321_v1, %v8321_v1  ;;  %v765_v61 = vld [vmem:[#allocation8 + $0x338] sm:$0xff]  ;;  %v12080_v1 = vld [vmem:[#allocation11 + $0x164] ss:$8 sps:$4 sm:$0xff]  }
 0x503   :  { %v10536_v4 = vcombine.low %v765_v61, %v773_v62 }
 0x504   :  { %7774 = vmatpush1.bf16.msra.mxu1 %v11396_v24  ;;  %v709_v24 = vld [vmem:[#allocation8 + $0x178] sm:$0xff] }
 0x505   :  { %9926 = vmatpush1.bf16.msra.mxu0 %v12048_v26  ;;  %7775 = vmatprep.subr.bf16.mxu1 %v11413_v56  ;;  %v12065_v26 = vld [vmem:[#allocation11 + $0x114] ss:$8 sps:$4 sm:$0xff]   ;;  %v8340_v56 = vpack.c.bf16 %v8324_v6, %v8324_v6  ;;  %v10473_v30 = vcombine.high %v701_v23, %v709_v24  ;;  %v12078_v6 = vld [vmem:[#allocation11 + $0x160] ss:$8 sps:$4 sm:$0xff]  }
 0x506   :  { %9927 = vmatprep.subr.bf16.mxu0 %v12053_v29  ;;  %v12063_v29 = vld [vmem:[#allocation11 + $0x110] ss:$8 sps:$4 sm:$0xff]  }
 0x508   :  { %7776 = vmatpush1.bf16.msra.mxu1 %v11412_v41  ;;  %v725_v41 = vld [vmem:[#allocation8 + $0x1f8] sm:$0xff] }
 0x509   :  { %9928 = vmatpush1.bf16.msra.mxu0 %v12051_v44  ;;  %7777 = vmatprep.subr.bf16.mxu1 %v11429_v48  ;;  %v10472_v44 = vcombine.low %v701_v23, %v709_v24  ;;  %v12066_v48 = vld [vmem:[#allocation11 + $0x120] ss:$8 sps:$4 sm:$0xff]   ;;  %v10489_v18 = vcombine.high %v717_v39, %v725_v41  ;;  %v12081_v24 = vld [vmem:[#allocation11 + $0x170] ss:$8 sps:$4 sm:$0xff]  }
 0x50a   :  { %9929 = vmatprep.subr.bf16.mxu0 %v12056_v53  ;;  %v733_v53 = vld [vmem:[#allocation8 + $0x238] sm:$0xff] }
 0x50b   :  { %v10505_v55 = vcombine.high %v733_v53, %v741_v42 }
 0x50c   :  { %7778 = vmatpush1.bf16.msra.mxu1 %v11428_v20  ;;  %v749_v20 = vld [vmem:[#allocation8 + $0x2b8] sm:$0xff] }
 0x50d   :  { %9930 = vmatpush1.bf16.msra.mxu0 %v12054_v58  ;;  %7779 = vmatprep.subr.bf16.mxu1 %v11445_v59  ;;  %v757_v58 = vld [vmem:[#allocation8 + $0x2f8] sm:$0xff]  ;;  %v10504_v59 = vcombine.low %v733_v53, %v741_v42  ;;  %v12092_v42 = vld [vmem:[#allocation11 + $0x1a4] ss:$8 sps:$4 sm:$0xff]  }
 0x50e   :  { %9931 = vmatprep.subr.bf16.mxu0 %v12059_v35  ;;  %v10521_v35 = vcombine.high %v749_v20, %v757_v58 }
 0x510   :  { %7780 = vmatpush1.bf16.msra.mxu1 %v11444_v8  ;;  %v10520_v8 = vcombine.low %v749_v20, %v757_v58  ;;  %v12095_v58 = vld [vmem:[#allocation11 + $0x1b4] ss:$8 sps:$4 sm:$0xff]  }
 0x511   :  { %9932 = vmatpush1.bf16.msra.mxu0 %v12057_v14  ;;  %7954 = vmatprep.subr.bf16.mxu1 %v10441_v22  ;;  %v12075_v14 = vld [vmem:[#allocation11 + $0x150] ss:$8 sps:$4 sm:$0xff]   ;;  %v10537_v22 = vcombine.high %v765_v61, %v773_v62  ;;  %v12098_v62 = vld [vmem:[#allocation11 + $0x1c4] ss:$8 sps:$4 sm:$0xff]  }
 0x512   :  { %9942 = vmatprep.subr.bf16.mxu0 %v12062_v2  ;;  %v781_v2 = vld [vmem:[#allocation8 + $0x3b8] sm:$0xff] }
 0x513   :  { %7782 = vmatmul.mubr.bf16.vlgmr.msra.gmra.mrb[20].mxu1 %v12879_v31  ;;  %v10552_v23 = vcombine.low %v781_v2, %v789_v3 }
 0x514   :  { %9934 = vmatmul.mubr.bf16.vlgmr.msra.gmra.mrb[20].mxu0 %v8337_v9  ;;  %7955 = vmatpush1.bf16.msra.mxu1 %v10440_v7  ;;  %v10553_v7 = vcombine.high %v781_v2, %v789_v3  ;;  %v797_v9 = vld [vmem:[#allocation8 + $0x438] sm:$0xff]  ;;  %v8134_v3 = vrot.slane %v12971_v32, %v12852_v40 }
 0x515   :  { %7986 = vmatprep.mubr.bf16.mxu1 %v12830_v36  ;;  %9943 = vmatpush1.bf16.msra.mxu0 %v12060_v11  ;;  %v10488_v36 = vcombine.low %v717_v39, %v725_v41  ;;  %v12083_v11 = vld [vmem:[#allocation11 + $0x174] ss:$8 sps:$4 sm:$0xff]  }
 0x516   :  { %9974 = vmatprep.mubr.bf16.mxu0 %v8340_v56  ;;  %7956 = vmatprep.subr.bf16.mxu1 %v10457_v12  ;;  %v805_v12 = vld [vmem:[#allocation8 + $0x478] sm:$0xff]  ;;  %v12086_v56 = vld [vmem:[#allocation11 + $0x184] ss:$8 sps:$4 sm:$0xff]  }
 0x517   :  { %9944 = vmatprep.subr.bf16.mxu0 %v12065_v26  ;;  %v10569_v26 = vcombine.high %v797_v9, %v805_v12  ;;  %v12089_v41 = vld [vmem:[#allocation11 + $0x194] ss:$8 sps:$4 sm:$0xff]  }
 0x518   :  { %7957 = vmatpush1.bf16.msra.mxu1 %v10456_v27  ;;  %v813_v27 = vld [vmem:[#allocation8 + $0x4b8] sm:$0xff] }
 0x519   :  { %9945 = vmatpush1.bf16.msra.mxu0 %v12063_v29  ;;  %7958 = vmatprep.subr.bf16.mxu1 %v10473_v30  ;;  %v821_v29 = vld [vmem:[#allocation8 + $0x4f8] sm:$0xff]  ;;  %v10568_v30 = vcombine.low %v797_v9, %v805_v12 }
 0x51a   :  { %9946 = vmatprep.subr.bf16.mxu0 %v12068_v33  ;;  %v12084_v33 = vld [vmem:[#allocation11 + $0x180] ss:$8 sps:$4 sm:$0xff]   ;;  %v10585_v39 = vcombine.high %v813_v27, %v821_v29  ;;  %v12099_v12 = vld [vmem:[#allocation11 + $0x1d0] ss:$8 sps:$4 sm:$0xff]  }
 0x51c   :  { %7959 = vmatpush1.bf16.msra.mxu1 %v10472_v44  ;;  %v829_v44 = vld [vmem:[#allocation8 + $0x538] sm:$0xff] }
 0x51d   :  { %9947 = vmatpush1.bf16.msra.mxu0 %v12066_v48  ;;  %7960 = vmatprep.subr.bf16.mxu1 %v10489_v18  ;;  %v837_v48 = vld [vmem:[#allocation8 + $0x578] sm:$0xff]  ;;  %v10584_v18 = vcombine.low %v813_v27, %v821_v29 }
 0x51e   :  { %9948 = vmatprep.subr.bf16.mxu0 %v12071_v52  ;;  %v12087_v52 = vld [vmem:[#allocation11 + $0x190] ss:$8 sps:$4 sm:$0xff]   ;;  %v10601_v53 = vcombine.high %v829_v44, %v837_v48 }
 0x51f   :  { %v909_v27 = vld [vmem:[#allocation8 + $0x7b8] sm:$0xff] }
 0x520   :  { %7961 = vmatpush1.bf16.msra.mxu1 %v10488_v36  ;;  %v845_v36 = vld [vmem:[#allocation8 + $0x5b8] sm:$0xff] }
 0x521   :  { %9949 = vmatpush1.bf16.msra.mxu0 %v12069_v46  ;;  %7962 = vmatprep.subr.bf16.mxu1 %v10505_v55  ;;  %v853_v46 = vld [vmem:[#allocation8 + $0x5f8] sm:$0xff]  ;;  %v10600_v55 = vcombine.low %v829_v44, %v837_v48 }
 0x522   :  { %9950 = vmatprep.subr.bf16.mxu0 %v12074_v49  ;;  %v12090_v49 = vld [vmem:[#allocation11 + $0x1a0] ss:$8 sps:$4 sm:$0xff]   ;;  %v10617_v20 = vcombine.high %v845_v36, %v853_v46  ;;  %v917_v29 = vld [vmem:[#allocation8 + $0x7f8] sm:$0xff] }
 0x523   :  { %v925_v48 = vld [vmem:[#allocation8 + $0x838] sm:$0xff] }
 0x524   :  { %7963 = vmatpush1.bf16.msra.mxu1 %v10504_v59  ;;  %v861_v59 = vld [vmem:[#allocation8 + $0x638] sm:$0xff] }
 0x525   :  { %9951 = vmatpush1.bf16.msra.mxu0 %v12072_v60  ;;  %7964 = vmatprep.subr.bf16.mxu1 %v10521_v35  ;;  %v869_v60 = vld [vmem:[#allocation8 + $0x678] sm:$0xff]  ;;  %v10616_v35 = vcombine.low %v845_v36, %v853_v46 }
 0x526   :  { %9952 = vmatprep.subr.bf16.mxu0 %v12077_v13  ;;  %v12093_v13 = vld [vmem:[#allocation11 + $0x1b0] ss:$8 sps:$4 sm:$0xff]   ;;  %v10633_v61 = vcombine.high %v861_v59, %v869_v60 }
 0x527   :  { %v941_v46 = vld [vmem:[#allocation8 + $0x8b8] sm:$0xff] }
 0x528   :  { %7965 = vmatpush1.bf16.msra.mxu1 %v10520_v8  ;;  %v877_v8 = vld [vmem:[#allocation8 + $0x6b8] sm:$0xff] }
 0x529   :  { %9953 = vmatpush1.bf16.msra.mxu0 %v12075_v14  ;;  %7966 = vmatprep.subr.bf16.mxu1 %v10537_v22  ;;  %v885_v14 = vld [vmem:[#allocation8 + $0x6f8] sm:$0xff]  ;;  %v10632_v22 = vcombine.low %v861_v59, %v869_v60 }
 0x52a   :  { %9954 = vmatprep.subr.bf16.mxu0 %v12080_v1  ;;  %v12096_v1 = vld [vmem:[#allocation11 + $0x1c0] ss:$8 sps:$4 sm:$0xff]   ;;  %v10649_v2 = vcombine.high %v877_v8, %v885_v14  ;;  %v10648_v9 = vcombine.low %v877_v8, %v885_v14  ;;  %v12111_v14 = vld [vmem:[#allocation11 + $0x210] ss:$8 sps:$4 sm:$0xff]  }
 0x52c   :  { %7967 = vmatpush1.bf16.msra.mxu1 %v10536_v4  ;;  %v12101_v4 = vld [vmem:[#allocation11 + $0x1d4] ss:$8 sps:$4 sm:$0xff]  }
 0x52d   :  { %9955 = vmatpush1.bf16.msra.mxu0 %v12078_v6  ;;  %7968 = vmatprep.subr.bf16.mxu1 %v10553_v7  ;;  %v893_v6 = vld [vmem:[#allocation8 + $0x738] sm:$0xff] }
 0x52e   :  { %9956 = vmatprep.subr.bf16.mxu0 %v12083_v11  ;;  %v901_v7 = vld [vmem:[#allocation8 + $0x778] sm:$0xff]  ;;  %v8146_v11 = vrot.slane %v12971_v32, %v12855_v45  ;;  %v8248_v32 = vrot.slane %v12975_v43, %v12855_v45 }
 0x530   :  { %7969 = vmatpush1.bf16.msra.mxu1 %v10552_v23  ;;  %v10665_v23 = vcombine.high %v893_v6, %v901_v7 }
 0x531   :  { %9957 = vmatpush1.bf16.msra.mxu0 %v12081_v24  ;;  %7970 = vmatprep.subr.bf16.mxu1 %v10569_v26  ;;  %v8205_v24 = vmul.f32 %v8134_v3, %v12951_v54  ;;  %v8236_v26 = vrot.slane %v12975_v43, %v12852_v40  ;;  %v12107_v54 = vld [vmem:[#allocation11 + $0x1f4] ss:$8 sps:$4 sm:$0xff]   ;;  %v12110_v43 = vld [vmem:[#allocation11 + $0x204] ss:$8 sps:$4 sm:$0xff]  }
 0x532   :  { %9958 = vmatprep.subr.bf16.mxu0 %v12086_v56  ;;  %v12104_v56 = vld [vmem:[#allocation11 + $0x1e4] ss:$8 sps:$4 sm:$0xff]   ;;  %v981_v3 = vld [vmem:[#allocation8 + $0x9f8] sm:$0xff] }
 0x533   :  { %v8307_v44 = vadd.f32 %v8236_v26, %v8205_v24  ;;  %v12122_v24 = vld [vmem:[#allocation11 + $0x244] ss:$8 sps:$4 sm:$0xff]   ;;  %v1005_v26 = vld [vmem:[#allocation8 + $0xab8] sm:$0xff] }
 0x534   :  { %7971 = vmatpush1.bf16.msra.mxu1 %v10568_v30  ;;  %v8208_v30 = vmul.f32 %v8146_v11, %v12945_v63  ;;  %v12105_v63 = vld [vmem:[#allocation11 + $0x1f0] ss:$8 sps:$4 sm:$0xff]  }
 0x535   :  { %9959 = vmatpush1.bf16.msra.mxu0 %v12084_v33  ;;  %7972 = vmatprep.subr.bf16.mxu1 %v10585_v39  ;;  %v10664_v33 = vcombine.low %v893_v6, %v901_v7  ;;  %v12102_v39 = vld [vmem:[#allocation11 + $0x1e0] ss:$8 sps:$4 sm:$0xff]   ;;  %v8323_v36 = vmax.f32 %v8307_v44, 0.0  ;;  %v12119_v7 = vld [vmem:[#allocation11 + $0x234] ss:$8 sps:$4 sm:$0xff]  }
 0x536   :  { %9960 = vmatprep.subr.bf16.mxu0 %v12089_v41  ;;  %v10681_v41 = vcombine.high %v909_v27, %v917_v29  ;;  %v989_v11 = vld [vmem:[#allocation8 + $0xa38] sm:$0xff] }
 0x537   :  { %v8339_v59 = vpack.c.bf16 %v8323_v36, %v8323_v36  ;;  %v12123_v44 = vld [vmem:[#allocation11 + $0x250] ss:$8 sps:$4 sm:$0xff]   ;;  %v12131_v36 = vld [vmem:[#allocation11 + $0x274] ss:$8 sps:$4 sm:$0xff]  }
 0x538   :  { %7973 = vmatpush1.bf16.msra.mxu1 %v10584_v18  ;;  %v933_v18 = vld [vmem:[#allocation8 + $0x878] sm:$0xff] }
 0x539   :  { %9961 = vmatpush1.bf16.msra.mxu0 %v12087_v52  ;;  %7974 = vmatprep.subr.bf16.mxu1 %v10601_v53  ;;  %v8310_v52 = vadd.f32 %v8248_v32, %v8208_v30  ;;  %v10680_v53 = vcombine.low %v909_v27, %v917_v29  ;;  %v12120_v29 = vld [vmem:[#allocation11 + $0x240] ss:$8 sps:$4 sm:$0xff]   ;;  %v12125_v32 = vld [vmem:[#allocation11 + $0x254] ss:$8 sps:$4 sm:$0xff]  }
 0x53a   :  { %9962 = vmatprep.subr.bf16.mxu0 %v12092_v42  ;;  %v10697_v42 = vcombine.high %v925_v48, %v933_v18 }
 0x53c   :  { %7975 = vmatpush1.bf16.msra.mxu1 %v10600_v55  ;;  %v949_v55 = vld [vmem:[#allocation8 + $0x8f8] sm:$0xff] }
 0x53d   :  { %9963 = vmatpush1.bf16.msra.mxu0 %v12090_v49  ;;  %7976 = vmatprep.subr.bf16.mxu1 %v10617_v20  ;;  %v8326_v49 = vmax.f32 %v8310_v52, 0.0  ;;  %v10696_v20 = vcombine.low %v925_v48, %v933_v18  ;;  %v10713_v60 = vcombine.high %v941_v46, %v949_v55  ;;  %v10712_v8 = vcombine.low %v941_v46, %v949_v55  ;;  %v12128_v48 = vld [vmem:[#allocation11 + $0x264] ss:$8 sps:$4 sm:$0xff]   ;;  %v1037_v18 = vld [vmem:[#allocation8 + $0xbb8] sm:$0xff] }
 0x53e   :  { %9964 = vmatprep.subr.bf16.mxu0 %v12095_v58  ;;  %v12108_v58 = vld [vmem:[#allocation11 + $0x200] ss:$8 sps:$4 sm:$0xff]   ;;  %v1045_v52 = vld [vmem:[#allocation8 + $0xbf8] sm:$0xff] }
 0x53f   :  { %v1061_v46 = vld [vmem:[#allocation8 + $0xc78] sm:$0xff]  ;;  %v10808_v55 = vcombine.low %v1037_v18, %v1045_v52 }
 0x540   :  { %7977 = vmatpush1.bf16.msra.mxu1 %v10616_v35  ;;  %v957_v35 = vld [vmem:[#allocation8 + $0x938] sm:$0xff] }
 0x541   :  { %9965 = vmatpush1.bf16.msra.mxu0 %v12093_v13  ;;  %7978 = vmatprep.subr.bf16.mxu1 %v10633_v61  ;;  %v965_v13 = vld [vmem:[#allocation8 + $0x978] sm:$0xff] }
 0x542   :  { %9966 = vmatprep.subr.bf16.mxu0 %v12098_v62  ;;  %v12113_v61 = vld [vmem:[#allocation11 + $0x214] ss:$8 sps:$4 sm:$0xff]   ;;  %v8342_v62 = vpack.c.bf16 %v8326_v49, %v8326_v49  ;;  %v12129_v49 = vld [vmem:[#allocation11 + $0x270] ss:$8 sps:$4 sm:$0xff]  }
 0x544   :  { %7979 = vmatpush1.bf16.msra.mxu1 %v10632_v22  ;;  %v10729_v22 = vcombine.high %v957_v35, %v965_v13 }
 0x545   :  { %9967 = vmatpush1.bf16.msra.mxu0 %v12096_v1  ;;  %7980 = vmatprep.subr.bf16.mxu1 %v10649_v2  ;;  %v12116_v1 = vld [vmem:[#allocation11 + $0x224] ss:$8 sps:$4 sm:$0xff]   ;;  %v973_v2 = vld [vmem:[#allocation8 + $0x9b8] sm:$0xff] }
 0x546   :  { %9968 = vmatprep.subr.bf16.mxu0 %v12101_v4  ;;  %v10728_v4 = vcombine.low %v957_v35, %v965_v13  ;;  %v10745_v6 = vcombine.high %v973_v2, %v981_v3  ;;  %v12132_v13 = vld [vmem:[#allocation11 + $0x280] ss:$8 sps:$4 sm:$0xff]  }
 0x548   :  { %7981 = vmatpush1.bf16.msra.mxu1 %v10648_v9  ;;  %v997_v9 = vld [vmem:[#allocation8 + $0xa78] sm:$0xff] }
 0x549   :  { %9969 = vmatpush1.bf16.msra.mxu0 %v12099_v12  ;;  %7982 = vmatprep.subr.bf16.mxu1 %v10665_v23  ;;  %v12117_v12 = vld [vmem:[#allocation11 + $0x230] ss:$8 sps:$4 sm:$0xff]   ;;  %v10761_v23 = vcombine.high %v989_v11, %v997_v9  ;;  %v10760_v27 = vcombine.low %v989_v11, %v997_v9  ;;  %v12143_v9 = vld [vmem:[#allocation11 + $0x2b4] ss:$8 sps:$4 sm:$0xff]  }
 0x54a   :  { %9970 = vmatprep.subr.bf16.mxu0 %v12104_v56  ;;  %v1013_v56 = vld [vmem:[#allocation8 + $0xaf8] sm:$0xff] }
 0x54b   :  { %v10777_v30 = vcombine.high %v1005_v26, %v1013_v56 }
 0x54c   :  { %7983 = vmatpush1.bf16.msra.mxu1 %v10664_v33  ;;  %v1021_v33 = vld [vmem:[#allocation8 + $0xb38] sm:$0xff] }
 0x54d   :  { %9971 = vmatpush1.bf16.msra.mxu0 %v12102_v39  ;;  %7984 = vmatprep.subr.bf16.mxu1 %v10681_v41  ;;  %v1029_v39 = vld [vmem:[#allocation8 + $0xb78] sm:$0xff]  ;;  %v10776_v41 = vcombine.low %v1005_v26, %v1013_v56  ;;  %v12146_v56 = vld [vmem:[#allocation11 + $0x2c4] ss:$8 sps:$4 sm:$0xff]  }
 0x54e   :  { %9972 = vmatprep.subr.bf16.mxu0 %v12107_v54  ;;  %v10793_v54 = vcombine.high %v1021_v33, %v1029_v39 }
 0x550   :  { %7985 = vmatpush1.bf16.msra.mxu1 %v10680_v53  ;;  %v10792_v53 = vcombine.low %v1021_v33, %v1029_v39  ;;  %v13011_v39 = vld [vmem:[#allocation10] ss:$2 sm:$0xff] }
 0x551   :  { %9973 = vmatpush1.bf16.msra.mxu0 %v12105_v63  ;;  %7995 = vmatprep.subr.bf16.mxu1 %v10697_v42  ;;  %v12126_v63 = vld [vmem:[#allocation11 + $0x260] ss:$8 sps:$4 sm:$0xff]   ;;  %v10809_v42 = vcombine.high %v1037_v18, %v1045_v52  ;;  %v8154_v18 = vrot.slane %v13011_v39, %v12863_v0 }
 0x552   :  { %9983 = vmatprep.subr.bf16.mxu0 %v12110_v43  ;;  %v1053_v43 = vld [vmem:[#allocation8 + $0xc38] sm:$0xff] }
 0x553   :  { %7987 = vmatmul.mubr.bf16.vlgmr.msra.gmra.mrb[24].mxu1 %v12832_v37  ;;  %v12114_v37 = vld [vmem:[#allocation11 + $0x220] ss:$8 sps:$4 sm:$0xff]   ;;  %v10824_v35 = vcombine.low %v1053_v43, %v1061_v46 }
 0x554   :  { %9975 = vmatmul.mubr.bf16.vlgmr.msra.gmra.mrb[20].mxu0 %v8339_v59  ;;  %7996 = vmatpush1.bf16.msra.mxu1 %v10696_v20  ;;  %v10825_v20 = vcombine.high %v1053_v43, %v1061_v46  ;;  %v1069_v59 = vld [vmem:[#allocation8 + $0xcb8] sm:$0xff]  ;;  %v12152_v46 = vld [vmem:[#allocation11 + $0x2e4] ss:$8 sps:$4 sm:$0xff]  }
 0x555   :  { %8027 = vmatprep.mubr.bf16.mxu1 %v12848_v25  ;;  %9984 = vmatpush1.bf16.msra.mxu0 %v12108_v58  ;;  %v10744_v25 = vcombine.low %v973_v2, %v981_v3  ;;  %v12134_v58 = vld [vmem:[#allocation11 + $0x284] ss:$8 sps:$4 sm:$0xff]  }
 0x556   :  { %10015 = vmatprep.mubr.bf16.mxu0 %v8342_v62  ;;  %7997 = vmatprep.subr.bf16.mxu1 %v10713_v60  ;;  %v1077_v60 = vld [vmem:[#allocation8 + $0xcf8] sm:$0xff]  ;;  %v12140_v3 = vld [vmem:[#allocation11 + $0x2a4] ss:$8 sps:$4 sm:$0xff]  }
 0x557   :  { %9985 = vmatprep.subr.bf16.mxu0 %v12113_v61  ;;  %v10841_v61 = vcombine.high %v1069_v59, %v1077_v60  ;;  %v12137_v62 = vld [vmem:[#allocation11 + $0x294] ss:$8 sps:$4 sm:$0xff]  }
 0x558   :  { %7998 = vmatpush1.bf16.msra.mxu1 %v10712_v8  ;;  %v1085_v8 = vld [vmem:[#allocation8 + $0xd38] sm:$0xff] }
 0x559   :  { %9986 = vmatpush1.bf16.msra.mxu0 %v12111_v14  ;;  %7999 = vmatprep.subr.bf16.mxu1 %v10729_v22  ;;  %v1093_v14 = vld [vmem:[#allocation8 + $0xd78] sm:$0xff]  ;;  %v10840_v22 = vcombine.low %v1069_v59, %v1077_v60  ;;  %v12150_v60 = vld [vmem:[#allocation11 + $0x2e0] ss:$8 sps:$4 sm:$0xff]  }
 0x55a   :  { %9987 = vmatprep.subr.bf16.mxu0 %v12116_v1  ;;  %v12135_v1 = vld [vmem:[#allocation11 + $0x290] ss:$8 sps:$4 sm:$0xff]   ;;  %v10857_v2 = vcombine.high %v1085_v8, %v1093_v14 }
 0x55c   :  { %8000 = vmatpush1.bf16.msra.mxu1 %v10728_v4  ;;  %v1101_v4 = vld [vmem:[#allocation8 + $0xdb8] sm:$0xff] }
 0x55d   :  { %9988 = vmatpush1.bf16.msra.mxu0 %v12114_v37  ;;  %8001 = vmatprep.subr.bf16.mxu1 %v10745_v6  ;;  %v1109_v37 = vld [vmem:[#allocation8 + $0xdf8] sm:$0xff]  ;;  %v10856_v6 = vcombine.low %v1085_v8, %v1093_v14 }
 0x55e   :  { %9989 = vmatprep.subr.bf16.mxu0 %v12119_v7  ;;  %v12138_v7 = vld [vmem:[#allocation11 + $0x2a0] ss:$8 sps:$4 sm:$0xff]   ;;  %v10873_v11 = vcombine.high %v1101_v4, %v1109_v37 }
 0x560   :  { %8002 = vmatpush1.bf16.msra.mxu1 %v10744_v25  ;;  %v1117_v25 = vld [vmem:[#allocation8 + $0xe38] sm:$0xff] }
 0x561   :  { %9990 = vmatpush1.bf16.msra.mxu0 %v12117_v12  ;;  %8003 = vmatprep.subr.bf16.mxu1 %v10761_v23  ;;  %v1125_v12 = vld [vmem:[#allocation8 + $0xe78] sm:$0xff]  ;;  %v10872_v23 = vcombine.low %v1101_v4, %v1109_v37 }
 0x562   :  { %9991 = vmatprep.subr.bf16.mxu0 %v12122_v24  ;;  %v12141_v24 = vld [vmem:[#allocation11 + $0x2b0] ss:$8 sps:$4 sm:$0xff]   ;;  %v10889_v26 = vcombine.high %v1117_v25, %v1125_v12 }
 0x563   :  { %v1205_v4 = vld [vmem:[#allocation8 + $0x10f8] sm:$0xff] }
 0x564   :  { %8004 = vmatpush1.bf16.msra.mxu1 %v10760_v27  ;;  %v1133_v27 = vld [vmem:[#allocation8 + $0xeb8] sm:$0xff] }
 0x565   :  { %9992 = vmatpush1.bf16.msra.mxu0 %v12120_v29  ;;  %8005 = vmatprep.subr.bf16.mxu1 %v10777_v30  ;;  %v1141_v29 = vld [vmem:[#allocation8 + $0xef8] sm:$0xff]  ;;  %v10888_v30 = vcombine.low %v1117_v25, %v1125_v12 }
 0x566   :  { %9993 = vmatprep.subr.bf16.mxu0 %v12125_v32  ;;  %v12144_v32 = vld [vmem:[#allocation11 + $0x2c0] ss:$8 sps:$4 sm:$0xff]   ;;  %v10905_v33 = vcombine.high %v1133_v27, %v1141_v29  ;;  %v10904_v52 = vcombine.low %v1133_v27, %v1141_v29  ;;  %v1213_v25 = vld [vmem:[#allocation8 + $0x1138] sm:$0xff]  ;;  %v12164_v29 = vld [vmem:[#allocation11 + $0x324] ss:$8 sps:$4 sm:$0xff]  }
 0x567   :  { %v1221_v12 = vld [vmem:[#allocation8 + $0x1178] sm:$0xff] }
 0x568   :  { %8006 = vmatpush1.bf16.msra.mxu1 %v10776_v41  ;;  %v8142_v41 = vrot.slane %v13011_v39, %v12896_v28  ;;  %v10985_v27 = vcombine.high %v1213_v25, %v1221_v12 }
 0x569   :  { %9994 = vmatpush1.bf16.msra.mxu0 %v12123_v44  ;;  %8007 = vmatprep.subr.bf16.mxu1 %v10793_v54  ;;  %v12149_v44 = vld [vmem:[#allocation11 + $0x2d4] ss:$8 sps:$4 sm:$0xff]  }
 0x56a   :  { %9995 = vmatprep.subr.bf16.mxu0 %v12128_v48  ;;  %v1149_v54 = vld [vmem:[#allocation8 + $0xf38] sm:$0xff] }
 0x56b   :  { %v1157_v48 = vld [vmem:[#allocation8 + $0xf78] sm:$0xff] }
 0x56c   :  { %8008 = vmatpush1.bf16.msra.mxu1 %v10792_v53  ;;  %v12147_v53 = vld [vmem:[#allocation11 + $0x2d0] ss:$8 sps:$4 sm:$0xff]   ;;  %v10920_v59 = vcombine.low %v1149_v54, %v1157_v48 }
 0x56d   :  { %9996 = vmatpush1.bf16.msra.mxu0 %v12126_v63  ;;  %8009 = vmatprep.subr.bf16.mxu1 %v10809_v42  ;;  %v10921_v63 = vcombine.high %v1149_v54, %v1157_v48  ;;  %v8207_v42 = vmul.f32 %v8142_v41, %v12943_v15  ;;  %v1245_v54 = vld [vmem:[#allocation8 + $0x1238] sm:$0xff] }
 0x56e   :  { %9997 = vmatprep.subr.bf16.mxu0 %v12131_v36  ;;  %v13018_v36 = vld [vmem:[#allocation10 + $0x1] ss:$2 sm:$0xff]  ;;  %v1253_v48 = vld [vmem:[#allocation8 + $0x1278] sm:$0xff] }
 0x56f   :  { %v8244_v43 = vrot.slane %v13018_v36, %v12896_v28 }
 0x570   :  { %8010 = vmatpush1.bf16.msra.mxu1 %v10808_v55  ;;  %v1165_v55 = vld [vmem:[#allocation8 + $0xfb8] sm:$0xff] }
 0x571   :  { %9998 = vmatpush1.bf16.msra.mxu0 %v12129_v49  ;;  %8011 = vmatprep.subr.bf16.mxu1 %v10825_v20  ;;  %v1173_v49 = vld [vmem:[#allocation8 + $0xff8] sm:$0xff]  ;;  %v8210_v20 = vmul.f32 %v8154_v18, %v12985_v17 }
 0x572   :  { %9999 = vmatprep.subr.bf16.mxu0 %v12134_v58  ;;  %v8256_v58 = vrot.slane %v13018_v36, %v12863_v0  ;;  %v10937_v15 = vcombine.high %v1165_v55, %v1173_v49  ;;  %v10936_v14 = vcombine.low %v1165_v55, %v1173_v49  ;;  %v12153_v17 = vld [vmem:[#allocation11 + $0x2f0] ss:$8 sps:$4 sm:$0xff]   ;;  %v12173_v49 = vld [vmem:[#allocation11 + $0x354] ss:$8 sps:$4 sm:$0xff]  }
 0x573   :  { %v12165_v18 = vld [vmem:[#allocation11 + $0x330] ss:$8 sps:$4 sm:$0xff]  }
 0x574   :  { %8012 = vmatpush1.bf16.msra.mxu1 %v10824_v35  ;;  %v8309_v35 = vadd.f32 %v8244_v43, %v8207_v42  ;;  %v8312_v8 = vadd.f32 %v8256_v58, %v8210_v20  ;;  %v1269_v42 = vld [vmem:[#allocation8 + $0x12f8] sm:$0xff]  ;;  %v11016_v43 = vcombine.low %v1245_v54, %v1253_v48 }
 0x575   :  { %10000 = vmatpush1.bf16.msra.mxu0 %v12132_v13  ;;  %8013 = vmatprep.subr.bf16.mxu1 %v10841_v61  ;;  %v12155_v13 = vld [vmem:[#allocation11 + $0x2f4] ss:$8 sps:$4 sm:$0xff]  }
 0x576   :  { %10001 = vmatprep.subr.bf16.mxu0 %v12137_v62  ;;  %v1181_v61 = vld [vmem:[#allocation8 + $0x1038] sm:$0xff]  ;;  %v8328_v37 = vmax.f32 %v8312_v8, 0.0 }
 0x577   :  { %v1189_v62 = vld [vmem:[#allocation8 + $0x1078] sm:$0xff] }
 0x578   :  { %8014 = vmatpush1.bf16.msra.mxu1 %v10840_v22  ;;  %v10953_v22 = vcombine.high %v1181_v61, %v1189_v62  ;;  %v1277_v20 = vld [vmem:[#allocation8 + $0x1338] sm:$0xff] }
 0x579   :  { %10002 = vmatpush1.bf16.msra.mxu0 %v12135_v1  ;;  %8015 = vmatprep.subr.bf16.mxu1 %v10857_v2  ;;  %v8325_v1 = vmax.f32 %v8309_v35, 0.0  ;;  %v12158_v2 = vld [vmem:[#allocation11 + $0x304] ss:$8 sps:$4 sm:$0xff]   ;;  %v1285_v58 = vld [vmem:[#allocation8 + $0x1378] sm:$0xff] }
 0x57a   :  { %10003 = vmatprep.subr.bf16.mxu0 %v12140_v3  ;;  %v1197_v3 = vld [vmem:[#allocation8 + $0x10b8] sm:$0xff]  ;;  %v12176_v35 = vld [vmem:[#allocation11 + $0x364] ss:$8 sps:$4 sm:$0xff]  }
 0x57c   :  { %8016 = vmatpush1.bf16.msra.mxu1 %v10856_v6  ;;  %v10952_v6 = vcombine.low %v1181_v61, %v1189_v62  ;;  %v1301_v61 = vld [vmem:[#allocation8 + $0x13f8] sm:$0xff] }
 0x57d   :  { %10004 = vmatpush1.bf16.msra.mxu0 %v12138_v7  ;;  %8017 = vmatprep.subr.bf16.mxu1 %v10873_v11  ;;  %v12156_v7 = vld [vmem:[#allocation11 + $0x300] ss:$8 sps:$4 sm:$0xff]   ;;  %v8341_v11 = vpack.c.bf16 %v8325_v1, %v8325_v1 }
 0x57e   :  { %10005 = vmatprep.subr.bf16.mxu0 %v12143_v9  ;;  %v10969_v9 = vcombine.high %v1197_v3, %v1205_v4 }
 0x580   :  { %8018 = vmatpush1.bf16.msra.mxu1 %v10872_v23  ;;  %v12161_v23 = vld [vmem:[#allocation11 + $0x314] ss:$8 sps:$4 sm:$0xff]  }
 0x581   :  { %10006 = vmatpush1.bf16.msra.mxu0 %v12141_v24  ;;  %8019 = vmatprep.subr.bf16.mxu1 %v10889_v26  ;;  %v8344_v24 = vpack.c.bf16 %v8328_v37, %v8328_v37  ;;  %v10968_v26 = vcombine.low %v1197_v3, %v1205_v4  ;;  %v12179_v3 = vld [vmem:[#allocation11 + $0x374] ss:$8 sps:$4 sm:$0xff]  }
 0x582   :  { %10007 = vmatprep.subr.bf16.mxu0 %v12146_v56  ;;  %v12159_v56 = vld [vmem:[#allocation11 + $0x310] ss:$8 sps:$4 sm:$0xff]  }
 0x583   :  { %v1309_v4 = vld [vmem:[#allocation8 + $0x1438] sm:$0xff] }
 0x584   :  { %8020 = vmatpush1.bf16.msra.mxu1 %v10888_v30  ;;  %v1229_v30 = vld [vmem:[#allocation8 + $0x11b8] sm:$0xff] }
 0x585   :  { %10008 = vmatpush1.bf16.msra.mxu0 %v12144_v32  ;;  %8021 = vmatprep.subr.bf16.mxu1 %v10905_v33  ;;  %v1237_v32 = vld [vmem:[#allocation8 + $0x11f8] sm:$0xff]  ;;  %v10984_v33 = vcombine.low %v1213_v25, %v1221_v12 }
 0x586   :  { %10009 = vmatprep.subr.bf16.mxu0 %v12149_v44  ;;  %v11001_v41 = vcombine.high %v1229_v30, %v1237_v32  ;;  %v12167_v44 = vld [vmem:[#allocation11 + $0x334] ss:$8 sps:$4 sm:$0xff]  }
 0x587   :  { %v1317_v37 = vld [vmem:[#allocation8 + $0x1478] sm:$0xff] }
 0x588   :  { %8022 = vmatpush1.bf16.msra.mxu1 %v10904_v52  ;;  %v11017_v52 = vcombine.high %v1245_v54, %v1253_v48  ;;  %v1325_v25 = vld [vmem:[#allocation8 + $0x14b8] sm:$0xff]  ;;  %v12186_v48 = vld [vmem:[#allocation11 + $0x3a0] ss:$8 sps:$4 sm:$0xff]  }
 0x589   :  { %10010 = vmatpush1.bf16.msra.mxu0 %v12147_v53  ;;  %8023 = vmatprep.subr.bf16.mxu1 %v10921_v63  ;;  %v12170_v53 = vld [vmem:[#allocation11 + $0x344] ss:$8 sps:$4 sm:$0xff]   ;;  %v1261_v63 = vld [vmem:[#allocation8 + $0x12b8] sm:$0xff] }
 0x58a   :  { %10011 = vmatprep.subr.bf16.mxu0 %v12152_v46  ;;  %v12168_v46 = vld [vmem:[#allocation11 + $0x340] ss:$8 sps:$4 sm:$0xff]   ;;  %v11033_v55 = vcombine.high %v1261_v63, %v1269_v42  ;;  %v1333_v12 = vld [vmem:[#allocation8 + $0x14f8] sm:$0xff] }
 0x58c   :  { %8024 = vmatpush1.bf16.msra.mxu1 %v10920_v59  ;;  %v11032_v59 = vcombine.low %v1261_v63, %v1269_v42  ;;  %v12189_v42 = vld [vmem:[#allocation11 + $0x3b0] ss:$8 sps:$4 sm:$0xff]  }
 0x58d   :  { %10012 = vmatpush1.bf16.msra.mxu0 %v12150_v60  ;;  %8025 = vmatprep.subr.bf16.mxu1 %v10937_v15  ;;  %v12171_v60 = vld [vmem:[#allocation11 + $0x350] ss:$8 sps:$4 sm:$0xff]   ;;  %v11049_v15 = vcombine.high %v1277_v20, %v1285_v58 }
 0x58e   :  { %10013 = vmatprep.subr.bf16.mxu0 %v12155_v13  ;;  %v1293_v13 = vld [vmem:[#allocation8 + $0x13b8] sm:$0xff] }
 0x58f   :  { %v11065_v1 = vcombine.high %v1293_v13, %v1301_v61 }
 0x590   :  { %8026 = vmatpush1.bf16.msra.mxu1 %v10936_v14  ;;  %v11048_v14 = vcombine.low %v1277_v20, %v1285_v58  ;;  %v13031_v58 = vld [vmem:[#allocation10 + $0x10] ss:$2 sm:$0xff] }
 0x591   :  { %10014 = vmatpush1.bf16.msra.mxu0 %v12153_v17  ;;  %8036 = vmatprep.subr.bf16.mxu1 %v10953_v22  ;;  %v12174_v22 = vld [vmem:[#allocation11 + $0x360] ss:$8 sps:$4 sm:$0xff]  }
 0x592   :  { %10024 = vmatprep.subr.bf16.mxu0 %v12158_v2 }
 0x593   :  { %8028 = vmatmul.mubr.bf16.vlgmr.msra.gmra.mrb[24].mxu1 %v12883_v38  ;;  %v12162_v38 = vld [vmem:[#allocation11 + $0x320] ss:$8 sps:$4 sm:$0xff]  }
 0x594   :  { %10016 = vmatmul.mubr.bf16.vlgmr.msra.gmra.mrb[20].mxu0 %v8341_v11  ;;  %8037 = vmatpush1.bf16.msra.mxu1 %v10952_v6  ;;  %v11064_v6 = vcombine.low %v1293_v13, %v1301_v61  ;;  %v11081_v11 = vcombine.high %v1309_v4, %v1317_v37  ;;  %v1405_v13 = vld [vmem:[#allocation8 + $0x1738] sm:$0xff] }
 0x595   :  { %8068 = vmatprep.mubr.bf16.mxu1 %v12886_v51  ;;  %10025 = vmatpush1.bf16.msra.mxu0 %v12156_v7  ;;  %v11000_v51 = vcombine.low %v1229_v30, %v1237_v32  ;;  %v12177_v7 = vld [vmem:[#allocation11 + $0x370] ss:$8 sps:$4 sm:$0xff]   ;;  %v11096_v30 = vcombine.low %v1325_v25, %v1333_v12 }
 0x596   :  { %10056 = vmatprep.mubr.bf16.mxu0 %v8344_v24  ;;  %8038 = vmatprep.subr.bf16.mxu1 %v10969_v9  ;;  %v12182_v9 = vld [vmem:[#allocation11 + $0x384] ss:$8 sps:$4 sm:$0xff]   ;;  %v12180_v24 = vld [vmem:[#allocation11 + $0x380] ss:$8 sps:$4 sm:$0xff]   ;;  %v12183_v32 = vld [vmem:[#allocation11 + $0x390] ss:$8 sps:$4 sm:$0xff]  }
 0x597   :  { %10026 = vmatprep.subr.bf16.mxu0 %v12161_v23  ;;  %v11080_v23 = vcombine.low %v1309_v4, %v1317_v37  ;;  %v1413_v61 = vld [vmem:[#allocation8 + $0x1778] sm:$0xff]  ;;  %v12200_v4 = vld [vmem:[#allocation11 + $0x3e4] ss:$8 sps:$4 sm:$0xff]  }
 0x598   :  { %8039 = vmatpush1.bf16.msra.mxu1 %v10968_v26  ;;  %v11097_v26 = vcombine.high %v1325_v25, %v1333_v12  ;;  %v1421_v37 = vld [vmem:[#allocation8 + $0x17b8] sm:$0xff]  ;;  %v12198_v25 = vld [vmem:[#allocation11 + $0x3e0] ss:$8 sps:$4 sm:$0xff]  }
 0x599   :  { %10027 = vmatpush1.bf16.msra.mxu0 %v12159_v56  ;;  %8040 = vmatprep.subr.bf16.mxu1 %v10985_v27  ;;  %v12185_v56 = vld [vmem:[#allocation11 + $0x394] ss:$8 sps:$4 sm:$0xff]  }
 0x59a   :  { %10028 = vmatprep.subr.bf16.mxu0 %v12164_v29  ;;  %v1341_v27 = vld [vmem:[#allocation8 + $0x1538] sm:$0xff] }
 0x59b   :  { %v1349_v29 = vld [vmem:[#allocation8 + $0x1578] sm:$0xff] }
 0x59c   :  { %8041 = vmatpush1.bf16.msra.mxu1 %v10984_v33  ;;  %v11113_v33 = vcombine.high %v1341_v27, %v1349_v29  ;;  %v11112_v54 = vcombine.low %v1341_v27, %v1349_v29 }
 0x59d   :  { %10029 = vmatpush1.bf16.msra.mxu0 %v12162_v38  ;;  %8042 = vmatprep.subr.bf16.mxu1 %v11001_v41  ;;  %v12188_v38 = vld [vmem:[#allocation11 + $0x3a4] ss:$8 sps:$4 sm:$0xff]   ;;  %v1357_v41 = vld [vmem:[#allocation8 + $0x15b8] sm:$0xff] }
 0x59e   :  { %10030 = vmatprep.subr.bf16.mxu0 %v12167_v44  ;;  %v1365_v44 = vld [vmem:[#allocation8 + $0x15f8] sm:$0xff] }
 0x59f   :  { %v11128_v63 = vcombine.low %v1357_v41, %v1365_v44 }
 0x5a0   :  { %8043 = vmatpush1.bf16.msra.mxu1 %v11000_v51  ;;  %v11129_v51 = vcombine.high %v1357_v41, %v1365_v44  ;;  %v12204_v44 = vld [vmem:[#allocation11 + $0x400] ss:$8 sps:$4 sm:$0xff]  }
 0x5a1   :  { %10031 = vmatpush1.bf16.msra.mxu0 %v12165_v18  ;;  %8044 = vmatprep.subr.bf16.mxu1 %v11017_v52  ;;  %v12191_v18 = vld [vmem:[#allocation11 + $0x3b4] ss:$8 sps:$4 sm:$0xff]  }
 0x5a2   :  { %10032 = vmatprep.subr.bf16.mxu0 %v12170_v53  ;;  %v1373_v52 = vld [vmem:[#allocation8 + $0x1638] sm:$0xff] }
 0x5a3   :  { %v1381_v53 = vld [vmem:[#allocation8 + $0x1678] sm:$0xff] }
 0x5a4   :  { %8045 = vmatpush1.bf16.msra.mxu1 %v11016_v43  ;;  %v11145_v43 = vcombine.high %v1373_v52, %v1381_v53  ;;  %v11144_v20 = vcombine.low %v1373_v52, %v1381_v53  ;;  %v12209_v52 = vld [vmem:[#allocation11 + $0x414] ss:$8 sps:$4 sm:$0xff]  }
 0x5a5   :  { %10033 = vmatpush1.bf16.msra.mxu0 %v12168_v46  ;;  %8046 = vmatprep.subr.bf16.mxu1 %v11033_v55  ;;  %v12194_v46 = vld [vmem:[#allocation11 + $0x3c4] ss:$8 sps:$4 sm:$0xff]   ;;  %v1389_v55 = vld [vmem:[#allocation8 + $0x16b8] sm:$0xff] }
 0x5a6   :  { %10034 = vmatprep.subr.bf16.mxu0 %v12173_v49  ;;  %v1397_v49 = vld [vmem:[#allocation8 + $0x16f8] sm:$0xff] }
 0x5a7   :  { %v13027_v62 = vpop.f32.mrb[16].mxu0 }
 0x5a8   :  { %v13029_v8 = vpop.f32.mrb[17].mxu0  ;;  %8047 = vmatpush1.bf16.msra.mxu1 %v11032_v59  ;;  %v12192_v59 = vld [vmem:[#allocation11 + $0x3c0] ss:$8 sps:$4 sm:$0xff]  }
 0x5a9   :  { %v7951_v17 = vpop.f32.mrb[18].mxu0  ;;  %10035 = vmatpush1.bf16.msra.mxu0 %v12171_v60  ;;  %8048 = vmatprep.subr.bf16.mxu1 %v11049_v15  ;;  %v11161_v60 = vcombine.high %v1389_v55, %v1397_v49  ;;  %v8150_v15 = vrot.slane %v13011_v39, %v12860_v50  ;;  %v8252_v39 = vrot.slane %v13018_v36, %v12860_v50  ;;  %v1445_v36 = vld [vmem:[#allocation8 + $0x1878] sm:$0xff] }
 0x5aa   :  { %v7952_v2 = vpop.f32.mrb[19].mxu0  ;;  %10036 = vmatprep.subr.bf16.mxu0 %v12176_v35  ;;  %v12197_v35 = vld [vmem:[#allocation11 + $0x3d4] ss:$8 sps:$4 sm:$0xff]   ;;  %v11160_v17 = vcombine.low %v1389_v55, %v1397_v49 }
 0x5ab   :  { %v11177_v2 = vcombine.high %v1405_v13, %v1413_v61  ;;  %v1485_v55 = vld [vmem:[#allocation8 + $0x19b8] sm:$0xff] }
 0x5ac   :  { %8049 = vmatpush1.bf16.msra.mxu1 %v11048_v14  ;;  %v8162_v14 = vrot.slane %v13031_v58, %v12818_v21  ;;  %v1493_v49 = vld [vmem:[#allocation8 + $0x19f8] sm:$0xff] }
 0x5ad   :  { %10037 = vmatpush1.bf16.msra.mxu0 %v12174_v22  ;;  %8050 = vmatprep.subr.bf16.mxu1 %v11065_v1  ;;  %v13037_v22 = vld [vmem:[#allocation10 + $0x11] ss:$2 sm:$0xff] }
 0x5ae   :  { %10038 = vmatprep.subr.bf16.mxu0 %v12179_v3  ;;  %v12195_v1 = vld [vmem:[#allocation11 + $0x3d0] ss:$8 sps:$4 sm:$0xff]   ;;  %v8209_v3 = vmul.f32 %v8150_v15, %v12983_v47  ;;  %v12203_v47 = vld [vmem:[#allocation11 + $0x3f4] ss:$8 sps:$4 sm:$0xff]  }
 0x5af   :  { %v1501_v15 = vld [vmem:[#allocation8 + $0x1a38] sm:$0xff] }
 0x5b0   :  { %8051 = vmatpush1.bf16.msra.mxu1 %v11064_v6  ;;  %v1429_v6 = vld [vmem:[#allocation8 + $0x17f8] sm:$0xff] }
 0x5b1   :  { %10039 = vmatpush1.bf16.msra.mxu0 %v12177_v7  ;;  %8052 = vmatprep.subr.bf16.mxu1 %v11081_v11  ;;  %v8212_v7 = vmul.f32 %v8162_v14, %v12969_v10  ;;  %v8264_v11 = vrot.slane %v13037_v22, %v12818_v21  ;;  %v11193_v12 = vcombine.high %v1421_v37, %v1429_v6  ;;  %v12201_v10 = vld [vmem:[#allocation11 + $0x3f0] ss:$8 sps:$4 sm:$0xff]   ;;  %v12218_v14 = vld [vmem:[#allocation11 + $0x444] ss:$8 sps:$4 sm:$0xff]  }
 0x5b2   :  { %10040 = vmatprep.subr.bf16.mxu0 %v12182_v9  ;;  %v11176_v9 = vcombine.low %v1405_v13, %v1413_v61  ;;  %v12213_v13 = vld [vmem:[#allocation11 + $0x430] ss:$8 sps:$4 sm:$0xff]  }
 0x5b4   :  { %8053 = vmatpush1.bf16.msra.mxu1 %v11080_v23  ;;  %v8311_v23 = vadd.f32 %v8252_v39, %v8209_v3  ;;  %v12216_v3 = vld [vmem:[#allocation11 + $0x440] ss:$8 sps:$4 sm:$0xff]  }
 0x5b5   :  { %10041 = vmatpush1.bf16.msra.mxu0 %v12180_v24  ;;  %8054 = vmatprep.subr.bf16.mxu1 %v11097_v26  ;;  %v1437_v24 = vld [vmem:[#allocation8 + $0x1838] sm:$0xff]  ;;  %v8314_v26 = vadd.f32 %v8264_v11, %v8212_v7 }
 0x5b6   :  { %10042 = vmatprep.subr.bf16.mxu0 %v12185_v56  ;;  %v11192_v56 = vcombine.low %v1421_v37, %v1429_v6  ;;  %v11209_v27 = vcombine.high %v1437_v24, %v1445_v36  ;;  %v8327_v29 = vmax.f32 %v8311_v23, 0.0  ;;  %v11208_v41 = vcombine.low %v1437_v24, %v1445_v36  ;;  %v1533_v37 = vld [vmem:[#allocation8 + $0x1b38] sm:$0xff] }
 0x5b7   :  { %v1541_v6 = vld [vmem:[#allocation8 + $0x1b78] sm:$0xff] }
 0x5b8   :  { %8055 = vmatpush1.bf16.msra.mxu1 %v11096_v30  ;;  %v12206_v30 = vld [vmem:[#allocation11 + $0x404] ss:$8 sps:$4 sm:$0xff]   ;;  %v12219_v11 = vld [vmem:[#allocation11 + $0x450] ss:$8 sps:$4 sm:$0xff]  }
 0x5b9   :  { %10043 = vmatpush1.bf16.msra.mxu0 %v12183_v32  ;;  %8056 = vmatprep.subr.bf16.mxu1 %v11113_v33  ;;  %v1453_v32 = vld [vmem:[#allocation8 + $0x18b8] sm:$0xff] }
 0x5ba   :  { %10044 = vmatprep.subr.bf16.mxu0 %v12188_v38  ;;  %v1461_v33 = vld [vmem:[#allocation8 + $0x18f8] sm:$0xff]  ;;  %v8330_v38 = vmax.f32 %v8314_v26, 0.0  ;;  %v11304_v26 = vcombine.low %v1533_v37, %v1541_v6 }
 0x5bb   :  { %v1549_v23 = vld [vmem:[#allocation8 + $0x1bb8] sm:$0xff] }
 0x5bc   :  { %8057 = vmatpush1.bf16.msra.mxu1 %v11112_v54  ;;  %v8343_v54 = vpack.c.bf16 %v8327_v29, %v8327_v29  ;;  %v8346_v53 = vpack.c.bf16 %v8330_v38, %v8330_v38  ;;  %v12227_v29 = vld [vmem:[#allocation11 + $0x474] ss:$8 sps:$4 sm:$0xff]   ;;  %v12225_v38 = vld [vmem:[#allocation11 + $0x470] ss:$8 sps:$4 sm:$0xff]  }
 0x5bd   :  { %10045 = vmatpush1.bf16.msra.mxu0 %v12186_v48  ;;  %8058 = vmatprep.subr.bf16.mxu1 %v11129_v51  ;;  %v11225_v48 = vcombine.high %v1453_v32, %v1461_v33  ;;  %v1469_v51 = vld [vmem:[#allocation8 + $0x1938] sm:$0xff] }
 0x5be   :  { %10046 = vmatprep.subr.bf16.mxu0 %v12191_v18  ;;  %v1477_v18 = vld [vmem:[#allocation8 + $0x1978] sm:$0xff] }
 0x5c0   :  { %8059 = vmatpush1.bf16.msra.mxu1 %v11128_v63  ;;  %v11224_v63 = vcombine.low %v1453_v32, %v1461_v33  ;;  %v1573_v32 = vld [vmem:[#allocation8 + $0x1c78] sm:$0xff] }
 0x5c1   :  { %10047 = vmatpush1.bf16.msra.mxu0 %v12189_v42  ;;  %8060 = vmatprep.subr.bf16.mxu1 %v11145_v43  ;;  %v12207_v42 = vld [vmem:[#allocation11 + $0x410] ss:$8 sps:$4 sm:$0xff]   ;;  %v11241_v43 = vcombine.high %v1469_v51, %v1477_v18 }
 0x5c2   :  { %10048 = vmatprep.subr.bf16.mxu0 %v12194_v46  ;;  %v12212_v46 = vld [vmem:[#allocation11 + $0x424] ss:$8 sps:$4 sm:$0xff]  }
 0x5c4   :  { %8061 = vmatpush1.bf16.msra.mxu1 %v11144_v20  ;;  %v11240_v20 = vcombine.low %v1469_v51, %v1477_v18  ;;  %v12228_v18 = vld [vmem:[#allocation11 + $0x480] ss:$8 sps:$4 sm:$0xff]  }
 0x5c5   :  { %10049 = vmatpush1.bf16.msra.mxu0 %v12192_v59  ;;  %8062 = vmatprep.subr.bf16.mxu1 %v11161_v60  ;;  %v11257_v59 = vcombine.high %v1485_v55, %v1493_v49  ;;  %v12215_v60 = vld [vmem:[#allocation11 + $0x434] ss:$8 sps:$4 sm:$0xff]  }
 0x5c6   :  { %10050 = vmatprep.subr.bf16.mxu0 %v12197_v35  ;;  %v1509_v35 = vld [vmem:[#allocation8 + $0x1a78] sm:$0xff] }
 0x5c7   :  { %v11273_v61 = vcombine.high %v1501_v15, %v1509_v35 }
 0x5c8   :  { %8063 = vmatpush1.bf16.msra.mxu1 %v11160_v17  ;;  %v1517_v17 = vld [vmem:[#allocation8 + $0x1ab8] sm:$0xff] }
 0x5c9   :  { %10051 = vmatpush1.bf16.msra.mxu0 %v12195_v1  ;;  %8064 = vmatprep.subr.bf16.mxu1 %v11177_v2  ;;  %v1525_v1 = vld [vmem:[#allocation8 + $0x1af8] sm:$0xff]  ;;  %v11272_v2 = vcombine.low %v1501_v15, %v1509_v35 }
 0x5ca   :  { %10052 = vmatprep.subr.bf16.mxu0 %v12200_v4  ;;  %v11289_v39 = vcombine.high %v1517_v17, %v1525_v1  ;;  %v12221_v4 = vld [vmem:[#allocation11 + $0x454] ss:$8 sps:$4 sm:$0xff]   ;;  %v11288_v7 = vcombine.low %v1517_v17, %v1525_v1  ;;  %v12242_v1 = vld [vmem:[#allocation11 + $0x4c4] ss:$8 sps:$4 sm:$0xff]  }
 0x5cb   :  { %v12239_v35 = vld [vmem:[#allocation11 + $0x4b4] ss:$8 sps:$4 sm:$0xff]  }
 0x5cc   :  { %8065 = vmatpush1.bf16.msra.mxu1 %v11176_v9  ;;  %v11305_v9 = vcombine.high %v1533_v37, %v1541_v6  ;;  %v8158_v6 = vrot.slane %v13031_v58, %v12813_v19 }
 0x5cd   :  { %10053 = vmatpush1.bf16.msra.mxu0 %v12198_v25  ;;  %8066 = vmatprep.subr.bf16.mxu1 %v11193_v12  ;;  %v12224_v12 = vld [vmem:[#allocation11 + $0x464] ss:$8 sps:$4 sm:$0xff]  }
 0x5ce   :  { %10054 = vmatprep.subr.bf16.mxu0 %v12203_v47  ;;  %v1557_v47 = vld [vmem:[#allocation8 + $0x1bf8] sm:$0xff] }
 0x5cf   :  { %v11320_v33 = vcombine.low %v1549_v23, %v1557_v47 }
 0x5d0   :  { %8067 = vmatpush1.bf16.msra.mxu1 %v11192_v56 }
 0x5d1   :  { %10055 = vmatpush1.bf16.msra.mxu0 %v12201_v10  ;;  %8077 = vmatprep.subr.bf16.mxu1 %v11209_v27  ;;  %v12222_v10 = vld [vmem:[#allocation11 + $0x460] ss:$8 sps:$4 sm:$0xff]   ;;  %v11321_v27 = vcombine.high %v1549_v23, %v1557_v47  ;;  %v12243_v47 = vld [vmem:[#allocation11 + $0x4d0] ss:$8 sps:$4 sm:$0xff]  }
 0x5d2   :  { %10065 = vmatprep.subr.bf16.mxu0 %v12206_v30  ;;  %v1565_v30 = vld [vmem:[#allocation8 + $0x1c38] sm:$0xff] }
 0x5d3   :  { %8069 = vmatmul.mubr.bf16.vlgmr.msra.gmra.mrb[24].mxu1 %v12903_v16  ;;  %v12210_v16 = vld [vmem:[#allocation11 + $0x420] ss:$8 sps:$4 sm:$0xff]   ;;  %v11336_v51 = vcombine.low %v1565_v30, %v1573_v32 }
 0x5d4   :  { %10057 = vmatmul.mubr.bf16.vlgmr.msra.gmra.mrb[20].mxu0 %v8343_v54  ;;  %8078 = vmatpush1.bf16.msra.mxu1 %v11208_v41  ;;  %v11337_v41 = vcombine.high %v1565_v30, %v1573_v32  ;;  %v1581_v54 = vld [vmem:[#allocation8 + $0x1cb8] sm:$0xff]  ;;  %v8272_v32 = vrot.slane %v13037_v22, %v12840_v57 }
 0x5d5   :  { %8109 = vmatprep.mubr.bf16.mxu1 %v12881_v34  ;;  %10066 = vmatpush1.bf16.msra.mxu0 %v12204_v44  ;;  %v11256_v34 = vcombine.low %v1485_v55, %v1493_v49  ;;  %v12230_v44 = vld [vmem:[#allocation11 + $0x484] ss:$8 sps:$4 sm:$0xff]  }
 0x5d6   :  { %10097 = vmatprep.mubr.bf16.mxu0 %v8346_v53  ;;  %8079 = vmatprep.subr.bf16.mxu1 %v11225_v48  ;;  %v1589_v48 = vld [vmem:[#allocation8 + $0x1cf8] sm:$0xff]  ;;  %v12236_v49 = vld [vmem:[#allocation11 + $0x4a4] ss:$8 sps:$4 sm:$0xff]  }
 0x5d7   :  { %10067 = vmatprep.subr.bf16.mxu0 %v12209_v52  ;;  %v11353_v52 = vcombine.high %v1581_v54, %v1589_v48  ;;  %v12233_v53 = vld [vmem:[#allocation11 + $0x494] ss:$8 sps:$4 sm:$0xff]  }
 0x5d8   :  { %8080 = vmatpush1.bf16.msra.mxu1 %v11224_v63  ;;  %v1597_v63 = vld [vmem:[#allocation8 + $0x1d38] sm:$0xff] }
 0x5d9   :  { %10068 = vmatpush1.bf16.msra.mxu0 %v12207_v42  ;;  %8081 = vmatprep.subr.bf16.mxu1 %v11241_v43  ;;  %v1605_v42 = vld [vmem:[#allocation8 + $0x1d78] sm:$0xff]  ;;  %v11352_v43 = vcombine.low %v1581_v54, %v1589_v48 }
 0x5da   :  { %10069 = vmatprep.subr.bf16.mxu0 %v12212_v46  ;;  %v12231_v46 = vld [vmem:[#allocation11 + $0x490] ss:$8 sps:$4 sm:$0xff]   ;;  %v11369_v55 = vcombine.high %v1597_v63, %v1605_v42 }
 0x5dc   :  { %8082 = vmatpush1.bf16.msra.mxu1 %v11240_v20  ;;  %v1613_v20 = vld [vmem:[#allocation8 + $0x1db8] sm:$0xff] }
 0x5dd   :  { %10070 = vmatpush1.bf16.msra.mxu0 %v12210_v16  ;;  %8083 = vmatprep.subr.bf16.mxu1 %v11257_v59  ;;  %v1621_v16 = vld [vmem:[#allocation8 + $0x1df8] sm:$0xff]  ;;  %v11368_v59 = vcombine.low %v1597_v63, %v1605_v42 }
 0x5de   :  { %10071 = vmatprep.subr.bf16.mxu0 %v12215_v60  ;;  %v12234_v60 = vld [vmem:[#allocation11 + $0x4a0] ss:$8 sps:$4 sm:$0xff]   ;;  %v11385_v15 = vcombine.high %v1613_v20, %v1621_v16  ;;  %v12257_v63 = vld [vmem:[#allocation11 + $0x514] ss:$8 sps:$4 sm:$0xff]  }
 0x5e0   :  { %8084 = vmatpush1.bf16.msra.mxu1 %v11256_v34  ;;  %v1629_v34 = vld [vmem:[#allocation8 + $0x1e38] sm:$0xff] }
 0x5e1   :  { %10072 = vmatpush1.bf16.msra.mxu0 %v12213_v13  ;;  %8085 = vmatprep.subr.bf16.mxu1 %v11273_v61  ;;  %v1637_v13 = vld [vmem:[#allocation8 + $0x1e78] sm:$0xff]  ;;  %v11384_v61 = vcombine.low %v1613_v20, %v1621_v16  ;;  %v12266_v16 = vld [vmem:[#allocation11 + $0x544] ss:$8 sps:$4 sm:$0xff]  }
 0x5e2   :  { %10073 = vmatprep.subr.bf16.mxu0 %v12218_v14  ;;  %v12237_v14 = vld [vmem:[#allocation11 + $0x4b0] ss:$8 sps:$4 sm:$0xff]   ;;  %v11401_v17 = vcombine.high %v1629_v34, %v1637_v13 }
 0x5e3   :  { %v12261_v20 = vld [vmem:[#allocation11 + $0x530] ss:$8 sps:$4 sm:$0xff]  }
 0x5e4   :  { %8086 = vmatpush1.bf16.msra.mxu1 %v11272_v2  ;;  %v1645_v2 = vld [vmem:[#allocation8 + $0x1eb8] sm:$0xff] }
 0x5e5   :  { %10074 = vmatpush1.bf16.msra.mxu0 %v12216_v3  ;;  %8087 = vmatprep.subr.bf16.mxu1 %v11289_v39  ;;  %v1653_v3 = vld [vmem:[#allocation8 + $0x1ef8] sm:$0xff]  ;;  %v11400_v39 = vcombine.low %v1629_v34, %v1637_v13 }
 0x5e6   :  { %v13047_v25 = vpop.f32.mrb[20].mxu1  ;;  %10075 = vmatprep.subr.bf16.mxu0 %v12221_v4  ;;  %v12240_v4 = vld [vmem:[#allocation11 + $0x4c0] ss:$8 sps:$4 sm:$0xff]   ;;  %v11417_v37 = vcombine.high %v1645_v2, %v1653_v3  ;;  %v11416_v23 = vcombine.low %v1645_v2, %v1653_v3  ;;  %v12275_v34 = vld [vmem:[#allocation11 + $0x574] ss:$8 sps:$4 sm:$0xff]  }
 0x5e7   :  { %v13049_v24 = vpop.f32.mrb[21].mxu1  ;;  %v12273_v13 = vld [vmem:[#allocation11 + $0x570] ss:$8 sps:$4 sm:$0xff]   ;;  %v12284_v2 = vld [vmem:[#allocation11 + $0x5a4] ss:$8 sps:$4 sm:$0xff]  }
 0x5e8   :  { %v7787_v36 = vpop.f32.mrb[22].mxu1  ;;  %8088 = vmatpush1.bf16.msra.mxu1 %v11288_v7  ;;  %v12245_v7 = vld [vmem:[#allocation11 + $0x4d4] ss:$8 sps:$4 sm:$0xff]   ;;  %v12282_v3 = vld [vmem:[#allocation11 + $0x5a0] ss:$8 sps:$4 sm:$0xff]  }
 0x5e9   :  { %10076 = vmatpush1.bf16.msra.mxu0 %v12219_v11  ;;  %v7788_v56 = vpop.f32.mrb[23].mxu1  ;;  %8089 = vmatprep.subr.bf16.mxu1 %v11305_v9  ;;  %v1661_v11 = vld [vmem:[#allocation8 + $0x1f38] sm:$0xff] }
 0x5ea   :  { %10077 = vmatprep.subr.bf16.mxu0 %v12224_v12  ;;  %v1669_v9 = vld [vmem:[#allocation8 + $0x1f78] sm:$0xff]  ;;  %v8170_v12 = vrot.slane %v13031_v58, %v12840_v57  ;;  %v8260_v56 = vrot.slane %v13037_v22, %v12813_v19  ;;  %v12252_v57 = vld [vmem:[#allocation11 + $0x500] ss:$8 sps:$4 sm:$0xff]  }
 0x5eb   :  { %v11433_v36 = vcombine.high %v1661_v11, %v1669_v9 }
 0x5ec   :  { %8090 = vmatpush1.bf16.msra.mxu1 %v11304_v26  ;;  %v8211_v26 = vmul.f32 %v8158_v6, %v12967_v5  ;;  %v8214_v30 = vmul.f32 %v8170_v12, %v13049_v24  ;;  %v12251_v5 = vld [vmem:[#allocation11 + $0x4f4] ss:$8 sps:$4 sm:$0xff]   ;;  %v12254_v24 = vld [vmem:[#allocation11 + $0x504] ss:$8 sps:$4 sm:$0xff]   ;;  %v12288_v6 = vld [vmem:[#allocation11 + $0x5c0] ss:$8 sps:$4 sm:$0xff]  }
 0x5ed   :  { %10078 = vmatpush1.bf16.msra.mxu0 %v12222_v10  ;;  %8091 = vmatprep.subr.bf16.mxu1 %v11321_v27  ;;  %v12248_v10 = vld [vmem:[#allocation11 + $0x4e4] ss:$8 sps:$4 sm:$0xff]   ;;  %v1677_v27 = vld [vmem:[#allocation8 + $0x1fb8] sm:$0xff] }
 0x5ee   :  { %10079 = vmatprep.subr.bf16.mxu0 %v12227_v29  ;;  %v1685_v29 = vld [vmem:[#allocation8 + $0x1ff8] sm:$0xff]  ;;  %v8316_v54 = vadd.f32 %v8272_v32, %v8214_v30 }
 0x5ef   :  { %v11448_v48 = vcombine.low %v1677_v27, %v1685_v29  ;;  %v12291_v12 = vld [vmem:[#allocation11 + $0x5d0] ss:$8 sps:$4 sm:$0xff]  }
 0x5f0   :  { %8092 = vmatpush1.bf16.msra.mxu1 %v11320_v33  ;;  %v11432_v33 = vcombine.low %v1661_v11, %v1669_v9  ;;  %v12293_v11 = vld [vmem:[#allocation11 + $0x5d4] ss:$8 sps:$4 sm:$0xff]   ;;  %v8178_v9 = vrot.slane %v13031_v58, %v12855_v45  ;;  %v12297_v32 = vld [vmem:[#allocation11 + $0x5f0] ss:$8 sps:$4 sm:$0xff]  }
 0x5f1   :  { %10080 = vmatpush1.bf16.msra.mxu0 %v12225_v38  ;;  %8093 = vmatprep.subr.bf16.mxu1 %v11337_v41  ;;  %v12246_v38 = vld [vmem:[#allocation11 + $0x4e0] ss:$8 sps:$4 sm:$0xff]   ;;  %v11449_v41 = vcombine.high %v1677_v27, %v1685_v29  ;;  %v12299_v29 = vld [vmem:[#allocation11 + $0x5f4] ss:$8 sps:$4 sm:$0xff]  }
 0x5f2   :  { %10081 = vmatprep.subr.bf16.mxu0 %v12230_v44  ;;  %v8313_v44 = vadd.f32 %v8260_v56, %v8211_v26  ;;  %v8216_v26 = vmul.f32 %v8178_v9, %v13029_v8  ;;  %v8280_v56 = vrot.slane %v13037_v22, %v12855_v45  ;;  %v12305_v8 = vld [vmem:[#allocation11 + $0x614] ss:$8 sps:$4 sm:$0xff]   ;;  %v12303_v45 = vld [vmem:[#allocation11 + $0x610] ss:$8 sps:$4 sm:$0xff]  }
 0x5f3   :  { %v12339_v9 = vld [vmem:[#allocation11 + $0x6d0] ss:$8 sps:$4 sm:$0xff]  }
 0x5f4   :  { %8094 = vmatpush1.bf16.msra.mxu1 %v11336_v51  ;;  %v12249_v51 = vld [vmem:[#allocation11 + $0x4f0] ss:$8 sps:$4 sm:$0xff]   ;;  %v8318_v30 = vadd.f32 %v8280_v56, %v8216_v26  ;;  %v12347_v56 = vld [vmem:[#allocation11 + $0x6f4] ss:$8 sps:$4 sm:$0xff]  }
 0x5f5   :  { %10082 = vmatpush1.bf16.msra.mxu0 %v12228_v18  ;;  %8095 = vmatprep.subr.bf16.mxu1 %v11353_v52  ;;  %v8329_v18 = vmax.f32 %v8313_v44, 0.0  ;;  %v8332_v52 = vmax.f32 %v8316_v54, 0.0  ;;  %v12306_v54 = vld [vmem:[#allocation11 + $0x620] ss:$8 sps:$4 sm:$0xff]  }
 0x5f6   :  { %10083 = vmatprep.subr.bf16.mxu0 %v12233_v53 }
 0x5f7   :  { %v8345_v53 = vpack.c.bf16 %v8329_v18, %v8329_v18  ;;  %v8348_v42 = vpack.c.bf16 %v8332_v52, %v8332_v52  ;;  %v12314_v18 = vld [vmem:[#allocation11 + $0x644] ss:$8 sps:$4 sm:$0xff]   ;;  %v12317_v52 = vld [vmem:[#allocation11 + $0x654] ss:$8 sps:$4 sm:$0xff]  }
 0x5f8   :  { %8096 = vmatpush1.bf16.msra.mxu1 %v11352_v43  ;;  %v12255_v43 = vld [vmem:[#allocation11 + $0x510] ss:$8 sps:$4 sm:$0xff]  }
 0x5f9   :  { %10084 = vmatpush1.bf16.msra.mxu0 %v12231_v46  ;;  %8097 = vmatprep.subr.bf16.mxu1 %v11369_v55  ;;  %v12260_v46 = vld [vmem:[#allocation11 + $0x524] ss:$8 sps:$4 sm:$0xff]   ;;  %v12258_v55 = vld [vmem:[#allocation11 + $0x520] ss:$8 sps:$4 sm:$0xff]  }
 0x5fa   :  { %10085 = vmatprep.subr.bf16.mxu0 %v12236_v49  ;;  %v12263_v49 = vld [vmem:[#allocation11 + $0x534] ss:$8 sps:$4 sm:$0xff]  }
 0x5fc   :  { %8098 = vmatpush1.bf16.msra.mxu1 %v11368_v59  ;;  %v12264_v59 = vld [vmem:[#allocation11 + $0x540] ss:$8 sps:$4 sm:$0xff]  }
 0x5fd   :  { %10086 = vmatpush1.bf16.msra.mxu0 %v12234_v60  ;;  %8099 = vmatprep.subr.bf16.mxu1 %v11385_v15  ;;  %v12269_v60 = vld [vmem:[#allocation11 + $0x554] ss:$8 sps:$4 sm:$0xff]   ;;  %v12272_v15 = vld [vmem:[#allocation11 + $0x564] ss:$8 sps:$4 sm:$0xff]  }
 0x5fe   :  { %10087 = vmatprep.subr.bf16.mxu0 %v12239_v35  ;;  %v12270_v35 = vld [vmem:[#allocation11 + $0x560] ss:$8 sps:$4 sm:$0xff]  }
 0x600   :  { %8100 = vmatpush1.bf16.msra.mxu1 %v11384_v61  ;;  %v12278_v61 = vld [vmem:[#allocation11 + $0x584] ss:$8 sps:$4 sm:$0xff]  }
 0x601   :  { %10088 = vmatpush1.bf16.msra.mxu0 %v12237_v14  ;;  %8101 = vmatprep.subr.bf16.mxu1 %v11401_v17  ;;  %v12276_v14 = vld [vmem:[#allocation11 + $0x580] ss:$8 sps:$4 sm:$0xff]   ;;  %v12281_v17 = vld [vmem:[#allocation11 + $0x594] ss:$8 sps:$4 sm:$0xff]  }
 0x602   :  { %10089 = vmatprep.subr.bf16.mxu0 %v12242_v1  ;;  %v12279_v1 = vld [vmem:[#allocation11 + $0x590] ss:$8 sps:$4 sm:$0xff]  }
 0x604   :  { %8102 = vmatpush1.bf16.msra.mxu1 %v11400_v39  ;;  %v12287_v39 = vld [vmem:[#allocation11 + $0x5b4] ss:$8 sps:$4 sm:$0xff]  }
 0x605   :  { %10090 = vmatpush1.bf16.msra.mxu0 %v12240_v4  ;;  %8103 = vmatprep.subr.bf16.mxu1 %v11417_v37  ;;  %v12285_v4 = vld [vmem:[#allocation11 + $0x5b0] ss:$8 sps:$4 sm:$0xff]   ;;  %v12290_v37 = vld [vmem:[#allocation11 + $0x5c4] ss:$8 sps:$4 sm:$0xff]  }
 0x606   :  { %10091 = vmatprep.subr.bf16.mxu0 %v12245_v7  ;;  %v8166_v7 = vrot.slane %v13031_v58, %v12852_v40 }
 0x608   :  { %8104 = vmatpush1.bf16.msra.mxu1 %v11416_v23  ;;  %v8213_v23 = vmul.f32 %v8166_v7, %v13047_v25  ;;  %v12302_v25 = vld [vmem:[#allocation11 + $0x604] ss:$8 sps:$4 sm:$0xff]   ;;  %v12341_v7 = vld [vmem:[#allocation11 + $0x6d4] ss:$8 sps:$4 sm:$0xff]  }
 0x609   :  { %10092 = vmatpush1.bf16.msra.mxu0 %v12243_v47  ;;  %8105 = vmatprep.subr.bf16.mxu1 %v11433_v36  ;;  %v8268_v47 = vrot.slane %v13037_v22, %v12852_v40  ;;  %v12296_v36 = vld [vmem:[#allocation11 + $0x5e4] ss:$8 sps:$4 sm:$0xff]   ;;  %v12300_v40 = vld [vmem:[#allocation11 + $0x600] ss:$8 sps:$4 sm:$0xff]  }
 0x60a   :  { %10093 = vmatprep.subr.bf16.mxu0 %v12248_v10  ;;  %v12294_v10 = vld [vmem:[#allocation11 + $0x5e0] ss:$8 sps:$4 sm:$0xff]  }
 0x60b   :  { %v8315_v27 = vadd.f32 %v8268_v47, %v8213_v23  ;;  %v8276_v23 = vrot.slane %v13037_v22, %v12896_v28  ;;  %v12344_v47 = vld [vmem:[#allocation11 + $0x6e4] ss:$8 sps:$4 sm:$0xff]  }
 0x60c   :  { %8106 = vmatpush1.bf16.msra.mxu1 %v11432_v33 }
 0x60d   :  { %10094 = vmatpush1.bf16.msra.mxu0 %v12246_v38  ;;  %8107 = vmatprep.subr.bf16.mxu1 %v11449_v41  ;;  %v8331_v33 = vmax.f32 %v8315_v27, 0.0  ;;  %v8334_v38 = vmax.f32 %v8318_v30, 0.0  ;;  %v12348_v30 = vld [vmem:[#allocation11 + $0x700] ss:$8 sps:$4 sm:$0xff]  }
 0x60e   :  { %10095 = vmatprep.subr.bf16.mxu0 %v12251_v5  ;;  %v12308_v5 = vld [vmem:[#allocation11 + $0x624] ss:$8 sps:$4 sm:$0xff]  }
 0x60f   :  { %v8347_v41 = vpack.c.bf16 %v8331_v33, %v8331_v33  ;;  %v8350_v44 = vpack.c.bf16 %v8334_v38, %v8334_v38  ;;  %v12356_v33 = vld [vmem:[#allocation11 + $0x724] ss:$8 sps:$4 sm:$0xff]   ;;  %v12359_v38 = vld [vmem:[#allocation11 + $0x734] ss:$8 sps:$4 sm:$0xff]  }
 0x610   :  { %8108 = vmatpush1.bf16.msra.mxu1 %v11448_v48  ;;  %v12311_v48 = vld [vmem:[#allocation11 + $0x634] ss:$8 sps:$4 sm:$0xff]  }
 0x611   :  { %10096 = vmatpush1.bf16.msra.mxu0 %v12249_v51  ;;  %v12309_v51 = vld [vmem:[#allocation11 + $0x630] ss:$8 sps:$4 sm:$0xff]  }
 0x612   :  { %10106 = vmatprep.subr.bf16.mxu0 %v12254_v24  ;;  %v12312_v24 = vld [vmem:[#allocation11 + $0x640] ss:$8 sps:$4 sm:$0xff]  }
 0x613   :  { %8110 = vmatmul.mubr.bf16.vlgmr.msra.gmra.mrb[24].mxu1 %v12879_v31  ;;  %v12267_v31 = vld [vmem:[#allocation11 + $0x550] ss:$8 sps:$4 sm:$0xff]  }
 0x614   :  { %10098 = vmatmul.mubr.bf16.vlgmr.msra.gmra.mrb[20].mxu0 %v8345_v53  ;;  %v12320_v53 = vld [vmem:[#allocation11 + $0x664] ss:$8 sps:$4 sm:$0xff]  }
 0x615   :  { %10107 = vmatpush1.bf16.msra.mxu0 %v12252_v57  ;;  %10138 = vmatprep.mubr.bf16.mxu0 %v8348_v42  ;;  %v12315_v57 = vld [vmem:[#allocation11 + $0x650] ss:$8 sps:$4 sm:$0xff]   ;;  %v12323_v42 = vld [vmem:[#allocation11 + $0x674] ss:$8 sps:$4 sm:$0xff]  }
 0x616   :  { %10108 = vmatprep.subr.bf16.mxu0 %v12257_v63  ;;  %v12318_v63 = vld [vmem:[#allocation11 + $0x660] ss:$8 sps:$4 sm:$0xff]  }
 0x619   :  { %10109 = vmatpush1.bf16.msra.mxu0 %v12255_v43  ;;  %v12321_v43 = vld [vmem:[#allocation11 + $0x670] ss:$8 sps:$4 sm:$0xff]  }
 0x61a   :  { %10110 = vmatprep.subr.bf16.mxu0 %v12260_v46  ;;  %v12326_v46 = vld [vmem:[#allocation11 + $0x684] ss:$8 sps:$4 sm:$0xff]  }
 0x61d   :  { %10111 = vmatpush1.bf16.msra.mxu0 %v12258_v55  ;;  %v12324_v55 = vld [vmem:[#allocation11 + $0x680] ss:$8 sps:$4 sm:$0xff]  }
 0x61e   :  { %10112 = vmatprep.subr.bf16.mxu0 %v12263_v49  ;;  %v12396_v49 = vld [vmem:[#allocation14 + $0x40] sm:$0xff]  }
 0x61f   :  { %11723 = vmatprep.subr.bf16.mxu1 %v12396_v49  ;;  %v12389_v49 = vld [vmem:[#allocation11 + $0x7d4] ss:$8 sps:$4 sm:$0xff]  }
 0x621   :  { %10113 = vmatpush1.bf16.msra.mxu0 %v12261_v20  ;;  %v12397_v20 = vld [vmem:[#allocation14] sm:$0xff]  }
 0x622   :  { %10114 = vmatprep.subr.bf16.mxu0 %v12266_v16  ;;  %v12398_v16 = vld [vmem:[#allocation14 + $0x48] sm:$0xff]   ;;  %11724 = vmatpush3.bf16.msra.mxu1 %v12397_v20 }
 0x623   :  { %11725 = vmatprep.subr.bf16.mxu1 %v12398_v16  ;;  %v12387_v20 = vld [vmem:[#allocation11 + $0x7d0] ss:$8 sps:$4 sm:$0xff]   ;;  %v12392_v16 = vld [vmem:[#allocation11 + $0x7e4] ss:$8 sps:$4 sm:$0xff]  }
 0x625   :  { %10115 = vmatpush1.bf16.msra.mxu0 %v12264_v59  ;;  %v12329_v59 = vld [vmem:[#allocation11 + $0x694] ss:$8 sps:$4 sm:$0xff]  }
 0x626   :  { %10116 = vmatprep.subr.bf16.mxu0 %v12269_v60  ;;  %v12399_v60 = vld [vmem:[#allocation14 + $0x8] sm:$0xff]  }
 0x627   :  { %11726 = vmatpush3.bf16.msra.mxu1 %v12399_v60  ;;  %v12395_v60 = vld [vmem:[#allocation11 + $0x7f4] ss:$8 sps:$4 sm:$0xff]  }
 0x629   :  { %10117 = vmatpush1.bf16.msra.mxu0 %v12267_v31  ;;  %v12327_v31 = vld [vmem:[#allocation11 + $0x690] ss:$8 sps:$4 sm:$0xff]  }
 0x62a   :  { %10118 = vmatprep.subr.bf16.mxu0 %v12272_v15  ;;  %v12400_v15 = vld [vmem:[#allocation14 + $0x50] sm:$0xff]  }
 0x62b   :  { %11727 = vmatprep.subr.bf16.mxu1 %v12400_v15  ;;  %v8182_v15 = vrot.slane %v13031_v58, %v12860_v50 }
 0x62d   :  { %10119 = vmatpush1.bf16.msra.mxu0 %v12270_v35  ;;  %v12332_v35 = vld [vmem:[#allocation11 + $0x6a4] ss:$8 sps:$4 sm:$0xff]  }
 0x62e   :  { %10120 = vmatprep.subr.bf16.mxu0 %v12275_v34  ;;  %v12401_v34 = vld [vmem:[#allocation14 + $0x10] sm:$0xff]  }
 0x62f   :  { %11728 = vmatpush3.bf16.msra.mxu1 %v12401_v34  ;;  %v8284_v34 = vrot.slane %v13037_v22, %v12860_v50  ;;  %v12410_v50 = vld [vmem:[#allocation14 + $0x78] sm:$0xff]  }
 0x631   :  { %10121 = vmatpush1.bf16.msra.mxu0 %v12273_v13  ;;  %v12330_v13 = vld [vmem:[#allocation11 + $0x6a0] ss:$8 sps:$4 sm:$0xff]  }
 0x632   :  { %10122 = vmatprep.subr.bf16.mxu0 %v12278_v61  ;;  %v12402_v61 = vld [vmem:[#allocation14 + $0x58] sm:$0xff]  }
 0x633   :  { %11729 = vmatprep.subr.bf16.mxu1 %v12402_v61  ;;  %v8288_v61 = vrot.slane %v13037_v22, %v12863_v0 }
 0x635   :  { %10123 = vmatpush1.bf16.msra.mxu0 %v12276_v14  ;;  %v12335_v14 = vld [vmem:[#allocation11 + $0x6b4] ss:$8 sps:$4 sm:$0xff]  }
 0x636   :  { %10124 = vmatprep.subr.bf16.mxu0 %v12281_v17  ;;  %v12403_v17 = vld [vmem:[#allocation14 + $0x18] sm:$0xff]  }
 0x637   :  { %11730 = vmatpush3.bf16.msra.mxu1 %v12403_v17 }
 0x639   :  { %10125 = vmatpush1.bf16.msra.mxu0 %v12279_v1  ;;  %v12333_v1 = vld [vmem:[#allocation11 + $0x6b0] ss:$8 sps:$4 sm:$0xff]  }
 0x63a   :  { %10126 = vmatprep.subr.bf16.mxu0 %v12284_v2  ;;  %v12404_v2 = vld [vmem:[#allocation14 + $0x60] sm:$0xff]  }
 0x63b   :  { %11731 = vmatprep.subr.bf16.mxu1 %v12404_v2 }
 0x63d   :  { %10127 = vmatpush1.bf16.msra.mxu0 %v12282_v3  ;;  %v12338_v3 = vld [vmem:[#allocation11 + $0x6c4] ss:$8 sps:$4 sm:$0xff]  }
 0x63e   :  { %10128 = vmatprep.subr.bf16.mxu0 %v12287_v39  ;;  %v12405_v39 = vld [vmem:[#allocation14 + $0x20] sm:$0xff]  }
 0x63f   :  { %11732 = vmatpush3.bf16.msra.mxu1 %v12405_v39 }
 0x641   :  { %10129 = vmatpush1.bf16.msra.mxu0 %v12285_v4  ;;  %v12336_v4 = vld [vmem:[#allocation11 + $0x6c0] ss:$8 sps:$4 sm:$0xff]  }
 0x642   :  { %10130 = vmatprep.subr.bf16.mxu0 %v12290_v37  ;;  %v12406_v37 = vld [vmem:[#allocation14 + $0x68] sm:$0xff]  }
 0x643   :  { %11733 = vmatprep.subr.bf16.mxu1 %v12406_v37 }
 0x645   :  { %10131 = vmatpush1.bf16.msra.mxu0 %v12288_v6  ;;  %v8174_v6 = vrot.slane %v13031_v58, %v12896_v28  ;;  %v12351_v28 = vld [vmem:[#allocation11 + $0x710] ss:$8 sps:$4 sm:$0xff]  }
 0x646   :  { %10132 = vmatprep.subr.bf16.mxu0 %v12293_v11  ;;  %v12407_v11 = vld [vmem:[#allocation14 + $0x28] sm:$0xff]  }
 0x647   :  { %11734 = vmatpush3.bf16.msra.mxu1 %v12407_v11 }
 0x649   :  { %10133 = vmatpush1.bf16.msra.mxu0 %v12291_v12  ;;  %v8215_v12 = vmul.f32 %v8174_v6, %v13027_v62  ;;  %v12353_v62 = vld [vmem:[#allocation11 + $0x714] ss:$8 sps:$4 sm:$0xff]  }
 0x64a   :  { %10134 = vmatprep.subr.bf16.mxu0 %v12296_v36  ;;  %v12342_v36 = vld [vmem:[#allocation11 + $0x6e0] ss:$8 sps:$4 sm:$0xff]  }
 0x64b   :  { %v8317_v26 = vadd.f32 %v8276_v23, %v8215_v12  ;;  %v12411_v12 = vld [vmem:[#allocation14 + $0x38] sm:$0xff]  }
 0x64d   :  { %10135 = vmatpush1.bf16.msra.mxu0 %v12294_v10  ;;  %v12345_v10 = vld [vmem:[#allocation11 + $0x6f0] ss:$8 sps:$4 sm:$0xff]   ;;  %v8333_v27 = vmax.f32 %v8317_v26, 0.0 }
 0x64e   :  { %10136 = vmatprep.subr.bf16.mxu0 %v12299_v29  ;;  %v12350_v29 = vld [vmem:[#allocation11 + $0x704] ss:$8 sps:$4 sm:$0xff]  }
 0x651   :  { %10137 = vmatpush1.bf16.msra.mxu0 %v12297_v32  ;;  %v8349_v32 = vpack.c.bf16 %v8333_v27, %v8333_v27 }
 0x652   :  { %10147 = vmatprep.subr.bf16.mxu0 %v12302_v25  ;;  %v12354_v25 = vld [vmem:[#allocation11 + $0x720] ss:$8 sps:$4 sm:$0xff]  }
 0x654   :  { %10139 = vmatmul.mubr.bf16.vlgmr.msra.gmra.mrb[20].mxu0 %v8347_v41  ;;  %v12362_v41 = vld [vmem:[#allocation11 + $0x744] ss:$8 sps:$4 sm:$0xff]  }
 0x655   :  { %10148 = vmatpush1.bf16.msra.mxu0 %v12300_v40  ;;  %10179 = vmatprep.mubr.bf16.mxu0 %v8350_v44  ;;  %v12357_v40 = vld [vmem:[#allocation11 + $0x730] ss:$8 sps:$4 sm:$0xff]   ;;  %v12365_v44 = vld [vmem:[#allocation11 + $0x754] ss:$8 sps:$4 sm:$0xff]  }
 0x656   :  { %10149 = vmatprep.subr.bf16.mxu0 %v12305_v8  ;;  %v12360_v8 = vld [vmem:[#allocation11 + $0x740] ss:$8 sps:$4 sm:$0xff]  }
 0x659   :  { %10150 = vmatpush1.bf16.msra.mxu0 %v12303_v45  ;;  %v12363_v45 = vld [vmem:[#allocation11 + $0x750] ss:$8 sps:$4 sm:$0xff]  }
 0x65a   :  { %10151 = vmatprep.subr.bf16.mxu0 %v12308_v5  ;;  %v12368_v5 = vld [vmem:[#allocation11 + $0x764] ss:$8 sps:$4 sm:$0xff]  }
 0x65d   :  { %10152 = vmatpush1.bf16.msra.mxu0 %v12306_v54  ;;  %v12366_v54 = vld [vmem:[#allocation11 + $0x760] ss:$8 sps:$4 sm:$0xff]  }
 0x65e   :  { %10153 = vmatprep.subr.bf16.mxu0 %v12311_v48  ;;  %v12371_v48 = vld [vmem:[#allocation11 + $0x774] ss:$8 sps:$4 sm:$0xff]  }
 0x661   :  { %10154 = vmatpush1.bf16.msra.mxu0 %v12309_v51  ;;  %v12369_v51 = vld [vmem:[#allocation11 + $0x770] ss:$8 sps:$4 sm:$0xff]  }
 0x662   :  { %10155 = vmatprep.subr.bf16.mxu0 %v12314_v18  ;;  %v12374_v18 = vld [vmem:[#allocation11 + $0x784] ss:$8 sps:$4 sm:$0xff]  }
 0x665   :  { %10156 = vmatpush1.bf16.msra.mxu0 %v12312_v24  ;;  %v12372_v24 = vld [vmem:[#allocation11 + $0x780] ss:$8 sps:$4 sm:$0xff]  }
 0x666   :  { %10157 = vmatprep.subr.bf16.mxu0 %v12317_v52  ;;  %v12377_v52 = vld [vmem:[#allocation11 + $0x794] ss:$8 sps:$4 sm:$0xff]  }
 0x669   :  { %10158 = vmatpush1.bf16.msra.mxu0 %v12315_v57  ;;  %v12375_v57 = vld [vmem:[#allocation11 + $0x790] ss:$8 sps:$4 sm:$0xff]  }
 0x66a   :  { %10159 = vmatprep.subr.bf16.mxu0 %v12320_v53  ;;  %v12380_v53 = vld [vmem:[#allocation11 + $0x7a4] ss:$8 sps:$4 sm:$0xff]  }
 0x66d   :  { %10160 = vmatpush1.bf16.msra.mxu0 %v12318_v63  ;;  %v12378_v63 = vld [vmem:[#allocation11 + $0x7a0] ss:$8 sps:$4 sm:$0xff]  }
 0x66e   :  { %10161 = vmatprep.subr.bf16.mxu0 %v12323_v42  ;;  %v12383_v42 = vld [vmem:[#allocation11 + $0x7b4] ss:$8 sps:$4 sm:$0xff]  }
 0x671   :  { %10162 = vmatpush1.bf16.msra.mxu0 %v12321_v43  ;;  %v12381_v43 = vld [vmem:[#allocation11 + $0x7b0] ss:$8 sps:$4 sm:$0xff]  }
 0x672   :  { %10163 = vmatprep.subr.bf16.mxu0 %v12326_v46  ;;  %v12386_v46 = vld [vmem:[#allocation11 + $0x7c4] ss:$8 sps:$4 sm:$0xff]  }
 0x675   :  { %10164 = vmatpush1.bf16.msra.mxu0 %v12324_v55  ;;  %v12384_v55 = vld [vmem:[#allocation11 + $0x7c0] ss:$8 sps:$4 sm:$0xff]  }
 0x676   :  { %10165 = vmatprep.subr.bf16.mxu0 %v12329_v59  ;;  %v12390_v59 = vld [vmem:[#allocation11 + $0x7e0] ss:$8 sps:$4 sm:$0xff]  }
 0x679   :  { %10166 = vmatpush1.bf16.msra.mxu0 %v12327_v31  ;;  %v12393_v31 = vld [vmem:[#allocation11 + $0x7f0] ss:$8 sps:$4 sm:$0xff]  }
 0x67a   :  { %10167 = vmatprep.subr.bf16.mxu0 %v12332_v35  ;;  %v8186_v35 = vrot.slane %v13031_v58, %v12863_v0  ;;  %v12408_v58 = vld [vmem:[#allocation14 + $0x70] sm:$0xff]   ;;  %v8609_v0 = vld [vmem:[#allocation13] ss:$2 sm:$0x3] }
 0x67b   :  { %11735 = vmatprep.subr.bf16.mxu1 %v12408_v58  ;;  %v8614_v22 = vrot.slane %v8609_v0, %v12813_v19  ;;  %v8618_v23 = vrot.slane %v8609_v0, %v12818_v21 }
 0x67d   :  { %10168 = vmatpush1.bf16.msra.mxu0 %v12330_v13 }
 0x67e   :  { %10169 = vmatprep.subr.bf16.mxu0 %v12335_v14 }
 0x681   :  { %10170 = vmatpush1.bf16.msra.mxu0 %v12333_v1 }
 0x682   :  { %10171 = vmatprep.subr.bf16.mxu0 %v12338_v3 }
 0x685   :  { %10172 = vmatpush1.bf16.msra.mxu0 %v12336_v4 }
 0x686   :  { %10173 = vmatprep.subr.bf16.mxu0 %v12341_v7 }
 0x689   :  { %10174 = vmatpush1.bf16.msra.mxu0 %v12339_v9  ;;  %v12409_v9 = vld [vmem:[#allocation14 + $0x30] sm:$0xff]  }
 0x68a   :  { %10175 = vmatprep.subr.bf16.mxu0 %v12344_v47  ;;  %11736 = vmatpush3.bf16.msra.mxu1 %v12409_v9 }
 0x68b   :  { %11737 = vmatprep.subr.bf16.mxu1 %v12410_v50 }
 0x68d   :  { %10176 = vmatpush1.bf16.msra.mxu0 %v12342_v36 }
 0x68e   :  { %10177 = vmatprep.subr.bf16.mxu0 %v12347_v56  ;;  %11738 = vmatpush3.bf16.msra.mxu1 %v12411_v12 }
 0x691   :  { %10178 = vmatpush1.bf16.msra.mxu0 %v12345_v10 }
 0x692   :  { %10188 = vmatprep.subr.bf16.mxu0 %v12350_v29 }
 0x694   :  { %10180 = vmatmul.mubr.bf16.vlgmr.msra.gmra.mrb[20].mxu0 %v8349_v32 }
 0x695   :  { %10189 = vmatpush1.bf16.msra.mxu0 %v12348_v30 }
 0x696   :  { %10190 = vmatprep.subr.bf16.mxu0 %v12353_v62 }
 0x699   :  { %10191 = vmatpush1.bf16.msra.mxu0 %v12351_v28 }
 0x69a   :  { %10192 = vmatprep.subr.bf16.mxu0 %v12356_v33  ;;  %v11706_v33 = vld [vmem:[#allocation13 + $0x1] ss:$0 sm:$0xff] }
 0x69d   :  { %10193 = vmatpush1.bf16.msra.mxu0 %v12354_v25 }
 0x69e   :  { %10194 = vmatprep.subr.bf16.mxu0 %v12359_v38 }
 0x6a1   :  { %10195 = vmatpush1.bf16.msra.mxu0 %v12357_v40 }
 0x6a2   :  { %10196 = vmatprep.subr.bf16.mxu0 %v12362_v41 }
 0x6a5   :  { %10197 = vmatpush1.bf16.msra.mxu0 %v12360_v8 }
 0x6a6   :  { %10198 = vmatprep.subr.bf16.mxu0 %v12365_v44 }
 0x6a9   :  { %10199 = vmatpush1.bf16.msra.mxu0 %v12363_v45 }
 0x6aa   :  { %10200 = vmatprep.subr.bf16.mxu0 %v12368_v5 }
 0x6ad   :  { %10201 = vmatpush1.bf16.msra.mxu0 %v12366_v54 }
 0x6ae   :  { %10202 = vmatprep.subr.bf16.mxu0 %v12371_v48 }
 0x6b1   :  { %10203 = vmatpush1.bf16.msra.mxu0 %v12369_v51 }
 0x6b2   :  { %10204 = vmatprep.subr.bf16.mxu0 %v12374_v18 }
 0x6b5   :  { %10205 = vmatpush1.bf16.msra.mxu0 %v12372_v24 }
 0x6b6   :  { %10206 = vmatprep.subr.bf16.mxu0 %v12377_v52 }
 0x6b9   :  { %10207 = vmatpush1.bf16.msra.mxu0 %v12375_v57 }
 0x6ba   :  { %10208 = vmatprep.subr.bf16.mxu0 %v12380_v53 }
 0x6bd   :  { %10209 = vmatpush1.bf16.msra.mxu0 %v12378_v63 }
 0x6be   :  { %10210 = vmatprep.subr.bf16.mxu0 %v12383_v42 }
 0x6c1   :  { %10211 = vmatpush1.bf16.msra.mxu0 %v12381_v43 }
 0x6c2   :  { %10212 = vmatprep.subr.bf16.mxu0 %v12386_v46 }
 0x6c5   :  { %10213 = vmatpush1.bf16.msra.mxu0 %v12384_v55 }
 0x6c6   :  { %10214 = vmatprep.subr.bf16.mxu0 %v12389_v49 }
 0x6c9   :  { %10215 = vmatpush1.bf16.msra.mxu0 %v12387_v20 }
 0x6ca   :  { %10216 = vmatprep.subr.bf16.mxu0 %v12392_v16 }
 0x6cd   :  { %10217 = vmatpush1.bf16.msra.mxu0 %v12390_v59 }
 0x6ce   :  { %10218 = vmatprep.subr.bf16.mxu0 %v12395_v60 }
 0x6d1   :  { %10219 = vmatpush1.bf16.msra.mxu0 %v12393_v31 }
 0x6e6   :  { %v8111_v13 = vpop.f32.mrb[24].mxu1 }
 0x6e7   :  { %v8217_v14 = vmul.f32 %v8182_v15, %v8111_v13  ;;  %v8113_v17 = vpop.f32.mrb[25].mxu1 }
 0x6e8   :  { %v8218_v1 = vmul.f32 %v8186_v35, %v8113_v17  ;;  %v8115_v2 = vpop.f32.mrb[26].mxu1 }
 0x6e9   :  { %v8319_v3 = vadd.f32 %v8284_v34, %v8217_v14  ;;  %v8116_v39 = vpop.f32.mrb[27].mxu1 }
 0x6ea   :  { %v8320_v4 = vadd.f32 %v8288_v61, %v8218_v1 }
 0x6eb   :  { %v8335_v37 = vmax.f32 %v8319_v3, 0.0 }
 0x6ec   :  { %v8336_v6 = vmax.f32 %v8320_v4, 0.0 }
 0x6ed   :  { %v8351_v11 = vpack.c.bf16 %v8335_v37, %v8335_v37 }
 0x6ee   :  { %v8352_v7 = vpack.c.bf16 %v8336_v6, %v8336_v6 }
 0x6f0   :  { %10220 = vmatprep.mubr.bf16.mxu0 %v8352_v7 }
 0x6f1   :  { %10221 = vmatmul.mubr.bf16.vlgmr.msra.gmra.mrb[20].mxu0 %v8351_v11 }
 0x7c4   :  { %v10222_v47 = vpop.f32.mrb[20].mxu0 }
 0x7c5   :  { %v11875_v36 = vadd.f32 %v10222_v47, %v8614_v22  ;;  %v10224_v26 = vpop.f32.mrb[21].mxu0 }
 0x7c6   :  { %v11876_v56 = vadd.f32 %v10224_v26, %v8618_v23  ;;  %v10226_v10 = vpop.f32.mrb[22].mxu0 }
 0x7c7   :  { %v10229_v27 = vmax.f32 %v11875_v36, 0.0  ;;  %v10227_v29 = vpop.f32.mrb[23].mxu0 }
 0x7c8   :  { %v10230_v30 = vmax.f32 %v11876_v56, 0.0 }
 0x7c9   :  { %v10231_v62 = vpack.c.bf16 %v10229_v27, %v10229_v27 }
 0x7ca   :  { %v10232_v32 = vpack.c.bf16 %v10230_v30, %v10230_v30 }
 0x7cc   :  { %10398 = vmatprep.mubr.bf16.mxu1 %v10232_v32 }
 0x7cd   :  { %10399 = vmatmul.mubr.bf16.vlgmr.msra.gmra.mrb[28].mxu1 %v10231_v62 }
 0x8a0   :  { %v11739_v28 = vpop.f32.mrb[28].mxu1 }
 0x8a1   :  { %v11740_v25 = vpop.f32.mrb[29].mxu1 }
 0x8a2   :  { %v11741_v19 = vadd.f32 %v11740_v25, %v11739_v28  ;;  %v11742_v38 = vpop.f32.mrb[30].mxu1 }
 0x8a3   :  { %v11743_v21 = vpop.f32.mrb[31].mxu1 }
 0x8a4   :  { %v10401_v40 = vadd.f32 %v11741_v19, %v11706_v33 }
 0x8a6   :  { %10406 = vst [vmem:[#allocation16] sm:$0xff] %v10401_v40 }
 0x8a7   :  { %12601 = shalt.err (!%p12598_p12)
}
 0x8a8   :  { %s12602_s26 = scalar_lea.hbm %s13107_s8, 128 }
 0x8a9   :  { %p12603_p13 = scmp.ne.s32.totalorder %s13107_s8, %s12602_s26  ;;  %p12606_p0 = scmp.lt.u32.totalorder %s12602_s26, %s13107_s8 }
 0x8ab   :  { %p12608_p1 = pnand %p12606_p0, %p12603_p13 }
 0x8ad   :  { %12611 = shalt.err (!%p12608_p1)
}
 0x8ae   :  { %10416 = dma.vmem_to_hbm [thread:$0]  %s10414_s16, 128, %s13107_s8, [#allocation4]  }
 0x8af   :  { %12622 = dma.done.wait [#allocation4], 128  }
 0x8b0   :  { %12623 = vsyncadd [#allocation4], 4294967168 }
 0x8b1   :  { %10420 = vsyncpa [#allocation3], 1 }
 0x8b2   :  { %10421 = vsyncpa [#allocation6], 1 }
 0x8b3   :  { %10422 = vsyncpa [#allocation9], 1 }
 0x8b4   :  { %10423 = vsyncpa [#allocation12], 1 }
 0x8b5   :  { %10424 = vsyncpa [#allocation15], 1 }
 0x8b6   :  { %10425 = vsyncpa [#allocation4], 1 }

</bundles_post_ra>
